<compile_context>
chip_gen: v7x
topology: tpu7x:2x2x1
jax: 0.10.0
libtpu: 0.0.40
codegen_flags: <defaults>
</compile_context>

<pallas_src>
import numpy as np
import jax
import jax.numpy as jnp
from jax import lax
from jax.experimental import pallas as pl
from jax.experimental.pallas import tpu as pltpu

INF_MIN = -10000000000.0


def _round_up(x, m):
    return (x + m - 1) // m * m


# ----------------------------------------------------------------------------
# Kernel: one batch block per grid step; label loop fully unrolled in-kernel.
# ----------------------------------------------------------------------------
def decoder_kernel(h_ref, mask_ref, emb_ref,
                   Whe_ref, Ws_ref, Wg_ref, Wyy_ref,
                   be_ref, by_ref, byy_ref, br_ref, ve_ref,
                   preds_hbm, ybuf, ysem):
    f32 = jnp.float32
    Bb, T, _two_h = h_ref.shape
    L = emb_ref.shape[0]
    row0 = pl.multiple_of(pl.program_id(0) * Bb, Bb)

    # ---- step-invariant loads (hoisted out of the label loop) ----
    h = h_ref[...]                       # (Bb, T, 2H) compute dtype
    cdt = h.dtype
    h32 = h.astype(f32)                  # f32 copy for the VPU context multiply
    mask = mask_ref[...]                 # (Bb, T) f32
    Whe = Whe_ref[...]                   # (2H, H)
    Ws = Ws_ref[...]                     # (H, 6H)   [W_se | W_sy | W_sr]
    Wg = Wg_ref[...]                     # (2H, 5H)  [W_gy | W_gr]
    Wyy = Wyy_ref[...]                   # (H, Vp)   lane-padded
    b_e = be_ref[...]                    # (1, H)
    b_y = by_ref[...]                    # (1, H)    b_sy + b_gy
    b_yy = byy_ref[...]                  # (1, Vp)
    b_r = br_ref[...]                    # (1, 4H)   b_sr + b_gr
    v_e = ve_ref[...]                    # (1, H)
    H = Whe.shape[1]

    # hW = h @ W_he + b_e, computed in-kernel once per batch block (kills the
    # wrapper's HBM round trip of a precomputed hW).  Batched MXU matmul with
    # W_he broadcast across the batch block.
    WheB = jnp.broadcast_to(Whe[None, :, :], (Bb,) + Whe.shape)      # (Bb, 2H, H)
    hW = jnp.einsum('btd,bdh->bth', h, WheB,
                    preferred_element_type=f32) + b_e[None, :, :]    # (Bb, T, H)

    s = jnp.zeros((Bb, H), f32)
    c = jnp.zeros((Bb, H), f32)

    # Fully-unrolled label loop (L is a small compile-time constant).  The
    # unroll gives the LLO scheduler visibility across steps and keeps the
    # output-DMA double-buffer slots static.
    for t in range(L):
        # ---- all s-projections fused into a single matmul ----
        sP = jnp.dot(s.astype(cdt), Ws, preferred_element_type=f32)   # (Bb, 6H)
        sW_e = sP[:, 0 * H:1 * H]
        sW_y = sP[:, 1 * H:2 * H]
        sW_r = sP[:, 2 * H:6 * H]

        # ---- content-based attention (masked softmax), f32 elementwise ----
        feat = jnp.tanh(hW + sW_e[:, None, :])                        # (Bb, T, H)
        e = jnp.sum(feat * v_e[None, :, :], axis=-1)                  # (Bb, T)
        e = jnp.where(mask > 0.0, e, INF_MIN)
        e = e - jnp.max(e, axis=-1, keepdims=True)
        w = jnp.exp(e) * mask
        alpha = w / jnp.sum(w, axis=-1, keepdims=True)                # (Bb, T)

        # context vector on VPU multiply + XLU sublane reduce; an M=1 batched
        # MXU matmul is the worst MXU shape and the MXU is needed for W_yy.
        g = jnp.sum(alpha[:, :, None] * h32, axis=1)                  # (Bb, 2H)

        # ---- all g-projections fused into a single matmul ----
        gP = jnp.dot(g.astype(cdt), Wg, preferred_element_type=f32)   # (Bb, 5H)
        gW_y = gP[:, 0 * H:1 * H]
        gW_r = gP[:, 1 * H:5 * H]

        # ---- output projection (lane-dense padded vocab) ----
        y_pre = jnp.tanh(sW_y + gW_y + b_y)
        y = jnp.dot(y_pre.astype(cdt), Wyy,
                    preferred_element_type=f32) + b_yy                # (Bb, Vp)

        # ---- stream per-step logits to HBM via a 2-slot VMEM buffer ----
        slot = t % 2
        if t >= 2:   # wait for the DMA that last used this slot (step t - 2)
            pltpu.make_async_copy(ybuf.at[slot],
                                  preds_hbm.at[t - 2, pl.ds(row0, Bb)],
                                  ysem.at[slot]).wait()
        ybuf[slot] = y
        pltpu.make_async_copy(ybuf.at[slot],
                              preds_hbm.at[t, pl.ds(row0, Bb)],
                              ysem.at[slot]).start()

        # ---- recurrent state update (_func_lstm), f32 ----
        emb = emb_ref[t].astype(f32)                                  # (Bb, 4H)
        rec = emb + sW_r + gW_r + b_r
        i_g = jnp.tanh(rec[:, 0 * H:1 * H] * 0.5) * 0.5 + 0.5
        f_g = jnp.tanh(rec[:, 1 * H:2 * H] * 0.5) * 0.5 + 0.5
        cg = jnp.tanh(rec[:, 2 * H:3 * H])
        o_g = jnp.tanh(rec[:, 3 * H:4 * H] * 0.5) * 0.5 + 0.5
        c = f_g * c + i_g * cg
        s = o_g * jnp.tanh(c)

    # drain the outstanding output DMAs before the block finishes
    for t in range(max(0, L - 2), L):
        slot = t % 2
        pltpu.make_async_copy(ybuf.at[slot],
                              preds_hbm.at[t, pl.ds(row0, Bb)],
                              ysem.at[slot]).wait()


# ----------------------------------------------------------------------------
# Wrapper helpers
# ----------------------------------------------------------------------------
def build_attn_mask(Bp, T, seq_lens):
    # Mirrors the (quirky) torch loop:
    #   for b, seq_len in enumerate(seq_lens):
    #       if b < seq_len: attn_mask[b, seq_len:] = 0.0
    # Rows with b >= seq_len get NO masking (upstream quirk, preserved).
    # Requires concrete (host-side) seq_lens.
    mask = np.ones((Bp, T), np.float32)
    for b, sl in enumerate(seq_lens):
        if b < sl:
            mask[b, int(sl):] = 0.0
    return jnp.asarray(mask)


def _pick_batch_block(batch, sublane, max_block=128, min_blocks=2):
    """Largest batch block <= 128 rows while keeping >= min_blocks grid blocks
    when the batch allows it (so v7x's second TensorCore has a shard)."""
    bp = _round_up(batch, sublane)
    if bp <= sublane:
        return bp, bp
    bb = min(max_block, _round_up(pl.cdiv(bp, min_blocks), sublane))
    bp = _round_up(bp, bb)
    return bb, bp


def _pick_vmem_limit(resident_bytes):
    phys = 64 * 1024 * 1024
    try:
        phys = int(pltpu.get_tpu_info().vmem_capacity_bytes)
    except Exception:
        pass
    limit = min(max(int(1.5 * resident_bytes) + (16 << 20), 32 << 20),
                phys - (8 << 20))
    return max(limit, 16 << 20)


# ----------------------------------------------------------------------------
# Forward wrapper
# ----------------------------------------------------------------------------
def decoder_forward(h_batch, seq_lens, labels, params,
                    *, compute_dtype=jnp.bfloat16, time_major=False):
    B, T, D = h_batch.shape
    H = D // 2
    L = labels.shape[1]
    V = params["W_yy"].shape[1]
    p = params
    cdt = jnp.dtype(compute_dtype)
    itm = cdt.itemsize

    sublane = 16 if itm < 4 else 8
    Bb, Bp = _pick_batch_block(B, sublane)
    Vp = _round_up(V, 128)          # lane padding for dense output stores
    num_blocks = Bp // Bb

    # Batch padding (padded rows: h=0, mask=1 -> softmax well-defined; sliced off).
    h_pad = jnp.zeros((Bp, T, 2 * H), jnp.float32).at[:B].set(h_batch).astype(cdt)
    labels_pad = jnp.zeros((Bp, L), jnp.int32).at[:B].set(labels)
    mask = build_attn_mask(Bp, T, seq_lens)

    # Embedding rows gathered once (no per-step one-hot matmul; E_yr never in VMEM).
    emb_all = jnp.transpose(p["E_yr"][labels_pad], (1, 0, 2)).astype(cdt)   # (L,Bp,4H)

    # Fused weight stacks / pre-summed biases / lane-padded output weights.
    W_he = p["W_he"].astype(cdt)
    W_s_all = jnp.concatenate([p["W_se"], p["W_sy"], p["W_sr"]], axis=1).astype(cdt)
    W_g_all = jnp.concatenate([p["W_gy"], p["W_gr"]], axis=1).astype(cdt)
    W_yy = jnp.zeros((H, Vp), jnp.float32).at[:, :V].set(p["W_yy"]).astype(cdt)
    b_e = p["b_e"].astype(jnp.float32)
    b_y = (p["b_sy"] + p["b_gy"]).astype(jnp.float32)
    b_r = (p["b_sr"] + p["b_gr"]).astype(jnp.float32)
    b_yy = jnp.zeros((1, Vp), jnp.float32).at[:, :V].set(p["b_yy"])
    v_e = p["v_e"].astype(jnp.float32)

    # Rough per-block VMEM footprint for the vmem_limit request.
    resident = (2 * Bb * T * 2 * H * itm                    # h (double buffered)
                + 2 * Bb * T * 4                            # mask
                + 2 * L * Bb * 4 * H * itm                  # embeddings
                + 2 * (18 * H * H + H * Vp) * itm           # weight stacks
                + 2 * (6 * H + 2 * Vp) * 4                  # biases
                + 2 * Bb * Vp * 4                           # output staging buffer
                + Bb * T * H * 4 + Bb * T * 2 * H * 4       # hW + h32 locals
                + Bb * 2 * H * H * itm                      # broadcast W_he
                + 4 * Bb * T * H * 4)                       # temporaries headroom
    vmem_limit = _pick_vmem_limit(resident)

    def run(single_buffer_consts):
        def const_spec(shape):
            nd = len(shape)
            idx = lambda i, _n=nd: (0,) * _n
            if single_buffer_consts:
                # constant index_map -> never refetched; one buffer is enough
                return pl.BlockSpec(shape, idx, pipeline_mode=pl.Buffered(1))
            return pl.BlockSpec(shape, idx)

        grid_spec = pltpu.PrefetchScalarGridSpec(
            num_scalar_prefetch=0,
            grid=(num_blocks,),
            in_specs=[
                pl.BlockSpec((Bb, T, 2 * H), lambda i: (i, 0, 0)),   # h
                pl.BlockSpec((Bb, T), lambda i: (i, 0)),             # mask
                pl.BlockSpec((L, Bb, 4 * H), lambda i: (0, i, 0)),   # emb rows
                const_spec(W_he.shape),
                const_spec(W_s_all.shape),
                const_spec(W_g_all.shape),
                const_spec(W_yy.shape),
                const_spec(b_e.shape),
                const_spec(b_y.shape),
                const_spec(b_yy.shape),
                const_spec(b_r.shape),
                const_spec(v_e.shape),
            ],
            # logits live in HBM; the kernel streams per-step slabs via DMA
            out_specs=pl.BlockSpec(memory_space=pl.ANY),
            scratch_shapes=[
                pltpu.VMEM((2, Bb, Vp), jnp.float32),   # 2-slot output staging
                pltpu.SemaphoreType.DMA((2,)),
            ],
        )
        return pl.pallas_call(
            decoder_kernel,
            out_shape=jax.ShapeDtypeStruct((L, Bp, Vp), jnp.float32),
            grid_spec=grid_spec,
            compiler_params=pltpu.CompilerParams(
                dimension_semantics=("parallel",),      # batch blocks independent
                vmem_limit_bytes=vmem_limit),
        )(h_pad, mask, emb_all, W_he, W_s_all, W_g_all, W_yy,
          b_e, b_y, b_yy, b_r, v_e)

    try:
        preds_lbv = run(single_buffer_consts=True)
    except Exception:
        # fallback for builds without BlockSpec.pipeline_mode / Buffered(1)
        preds_lbv = run(single_buffer_consts=False)

    if time_major:
        # (L, B, V): the kernel's natural store layout; avoids a full HBM transpose.
        return preds_lbv[:, :B, :V]
    # Match torch's (batch, labels_len, vocab) layout.
    return jnp.transpose(preds_lbv, (1, 0, 2))[:B, :, :V]


# ----------------------------------------------------------------------------
# Pure-JAX reference (mirrors the PyTorch forward loop, f32 HIGHEST precision)
# ----------------------------------------------------------------------------
def reference_forward(h, seq_lens, labels, p):
    HIGH = lax.Precision.HIGHEST
    B, T, D = h.shape
    H = D // 2
    L = labels.shape[1]
    mask = build_attn_mask(B, T, seq_lens)
    s = jnp.zeros((B, H), jnp.float32)
    c = jnp.zeros((B, H), jnp.float32)
    preds = []
    half = 0.5
    for step in range(L):
        hW = jnp.einsum('btd,dh->bth', h, p["W_he"], precision=HIGH)
        sW = jnp.dot(s, p["W_se"], precision=HIGH)
        feat = jnp.tanh(hW + sW[:, None, :] + p["b_e"][None])
        e = jnp.sum(feat * p["v_e"][None], axis=-1)
        e = jnp.where(mask > 0.0, e, INF_MIN)
        e = e - jnp.max(e, axis=-1, keepdims=True)
        w = jnp.exp(e) * mask
        alpha = w / jnp.sum(w, axis=-1, keepdims=True)
        g = jnp.sum(alpha[:, :, None] * h, axis=1)
        y = jnp.dot(jnp.tanh(jnp.dot(g, p["W_gy"], precision=HIGH) + p["b_gy"]
                             + jnp.dot(s, p["W_sy"], precision=HIGH) + p["b_sy"]),
                    p["W_yy"], precision=HIGH) + p["b_yy"]
        emb = p["E_yr"][labels[:, step]]
        rec = (emb + jnp.dot(s, p["W_sr"], precision=HIGH) + p["b_sr"]
               + jnp.dot(g, p["W_gr"], precision=HIGH) + p["b_gr"])
        i_g = jnp.tanh(rec[:, :H] * half) * half + half
        f_g = jnp.tanh(rec[:, H:2 * H] * half) * half + half
        cg = jnp.tanh(rec[:, 2 * H:3 * H])
        o_g = jnp.tanh(rec[:, 3 * H:] * half) * half + half
        c = f_g * c + i_g * cg
        s = o_g * jnp.tanh(c)
        preds.append(y)
    return jnp.stack(preds, axis=1)


# ----------------------------------------------------------------------------
if __name__ == "__main__":
    B, T, H, V, L = 2, 8, 32, 16, 6   # batch, frames, hidden, vocab, labels_len
    key = jax.random.PRNGKey(0)
    ks = jax.random.split(key, 24)
    sc = 0.1

    params = {
        # attention
        "W_he": sc * jax.random.normal(ks[0], (2 * H, H), jnp.float32),
        "W_se": sc * jax.random.normal(ks[1], (H, H), jnp.float32),
        "b_e":  sc * jax.random.normal(ks[2], (1, H), jnp.float32),
        "v_e":  sc * jax.random.normal(ks[3], (1, H), jnp.float32),
        # L_sy, L_gy, L_yy
        "W_sy": sc * jax.random.normal(ks[4], (H, H), jnp.float32),
        "b_sy": sc * jax.random.normal(ks[5], (1, H), jnp.float32),
        "W_gy": sc * jax.random.normal(ks[6], (2 * H, H), jnp.float32),
        "b_gy": sc * jax.random.normal(ks[7], (1, H), jnp.float32),
        "W_yy": sc * jax.random.normal(ks[8], (H, V), jnp.float32),
        "b_yy": sc * jax.random.normal(ks[9], (1, V), jnp.float32),
        # L_yr (embedding), L_sr, L_gr
        "E_yr": sc * jax.random.normal(ks[10], (V, 4 * H), jnp.float32),
        "W_sr": sc * jax.random.normal(ks[11], (H, 4 * H), jnp.float32),
        "b_sr": sc * jax.random.normal(ks[12], (1, 4 * H), jnp.float32),
        "W_gr": sc * jax.random.normal(ks[13], (2 * H, 4 * H), jnp.float32),
        "b_gr": sc * jax.random.normal(ks[14], (1, 4 * H), jnp.float32),
    }

    h_batch = jax.random.normal(ks[20], (B, T, 2 * H), jnp.float32)
    labels = jax.random.randint(ks[21], (B, L), 0, V, dtype=jnp.int32)
    seq_lens = [6, 5]

    ref = reference_forward(h_batch, seq_lens, labels, params)

    # f32 compute path: validates the kernel math tightly against the reference.
    preds_f32 = jax.block_until_ready(
        decoder_forward(h_batch, seq_lens, labels, params,
                        compute_dtype=jnp.float32))
    np.testing.assert_allclose(np.asarray(preds_f32), np.asarray(ref),
                               rtol=1e-3, atol=1e-3)

    # Default bf16 matmul-operand path (perf recommendation for v6e/v7x MXU).
    preds_bf16 = jax.block_until_ready(
        decoder_forward(h_batch, seq_lens, labels, params))
    np.testing.assert_allclose(np.asarray(preds_bf16), np.asarray(ref),
                               rtol=4e-2, atol=4e-2)

    print("KERNEL_OK")
</pallas_src>

<mosaic_0001>
module attributes {stable_mosaic.version = 11 : i64} {
  func.func @decoder_kernel(%arg0: i32, %arg1: memref<8x8x64xf32, #tpu.memory_space<vmem>>, %arg2: memref<8x8xf32, #tpu.memory_space<vmem>>, %arg3: memref<6x8x128xf32, #tpu.memory_space<vmem>>, %arg4: memref<64x32xf32, #tpu.memory_space<vmem>>, %arg5: memref<32x192xf32, #tpu.memory_space<vmem>>, %arg6: memref<64x160xf32, #tpu.memory_space<vmem>>, %arg7: memref<32x128xf32, #tpu.memory_space<vmem>>, %arg8: memref<1x32xf32, #tpu.memory_space<vmem>>, %arg9: memref<1x32xf32, #tpu.memory_space<vmem>>, %arg10: memref<1x128xf32, #tpu.memory_space<vmem>>, %arg11: memref<1x128xf32, #tpu.memory_space<vmem>>, %arg12: memref<1x32xf32, #tpu.memory_space<vmem>>, %arg13: memref<6x8x128xf32, #tpu.memory_space<any>>, %arg14: memref<2x8x128xf32, #tpu.memory_space<vmem>>, %arg15: memref<2x!tpu.dma_semaphore, #tpu.memory_space<semaphore_mem>>) attributes {dimension_semantics = [#tpu.dimension_semantics<parallel>], iteration_bounds = array<i64: 1>, scalar_prefetch = 0 : i64, scratch_operands = 2 : i64, tpu.core_type = #tpu.core_type<tc>, window_params = [{transform_indices = @transform_0, window_bounds = array<i64: 8, 8, 64>}, {transform_indices = @transform_1, window_bounds = array<i64: 8, 8>}, {transform_indices = @transform_2, window_bounds = array<i64: 6, 8, 128>}, {pipeline_mode = #tpu.pipeline_mode<synchronous>, transform_indices = @transform_3, window_bounds = array<i64: 64, 32>}, {pipeline_mode = #tpu.pipeline_mode<synchronous>, transform_indices = @transform_4, window_bounds = array<i64: 32, 192>}, {pipeline_mode = #tpu.pipeline_mode<synchronous>, transform_indices = @transform_5, window_bounds = array<i64: 64, 160>}, {pipeline_mode = #tpu.pipeline_mode<synchronous>, transform_indices = @transform_6, window_bounds = array<i64: 32, 128>}, {pipeline_mode = #tpu.pipeline_mode<synchronous>, transform_indices = @transform_7, window_bounds = array<i64: 1, 32>}, {pipeline_mode = #tpu.pipeline_mode<synchronous>, transform_indices = @transform_8, window_bounds = array<i64: 1, 32>}, {pipeline_mode = #tpu.pipeline_mode<synchronous>, transform_indices = @transform_9, window_bounds = array<i64: 1, 128>}, {pipeline_mode = #tpu.pipeline_mode<synchronous>, transform_indices = @transform_10, window_bounds = array<i64: 1, 128>}, {pipeline_mode = #tpu.pipeline_mode<synchronous>, transform_indices = @transform_11, window_bounds = array<i64: 1, 32>}, {}]} {
    %c8_i32 = arith.constant 8 : i32
    %0 = arith.muli %arg0, %c8_i32 : i32
    %1 = tpu.assume_multiple %0, 8 : i32
    %c0 = arith.constant 0 : index
    %c0_0 = arith.constant 0 : index
    %c0_1 = arith.constant 0 : index
    %2 = vector.load %arg1[%c0, %c0_0, %c0_1] : memref<8x8x64xf32, #tpu.memory_space<vmem>>, vector<8x8x64xf32>
    %c0_2 = arith.constant 0 : index
    %c0_3 = arith.constant 0 : index
    %3 = vector.load %arg2[%c0_2, %c0_3] : memref<8x8xf32, #tpu.memory_space<vmem>>, vector<8x8xf32>
    %c0_4 = arith.constant 0 : index
    %c0_5 = arith.constant 0 : index
    %4 = vector.load %arg4[%c0_4, %c0_5] : memref<64x32xf32, #tpu.memory_space<vmem>>, vector<64x32xf32>
    %c0_6 = arith.constant 0 : index
    %c0_7 = arith.constant 0 : index
    %5 = vector.load %arg5[%c0_6, %c0_7] : memref<32x192xf32, #tpu.memory_space<vmem>>, vector<32x192xf32>
    %c0_8 = arith.constant 0 : index
    %c0_9 = arith.constant 0 : index
    %6 = vector.load %arg6[%c0_8, %c0_9] : memref<64x160xf32, #tpu.memory_space<vmem>>, vector<64x160xf32>
    %c0_10 = arith.constant 0 : index
    %c0_11 = arith.constant 0 : index
    %7 = vector.load %arg7[%c0_10, %c0_11] : memref<32x128xf32, #tpu.memory_space<vmem>>, vector<32x128xf32>
    %c0_12 = arith.constant 0 : index
    %c0_13 = arith.constant 0 : index
    %8 = vector.load %arg8[%c0_12, %c0_13] : memref<1x32xf32, #tpu.memory_space<vmem>>, vector<1x32xf32>
    %c0_14 = arith.constant 0 : index
    %c0_15 = arith.constant 0 : index
    %9 = vector.load %arg9[%c0_14, %c0_15] : memref<1x32xf32, #tpu.memory_space<vmem>>, vector<1x32xf32>
    %c0_16 = arith.constant 0 : index
    %c0_17 = arith.constant 0 : index
    %10 = vector.load %arg10[%c0_16, %c0_17] : memref<1x128xf32, #tpu.memory_space<vmem>>, vector<1x128xf32>
    %c0_18 = arith.constant 0 : index
    %c0_19 = arith.constant 0 : index
    %11 = vector.load %arg11[%c0_18, %c0_19] : memref<1x128xf32, #tpu.memory_space<vmem>>, vector<1x128xf32>
    %c0_20 = arith.constant 0 : index
    %c0_21 = arith.constant 0 : index
    %12 = vector.load %arg12[%c0_20, %c0_21] : memref<1x32xf32, #tpu.memory_space<vmem>>, vector<1x32xf32>
    %13 = vector.shape_cast %4 : vector<64x32xf32> to vector<1x64x32xf32>
    %14 = vector.shape_cast %13 : vector<1x64x32xf32> to vector<1x64x32xf32>
    %15 = vector.broadcast %14 : vector<1x64x32xf32> to vector<8x64x32xf32>
    "tpu.trace_start"() <{level = 10 : i32, message = "btd,bdh->bth"}> : () -> ()
    %cst = arith.constant dense<0.000000e+00> : vector<8x8x32xf32>
    %16 = tpu.matmul %2, %15, %cst {dimension_numbers = #tpu.dot_dimension_numbers<[2], [1], [1], [2], [0, 0, 0, 1, 1, 2], [0], [0]>} : vector<8x8x64xf32>, vector<8x64x32xf32>, vector<8x8x32xf32> -> vector<8x8x32xf32>
    "tpu.trace_stop"() : () -> ()
    %17 = vector.shape_cast %8 : vector<1x32xf32> to vector<1x1x32xf32>
    %18 = vector.broadcast %17 : vector<1x1x32xf32> to vector<8x8x32xf32>
    %19 = arith.addf %16, %18 : vector<8x8x32xf32>
    %cst_22 = arith.constant 0.000000e+00 : f32
    %20 = vector.broadcast %cst_22 : f32 to vector<8x32xf32>
    %cst_23 = arith.constant 0.000000e+00 : f32
    %21 = vector.broadcast %cst_23 : f32 to vector<8x32xf32>
    %cst_24 = arith.constant dense<0.000000e+00> : vector<8x192xf32>
    %22 = tpu.matmul %20, %5, %cst_24 {dimension_numbers = #tpu.dot_dimension_numbers<[1], [0], [0], [1], [0, 0, 1, 1], [], []>} : vector<8x32xf32>, vector<32x192xf32>, vector<8x192xf32> -> vector<8x192xf32>
    %23 = vector.extract_strided_slice %22 {offsets = [0, 0], sizes = [8, 32], strides = [1, 1]} : vector<8x192xf32> to vector<8x32xf32>
    %24 = vector.extract_strided_slice %22 {offsets = [0, 32], sizes = [8, 32], strides = [1, 1]} : vector<8x192xf32> to vector<8x32xf32>
    %25 = vector.extract_strided_slice %22 {offsets = [0, 64], sizes = [8, 128], strides = [1, 1]} : vector<8x192xf32> to vector<8x128xf32>
    %26 = vector.shape_cast %23 : vector<8x32xf32> to vector<8x1x32xf32>
    %27 = vector.broadcast %26 : vector<8x1x32xf32> to vector<8x8x32xf32>
    %28 = arith.addf %19, %27 : vector<8x8x32xf32>
    %29 = math.tanh %28 : vector<8x8x32xf32>
    %30 = vector.shape_cast %12 : vector<1x32xf32> to vector<1x1x32xf32>
    %31 = vector.broadcast %30 : vector<1x1x32xf32> to vector<8x8x32xf32>
    %32 = arith.mulf %29, %31 : vector<8x8x32xf32>
    %cst_25 = arith.constant dense<0.000000e+00> : vector<8x8xf32>
    %33 = vector.multi_reduction <add>, %32, %cst_25 [2] : vector<8x8x32xf32> to vector<8x8xf32>
    %cst_26 = arith.constant 0.000000e+00 : f32
    %34 = vector.broadcast %cst_26 : f32 to vector<8x8xf32>
    %35 = arith.cmpf ogt, %3, %34 : vector<8x8xf32>
    %cst_27 = arith.constant -1.000000e+10 : f32
    %36 = vector.broadcast %cst_27 : f32 to vector<8x8xf32>
    %37 = arith.select %35, %33, %36 : vector<8x8xi1>, vector<8x8xf32>
    %cst_28 = arith.constant dense<0xFF800000> : vector<8xf32>
    %38 = vector.multi_reduction <maximumf>, %37, %cst_28 [1] : vector<8x8xf32> to vector<8xf32>
    %39 = vector.shape_cast %38 : vector<8xf32> to vector<8x1xf32>
    %40 = vector.broadcast %39 : vector<8x1xf32> to vector<8x8xf32>
    %41 = arith.subf %37, %40 : vector<8x8xf32>
    %42 = math.exp %41 : vector<8x8xf32>
    %43 = arith.mulf %42, %3 : vector<8x8xf32>
    %cst_29 = arith.constant dense<0.000000e+00> : vector<8xf32>
    %44 = vector.multi_reduction <add>, %43, %cst_29 [1] : vector<8x8xf32> to vector<8xf32>
    %45 = vector.shape_cast %44 : vector<8xf32> to vector<8x1xf32>
    %46 = vector.broadcast %45 : vector<8x1xf32> to vector<8x8xf32>
    %47 = arith.divf %43, %46 : vector<8x8xf32>
    %48 = vector.shape_cast %47 : vector<8x8xf32> to vector<8x8x1xf32>
    %49 = vector.broadcast %48 : vector<8x8x1xf32> to vector<8x8x64xf32>
    %50 = arith.mulf %49, %2 : vector<8x8x64xf32>
    %cst_30 = arith.constant dense<0.000000e+00> : vector<8x64xf32>
    %51 = vector.multi_reduction <add>, %50, %cst_30 [1] : vector<8x8x64xf32> to vector<8x64xf32>
    %cst_31 = arith.constant dense<0.000000e+00> : vector<8x160xf32>
    %52 = tpu.matmul %51, %6, %cst_31 {dimension_numbers = #tpu.dot_dimension_numbers<[1], [0], [0], [1], [0, 0, 1, 1], [], []>} : vector<8x64xf32>, vector<64x160xf32>, vector<8x160xf32> -> vector<8x160xf32>
    %53 = vector.extract_strided_slice %52 {offsets = [0, 0], sizes = [8, 32], strides = [1, 1]} : vector<8x160xf32> to vector<8x32xf32>
    %54 = vector.extract_strided_slice %52 {offsets = [0, 32], sizes = [8, 128], strides = [1, 1]} : vector<8x160xf32> to vector<8x128xf32>
    %55 = arith.addf %24, %53 : vector<8x32xf32>
    %56 = vector.broadcast %9 : vector<1x32xf32> to vector<8x32xf32>
    %57 = arith.addf %55, %56 : vector<8x32xf32>
    %58 = math.tanh %57 : vector<8x32xf32>
    %cst_32 = arith.constant dense<0.000000e+00> : vector<8x128xf32>
    %59 = tpu.matmul %58, %7, %cst_32 {dimension_numbers = #tpu.dot_dimension_numbers<[1], [0], [0], [1], [0, 0, 1, 1], [], []>} : vector<8x32xf32>, vector<32x128xf32>, vector<8x128xf32> -> vector<8x128xf32>
    %60 = vector.broadcast %10 : vector<1x128xf32> to vector<8x128xf32>
    %61 = arith.addf %59, %60 : vector<8x128xf32>
    %c0_33 = arith.constant 0 : index
    %c0_34 = arith.constant 0 : index
    %c0_35 = arith.constant 0 : index
    %62 = vector.load %arg14[%c0_33, %c0_34, %c0_35] : memref<2x8x128xf32, #tpu.memory_space<vmem>>, vector<1x8x128xf32>
    %63 = vector.shape_cast %62 : vector<1x8x128xf32> to vector<8x128xf32>
    %64 = vector.shape_cast %61 : vector<8x128xf32> to vector<1x8x128xf32>
    tpu.vector_store %arg14[%c0_33, %c0_34, %c0_35], %64 {strides = array<i32>} : memref<2x8x128xf32, #tpu.memory_space<vmem>>, vector<1x8x128xf32>,
    %c0_i32 = arith.constant 0 : i32
    %c0_i32_36 = arith.constant 0 : i32
    %c0_i32_37 = arith.constant 0 : i32
    %c0_i32_38 = arith.constant 0 : i32
    %c0_i32_39 = arith.constant 0 : i32
    %65 = tpu.memref_slice %arg14[%c0_i32, %c0_i32_38, %c0_i32_39] : memref<2x8x128xf32, #tpu.memory_space<vmem>> -> memref<1x8x128xf32, #tpu.memory_space<vmem>>
    %66 = tpu.memref_squeeze %65 : memref<1x8x128xf32, #tpu.memory_space<vmem>> -> memref<8x128xf32, #tpu.memory_space<vmem>>
    %c0_i32_40 = arith.constant 0 : i32
    %67 = tpu.memref_slice %arg13[%c0_i32_36, %1, %c0_i32_40] : memref<6x8x128xf32, #tpu.memory_space<any>> -> memref<1x8x128xf32, #tpu.memory_space<any>>
    %68 = tpu.memref_squeeze %67 : memref<1x8x128xf32, #tpu.memory_space<any>> -> memref<8x128xf32, #tpu.memory_space<any>>
    %69 = tpu.memref_slice %arg15[%c0_i32_37] : memref<2x!tpu.dma_semaphore, #tpu.memory_space<semaphore_mem>> -> memref<1x!tpu.dma_semaphore, #tpu.memory_space<semaphore_mem>>
    %70 = tpu.memref_squeeze %69 : memref<1x!tpu.dma_semaphore, #tpu.memory_space<semaphore_mem>> -> memref<!tpu.dma_semaphore, #tpu.memory_space<semaphore_mem>>
    tpu.enqueue_dma source(%66 : memref<8x128xf32, #tpu.memory_space<vmem>>) target(%68 : memref<8x128xf32, #tpu.memory_space<any>>) target_semaphore(%70 : memref<!tpu.dma_semaphore, #tpu.memory_space<semaphore_mem>>)
    %c0_41 = arith.constant 0 : index
    %c0_42 = arith.constant 0 : index
    %c0_43 = arith.constant 0 : index
    %71 = vector.load %arg3[%c0_41, %c0_42, %c0_43] : memref<6x8x128xf32, #tpu.memory_space<vmem>>, vector<1x8x128xf32>
    %72 = vector.shape_cast %71 : vector<1x8x128xf32> to vector<8x128xf32>
    %73 = arith.addf %72, %25 : vector<8x128xf32>
    %74 = arith.addf %73, %54 : vector<8x128xf32>
    %75 = vector.broadcast %11 : vector<1x128xf32> to vector<8x128xf32>
    %76 = arith.addf %74, %75 : vector<8x128xf32>
    %77 = vector.extract_strided_slice %76 {offsets = [0, 0], sizes = [8, 32], strides = [1, 1]} : vector<8x128xf32> to vector<8x32xf32>
    %cst_44 = arith.constant 5.000000e-01 : f32
    %78 = vector.broadcast %cst_44 : f32 to vector<8x32xf32>
    %79 = arith.mulf %77, %78 : vector<8x32xf32>
    %80 = math.tanh %79 : vector<8x32xf32>
    %cst_45 = arith.constant 5.000000e-01 : f32
    %81 = vector.broadcast %cst_45 : f32 to vector<8x32xf32>
    %82 = arith.mulf %80, %81 : vector<8x32xf32>
    %cst_46 = arith.constant 5.000000e-01 : f32
    %83 = vector.broadcast %cst_46 : f32 to vector<8x32xf32>
    %84 = arith.addf %82, %83 : vector<8x32xf32>
    %85 = vector.extract_strided_slice %76 {offsets = [0, 32], sizes = [8, 32], strides = [1, 1]} : vector<8x128xf32> to vector<8x32xf32>
    %cst_47 = arith.constant 5.000000e-01 : f32
    %86 = vector.broadcast %cst_47 : f32 to vector<8x32xf32>
    %87 = arith.mulf %85, %86 : vector<8x32xf32>
    %88 = math.tanh %87 : vector<8x32xf32>
    %cst_48 = arith.constant 5.000000e-01 : f32
    %89 = vector.broadcast %cst_48 : f32 to vector<8x32xf32>
    %90 = arith.mulf %88, %89 : vector<8x32xf32>
    %cst_49 = arith.constant 5.000000e-01 : f32
    %91 = vector.broadcast %cst_49 : f32 to vector<8x32xf32>
    %92 = arith.addf %90, %91 : vector<8x32xf32>
    %93 = vector.extract_strided_slice %76 {offsets = [0, 64], sizes = [8, 32], strides = [1, 1]} : vector<8x128xf32> to vector<8x32xf32>
    %94 = math.tanh %93 : vector<8x32xf32>
    %95 = vector.extract_strided_slice %76 {offsets = [0, 96], sizes = [8, 32], strides = [1, 1]} : vector<8x128xf32> to vector<8x32xf32>
    %cst_50 = arith.constant 5.000000e-01 : f32
    %96 = vector.broadcast %cst_50 : f32 to vector<8x32xf32>
    %97 = arith.mulf %95, %96 : vector<8x32xf32>
    %98 = math.tanh %97 : vector<8x32xf32>
    %cst_51 = arith.constant 5.000000e-01 : f32
    %99 = vector.broadcast %cst_51 : f32 to vector<8x32xf32>
    %100 = arith.mulf %98, %99 : vector<8x32xf32>
    %cst_52 = arith.constant 5.000000e-01 : f32
    %101 = vector.broadcast %cst_52 : f32 to vector<8x32xf32>
    %102 = arith.addf %100, %101 : vector<8x32xf32>
    %103 = arith.mulf %92, %21 : vector<8x32xf32>
    %104 = arith.mulf %84, %94 : vector<8x32xf32>
    %105 = arith.addf %103, %104 : vector<8x32xf32>
    %106 = math.tanh %105 : vector<8x32xf32>
    %107 = arith.mulf %102, %106 : vector<8x32xf32>
    %cst_53 = arith.constant dense<0.000000e+00> : vector<8x192xf32>
    %108 = tpu.matmul %107, %5, %cst_53 {dimension_numbers = #tpu.dot_dimension_numbers<[1], [0], [0], [1], [0, 0, 1, 1], [], []>} : vector<8x32xf32>, vector<32x192xf32>, vector<8x192xf32> -> vector<8x192xf32>
    %109 = vector.extract_strided_slice %108 {offsets = [0, 0], sizes = [8, 32], strides = [1, 1]} : vector<8x192xf32> to vector<8x32xf32>
    %110 = vector.extract_strided_slice %108 {offsets = [0, 32], sizes = [8, 32], strides = [1, 1]} : vector<8x192xf32> to vector<8x32xf32>
    %111 = vector.extract_strided_slice %108 {offsets = [0, 64], sizes = [8, 128], strides = [1, 1]} : vector<8x192xf32> to vector<8x128xf32>
    %112 = vector.shape_cast %109 : vector<8x32xf32> to vector<8x1x32xf32>
    %113 = vector.broadcast %112 : vector<8x1x32xf32> to vector<8x8x32xf32>
    %114 = arith.addf %19, %113 : vector<8x8x32xf32>
    %115 = math.tanh %114 : vector<8x8x32xf32>
    %116 = vector.shape_cast %12 : vector<1x32xf32> to vector<1x1x32xf32>
    %117 = vector.broadcast %116 : vector<1x1x32xf32> to vector<8x8x32xf32>
    %118 = arith.mulf %115, %117 : vector<8x8x32xf32>
    %cst_54 = arith.constant dense<0.000000e+00> : vector<8x8xf32>
    %119 = vector.multi_reduction <add>, %118, %cst_54 [2] : vector<8x8x32xf32> to vector<8x8xf32>
    %cst_55 = arith.constant 0.000000e+00 : f32
    %120 = vector.broadcast %cst_55 : f32 to vector<8x8xf32>
    %121 = arith.cmpf ogt, %3, %120 : vector<8x8xf32>
    %cst_56 = arith.constant -1.000000e+10 : f32
    %122 = vector.broadcast %cst_56 : f32 to vector<8x8xf32>
    %123 = arith.select %121, %119, %122 : vector<8x8xi1>, vector<8x8xf32>
    %cst_57 = arith.constant dense<0xFF800000> : vector<8xf32>
    %124 = vector.multi_reduction <maximumf>, %123, %cst_57 [1] : vector<8x8xf32> to vector<8xf32>
    %125 = vector.shape_cast %124 : vector<8xf32> to vector<8x1xf32>
    %126 = vector.broadcast %125 : vector<8x1xf32> to vector<8x8xf32>
    %127 = arith.subf %123, %126 : vector<8x8xf32>
    %128 = math.exp %127 : vector<8x8xf32>
    %129 = arith.mulf %128, %3 : vector<8x8xf32>
    %cst_58 = arith.constant dense<0.000000e+00> : vector<8xf32>
    %130 = vector.multi_reduction <add>, %129, %cst_58 [1] : vector<8x8xf32> to vector<8xf32>
    %131 = vector.shape_cast %130 : vector<8xf32> to vector<8x1xf32>
    %132 = vector.broadcast %131 : vector<8x1xf32> to vector<8x8xf32>
    %133 = arith.divf %129, %132 : vector<8x8xf32>
    %134 = vector.shape_cast %133 : vector<8x8xf32> to vector<8x8x1xf32>
    %135 = vector.broadcast %134 : vector<8x8x1xf32> to vector<8x8x64xf32>
    %136 = arith.mulf %135, %2 : vector<8x8x64xf32>
    %cst_59 = arith.constant dense<0.000000e+00> : vector<8x64xf32>
    %137 = vector.multi_reduction <add>, %136, %cst_59 [1] : vector<8x8x64xf32> to vector<8x64xf32>
    %cst_60 = arith.constant dense<0.000000e+00> : vector<8x160xf32>
    %138 = tpu.matmul %137, %6, %cst_60 {dimension_numbers = #tpu.dot_dimension_numbers<[1], [0], [0], [1], [0, 0, 1, 1], [], []>} : vector<8x64xf32>, vector<64x160xf32>, vector<8x160xf32> -> vector<8x160xf32>
    %139 = vector.extract_strided_slice %138 {offsets = [0, 0], sizes = [8, 32], strides = [1, 1]} : vector<8x160xf32> to vector<8x32xf32>
    %140 = vector.extract_strided_slice %138 {offsets = [0, 32], sizes = [8, 128], strides = [1, 1]} : vector<8x160xf32> to vector<8x128xf32>
    %141 = arith.addf %110, %139 : vector<8x32xf32>
    %142 = vector.broadcast %9 : vector<1x32xf32> to vector<8x32xf32>
    %143 = arith.addf %141, %142 : vector<8x32xf32>
    %144 = math.tanh %143 : vector<8x32xf32>
    %cst_61 = arith.constant dense<0.000000e+00> : vector<8x128xf32>
    %145 = tpu.matmul %144, %7, %cst_61 {dimension_numbers = #tpu.dot_dimension_numbers<[1], [0], [0], [1], [0, 0, 1, 1], [], []>} : vector<8x32xf32>, vector<32x128xf32>, vector<8x128xf32> -> vector<8x128xf32>
    %146 = vector.broadcast %10 : vector<1x128xf32> to vector<8x128xf32>
    %147 = arith.addf %145, %146 : vector<8x128xf32>
    %c1 = arith.constant 1 : index
    %c0_62 = arith.constant 0 : index
    %c0_63 = arith.constant 0 : index
    %148 = vector.load %arg14[%c1, %c0_62, %c0_63] : memref<2x8x128xf32, #tpu.memory_space<vmem>>, vector<1x8x128xf32>
    %149 = vector.shape_cast %148 : vector<1x8x128xf32> to vector<8x128xf32>
    %150 = vector.shape_cast %147 : vector<8x128xf32> to vector<1x8x128xf32>
    tpu.vector_store %arg14[%c1, %c0_62, %c0_63], %150 {strides = array<i32>} : memref<2x8x128xf32, #tpu.memory_space<vmem>>, vector<1x8x128xf32>,
    %c1_i32 = arith.constant 1 : i32
    %c1_i32_64 = arith.constant 1 : i32
    %c1_i32_65 = arith.constant 1 : i32
    %c0_i32_66 = arith.constant 0 : i32
    %c0_i32_67 = arith.constant 0 : i32
    %151 = tpu.memref_slice %arg14[%c1_i32, %c0_i32_66, %c0_i32_67] : memref<2x8x128xf32, #tpu.memory_space<vmem>> -> memref<1x8x128xf32, #tpu.memory_space<vmem>>
    %152 = tpu.memref_squeeze %151 : memref<1x8x128xf32, #tpu.memory_space<vmem>> -> memref<8x128xf32, #tpu.memory_space<vmem>>
    %c0_i32_68 = arith.constant 0 : i32
    %153 = tpu.memref_slice %arg13[%c1_i32_64, %1, %c0_i32_68] : memref<6x8x128xf32, #tpu.memory_space<any>> -> memref<1x8x128xf32, #tpu.memory_space<any>>
    %154 = tpu.memref_squeeze %153 : memref<1x8x128xf32, #tpu.memory_space<any>> -> memref<8x128xf32, #tpu.memory_space<any>>
    %155 = tpu.memref_slice %arg15[%c1_i32_65] : memref<2x!tpu.dma_semaphore, #tpu.memory_space<semaphore_mem>> -> memref<1x!tpu.dma_semaphore, #tpu.memory_space<semaphore_mem>>
    %156 = tpu.memref_squeeze %155 : memref<1x!tpu.dma_semaphore, #tpu.memory_space<semaphore_mem>> -> memref<!tpu.dma_semaphore, #tpu.memory_space<semaphore_mem>>
    tpu.enqueue_dma source(%152 : memref<8x128xf32, #tpu.memory_space<vmem>>) target(%154 : memref<8x128xf32, #tpu.memory_space<any>>) target_semaphore(%156 : memref<!tpu.dma_semaphore, #tpu.memory_space<semaphore_mem>>)
    %c1_69 = arith.constant 1 : index
    %c0_70 = arith.constant 0 : index
    %c0_71 = arith.constant 0 : index
    %157 = vector.load %arg3[%c1_69, %c0_70, %c0_71] : memref<6x8x128xf32, #tpu.memory_space<vmem>>, vector<1x8x128xf32>
    %158 = vector.shape_cast %157 : vector<1x8x128xf32> to vector<8x128xf32>
    %159 = arith.addf %158, %111 : vector<8x128xf32>
    %160 = arith.addf %159, %140 : vector<8x128xf32>
    %161 = vector.broadcast %11 : vector<1x128xf32> to vector<8x128xf32>
    %162 = arith.addf %160, %161 : vector<8x128xf32>
    %163 = vector.extract_strided_slice %162 {offsets = [0, 0], sizes = [8, 32], strides = [1, 1]} : vector<8x128xf32> to vector<8x32xf32>
    %cst_72 = arith.constant 5.000000e-01 : f32
    %164 = vector.broadcast %cst_72 : f32 to vector<8x32xf32>
    %165 = arith.mulf %163, %164 : vector<8x32xf32>
    %166 = math.tanh %165 : vector<8x32xf32>
    %cst_73 = arith.constant 5.000000e-01 : f32
    %167 = vector.broadcast %cst_73 : f32 to vector<8x32xf32>
    %168 = arith.mulf %166, %167 : vector<8x32xf32>
    %cst_74 = arith.constant 5.000000e-01 : f32
    %169 = vector.broadcast %cst_74 : f32 to vector<8x32xf32>
    %170 = arith.addf %168, %169 : vector<8x32xf32>
    %171 = vector.extract_strided_slice %162 {offsets = [0, 32], sizes = [8, 32], strides = [1, 1]} : vector<8x128xf32> to vector<8x32xf32>
    %cst_75 = arith.constant 5.000000e-01 : f32
    %172 = vector.broadcast %cst_75 : f32 to vector<8x32xf32>
    %173 = arith.mulf %171, %172 : vector<8x32xf32>
    %174 = math.tanh %173 : vector<8x32xf32>
    %cst_76 = arith.constant 5.000000e-01 : f32
    %175 = vector.broadcast %cst_76 : f32 to vector<8x32xf32>
    %176 = arith.mulf %174, %175 : vector<8x32xf32>
    %cst_77 = arith.constant 5.000000e-01 : f32
    %177 = vector.broadcast %cst_77 : f32 to vector<8x32xf32>
    %178 = arith.addf %176, %177 : vector<8x32xf32>
    %179 = vector.extract_strided_slice %162 {offsets = [0, 64], sizes = [8, 32], strides = [1, 1]} : vector<8x128xf32> to vector<8x32xf32>
    %180 = math.tanh %179 : vector<8x32xf32>
    %181 = vector.extract_strided_slice %162 {offsets = [0, 96], sizes = [8, 32], strides = [1, 1]} : vector<8x128xf32> to vector<8x32xf32>
    %cst_78 = arith.constant 5.000000e-01 : f32
    %182 = vector.broadcast %cst_78 : f32 to vector<8x32xf32>
    %183 = arith.mulf %181, %182 : vector<8x32xf32>
    %184 = math.tanh %183 : vector<8x32xf32>
    %cst_79 = arith.constant 5.000000e-01 : f32
    %185 = vector.broadcast %cst_79 : f32 to vector<8x32xf32>
    %186 = arith.mulf %184, %185 : vector<8x32xf32>
    %cst_80 = arith.constant 5.000000e-01 : f32
    %187 = vector.broadcast %cst_80 : f32 to vector<8x32xf32>
    %188 = arith.addf %186, %187 : vector<8x32xf32>
    %189 = arith.mulf %178, %105 : vector<8x32xf32>
    %190 = arith.mulf %170, %180 : vector<8x32xf32>
    %191 = arith.addf %189, %190 : vector<8x32xf32>
    %192 = math.tanh %191 : vector<8x32xf32>
    %193 = arith.mulf %188, %192 : vector<8x32xf32>
    %cst_81 = arith.constant dense<0.000000e+00> : vector<8x192xf32>
    %194 = tpu.matmul %193, %5, %cst_81 {dimension_numbers = #tpu.dot_dimension_numbers<[1], [0], [0], [1], [0, 0, 1, 1], [], []>} : vector<8x32xf32>, vector<32x192xf32>, vector<8x192xf32> -> vector<8x192xf32>
    %195 = vector.extract_strided_slice %194 {offsets = [0, 0], sizes = [8, 32], strides = [1, 1]} : vector<8x192xf32> to vector<8x32xf32>
    %196 = vector.extract_strided_slice %194 {offsets = [0, 32], sizes = [8, 32], strides = [1, 1]} : vector<8x192xf32> to vector<8x32xf32>
    %197 = vector.extract_strided_slice %194 {offsets = [0, 64], sizes = [8, 128], strides = [1, 1]} : vector<8x192xf32> to vector<8x128xf32>
    %198 = vector.shape_cast %195 : vector<8x32xf32> to vector<8x1x32xf32>
    %199 = vector.broadcast %198 : vector<8x1x32xf32> to vector<8x8x32xf32>
    %200 = arith.addf %19, %199 : vector<8x8x32xf32>
    %201 = math.tanh %200 : vector<8x8x32xf32>
    %202 = vector.shape_cast %12 : vector<1x32xf32> to vector<1x1x32xf32>
    %203 = vector.broadcast %202 : vector<1x1x32xf32> to vector<8x8x32xf32>
    %204 = arith.mulf %201, %203 : vector<8x8x32xf32>
    %cst_82 = arith.constant dense<0.000000e+00> : vector<8x8xf32>
    %205 = vector.multi_reduction <add>, %204, %cst_82 [2] : vector<8x8x32xf32> to vector<8x8xf32>
    %cst_83 = arith.constant 0.000000e+00 : f32
    %206 = vector.broadcast %cst_83 : f32 to vector<8x8xf32>
    %207 = arith.cmpf ogt, %3, %206 : vector<8x8xf32>
    %cst_84 = arith.constant -1.000000e+10 : f32
    %208 = vector.broadcast %cst_84 : f32 to vector<8x8xf32>
    %209 = arith.select %207, %205, %208 : vector<8x8xi1>, vector<8x8xf32>
    %cst_85 = arith.constant dense<0xFF800000> : vector<8xf32>
    %210 = vector.multi_reduction <maximumf>, %209, %cst_85 [1] : vector<8x8xf32> to vector<8xf32>
    %211 = vector.shape_cast %210 : vector<8xf32> to vector<8x1xf32>
    %212 = vector.broadcast %211 : vector<8x1xf32> to vector<8x8xf32>
    %213 = arith.subf %209, %212 : vector<8x8xf32>
    %214 = math.exp %213 : vector<8x8xf32>
    %215 = arith.mulf %214, %3 : vector<8x8xf32>
    %cst_86 = arith.constant dense<0.000000e+00> : vector<8xf32>
    %216 = vector.multi_reduction <add>, %215, %cst_86 [1] : vector<8x8xf32> to vector<8xf32>
    %217 = vector.shape_cast %216 : vector<8xf32> to vector<8x1xf32>
    %218 = vector.broadcast %217 : vector<8x1xf32> to vector<8x8xf32>
    %219 = arith.divf %215, %218 : vector<8x8xf32>
    %220 = vector.shape_cast %219 : vector<8x8xf32> to vector<8x8x1xf32>
    %221 = vector.broadcast %220 : vector<8x8x1xf32> to vector<8x8x64xf32>
    %222 = arith.mulf %221, %2 : vector<8x8x64xf32>
    %cst_87 = arith.constant dense<0.000000e+00> : vector<8x64xf32>
    %223 = vector.multi_reduction <add>, %222, %cst_87 [1] : vector<8x8x64xf32> to vector<8x64xf32>
    %cst_88 = arith.constant dense<0.000000e+00> : vector<8x160xf32>
    %224 = tpu.matmul %223, %6, %cst_88 {dimension_numbers = #tpu.dot_dimension_numbers<[1], [0], [0], [1], [0, 0, 1, 1], [], []>} : vector<8x64xf32>, vector<64x160xf32>, vector<8x160xf32> -> vector<8x160xf32>
    %225 = vector.extract_strided_slice %224 {offsets = [0, 0], sizes = [8, 32], strides = [1, 1]} : vector<8x160xf32> to vector<8x32xf32>
    %226 = vector.extract_strided_slice %224 {offsets = [0, 32], sizes = [8, 128], strides = [1, 1]} : vector<8x160xf32> to vector<8x128xf32>
    %227 = arith.addf %196, %225 : vector<8x32xf32>
    %228 = vector.broadcast %9 : vector<1x32xf32> to vector<8x32xf32>
    %229 = arith.addf %227, %228 : vector<8x32xf32>
    %230 = math.tanh %229 : vector<8x32xf32>
    %cst_89 = arith.constant dense<0.000000e+00> : vector<8x128xf32>
    %231 = tpu.matmul %230, %7, %cst_89 {dimension_numbers = #tpu.dot_dimension_numbers<[1], [0], [0], [1], [0, 0, 1, 1], [], []>} : vector<8x32xf32>, vector<32x128xf32>, vector<8x128xf32> -> vector<8x128xf32>
    %232 = vector.broadcast %10 : vector<1x128xf32> to vector<8x128xf32>
    %233 = arith.addf %231, %232 : vector<8x128xf32>
    %c0_i32_90 = arith.constant 0 : i32
    %c0_i32_91 = arith.constant 0 : i32
    %c0_i32_92 = arith.constant 0 : i32
    %c0_i32_93 = arith.constant 0 : i32
    %c0_i32_94 = arith.constant 0 : i32
    %234 = tpu.memref_slice %arg14[%c0_i32_90, %c0_i32_93, %c0_i32_94] : memref<2x8x128xf32, #tpu.memory_space<vmem>> -> memref<1x8x128xf32, #tpu.memory_space<vmem>>
    %235 = tpu.memref_squeeze %234 : memref<1x8x128xf32, #tpu.memory_space<vmem>> -> memref<8x128xf32, #tpu.memory_space<vmem>>
    %c0_i32_95 = arith.constant 0 : i32
    %236 = tpu.memref_slice %arg13[%c0_i32_91, %1, %c0_i32_95] : memref<6x8x128xf32, #tpu.memory_space<any>> -> memref<1x8x128xf32, #tpu.memory_space<any>>
    %237 = tpu.memref_squeeze %236 : memref<1x8x128xf32, #tpu.memory_space<any>> -> memref<8x128xf32, #tpu.memory_space<any>>
    %238 = tpu.memref_slice %arg15[%c0_i32_92] : memref<2x!tpu.dma_semaphore, #tpu.memory_space<semaphore_mem>> -> memref<1x!tpu.dma_semaphore, #tpu.memory_space<semaphore_mem>>
    %239 = tpu.memref_squeeze %238 : memref<1x!tpu.dma_semaphore, #tpu.memory_space<semaphore_mem>> -> memref<!tpu.dma_semaphore, #tpu.memory_space<semaphore_mem>>
    tpu.wait_dma2 semaphore(%239 : memref<!tpu.dma_semaphore, #tpu.memory_space<semaphore_mem>>) src(%235 : memref<8x128xf32, #tpu.memory_space<vmem>>) dst(%237 : memref<8x128xf32, #tpu.memory_space<any>>)
    %c0_96 = arith.constant 0 : index
    %c0_97 = arith.constant 0 : index
    %c0_98 = arith.constant 0 : index
    %240 = vector.load %arg14[%c0_96, %c0_97, %c0_98] : memref<2x8x128xf32, #tpu.memory_space<vmem>>, vector<1x8x128xf32>
    %241 = vector.shape_cast %240 : vector<1x8x128xf32> to vector<8x128xf32>
    %242 = vector.shape_cast %233 : vector<8x128xf32> to vector<1x8x128xf32>
    tpu.vector_store %arg14[%c0_96, %c0_97, %c0_98], %242 {strides = array<i32>} : memref<2x8x128xf32, #tpu.memory_space<vmem>>, vector<1x8x128xf32>,
    %c0_i32_99 = arith.constant 0 : i32
    %c2_i32 = arith.constant 2 : i32
    %c0_i32_100 = arith.constant 0 : i32
    %c0_i32_101 = arith.constant 0 : i32
    %c0_i32_102 = arith.constant 0 : i32
    %243 = tpu.memref_slice %arg14[%c0_i32_99, %c0_i32_101, %c0_i32_102] : memref<2x8x128xf32, #tpu.memory_space<vmem>> -> memref<1x8x128xf32, #tpu.memory_space<vmem>>
    %244 = tpu.memref_squeeze %243 : memref<1x8x128xf32, #tpu.memory_space<vmem>> -> memref<8x128xf32, #tpu.memory_space<vmem>>
    %c0_i32_103 = arith.constant 0 : i32
    %245 = tpu.memref_slice %arg13[%c2_i32, %1, %c0_i32_103] : memref<6x8x128xf32, #tpu.memory_space<any>> -> memref<1x8x128xf32, #tpu.memory_space<any>>
    %246 = tpu.memref_squeeze %245 : memref<1x8x128xf32, #tpu.memory_space<any>> -> memref<8x128xf32, #tpu.memory_space<any>>
    %247 = tpu.memref_slice %arg15[%c0_i32_100] : memref<2x!tpu.dma_semaphore, #tpu.memory_space<semaphore_mem>> -> memref<1x!tpu.dma_semaphore, #tpu.memory_space<semaphore_mem>>
    %248 = tpu.memref_squeeze %247 : memref<1x!tpu.dma_semaphore, #tpu.memory_space<semaphore_mem>> -> memref<!tpu.dma_semaphore, #tpu.memory_space<semaphore_mem>>
    tpu.enqueue_dma source(%244 : memref<8x128xf32, #tpu.memory_space<vmem>>) target(%246 : memref<8x128xf32, #tpu.memory_space<any>>) target_semaphore(%248 : memref<!tpu.dma_semaphore, #tpu.memory_space<semaphore_mem>>)
    %c2 = arith.constant 2 : index
    %c0_104 = arith.constant 0 : index
    %c0_105 = arith.constant 0 : index
    %249 = vector.load %arg3[%c2, %c0_104, %c0_105] : memref<6x8x128xf32, #tpu.memory_space<vmem>>, vector<1x8x128xf32>
    %250 = vector.shape_cast %249 : vector<1x8x128xf32> to vector<8x128xf32>
    %251 = arith.addf %250, %197 : vector<8x128xf32>
    %252 = arith.addf %251, %226 : vector<8x128xf32>
    %253 = vector.broadcast %11 : vector<1x128xf32> to vector<8x128xf32>
    %254 = arith.addf %252, %253 : vector<8x128xf32>
    %255 = vector.extract_strided_slice %254 {offsets = [0, 0], sizes = [8, 32], strides = [1, 1]} : vector<8x128xf32> to vector<8x32xf32>
    %cst_106 = arith.constant 5.000000e-01 : f32
    %256 = vector.broadcast %cst_106 : f32 to vector<8x32xf32>
    %257 = arith.mulf %255, %256 : vector<8x32xf32>
    %258 = math.tanh %257 : vector<8x32xf32>
    %cst_107 = arith.constant 5.000000e-01 : f32
    %259 = vector.broadcast %cst_107 : f32 to vector<8x32xf32>
    %260 = arith.mulf %258, %259 : vector<8x32xf32>
    %cst_108 = arith.constant 5.000000e-01 : f32
    %261 = vector.broadcast %cst_108 : f32 to vector<8x32xf32>
    %262 = arith.addf %260, %261 : vector<8x32xf32>
    %263 = vector.extract_strided_slice %254 {offsets = [0, 32], sizes = [8, 32], strides = [1, 1]} : vector<8x128xf32> to vector<8x32xf32>
    %cst_109 = arith.constant 5.000000e-01 : f32
    %264 = vector.broadcast %cst_109 : f32 to vector<8x32xf32>
    %265 = arith.mulf %263, %264 : vector<8x32xf32>
    %266 = math.tanh %265 : vector<8x32xf32>
    %cst_110 = arith.constant 5.000000e-01 : f32
    %267 = vector.broadcast %cst_110 : f32 to vector<8x32xf32>
    %268 = arith.mulf %266, %267 : vector<8x32xf32>
    %cst_111 = arith.constant 5.000000e-01 : f32
    %269 = vector.broadcast %cst_111 : f32 to vector<8x32xf32>
    %270 = arith.addf %268, %269 : vector<8x32xf32>
    %271 = vector.extract_strided_slice %254 {offsets = [0, 64], sizes = [8, 32], strides = [1, 1]} : vector<8x128xf32> to vector<8x32xf32>
    %272 = math.tanh %271 : vector<8x32xf32>
    %273 = vector.extract_strided_slice %254 {offsets = [0, 96], sizes = [8, 32], strides = [1, 1]} : vector<8x128xf32> to vector<8x32xf32>
    %cst_112 = arith.constant 5.000000e-01 : f32
    %274 = vector.broadcast %cst_112 : f32 to vector<8x32xf32>
    %275 = arith.mulf %273, %274 : vector<8x32xf32>
    %276 = math.tanh %275 : vector<8x32xf32>
    %cst_113 = arith.constant 5.000000e-01 : f32
    %277 = vector.broadcast %cst_113 : f32 to vector<8x32xf32>
    %278 = arith.mulf %276, %277 : vector<8x32xf32>
    %cst_114 = arith.constant 5.000000e-01 : f32
    %279 = vector.broadcast %cst_114 : f32 to vector<8x32xf32>
    %280 = arith.addf %278, %279 : vector<8x32xf32>
    %281 = arith.mulf %270, %191 : vector<8x32xf32>
    %282 = arith.mulf %262, %272 : vector<8x32xf32>
    %283 = arith.addf %281, %282 : vector<8x32xf32>
    %284 = math.tanh %283 : vector<8x32xf32>
    %285 = arith.mulf %280, %284 : vector<8x32xf32>
    %cst_115 = arith.constant dense<0.000000e+00> : vector<8x192xf32>
    %286 = tpu.matmul %285, %5, %cst_115 {dimension_numbers = #tpu.dot_dimension_numbers<[1], [0], [0], [1], [0, 0, 1, 1], [], []>} : vector<8x32xf32>, vector<32x192xf32>, vector<8x192xf32> -> vector<8x192xf32>
    %287 = vector.extract_strided_slice %286 {offsets = [0, 0], sizes = [8, 32], strides = [1, 1]} : vector<8x192xf32> to vector<8x32xf32>
    %288 = vector.extract_strided_slice %286 {offsets = [0, 32], sizes = [8, 32], strides = [1, 1]} : vector<8x192xf32> to vector<8x32xf32>
    %289 = vector.extract_strided_slice %286 {offsets = [0, 64], sizes = [8, 128], strides = [1, 1]} : vector<8x192xf32> to vector<8x128xf32>
    %290 = vector.shape_cast %287 : vector<8x32xf32> to vector<8x1x32xf32>
    %291 = vector.broadcast %290 : vector<8x1x32xf32> to vector<8x8x32xf32>
    %292 = arith.addf %19, %291 : vector<8x8x32xf32>
    %293 = math.tanh %292 : vector<8x8x32xf32>
    %294 = vector.shape_cast %12 : vector<1x32xf32> to vector<1x1x32xf32>
    %295 = vector.broadcast %294 : vector<1x1x32xf32> to vector<8x8x32xf32>
    %296 = arith.mulf %293, %295 : vector<8x8x32xf32>
    %cst_116 = arith.constant dense<0.000000e+00> : vector<8x8xf32>
    %297 = vector.multi_reduction <add>, %296, %cst_116 [2] : vector<8x8x32xf32> to vector<8x8xf32>
    %cst_117 = arith.constant 0.000000e+00 : f32
    %298 = vector.broadcast %cst_117 : f32 to vector<8x8xf32>
    %299 = arith.cmpf ogt, %3, %298 : vector<8x8xf32>
    %cst_118 = arith.constant -1.000000e+10 : f32
    %300 = vector.broadcast %cst_118 : f32 to vector<8x8xf32>
    %301 = arith.select %299, %297, %300 : vector<8x8xi1>, vector<8x8xf32>
    %cst_119 = arith.constant dense<0xFF800000> : vector<8xf32>
    %302 = vector.multi_reduction <maximumf>, %301, %cst_119 [1] : vector<8x8xf32> to vector<8xf32>
    %303 = vector.shape_cast %302 : vector<8xf32> to vector<8x1xf32>
    %304 = vector.broadcast %303 : vector<8x1xf32> to vector<8x8xf32>
    %305 = arith.subf %301, %304 : vector<8x8xf32>
    %306 = math.exp %305 : vector<8x8xf32>
    %307 = arith.mulf %306, %3 : vector<8x8xf32>
    %cst_120 = arith.constant dense<0.000000e+00> : vector<8xf32>
    %308 = vector.multi_reduction <add>, %307, %cst_120 [1] : vector<8x8xf32> to vector<8xf32>
    %309 = vector.shape_cast %308 : vector<8xf32> to vector<8x1xf32>
    %310 = vector.broadcast %309 : vector<8x1xf32> to vector<8x8xf32>
    %311 = arith.divf %307, %310 : vector<8x8xf32>
    %312 = vector.shape_cast %311 : vector<8x8xf32> to vector<8x8x1xf32>
    %313 = vector.broadcast %312 : vector<8x8x1xf32> to vector<8x8x64xf32>
    %314 = arith.mulf %313, %2 : vector<8x8x64xf32>
    %cst_121 = arith.constant dense<0.000000e+00> : vector<8x64xf32>
    %315 = vector.multi_reduction <add>, %314, %cst_121 [1] : vector<8x8x64xf32> to vector<8x64xf32>
    %cst_122 = arith.constant dense<0.000000e+00> : vector<8x160xf32>
    %316 = tpu.matmul %315, %6, %cst_122 {dimension_numbers = #tpu.dot_dimension_numbers<[1], [0], [0], [1], [0, 0, 1, 1], [], []>} : vector<8x64xf32>, vector<64x160xf32>, vector<8x160xf32> -> vector<8x160xf32>
    %317 = vector.extract_strided_slice %316 {offsets = [0, 0], sizes = [8, 32], strides = [1, 1]} : vector<8x160xf32> to vector<8x32xf32>
    %318 = vector.extract_strided_slice %316 {offsets = [0, 32], sizes = [8, 128], strides = [1, 1]} : vector<8x160xf32> to vector<8x128xf32>
    %319 = arith.addf %288, %317 : vector<8x32xf32>
    %320 = vector.broadcast %9 : vector<1x32xf32> to vector<8x32xf32>
    %321 = arith.addf %319, %320 : vector<8x32xf32>
    %322 = math.tanh %321 : vector<8x32xf32>
    %cst_123 = arith.constant dense<0.000000e+00> : vector<8x128xf32>
    %323 = tpu.matmul %322, %7, %cst_123 {dimension_numbers = #tpu.dot_dimension_numbers<[1], [0], [0], [1], [0, 0, 1, 1], [], []>} : vector<8x32xf32>, vector<32x128xf32>, vector<8x128xf32> -> vector<8x128xf32>
    %324 = vector.broadcast %10 : vector<1x128xf32> to vector<8x128xf32>
    %325 = arith.addf %323, %324 : vector<8x128xf32>
    %c1_i32_124 = arith.constant 1 : i32
    %c1_i32_125 = arith.constant 1 : i32
    %c1_i32_126 = arith.constant 1 : i32
    %c0_i32_127 = arith.constant 0 : i32
    %c0_i32_128 = arith.constant 0 : i32
    %326 = tpu.memref_slice %arg14[%c1_i32_124, %c0_i32_127, %c0_i32_128] : memref<2x8x128xf32, #tpu.memory_space<vmem>> -> memref<1x8x128xf32, #tpu.memory_space<vmem>>
    %327 = tpu.memref_squeeze %326 : memref<1x8x128xf32, #tpu.memory_space<vmem>> -> memref<8x128xf32, #tpu.memory_space<vmem>>
    %c0_i32_129 = arith.constant 0 : i32
    %328 = tpu.memref_slice %arg13[%c1_i32_125, %1, %c0_i32_129] : memref<6x8x128xf32, #tpu.memory_space<any>> -> memref<1x8x128xf32, #tpu.memory_space<any>>
    %329 = tpu.memref_squeeze %328 : memref<1x8x128xf32, #tpu.memory_space<any>> -> memref<8x128xf32, #tpu.memory_space<any>>
    %330 = tpu.memref_slice %arg15[%c1_i32_126] : memref<2x!tpu.dma_semaphore, #tpu.memory_space<semaphore_mem>> -> memref<1x!tpu.dma_semaphore, #tpu.memory_space<semaphore_mem>>
    %331 = tpu.memref_squeeze %330 : memref<1x!tpu.dma_semaphore, #tpu.memory_space<semaphore_mem>> -> memref<!tpu.dma_semaphore, #tpu.memory_space<semaphore_mem>>
    tpu.wait_dma2 semaphore(%331 : memref<!tpu.dma_semaphore, #tpu.memory_space<semaphore_mem>>) src(%327 : memref<8x128xf32, #tpu.memory_space<vmem>>) dst(%329 : memref<8x128xf32, #tpu.memory_space<any>>)
    %c1_130 = arith.constant 1 : index
    %c0_131 = arith.constant 0 : index
    %c0_132 = arith.constant 0 : index
    %332 = vector.load %arg14[%c1_130, %c0_131, %c0_132] : memref<2x8x128xf32, #tpu.memory_space<vmem>>, vector<1x8x128xf32>
    %333 = vector.shape_cast %332 : vector<1x8x128xf32> to vector<8x128xf32>
    %334 = vector.shape_cast %325 : vector<8x128xf32> to vector<1x8x128xf32>
    tpu.vector_store %arg14[%c1_130, %c0_131, %c0_132], %334 {strides = array<i32>} : memref<2x8x128xf32, #tpu.memory_space<vmem>>, vector<1x8x128xf32>,
    %c1_i32_133 = arith.constant 1 : i32
    %c3_i32 = arith.constant 3 : i32
    %c1_i32_134 = arith.constant 1 : i32
    %c0_i32_135 = arith.constant 0 : i32
    %c0_i32_136 = arith.constant 0 : i32
    %335 = tpu.memref_slice %arg14[%c1_i32_133, %c0_i32_135, %c0_i32_136] : memref<2x8x128xf32, #tpu.memory_space<vmem>> -> memref<1x8x128xf32, #tpu.memory_space<vmem>>
    %336 = tpu.memref_squeeze %335 : memref<1x8x128xf32, #tpu.memory_space<vmem>> -> memref<8x128xf32, #tpu.memory_space<vmem>>
    %c0_i32_137 = arith.constant 0 : i32
    %337 = tpu.memref_slice %arg13[%c3_i32, %1, %c0_i32_137] : memref<6x8x128xf32, #tpu.memory_space<any>> -> memref<1x8x128xf32, #tpu.memory_space<any>>
    %338 = tpu.memref_squeeze %337 : memref<1x8x128xf32, #tpu.memory_space<any>> -> memref<8x128xf32, #tpu.memory_space<any>>
    %339 = tpu.memref_slice %arg15[%c1_i32_134] : memref<2x!tpu.dma_semaphore, #tpu.memory_space<semaphore_mem>> -> memref<1x!tpu.dma_semaphore, #tpu.memory_space<semaphore_mem>>
    %340 = tpu.memref_squeeze %339 : memref<1x!tpu.dma_semaphore, #tpu.memory_space<semaphore_mem>> -> memref<!tpu.dma_semaphore, #tpu.memory_space<semaphore_mem>>
    tpu.enqueue_dma source(%336 : memref<8x128xf32, #tpu.memory_space<vmem>>) target(%338 : memref<8x128xf32, #tpu.memory_space<any>>) target_semaphore(%340 : memref<!tpu.dma_semaphore, #tpu.memory_space<semaphore_mem>>)
    %c3 = arith.constant 3 : index
    %c0_138 = arith.constant 0 : index
    %c0_139 = arith.constant 0 : index
    %341 = vector.load %arg3[%c3, %c0_138, %c0_139] : memref<6x8x128xf32, #tpu.memory_space<vmem>>, vector<1x8x128xf32>
    %342 = vector.shape_cast %341 : vector<1x8x128xf32> to vector<8x128xf32>
    %343 = arith.addf %342, %289 : vector<8x128xf32>
    %344 = arith.addf %343, %318 : vector<8x128xf32>
    %345 = vector.broadcast %11 : vector<1x128xf32> to vector<8x128xf32>
    %346 = arith.addf %344, %345 : vector<8x128xf32>
    %347 = vector.extract_strided_slice %346 {offsets = [0, 0], sizes = [8, 32], strides = [1, 1]} : vector<8x128xf32> to vector<8x32xf32>
    %cst_140 = arith.constant 5.000000e-01 : f32
    %348 = vector.broadcast %cst_140 : f32 to vector<8x32xf32>
    %349 = arith.mulf %347, %348 : vector<8x32xf32>
    %350 = math.tanh %349 : vector<8x32xf32>
    %cst_141 = arith.constant 5.000000e-01 : f32
    %351 = vector.broadcast %cst_141 : f32 to vector<8x32xf32>
    %352 = arith.mulf %350, %351 : vector<8x32xf32>
    %cst_142 = arith.constant 5.000000e-01 : f32
    %353 = vector.broadcast %cst_142 : f32 to vector<8x32xf32>
    %354 = arith.addf %352, %353 : vector<8x32xf32>
    %355 = vector.extract_strided_slice %346 {offsets = [0, 32], sizes = [8, 32], strides = [1, 1]} : vector<8x128xf32> to vector<8x32xf32>
    %cst_143 = arith.constant 5.000000e-01 : f32
    %356 = vector.broadcast %cst_143 : f32 to vector<8x32xf32>
    %357 = arith.mulf %355, %356 : vector<8x32xf32>
    %358 = math.tanh %357 : vector<8x32xf32>
    %cst_144 = arith.constant 5.000000e-01 : f32
    %359 = vector.broadcast %cst_144 : f32 to vector<8x32xf32>
    %360 = arith.mulf %358, %359 : vector<8x32xf32>
    %cst_145 = arith.constant 5.000000e-01 : f32
    %361 = vector.broadcast %cst_145 : f32 to vector<8x32xf32>
    %362 = arith.addf %360, %361 : vector<8x32xf32>
    %363 = vector.extract_strided_slice %346 {offsets = [0, 64], sizes = [8, 32], strides = [1, 1]} : vector<8x128xf32> to vector<8x32xf32>
    %364 = math.tanh %363 : vector<8x32xf32>
    %365 = vector.extract_strided_slice %346 {offsets = [0, 96], sizes = [8, 32], strides = [1, 1]} : vector<8x128xf32> to vector<8x32xf32>
    %cst_146 = arith.constant 5.000000e-01 : f32
    %366 = vector.broadcast %cst_146 : f32 to vector<8x32xf32>
    %367 = arith.mulf %365, %366 : vector<8x32xf32>
    %368 = math.tanh %367 : vector<8x32xf32>
    %cst_147 = arith.constant 5.000000e-01 : f32
    %369 = vector.broadcast %cst_147 : f32 to vector<8x32xf32>
    %370 = arith.mulf %368, %369 : vector<8x32xf32>
    %cst_148 = arith.constant 5.000000e-01 : f32
    %371 = vector.broadcast %cst_148 : f32 to vector<8x32xf32>
    %372 = arith.addf %370, %371 : vector<8x32xf32>
    %373 = arith.mulf %362, %283 : vector<8x32xf32>
    %374 = arith.mulf %354, %364 : vector<8x32xf32>
    %375 = arith.addf %373, %374 : vector<8x32xf32>
    %376 = math.tanh %375 : vector<8x32xf32>
    %377 = arith.mulf %372, %376 : vector<8x32xf32>
    %cst_149 = arith.constant dense<0.000000e+00> : vector<8x192xf32>
    %378 = tpu.matmul %377, %5, %cst_149 {dimension_numbers = #tpu.dot_dimension_numbers<[1], [0], [0], [1], [0, 0, 1, 1], [], []>} : vector<8x32xf32>, vector<32x192xf32>, vector<8x192xf32> -> vector<8x192xf32>
    %379 = vector.extract_strided_slice %378 {offsets = [0, 0], sizes = [8, 32], strides = [1, 1]} : vector<8x192xf32> to vector<8x32xf32>
    %380 = vector.extract_strided_slice %378 {offsets = [0, 32], sizes = [8, 32], strides = [1, 1]} : vector<8x192xf32> to vector<8x32xf32>
    %381 = vector.extract_strided_slice %378 {offsets = [0, 64], sizes = [8, 128], strides = [1, 1]} : vector<8x192xf32> to vector<8x128xf32>
    %382 = vector.shape_cast %379 : vector<8x32xf32> to vector<8x1x32xf32>
    %383 = vector.broadcast %382 : vector<8x1x32xf32> to vector<8x8x32xf32>
    %384 = arith.addf %19, %383 : vector<8x8x32xf32>
    %385 = math.tanh %384 : vector<8x8x32xf32>
    %386 = vector.shape_cast %12 : vector<1x32xf32> to vector<1x1x32xf32>
    %387 = vector.broadcast %386 : vector<1x1x32xf32> to vector<8x8x32xf32>
    %388 = arith.mulf %385, %387 : vector<8x8x32xf32>
    %cst_150 = arith.constant dense<0.000000e+00> : vector<8x8xf32>
    %389 = vector.multi_reduction <add>, %388, %cst_150 [2] : vector<8x8x32xf32> to vector<8x8xf32>
    %cst_151 = arith.constant 0.000000e+00 : f32
    %390 = vector.broadcast %cst_151 : f32 to vector<8x8xf32>
    %391 = arith.cmpf ogt, %3, %390 : vector<8x8xf32>
    %cst_152 = arith.constant -1.000000e+10 : f32
    %392 = vector.broadcast %cst_152 : f32 to vector<8x8xf32>
    %393 = arith.select %391, %389, %392 : vector<8x8xi1>, vector<8x8xf32>
    %cst_153 = arith.constant dense<0xFF800000> : vector<8xf32>
    %394 = vector.multi_reduction <maximumf>, %393, %cst_153 [1] : vector<8x8xf32> to vector<8xf32>
    %395 = vector.shape_cast %394 : vector<8xf32> to vector<8x1xf32>
    %396 = vector.broadcast %395 : vector<8x1xf32> to vector<8x8xf32>
    %397 = arith.subf %393, %396 : vector<8x8xf32>
    %398 = math.exp %397 : vector<8x8xf32>
    %399 = arith.mulf %398, %3 : vector<8x8xf32>
    %cst_154 = arith.constant dense<0.000000e+00> : vector<8xf32>
    %400 = vector.multi_reduction <add>, %399, %cst_154 [1] : vector<8x8xf32> to vector<8xf32>
    %401 = vector.shape_cast %400 : vector<8xf32> to vector<8x1xf32>
    %402 = vector.broadcast %401 : vector<8x1xf32> to vector<8x8xf32>
    %403 = arith.divf %399, %402 : vector<8x8xf32>
    %404 = vector.shape_cast %403 : vector<8x8xf32> to vector<8x8x1xf32>
    %405 = vector.broadcast %404 : vector<8x8x1xf32> to vector<8x8x64xf32>
    %406 = arith.mulf %405, %2 : vector<8x8x64xf32>
    %cst_155 = arith.constant dense<0.000000e+00> : vector<8x64xf32>
    %407 = vector.multi_reduction <add>, %406, %cst_155 [1] : vector<8x8x64xf32> to vector<8x64xf32>
    %cst_156 = arith.constant dense<0.000000e+00> : vector<8x160xf32>
    %408 = tpu.matmul %407, %6, %cst_156 {dimension_numbers = #tpu.dot_dimension_numbers<[1], [0], [0], [1], [0, 0, 1, 1], [], []>} : vector<8x64xf32>, vector<64x160xf32>, vector<8x160xf32> -> vector<8x160xf32>
    %409 = vector.extract_strided_slice %408 {offsets = [0, 0], sizes = [8, 32], strides = [1, 1]} : vector<8x160xf32> to vector<8x32xf32>
    %410 = vector.extract_strided_slice %408 {offsets = [0, 32], sizes = [8, 128], strides = [1, 1]} : vector<8x160xf32> to vector<8x128xf32>
    %411 = arith.addf %380, %409 : vector<8x32xf32>
    %412 = vector.broadcast %9 : vector<1x32xf32> to vector<8x32xf32>
    %413 = arith.addf %411, %412 : vector<8x32xf32>
    %414 = math.tanh %413 : vector<8x32xf32>
    %cst_157 = arith.constant dense<0.000000e+00> : vector<8x128xf32>
    %415 = tpu.matmul %414, %7, %cst_157 {dimension_numbers = #tpu.dot_dimension_numbers<[1], [0], [0], [1], [0, 0, 1, 1], [], []>} : vector<8x32xf32>, vector<32x128xf32>, vector<8x128xf32> -> vector<8x128xf32>
    %416 = vector.broadcast %10 : vector<1x128xf32> to vector<8x128xf32>
    %417 = arith.addf %415, %416 : vector<8x128xf32>
    %c0_i32_158 = arith.constant 0 : i32
    %c2_i32_159 = arith.constant 2 : i32
    %c0_i32_160 = arith.constant 0 : i32
    %c0_i32_161 = arith.constant 0 : i32
    %c0_i32_162 = arith.constant 0 : i32
    %418 = tpu.memref_slice %arg14[%c0_i32_158, %c0_i32_161, %c0_i32_162] : memref<2x8x128xf32, #tpu.memory_space<vmem>> -> memref<1x8x128xf32, #tpu.memory_space<vmem>>
    %419 = tpu.memref_squeeze %418 : memref<1x8x128xf32, #tpu.memory_space<vmem>> -> memref<8x128xf32, #tpu.memory_space<vmem>>
    %c0_i32_163 = arith.constant 0 : i32
    %420 = tpu.memref_slice %arg13[%c2_i32_159, %1, %c0_i32_163] : memref<6x8x128xf32, #tpu.memory_space<any>> -> memref<1x8x128xf32, #tpu.memory_space<any>>
    %421 = tpu.memref_squeeze %420 : memref<1x8x128xf32, #tpu.memory_space<any>> -> memref<8x128xf32, #tpu.memory_space<any>>
    %422 = tpu.memref_slice %arg15[%c0_i32_160] : memref<2x!tpu.dma_semaphore, #tpu.memory_space<semaphore_mem>> -> memref<1x!tpu.dma_semaphore, #tpu.memory_space<semaphore_mem>>
    %423 = tpu.memref_squeeze %422 : memref<1x!tpu.dma_semaphore, #tpu.memory_space<semaphore_mem>> -> memref<!tpu.dma_semaphore, #tpu.memory_space<semaphore_mem>>
    tpu.wait_dma2 semaphore(%423 : memref<!tpu.dma_semaphore, #tpu.memory_space<semaphore_mem>>) src(%419 : memref<8x128xf32, #tpu.memory_space<vmem>>) dst(%421 : memref<8x128xf32, #tpu.memory_space<any>>)
    %c0_164 = arith.constant 0 : index
    %c0_165 = arith.constant 0 : index
    %c0_166 = arith.constant 0 : index
    %424 = vector.load %arg14[%c0_164, %c0_165, %c0_166] : memref<2x8x128xf32, #tpu.memory_space<vmem>>, vector<1x8x128xf32>
    %425 = vector.shape_cast %424 : vector<1x8x128xf32> to vector<8x128xf32>
    %426 = vector.shape_cast %417 : vector<8x128xf32> to vector<1x8x128xf32>
    tpu.vector_store %arg14[%c0_164, %c0_165, %c0_166], %426 {strides = array<i32>} : memref<2x8x128xf32, #tpu.memory_space<vmem>>, vector<1x8x128xf32>,
    %c0_i32_167 = arith.constant 0 : i32
    %c4_i32 = arith.constant 4 : i32
    %c0_i32_168 = arith.constant 0 : i32
    %c0_i32_169 = arith.constant 0 : i32
    %c0_i32_170 = arith.constant 0 : i32
    %427 = tpu.memref_slice %arg14[%c0_i32_167, %c0_i32_169, %c0_i32_170] : memref<2x8x128xf32, #tpu.memory_space<vmem>> -> memref<1x8x128xf32, #tpu.memory_space<vmem>>
    %428 = tpu.memref_squeeze %427 : memref<1x8x128xf32, #tpu.memory_space<vmem>> -> memref<8x128xf32, #tpu.memory_space<vmem>>
    %c0_i32_171 = arith.constant 0 : i32
    %429 = tpu.memref_slice %arg13[%c4_i32, %1, %c0_i32_171] : memref<6x8x128xf32, #tpu.memory_space<any>> -> memref<1x8x128xf32, #tpu.memory_space<any>>
    %430 = tpu.memref_squeeze %429 : memref<1x8x128xf32, #tpu.memory_space<any>> -> memref<8x128xf32, #tpu.memory_space<any>>
    %431 = tpu.memref_slice %arg15[%c0_i32_168] : memref<2x!tpu.dma_semaphore, #tpu.memory_space<semaphore_mem>> -> memref<1x!tpu.dma_semaphore, #tpu.memory_space<semaphore_mem>>
    %432 = tpu.memref_squeeze %431 : memref<1x!tpu.dma_semaphore, #tpu.memory_space<semaphore_mem>> -> memref<!tpu.dma_semaphore, #tpu.memory_space<semaphore_mem>>
    tpu.enqueue_dma source(%428 : memref<8x128xf32, #tpu.memory_space<vmem>>) target(%430 : memref<8x128xf32, #tpu.memory_space<any>>) target_semaphore(%432 : memref<!tpu.dma_semaphore, #tpu.memory_space<semaphore_mem>>)
    %c4 = arith.constant 4 : index
    %c0_172 = arith.constant 0 : index
    %c0_173 = arith.constant 0 : index
    %433 = vector.load %arg3[%c4, %c0_172, %c0_173] : memref<6x8x128xf32, #tpu.memory_space<vmem>>, vector<1x8x128xf32>
    %434 = vector.shape_cast %433 : vector<1x8x128xf32> to vector<8x128xf32>
    %435 = arith.addf %434, %381 : vector<8x128xf32>
    %436 = arith.addf %435, %410 : vector<8x128xf32>
    %437 = vector.broadcast %11 : vector<1x128xf32> to vector<8x128xf32>
    %438 = arith.addf %436, %437 : vector<8x128xf32>
    %439 = vector.extract_strided_slice %438 {offsets = [0, 0], sizes = [8, 32], strides = [1, 1]} : vector<8x128xf32> to vector<8x32xf32>
    %cst_174 = arith.constant 5.000000e-01 : f32
    %440 = vector.broadcast %cst_174 : f32 to vector<8x32xf32>
    %441 = arith.mulf %439, %440 : vector<8x32xf32>
    %442 = math.tanh %441 : vector<8x32xf32>
    %cst_175 = arith.constant 5.000000e-01 : f32
    %443 = vector.broadcast %cst_175 : f32 to vector<8x32xf32>
    %444 = arith.mulf %442, %443 : vector<8x32xf32>
    %cst_176 = arith.constant 5.000000e-01 : f32
    %445 = vector.broadcast %cst_176 : f32 to vector<8x32xf32>
    %446 = arith.addf %444, %445 : vector<8x32xf32>
    %447 = vector.extract_strided_slice %438 {offsets = [0, 32], sizes = [8, 32], strides = [1, 1]} : vector<8x128xf32> to vector<8x32xf32>
    %cst_177 = arith.constant 5.000000e-01 : f32
    %448 = vector.broadcast %cst_177 : f32 to vector<8x32xf32>
    %449 = arith.mulf %447, %448 : vector<8x32xf32>
    %450 = math.tanh %449 : vector<8x32xf32>
    %cst_178 = arith.constant 5.000000e-01 : f32
    %451 = vector.broadcast %cst_178 : f32 to vector<8x32xf32>
    %452 = arith.mulf %450, %451 : vector<8x32xf32>
    %cst_179 = arith.constant 5.000000e-01 : f32
    %453 = vector.broadcast %cst_179 : f32 to vector<8x32xf32>
    %454 = arith.addf %452, %453 : vector<8x32xf32>
    %455 = vector.extract_strided_slice %438 {offsets = [0, 64], sizes = [8, 32], strides = [1, 1]} : vector<8x128xf32> to vector<8x32xf32>
    %456 = math.tanh %455 : vector<8x32xf32>
    %457 = vector.extract_strided_slice %438 {offsets = [0, 96], sizes = [8, 32], strides = [1, 1]} : vector<8x128xf32> to vector<8x32xf32>
    %cst_180 = arith.constant 5.000000e-01 : f32
    %458 = vector.broadcast %cst_180 : f32 to vector<8x32xf32>
    %459 = arith.mulf %457, %458 : vector<8x32xf32>
    %460 = math.tanh %459 : vector<8x32xf32>
    %cst_181 = arith.constant 5.000000e-01 : f32
    %461 = vector.broadcast %cst_181 : f32 to vector<8x32xf32>
    %462 = arith.mulf %460, %461 : vector<8x32xf32>
    %cst_182 = arith.constant 5.000000e-01 : f32
    %463 = vector.broadcast %cst_182 : f32 to vector<8x32xf32>
    %464 = arith.addf %462, %463 : vector<8x32xf32>
    %465 = arith.mulf %454, %375 : vector<8x32xf32>
    %466 = arith.mulf %446, %456 : vector<8x32xf32>
    %467 = arith.addf %465, %466 : vector<8x32xf32>
    %468 = math.tanh %467 : vector<8x32xf32>
    %469 = arith.mulf %464, %468 : vector<8x32xf32>
    %cst_183 = arith.constant dense<0.000000e+00> : vector<8x192xf32>
    %470 = tpu.matmul %469, %5, %cst_183 {dimension_numbers = #tpu.dot_dimension_numbers<[1], [0], [0], [1], [0, 0, 1, 1], [], []>} : vector<8x32xf32>, vector<32x192xf32>, vector<8x192xf32> -> vector<8x192xf32>
    %471 = vector.extract_strided_slice %470 {offsets = [0, 0], sizes = [8, 32], strides = [1, 1]} : vector<8x192xf32> to vector<8x32xf32>
    %472 = vector.extract_strided_slice %470 {offsets = [0, 32], sizes = [8, 32], strides = [1, 1]} : vector<8x192xf32> to vector<8x32xf32>
    %473 = vector.shape_cast %471 : vector<8x32xf32> to vector<8x1x32xf32>
    %474 = vector.broadcast %473 : vector<8x1x32xf32> to vector<8x8x32xf32>
    %475 = arith.addf %19, %474 : vector<8x8x32xf32>
    %476 = math.tanh %475 : vector<8x8x32xf32>
    %477 = vector.shape_cast %12 : vector<1x32xf32> to vector<1x1x32xf32>
    %478 = vector.broadcast %477 : vector<1x1x32xf32> to vector<8x8x32xf32>
    %479 = arith.mulf %476, %478 : vector<8x8x32xf32>
    %cst_184 = arith.constant dense<0.000000e+00> : vector<8x8xf32>
    %480 = vector.multi_reduction <add>, %479, %cst_184 [2] : vector<8x8x32xf32> to vector<8x8xf32>
    %cst_185 = arith.constant 0.000000e+00 : f32
    %481 = vector.broadcast %cst_185 : f32 to vector<8x8xf32>
    %482 = arith.cmpf ogt, %3, %481 : vector<8x8xf32>
    %cst_186 = arith.constant -1.000000e+10 : f32
    %483 = vector.broadcast %cst_186 : f32 to vector<8x8xf32>
    %484 = arith.select %482, %480, %483 : vector<8x8xi1>, vector<8x8xf32>
    %cst_187 = arith.constant dense<0xFF800000> : vector<8xf32>
    %485 = vector.multi_reduction <maximumf>, %484, %cst_187 [1] : vector<8x8xf32> to vector<8xf32>
    %486 = vector.shape_cast %485 : vector<8xf32> to vector<8x1xf32>
    %487 = vector.broadcast %486 : vector<8x1xf32> to vector<8x8xf32>
    %488 = arith.subf %484, %487 : vector<8x8xf32>
    %489 = math.exp %488 : vector<8x8xf32>
    %490 = arith.mulf %489, %3 : vector<8x8xf32>
    %cst_188 = arith.constant dense<0.000000e+00> : vector<8xf32>
    %491 = vector.multi_reduction <add>, %490, %cst_188 [1] : vector<8x8xf32> to vector<8xf32>
    %492 = vector.shape_cast %491 : vector<8xf32> to vector<8x1xf32>
    %493 = vector.broadcast %492 : vector<8x1xf32> to vector<8x8xf32>
    %494 = arith.divf %490, %493 : vector<8x8xf32>
    %495 = vector.shape_cast %494 : vector<8x8xf32> to vector<8x8x1xf32>
    %496 = vector.broadcast %495 : vector<8x8x1xf32> to vector<8x8x64xf32>
    %497 = arith.mulf %496, %2 : vector<8x8x64xf32>
    %cst_189 = arith.constant dense<0.000000e+00> : vector<8x64xf32>
    %498 = vector.multi_reduction <add>, %497, %cst_189 [1] : vector<8x8x64xf32> to vector<8x64xf32>
    %cst_190 = arith.constant dense<0.000000e+00> : vector<8x160xf32>
    %499 = tpu.matmul %498, %6, %cst_190 {dimension_numbers = #tpu.dot_dimension_numbers<[1], [0], [0], [1], [0, 0, 1, 1], [], []>} : vector<8x64xf32>, vector<64x160xf32>, vector<8x160xf32> -> vector<8x160xf32>
    %500 = vector.extract_strided_slice %499 {offsets = [0, 0], sizes = [8, 32], strides = [1, 1]} : vector<8x160xf32> to vector<8x32xf32>
    %501 = arith.addf %472, %500 : vector<8x32xf32>
    %502 = vector.broadcast %9 : vector<1x32xf32> to vector<8x32xf32>
    %503 = arith.addf %501, %502 : vector<8x32xf32>
    %504 = math.tanh %503 : vector<8x32xf32>
    %cst_191 = arith.constant dense<0.000000e+00> : vector<8x128xf32>
    %505 = tpu.matmul %504, %7, %cst_191 {dimension_numbers = #tpu.dot_dimension_numbers<[1], [0], [0], [1], [0, 0, 1, 1], [], []>} : vector<8x32xf32>, vector<32x128xf32>, vector<8x128xf32> -> vector<8x128xf32>
    %506 = vector.broadcast %10 : vector<1x128xf32> to vector<8x128xf32>
    %507 = arith.addf %505, %506 : vector<8x128xf32>
    %c1_i32_192 = arith.constant 1 : i32
    %c3_i32_193 = arith.constant 3 : i32
    %c1_i32_194 = arith.constant 1 : i32
    %c0_i32_195 = arith.constant 0 : i32
    %c0_i32_196 = arith.constant 0 : i32
    %508 = tpu.memref_slice %arg14[%c1_i32_192, %c0_i32_195, %c0_i32_196] : memref<2x8x128xf32, #tpu.memory_space<vmem>> -> memref<1x8x128xf32, #tpu.memory_space<vmem>>
    %509 = tpu.memref_squeeze %508 : memref<1x8x128xf32, #tpu.memory_space<vmem>> -> memref<8x128xf32, #tpu.memory_space<vmem>>
    %c0_i32_197 = arith.constant 0 : i32
    %510 = tpu.memref_slice %arg13[%c3_i32_193, %1, %c0_i32_197] : memref<6x8x128xf32, #tpu.memory_space<any>> -> memref<1x8x128xf32, #tpu.memory_space<any>>
    %511 = tpu.memref_squeeze %510 : memref<1x8x128xf32, #tpu.memory_space<any>> -> memref<8x128xf32, #tpu.memory_space<any>>
    %512 = tpu.memref_slice %arg15[%c1_i32_194] : memref<2x!tpu.dma_semaphore, #tpu.memory_space<semaphore_mem>> -> memref<1x!tpu.dma_semaphore, #tpu.memory_space<semaphore_mem>>
    %513 = tpu.memref_squeeze %512 : memref<1x!tpu.dma_semaphore, #tpu.memory_space<semaphore_mem>> -> memref<!tpu.dma_semaphore, #tpu.memory_space<semaphore_mem>>
    tpu.wait_dma2 semaphore(%513 : memref<!tpu.dma_semaphore, #tpu.memory_space<semaphore_mem>>) src(%509 : memref<8x128xf32, #tpu.memory_space<vmem>>) dst(%511 : memref<8x128xf32, #tpu.memory_space<any>>)
    %c1_198 = arith.constant 1 : index
    %c0_199 = arith.constant 0 : index
    %c0_200 = arith.constant 0 : index
    %514 = vector.load %arg14[%c1_198, %c0_199, %c0_200] : memref<2x8x128xf32, #tpu.memory_space<vmem>>, vector<1x8x128xf32>
    %515 = vector.shape_cast %514 : vector<1x8x128xf32> to vector<8x128xf32>
    %516 = vector.shape_cast %507 : vector<8x128xf32> to vector<1x8x128xf32>
    tpu.vector_store %arg14[%c1_198, %c0_199, %c0_200], %516 {strides = array<i32>} : memref<2x8x128xf32, #tpu.memory_space<vmem>>, vector<1x8x128xf32>,
    %c1_i32_201 = arith.constant 1 : i32
    %c5_i32 = arith.constant 5 : i32
    %c1_i32_202 = arith.constant 1 : i32
    %c0_i32_203 = arith.constant 0 : i32
    %c0_i32_204 = arith.constant 0 : i32
    %517 = tpu.memref_slice %arg14[%c1_i32_201, %c0_i32_203, %c0_i32_204] : memref<2x8x128xf32, #tpu.memory_space<vmem>> -> memref<1x8x128xf32, #tpu.memory_space<vmem>>
    %518 = tpu.memref_squeeze %517 : memref<1x8x128xf32, #tpu.memory_space<vmem>> -> memref<8x128xf32, #tpu.memory_space<vmem>>
    %c0_i32_205 = arith.constant 0 : i32
    %519 = tpu.memref_slice %arg13[%c5_i32, %1, %c0_i32_205] : memref<6x8x128xf32, #tpu.memory_space<any>> -> memref<1x8x128xf32, #tpu.memory_space<any>>
    %520 = tpu.memref_squeeze %519 : memref<1x8x128xf32, #tpu.memory_space<any>> -> memref<8x128xf32, #tpu.memory_space<any>>
    %521 = tpu.memref_slice %arg15[%c1_i32_202] : memref<2x!tpu.dma_semaphore, #tpu.memory_space<semaphore_mem>> -> memref<1x!tpu.dma_semaphore, #tpu.memory_space<semaphore_mem>>
    %522 = tpu.memref_squeeze %521 : memref<1x!tpu.dma_semaphore, #tpu.memory_space<semaphore_mem>> -> memref<!tpu.dma_semaphore, #tpu.memory_space<semaphore_mem>>
    tpu.enqueue_dma source(%518 : memref<8x128xf32, #tpu.memory_space<vmem>>) target(%520 : memref<8x128xf32, #tpu.memory_space<any>>) target_semaphore(%522 : memref<!tpu.dma_semaphore, #tpu.memory_space<semaphore_mem>>)
    %c0_i32_206 = arith.constant 0 : i32
    %c4_i32_207 = arith.constant 4 : i32
    %c0_i32_208 = arith.constant 0 : i32
    %c0_i32_209 = arith.constant 0 : i32
    %c0_i32_210 = arith.constant 0 : i32
    %523 = tpu.memref_slice %arg14[%c0_i32_206, %c0_i32_209, %c0_i32_210] : memref<2x8x128xf32, #tpu.memory_space<vmem>> -> memref<1x8x128xf32, #tpu.memory_space<vmem>>
    %524 = tpu.memref_squeeze %523 : memref<1x8x128xf32, #tpu.memory_space<vmem>> -> memref<8x128xf32, #tpu.memory_space<vmem>>
    %c0_i32_211 = arith.constant 0 : i32
    %525 = tpu.memref_slice %arg13[%c4_i32_207, %1, %c0_i32_211] : memref<6x8x128xf32, #tpu.memory_space<any>> -> memref<1x8x128xf32, #tpu.memory_space<any>>
    %526 = tpu.memref_squeeze %525 : memref<1x8x128xf32, #tpu.memory_space<any>> -> memref<8x128xf32, #tpu.memory_space<any>>
    %527 = tpu.memref_slice %arg15[%c0_i32_208] : memref<2x!tpu.dma_semaphore, #tpu.memory_space<semaphore_mem>> -> memref<1x!tpu.dma_semaphore, #tpu.memory_space<semaphore_mem>>
    %528 = tpu.memref_squeeze %527 : memref<1x!tpu.dma_semaphore, #tpu.memory_space<semaphore_mem>> -> memref<!tpu.dma_semaphore, #tpu.memory_space<semaphore_mem>>
    tpu.wait_dma2 semaphore(%528 : memref<!tpu.dma_semaphore, #tpu.memory_space<semaphore_mem>>) src(%524 : memref<8x128xf32, #tpu.memory_space<vmem>>) dst(%526 : memref<8x128xf32, #tpu.memory_space<any>>)
    %c1_i32_212 = arith.constant 1 : i32
    %c5_i32_213 = arith.constant 5 : i32
    %c1_i32_214 = arith.constant 1 : i32
    %c0_i32_215 = arith.constant 0 : i32
    %c0_i32_216 = arith.constant 0 : i32
    %529 = tpu.memref_slice %arg14[%c1_i32_212, %c0_i32_215, %c0_i32_216] : memref<2x8x128xf32, #tpu.memory_space<vmem>> -> memref<1x8x128xf32, #tpu.memory_space<vmem>>
    %530 = tpu.memref_squeeze %529 : memref<1x8x128xf32, #tpu.memory_space<vmem>> -> memref<8x128xf32, #tpu.memory_space<vmem>>
    %c0_i32_217 = arith.constant 0 : i32
    %531 = tpu.memref_slice %arg13[%c5_i32_213, %1, %c0_i32_217] : memref<6x8x128xf32, #tpu.memory_space<any>> -> memref<1x8x128xf32, #tpu.memory_space<any>>
    %532 = tpu.memref_squeeze %531 : memref<1x8x128xf32, #tpu.memory_space<any>> -> memref<8x128xf32, #tpu.memory_space<any>>
    %533 = tpu.memref_slice %arg15[%c1_i32_214] : memref<2x!tpu.dma_semaphore, #tpu.memory_space<semaphore_mem>> -> memref<1x!tpu.dma_semaphore, #tpu.memory_space<semaphore_mem>>
    %534 = tpu.memref_squeeze %533 : memref<1x!tpu.dma_semaphore, #tpu.memory_space<semaphore_mem>> -> memref<!tpu.dma_semaphore, #tpu.memory_space<semaphore_mem>>
    tpu.wait_dma2 semaphore(%534 : memref<!tpu.dma_semaphore, #tpu.memory_space<semaphore_mem>>) src(%530 : memref<8x128xf32, #tpu.memory_space<vmem>>) dst(%532 : memref<8x128xf32, #tpu.memory_space<any>>)
    return
  }
  func.func @transform_0(%arg0: i32) -> (i32, i32, i32) {
    %c0_i32 = arith.constant 0 : i32
    %c0_i32_0 = arith.constant 0 : i32
    %c0_i32_1 = arith.constant 0 : i32
    return %arg0, %c0_i32, %c0_i32_0 : i32, i32, i32
  }
  func.func @transform_1(%arg0: i32) -> (i32, i32) {
    %c0_i32 = arith.constant 0 : i32
    %c0_i32_0 = arith.constant 0 : i32
    return %arg0, %c0_i32 : i32, i32
  }
  func.func @transform_2(%arg0: i32) -> (i32, i32, i32) {
    %c0_i32 = arith.constant 0 : i32
    %c0_i32_0 = arith.constant 0 : i32
    %c0_i32_1 = arith.constant 0 : i32
    return %c0_i32, %arg0, %c0_i32_0 : i32, i32, i32
  }
  func.func @transform_3(%arg0: i32) -> (i32, i32) {
    %c0_i32 = arith.constant 0 : i32
    %c0_i32_0 = arith.constant 0 : i32
    %c0_i32_1 = arith.constant 0 : i32
    return %c0_i32, %c0_i32_0 : i32, i32
  }
  func.func @transform_4(%arg0: i32) -> (i32, i32) {
    %c0_i32 = arith.constant 0 : i32
    %c0_i32_0 = arith.constant 0 : i32
    %c0_i32_1 = arith.constant 0 : i32
    return %c0_i32, %c0_i32_0 : i32, i32
  }
  func.func @transform_5(%arg0: i32) -> (i32, i32) {
    %c0_i32 = arith.constant 0 : i32
    %c0_i32_0 = arith.constant 0 : i32
    %c0_i32_1 = arith.constant 0 : i32
    return %c0_i32, %c0_i32_0 : i32, i32
  }
  func.func @transform_6(%arg0: i32) -> (i32, i32) {
    %c0_i32 = arith.constant 0 : i32
    %c0_i32_0 = arith.constant 0 : i32
    %c0_i32_1 = arith.constant 0 : i32
    return %c0_i32, %c0_i32_0 : i32, i32
  }
  func.func @transform_7(%arg0: i32) -> (i32, i32) {
    %c0_i32 = arith.constant 0 : i32
    %c0_i32_0 = arith.constant 0 : i32
    %c0_i32_1 = arith.constant 0 : i32
    return %c0_i32, %c0_i32_0 : i32, i32
  }
  func.func @transform_8(%arg0: i32) -> (i32, i32) {
    %c0_i32 = arith.constant 0 : i32
    %c0_i32_0 = arith.constant 0 : i32
    %c0_i32_1 = arith.constant 0 : i32
    return %c0_i32, %c0_i32_0 : i32, i32
  }
  func.func @transform_9(%arg0: i32) -> (i32, i32) {
    %c0_i32 = arith.constant 0 : i32
    %c0_i32_0 = arith.constant 0 : i32
    %c0_i32_1 = arith.constant 0 : i32
    return %c0_i32, %c0_i32_0 : i32, i32
  }
  func.func @transform_10(%arg0: i32) -> (i32, i32) {
    %c0_i32 = arith.constant 0 : i32
    %c0_i32_0 = arith.constant 0 : i32
    %c0_i32_1 = arith.constant 0 : i32
    return %c0_i32, %c0_i32_0 : i32, i32
  }
  func.func @transform_11(%arg0: i32) -> (i32, i32) {
    %c0_i32 = arith.constant 0 : i32
    %c0_i32_0 = arith.constant 0 : i32
    %c0_i32_1 = arith.constant 0 : i32
    return %c0_i32, %c0_i32_0 : i32, i32
  }
}

module attributes {stable_mosaic.version = 11 : i64} {
  func.func @decoder_kernel(%arg0: i32, %arg1: memref<8x8x64xf32, #tpu.memory_space<vmem>>, %arg2: memref<8x8xf32, #tpu.memory_space<vmem>>, %arg3: memref<6x8x128xf32, #tpu.memory_space<vmem>>, %arg4: memref<64x32xf32, #tpu.memory_space<vmem>>, %arg5: memref<32x192xf32, #tpu.memory_space<vmem>>, %arg6: memref<64x160xf32, #tpu.memory_space<vmem>>, %arg7: memref<32x128xf32, #tpu.memory_space<vmem>>, %arg8: memref<1x32xf32, #tpu.memory_space<vmem>>, %arg9: memref<1x32xf32, #tpu.memory_space<vmem>>, %arg10: memref<1x128xf32, #tpu.memory_space<vmem>>, %arg11: memref<1x128xf32, #tpu.memory_space<vmem>>, %arg12: memref<1x32xf32, #tpu.memory_space<vmem>>, %arg13: memref<6x8x128xf32, #tpu.memory_space<any>>, %arg14: memref<2x8x128xf32, #tpu.memory_space<vmem>>, %arg15: memref<2x!tpu.dma_semaphore, #tpu.memory_space<semaphore_mem>>) attributes {dimension_semantics = [#tpu.dimension_semantics<parallel>], iteration_bounds = array<i64: 1>, scalar_prefetch = 0 : i64, scratch_operands = 2 : i64, tpu.core_type = #tpu.core_type<tc>, window_params = [{transform_indices = @transform_0, window_bounds = array<i64: 8, 8, 64>}, {transform_indices = @transform_1, window_bounds = array<i64: 8, 8>}, {transform_indices = @transform_2, window_bounds = array<i64: 6, 8, 128>}, {pipeline_mode = #tpu.pipeline_mode<synchronous>, transform_indices = @transform_3, window_bounds = array<i64: 64, 32>}, {pipeline_mode = #tpu.pipeline_mode<synchronous>, transform_indices = @transform_4, window_bounds = array<i64: 32, 192>}, {pipeline_mode = #tpu.pipeline_mode<synchronous>, transform_indices = @transform_5, window_bounds = array<i64: 64, 160>}, {pipeline_mode = #tpu.pipeline_mode<synchronous>, transform_indices = @transform_6, window_bounds = array<i64: 32, 128>}, {pipeline_mode = #tpu.pipeline_mode<synchronous>, transform_indices = @transform_7, window_bounds = array<i64: 1, 32>}, {pipeline_mode = #tpu.pipeline_mode<synchronous>, transform_indices = @transform_8, window_bounds = array<i64: 1, 32>}, {pipeline_mode = #tpu.pipeline_mode<synchronous>, transform_indices = @transform_9, window_bounds = array<i64: 1, 128>}, {pipeline_mode = #tpu.pipeline_mode<synchronous>, transform_indices = @transform_10, window_bounds = array<i64: 1, 128>}, {pipeline_mode = #tpu.pipeline_mode<synchronous>, transform_indices = @transform_11, window_bounds = array<i64: 1, 32>}, {}]} {
    %c8_i32 = arith.constant 8 : i32
    %0 = arith.muli %arg0, %c8_i32 : i32
    %1 = tpu.assume_multiple %0, 8 : i32
    %c0 = arith.constant 0 : index
    %c0_0 = arith.constant 0 : index
    %c0_1 = arith.constant 0 : index
    %2 = vector.load %arg1[%c0, %c0_0, %c0_1] : memref<8x8x64xf32, #tpu.memory_space<vmem>>, vector<8x8x64xf32>
    %c0_2 = arith.constant 0 : index
    %c0_3 = arith.constant 0 : index
    %3 = vector.load %arg2[%c0_2, %c0_3] : memref<8x8xf32, #tpu.memory_space<vmem>>, vector<8x8xf32>
    %c0_4 = arith.constant 0 : index
    %c0_5 = arith.constant 0 : index
    %4 = vector.load %arg4[%c0_4, %c0_5] : memref<64x32xf32, #tpu.memory_space<vmem>>, vector<64x32xf32>
    %c0_6 = arith.constant 0 : index
    %c0_7 = arith.constant 0 : index
    %5 = vector.load %arg5[%c0_6, %c0_7] : memref<32x192xf32, #tpu.memory_space<vmem>>, vector<32x192xf32>
    %c0_8 = arith.constant 0 : index
    %c0_9 = arith.constant 0 : index
    %6 = vector.load %arg6[%c0_8, %c0_9] : memref<64x160xf32, #tpu.memory_space<vmem>>, vector<64x160xf32>
    %c0_10 = arith.constant 0 : index
    %c0_11 = arith.constant 0 : index
    %7 = vector.load %arg7[%c0_10, %c0_11] : memref<32x128xf32, #tpu.memory_space<vmem>>, vector<32x128xf32>
    %c0_12 = arith.constant 0 : index
    %c0_13 = arith.constant 0 : index
    %8 = vector.load %arg8[%c0_12, %c0_13] : memref<1x32xf32, #tpu.memory_space<vmem>>, vector<1x32xf32>
    %c0_14 = arith.constant 0 : index
    %c0_15 = arith.constant 0 : index
    %9 = vector.load %arg9[%c0_14, %c0_15] : memref<1x32xf32, #tpu.memory_space<vmem>>, vector<1x32xf32>
    %c0_16 = arith.constant 0 : index
    %c0_17 = arith.constant 0 : index
    %10 = vector.load %arg10[%c0_16, %c0_17] : memref<1x128xf32, #tpu.memory_space<vmem>>, vector<1x128xf32>
    %c0_18 = arith.constant 0 : index
    %c0_19 = arith.constant 0 : index
    %11 = vector.load %arg11[%c0_18, %c0_19] : memref<1x128xf32, #tpu.memory_space<vmem>>, vector<1x128xf32>
    %c0_20 = arith.constant 0 : index
    %c0_21 = arith.constant 0 : index
    %12 = vector.load %arg12[%c0_20, %c0_21] : memref<1x32xf32, #tpu.memory_space<vmem>>, vector<1x32xf32>
    %13 = vector.shape_cast %4 : vector<64x32xf32> to vector<1x64x32xf32>
    %14 = vector.shape_cast %13 : vector<1x64x32xf32> to vector<1x64x32xf32>
    %15 = vector.broadcast %14 : vector<1x64x32xf32> to vector<8x64x32xf32>
    "tpu.trace_start"() <{level = 10 : i32, message = "btd,bdh->bth"}> : () -> ()
    %cst = arith.constant dense<0.000000e+00> : vector<8x8x32xf32>
    %16 = tpu.matmul %2, %15, %cst {dimension_numbers = #tpu.dot_dimension_numbers<[2], [1], [1], [2], [0, 0, 0, 1, 1, 2], [0], [0]>} : vector<8x8x64xf32>, vector<8x64x32xf32>, vector<8x8x32xf32> -> vector<8x8x32xf32>
    "tpu.trace_stop"() : () -> ()
    %17 = vector.shape_cast %8 : vector<1x32xf32> to vector<1x1x32xf32>
    %18 = vector.broadcast %17 : vector<1x1x32xf32> to vector<8x8x32xf32>
    %19 = arith.addf %16, %18 : vector<8x8x32xf32>
    %cst_22 = arith.constant 0.000000e+00 : f32
    %20 = vector.broadcast %cst_22 : f32 to vector<8x32xf32>
    %cst_23 = arith.constant 0.000000e+00 : f32
    %21 = vector.broadcast %cst_23 : f32 to vector<8x32xf32>
    %cst_24 = arith.constant dense<0.000000e+00> : vector<8x192xf32>
    %22 = tpu.matmul %20, %5, %cst_24 {dimension_numbers = #tpu.dot_dimension_numbers<[1], [0], [0], [1], [0, 0, 1, 1], [], []>} : vector<8x32xf32>, vector<32x192xf32>, vector<8x192xf32> -> vector<8x192xf32>
    %23 = vector.extract_strided_slice %22 {offsets = [0, 0], sizes = [8, 32], strides = [1, 1]} : vector<8x192xf32> to vector<8x32xf32>
    %24 = vector.extract_strided_slice %22 {offsets = [0, 32], sizes = [8, 32], strides = [1, 1]} : vector<8x192xf32> to vector<8x32xf32>
    %25 = vector.extract_strided_slice %22 {offsets = [0, 64], sizes = [8, 128], strides = [1, 1]} : vector<8x192xf32> to vector<8x128xf32>
    %26 = vector.shape_cast %23 : vector<8x32xf32> to vector<8x1x32xf32>
    %27 = vector.broadcast %26 : vector<8x1x32xf32> to vector<8x8x32xf32>
    %28 = arith.addf %19, %27 : vector<8x8x32xf32>
    %29 = math.tanh %28 : vector<8x8x32xf32>
    %30 = vector.shape_cast %12 : vector<1x32xf32> to vector<1x1x32xf32>
    %31 = vector.broadcast %30 : vector<1x1x32xf32> to vector<8x8x32xf32>
    %32 = arith.mulf %29, %31 : vector<8x8x32xf32>
    %cst_25 = arith.constant dense<0.000000e+00> : vector<8x8xf32>
    %33 = vector.multi_reduction <add>, %32, %cst_25 [2] : vector<8x8x32xf32> to vector<8x8xf32>
    %cst_26 = arith.constant 0.000000e+00 : f32
    %34 = vector.broadcast %cst_26 : f32 to vector<8x8xf32>
    %35 = arith.cmpf ogt, %3, %34 : vector<8x8xf32>
    %cst_27 = arith.constant -1.000000e+10 : f32
    %36 = vector.broadcast %cst_27 : f32 to vector<8x8xf32>
    %37 = arith.select %35, %33, %36 : vector<8x8xi1>, vector<8x8xf32>
    %cst_28 = arith.constant dense<0xFF800000> : vector<8xf32>
    %38 = vector.multi_reduction <maximumf>, %37, %cst_28 [1] : vector<8x8xf32> to vector<8xf32>
    %39 = vector.shape_cast %38 : vector<8xf32> to vector<8x1xf32>
    %40 = vector.broadcast %39 : vector<8x1xf32> to vector<8x8xf32>
    %41 = arith.subf %37, %40 : vector<8x8xf32>
    %42 = math.exp %41 : vector<8x8xf32>
    %43 = arith.mulf %42, %3 : vector<8x8xf32>
    %cst_29 = arith.constant dense<0.000000e+00> : vector<8xf32>
    %44 = vector.multi_reduction <add>, %43, %cst_29 [1] : vector<8x8xf32> to vector<8xf32>
    %45 = vector.shape_cast %44 : vector<8xf32> to vector<8x1xf32>
    %46 = vector.broadcast %45 : vector<8x1xf32> to vector<8x8xf32>
    %47 = arith.divf %43, %46 : vector<8x8xf32>
    %48 = vector.shape_cast %47 : vector<8x8xf32> to vector<8x8x1xf32>
    %49 = vector.broadcast %48 : vector<8x8x1xf32> to vector<8x8x64xf32>
    %50 = arith.mulf %49, %2 : vector<8x8x64xf32>
    %cst_30 = arith.constant dense<0.000000e+00> : vector<8x64xf32>
    %51 = vector.multi_reduction <add>, %50, %cst_30 [1] : vector<8x8x64xf32> to vector<8x64xf32>
    %cst_31 = arith.constant dense<0.000000e+00> : vector<8x160xf32>
    %52 = tpu.matmul %51, %6, %cst_31 {dimension_numbers = #tpu.dot_dimension_numbers<[1], [0], [0], [1], [0, 0, 1, 1], [], []>} : vector<8x64xf32>, vector<64x160xf32>, vector<8x160xf32> -> vector<8x160xf32>
    %53 = vector.extract_strided_slice %52 {offsets = [0, 0], sizes = [8, 32], strides = [1, 1]} : vector<8x160xf32> to vector<8x32xf32>
    %54 = vector.extract_strided_slice %52 {offsets = [0, 32], sizes = [8, 128], strides = [1, 1]} : vector<8x160xf32> to vector<8x128xf32>
    %55 = arith.addf %24, %53 : vector<8x32xf32>
    %56 = vector.broadcast %9 : vector<1x32xf32> to vector<8x32xf32>
    %57 = arith.addf %55, %56 : vector<8x32xf32>
    %58 = math.tanh %57 : vector<8x32xf32>
    %cst_32 = arith.constant dense<0.000000e+00> : vector<8x128xf32>
    %59 = tpu.matmul %58, %7, %cst_32 {dimension_numbers = #tpu.dot_dimension_numbers<[1], [0], [0], [1], [0, 0, 1, 1], [], []>} : vector<8x32xf32>, vector<32x128xf32>, vector<8x128xf32> -> vector<8x128xf32>
    %60 = vector.broadcast %10 : vector<1x128xf32> to vector<8x128xf32>
    %61 = arith.addf %59, %60 : vector<8x128xf32>
    %c0_33 = arith.constant 0 : index
    %c0_34 = arith.constant 0 : index
    %c0_35 = arith.constant 0 : index
    %62 = vector.load %arg14[%c0_33, %c0_34, %c0_35] : memref<2x8x128xf32, #tpu.memory_space<vmem>>, vector<1x8x128xf32>
    %63 = vector.shape_cast %62 : vector<1x8x128xf32> to vector<8x128xf32>
    %64 = vector.shape_cast %61 : vector<8x128xf32> to vector<1x8x128xf32>
    tpu.vector_store %arg14[%c0_33, %c0_34, %c0_35], %64 {strides = array<i32>} : memref<2x8x128xf32, #tpu.memory_space<vmem>>, vector<1x8x128xf32>,
    %c0_i32 = arith.constant 0 : i32
    %c0_i32_36 = arith.constant 0 : i32
    %c0_i32_37 = arith.constant 0 : i32
    %c0_i32_38 = arith.constant 0 : i32
    %c0_i32_39 = arith.constant 0 : i32
    %65 = tpu.memref_slice %arg14[%c0_i32, %c0_i32_38, %c0_i32_39] : memref<2x8x128xf32, #tpu.memory_space<vmem>> -> memref<1x8x128xf32, #tpu.memory_space<vmem>>
    %66 = tpu.memref_squeeze %65 : memref<1x8x128xf32, #tpu.memory_space<vmem>> -> memref<8x128xf32, #tpu.memory_space<vmem>>
    %c0_i32_40 = arith.constant 0 : i32
    %67 = tpu.memref_slice %arg13[%c0_i32_36, %1, %c0_i32_40] : memref<6x8x128xf32, #tpu.memory_space<any>> -> memref<1x8x128xf32, #tpu.memory_space<any>>
    %68 = tpu.memref_squeeze %67 : memref<1x8x128xf32, #tpu.memory_space<any>> -> memref<8x128xf32, #tpu.memory_space<any>>
    %69 = tpu.memref_slice %arg15[%c0_i32_37] : memref<2x!tpu.dma_semaphore, #tpu.memory_space<semaphore_mem>> -> memref<1x!tpu.dma_semaphore, #tpu.memory_space<semaphore_mem>>
    %70 = tpu.memref_squeeze %69 : memref<1x!tpu.dma_semaphore, #tpu.memory_space<semaphore_mem>> -> memref<!tpu.dma_semaphore, #tpu.memory_space<semaphore_mem>>
    tpu.enqueue_dma source(%66 : memref<8x128xf32, #tpu.memory_space<vmem>>) target(%68 : memref<8x128xf32, #tpu.memory_space<any>>) target_semaphore(%70 : memref<!tpu.dma_semaphore, #tpu.memory_space<semaphore_mem>>)
    %c0_41 = arith.constant 0 : index
    %c0_42 = arith.constant 0 : index
    %c0_43 = arith.constant 0 : index
    %71 = vector.load %arg3[%c0_41, %c0_42, %c0_43] : memref<6x8x128xf32, #tpu.memory_space<vmem>>, vector<1x8x128xf32>
    %72 = vector.shape_cast %71 : vector<1x8x128xf32> to vector<8x128xf32>
    %73 = arith.addf %72, %25 : vector<8x128xf32>
    %74 = arith.addf %73, %54 : vector<8x128xf32>
    %75 = vector.broadcast %11 : vector<1x128xf32> to vector<8x128xf32>
    %76 = arith.addf %74, %75 : vector<8x128xf32>
    %77 = vector.extract_strided_slice %76 {offsets = [0, 0], sizes = [8, 32], strides = [1, 1]} : vector<8x128xf32> to vector<8x32xf32>
    %cst_44 = arith.constant 5.000000e-01 : f32
    %78 = vector.broadcast %cst_44 : f32 to vector<8x32xf32>
    %79 = arith.mulf %77, %78 : vector<8x32xf32>
    %80 = math.tanh %79 : vector<8x32xf32>
    %cst_45 = arith.constant 5.000000e-01 : f32
    %81 = vector.broadcast %cst_45 : f32 to vector<8x32xf32>
    %82 = arith.mulf %80, %81 : vector<8x32xf32>
    %cst_46 = arith.constant 5.000000e-01 : f32
    %83 = vector.broadcast %cst_46 : f32 to vector<8x32xf32>
    %84 = arith.addf %82, %83 : vector<8x32xf32>
    %85 = vector.extract_strided_slice %76 {offsets = [0, 32], sizes = [8, 32], strides = [1, 1]} : vector<8x128xf32> to vector<8x32xf32>
    %cst_47 = arith.constant 5.000000e-01 : f32
    %86 = vector.broadcast %cst_47 : f32 to vector<8x32xf32>
    %87 = arith.mulf %85, %86 : vector<8x32xf32>
    %88 = math.tanh %87 : vector<8x32xf32>
    %cst_48 = arith.constant 5.000000e-01 : f32
    %89 = vector.broadcast %cst_48 : f32 to vector<8x32xf32>
    %90 = arith.mulf %88, %89 : vector<8x32xf32>
    %cst_49 = arith.constant 5.000000e-01 : f32
    %91 = vector.broadcast %cst_49 : f32 to vector<8x32xf32>
    %92 = arith.addf %90, %91 : vector<8x32xf32>
    %93 = vector.extract_strided_slice %76 {offsets = [0, 64], sizes = [8, 32], strides = [1, 1]} : vector<8x128xf32> to vector<8x32xf32>
    %94 = math.tanh %93 : vector<8x32xf32>
    %95 = vector.extract_strided_slice %76 {offsets = [0, 96], sizes = [8, 32], strides = [1, 1]} : vector<8x128xf32> to vector<8x32xf32>
    %cst_50 = arith.constant 5.000000e-01 : f32
    %96 = vector.broadcast %cst_50 : f32 to vector<8x32xf32>
    %97 = arith.mulf %95, %96 : vector<8x32xf32>
    %98 = math.tanh %97 : vector<8x32xf32>
    %cst_51 = arith.constant 5.000000e-01 : f32
    %99 = vector.broadcast %cst_51 : f32 to vector<8x32xf32>
    %100 = arith.mulf %98, %99 : vector<8x32xf32>
    %cst_52 = arith.constant 5.000000e-01 : f32
    %101 = vector.broadcast %cst_52 : f32 to vector<8x32xf32>
    %102 = arith.addf %100, %101 : vector<8x32xf32>
    %103 = arith.mulf %92, %21 : vector<8x32xf32>
    %104 = arith.mulf %84, %94 : vector<8x32xf32>
    %105 = arith.addf %103, %104 : vector<8x32xf32>
    %106 = math.tanh %105 : vector<8x32xf32>
    %107 = arith.mulf %102, %106 : vector<8x32xf32>
    %cst_53 = arith.constant dense<0.000000e+00> : vector<8x192xf32>
    %108 = tpu.matmul %107, %5, %cst_53 {dimension_numbers = #tpu.dot_dimension_numbers<[1], [0], [0], [1], [0, 0, 1, 1], [], []>} : vector<8x32xf32>, vector<32x192xf32>, vector<8x192xf32> -> vector<8x192xf32>
    %109 = vector.extract_strided_slice %108 {offsets = [0, 0], sizes = [8, 32], strides = [1, 1]} : vector<8x192xf32> to vector<8x32xf32>
    %110 = vector.extract_strided_slice %108 {offsets = [0, 32], sizes = [8, 32], strides = [1, 1]} : vector<8x192xf32> to vector<8x32xf32>
    %111 = vector.extract_strided_slice %108 {offsets = [0, 64], sizes = [8, 128], strides = [1, 1]} : vector<8x192xf32> to vector<8x128xf32>
    %112 = vector.shape_cast %109 : vector<8x32xf32> to vector<8x1x32xf32>
    %113 = vector.broadcast %112 : vector<8x1x32xf32> to vector<8x8x32xf32>
    %114 = arith.addf %19, %113 : vector<8x8x32xf32>
    %115 = math.tanh %114 : vector<8x8x32xf32>
    %116 = vector.shape_cast %12 : vector<1x32xf32> to vector<1x1x32xf32>
    %117 = vector.broadcast %116 : vector<1x1x32xf32> to vector<8x8x32xf32>
    %118 = arith.mulf %115, %117 : vector<8x8x32xf32>
    %cst_54 = arith.constant dense<0.000000e+00> : vector<8x8xf32>
    %119 = vector.multi_reduction <add>, %118, %cst_54 [2] : vector<8x8x32xf32> to vector<8x8xf32>
    %cst_55 = arith.constant 0.000000e+00 : f32
    %120 = vector.broadcast %cst_55 : f32 to vector<8x8xf32>
    %121 = arith.cmpf ogt, %3, %120 : vector<8x8xf32>
    %cst_56 = arith.constant -1.000000e+10 : f32
    %122 = vector.broadcast %cst_56 : f32 to vector<8x8xf32>
    %123 = arith.select %121, %119, %122 : vector<8x8xi1>, vector<8x8xf32>
    %cst_57 = arith.constant dense<0xFF800000> : vector<8xf32>
    %124 = vector.multi_reduction <maximumf>, %123, %cst_57 [1] : vector<8x8xf32> to vector<8xf32>
    %125 = vector.shape_cast %124 : vector<8xf32> to vector<8x1xf32>
    %126 = vector.broadcast %125 : vector<8x1xf32> to vector<8x8xf32>
    %127 = arith.subf %123, %126 : vector<8x8xf32>
    %128 = math.exp %127 : vector<8x8xf32>
    %129 = arith.mulf %128, %3 : vector<8x8xf32>
    %cst_58 = arith.constant dense<0.000000e+00> : vector<8xf32>
    %130 = vector.multi_reduction <add>, %129, %cst_58 [1] : vector<8x8xf32> to vector<8xf32>
    %131 = vector.shape_cast %130 : vector<8xf32> to vector<8x1xf32>
    %132 = vector.broadcast %131 : vector<8x1xf32> to vector<8x8xf32>
    %133 = arith.divf %129, %132 : vector<8x8xf32>
    %134 = vector.shape_cast %133 : vector<8x8xf32> to vector<8x8x1xf32>
    %135 = vector.broadcast %134 : vector<8x8x1xf32> to vector<8x8x64xf32>
    %136 = arith.mulf %135, %2 : vector<8x8x64xf32>
    %cst_59 = arith.constant dense<0.000000e+00> : vector<8x64xf32>
    %137 = vector.multi_reduction <add>, %136, %cst_59 [1] : vector<8x8x64xf32> to vector<8x64xf32>
    %cst_60 = arith.constant dense<0.000000e+00> : vector<8x160xf32>
    %138 = tpu.matmul %137, %6, %cst_60 {dimension_numbers = #tpu.dot_dimension_numbers<[1], [0], [0], [1], [0, 0, 1, 1], [], []>} : vector<8x64xf32>, vector<64x160xf32>, vector<8x160xf32> -> vector<8x160xf32>
    %139 = vector.extract_strided_slice %138 {offsets = [0, 0], sizes = [8, 32], strides = [1, 1]} : vector<8x160xf32> to vector<8x32xf32>
    %140 = vector.extract_strided_slice %138 {offsets = [0, 32], sizes = [8, 128], strides = [1, 1]} : vector<8x160xf32> to vector<8x128xf32>
    %141 = arith.addf %110, %139 : vector<8x32xf32>
    %142 = vector.broadcast %9 : vector<1x32xf32> to vector<8x32xf32>
    %143 = arith.addf %141, %142 : vector<8x32xf32>
    %144 = math.tanh %143 : vector<8x32xf32>
    %cst_61 = arith.constant dense<0.000000e+00> : vector<8x128xf32>
    %145 = tpu.matmul %144, %7, %cst_61 {dimension_numbers = #tpu.dot_dimension_numbers<[1], [0], [0], [1], [0, 0, 1, 1], [], []>} : vector<8x32xf32>, vector<32x128xf32>, vector<8x128xf32> -> vector<8x128xf32>
    %146 = vector.broadcast %10 : vector<1x128xf32> to vector<8x128xf32>
    %147 = arith.addf %145, %146 : vector<8x128xf32>
    %c1 = arith.constant 1 : index
    %c0_62 = arith.constant 0 : index
    %c0_63 = arith.constant 0 : index
    %148 = vector.load %arg14[%c1, %c0_62, %c0_63] : memref<2x8x128xf32, #tpu.memory_space<vmem>>, vector<1x8x128xf32>
    %149 = vector.shape_cast %148 : vector<1x8x128xf32> to vector<8x128xf32>
    %150 = vector.shape_cast %147 : vector<8x128xf32> to vector<1x8x128xf32>
    tpu.vector_store %arg14[%c1, %c0_62, %c0_63], %150 {strides = array<i32>} : memref<2x8x128xf32, #tpu.memory_space<vmem>>, vector<1x8x128xf32>,
    %c1_i32 = arith.constant 1 : i32
    %c1_i32_64 = arith.constant 1 : i32
    %c1_i32_65 = arith.constant 1 : i32
    %c0_i32_66 = arith.constant 0 : i32
    %c0_i32_67 = arith.constant 0 : i32
    %151 = tpu.memref_slice %arg14[%c1_i32, %c0_i32_66, %c0_i32_67] : memref<2x8x128xf32, #tpu.memory_space<vmem>> -> memref<1x8x128xf32, #tpu.memory_space<vmem>>
    %152 = tpu.memref_squeeze %151 : memref<1x8x128xf32, #tpu.memory_space<vmem>> -> memref<8x128xf32, #tpu.memory_space<vmem>>
    %c0_i32_68 = arith.constant 0 : i32
    %153 = tpu.memref_slice %arg13[%c1_i32_64, %1, %c0_i32_68] : memref<6x8x128xf32, #tpu.memory_space<any>> -> memref<1x8x128xf32, #tpu.memory_space<any>>
    %154 = tpu.memref_squeeze %153 : memref<1x8x128xf32, #tpu.memory_space<any>> -> memref<8x128xf32, #tpu.memory_space<any>>
    %155 = tpu.memref_slice %arg15[%c1_i32_65] : memref<2x!tpu.dma_semaphore, #tpu.memory_space<semaphore_mem>> -> memref<1x!tpu.dma_semaphore, #tpu.memory_space<semaphore_mem>>
    %156 = tpu.memref_squeeze %155 : memref<1x!tpu.dma_semaphore, #tpu.memory_space<semaphore_mem>> -> memref<!tpu.dma_semaphore, #tpu.memory_space<semaphore_mem>>
    tpu.enqueue_dma source(%152 : memref<8x128xf32, #tpu.memory_space<vmem>>) target(%154 : memref<8x128xf32, #tpu.memory_space<any>>) target_semaphore(%156 : memref<!tpu.dma_semaphore, #tpu.memory_space<semaphore_mem>>)
    %c1_69 = arith.constant 1 : index
    %c0_70 = arith.constant 0 : index
    %c0_71 = arith.constant 0 : index
    %157 = vector.load %arg3[%c1_69, %c0_70, %c0_71] : memref<6x8x128xf32, #tpu.memory_space<vmem>>, vector<1x8x128xf32>
    %158 = vector.shape_cast %157 : vector<1x8x128xf32> to vector<8x128xf32>
    %159 = arith.addf %158, %111 : vector<8x128xf32>
    %160 = arith.addf %159, %140 : vector<8x128xf32>
    %161 = vector.broadcast %11 : vector<1x128xf32> to vector<8x128xf32>
    %162 = arith.addf %160, %161 : vector<8x128xf32>
    %163 = vector.extract_strided_slice %162 {offsets = [0, 0], sizes = [8, 32], strides = [1, 1]} : vector<8x128xf32> to vector<8x32xf32>
    %cst_72 = arith.constant 5.000000e-01 : f32
    %164 = vector.broadcast %cst_72 : f32 to vector<8x32xf32>
    %165 = arith.mulf %163, %164 : vector<8x32xf32>
    %166 = math.tanh %165 : vector<8x32xf32>
    %cst_73 = arith.constant 5.000000e-01 : f32
    %167 = vector.broadcast %cst_73 : f32 to vector<8x32xf32>
    %168 = arith.mulf %166, %167 : vector<8x32xf32>
    %cst_74 = arith.constant 5.000000e-01 : f32
    %169 = vector.broadcast %cst_74 : f32 to vector<8x32xf32>
    %170 = arith.addf %168, %169 : vector<8x32xf32>
    %171 = vector.extract_strided_slice %162 {offsets = [0, 32], sizes = [8, 32], strides = [1, 1]} : vector<8x128xf32> to vector<8x32xf32>
    %cst_75 = arith.constant 5.000000e-01 : f32
    %172 = vector.broadcast %cst_75 : f32 to vector<8x32xf32>
    %173 = arith.mulf %171, %172 : vector<8x32xf32>
    %174 = math.tanh %173 : vector<8x32xf32>
    %cst_76 = arith.constant 5.000000e-01 : f32
    %175 = vector.broadcast %cst_76 : f32 to vector<8x32xf32>
    %176 = arith.mulf %174, %175 : vector<8x32xf32>
    %cst_77 = arith.constant 5.000000e-01 : f32
    %177 = vector.broadcast %cst_77 : f32 to vector<8x32xf32>
    %178 = arith.addf %176, %177 : vector<8x32xf32>
    %179 = vector.extract_strided_slice %162 {offsets = [0, 64], sizes = [8, 32], strides = [1, 1]} : vector<8x128xf32> to vector<8x32xf32>
    %180 = math.tanh %179 : vector<8x32xf32>
    %181 = vector.extract_strided_slice %162 {offsets = [0, 96], sizes = [8, 32], strides = [1, 1]} : vector<8x128xf32> to vector<8x32xf32>
    %cst_78 = arith.constant 5.000000e-01 : f32
    %182 = vector.broadcast %cst_78 : f32 to vector<8x32xf32>
    %183 = arith.mulf %181, %182 : vector<8x32xf32>
    %184 = math.tanh %183 : vector<8x32xf32>
    %cst_79 = arith.constant 5.000000e-01 : f32
    %185 = vector.broadcast %cst_79 : f32 to vector<8x32xf32>
    %186 = arith.mulf %184, %185 : vector<8x32xf32>
    %cst_80 = arith.constant 5.000000e-01 : f32
    %187 = vector.broadcast %cst_80 : f32 to vector<8x32xf32>
    %188 = arith.addf %186, %187 : vector<8x32xf32>
    %189 = arith.mulf %178, %105 : vector<8x32xf32>
    %190 = arith.mulf %170, %180 : vector<8x32xf32>
    %191 = arith.addf %189, %190 : vector<8x32xf32>
    %192 = math.tanh %191 : vector<8x32xf32>
    %193 = arith.mulf %188, %192 : vector<8x32xf32>
    %cst_81 = arith.constant dense<0.000000e+00> : vector<8x192xf32>
    %194 = tpu.matmul %193, %5, %cst_81 {dimension_numbers = #tpu.dot_dimension_numbers<[1], [0], [0], [1], [0, 0, 1, 1], [], []>} : vector<8x32xf32>, vector<32x192xf32>, vector<8x192xf32> -> vector<8x192xf32>
    %195 = vector.extract_strided_slice %194 {offsets = [0, 0], sizes = [8, 32], strides = [1, 1]} : vector<8x192xf32> to vector<8x32xf32>
    %196 = vector.extract_strided_slice %194 {offsets = [0, 32], sizes = [8, 32], strides = [1, 1]} : vector<8x192xf32> to vector<8x32xf32>
    %197 = vector.extract_strided_slice %194 {offsets = [0, 64], sizes = [8, 128], strides = [1, 1]} : vector<8x192xf32> to vector<8x128xf32>
    %198 = vector.shape_cast %195 : vector<8x32xf32> to vector<8x1x32xf32>
    %199 = vector.broadcast %198 : vector<8x1x32xf32> to vector<8x8x32xf32>
    %200 = arith.addf %19, %199 : vector<8x8x32xf32>
    %201 = math.tanh %200 : vector<8x8x32xf32>
    %202 = vector.shape_cast %12 : vector<1x32xf32> to vector<1x1x32xf32>
    %203 = vector.broadcast %202 : vector<1x1x32xf32> to vector<8x8x32xf32>
    %204 = arith.mulf %201, %203 : vector<8x8x32xf32>
    %cst_82 = arith.constant dense<0.000000e+00> : vector<8x8xf32>
    %205 = vector.multi_reduction <add>, %204, %cst_82 [2] : vector<8x8x32xf32> to vector<8x8xf32>
    %cst_83 = arith.constant 0.000000e+00 : f32
    %206 = vector.broadcast %cst_83 : f32 to vector<8x8xf32>
    %207 = arith.cmpf ogt, %3, %206 : vector<8x8xf32>
    %cst_84 = arith.constant -1.000000e+10 : f32
    %208 = vector.broadcast %cst_84 : f32 to vector<8x8xf32>
    %209 = arith.select %207, %205, %208 : vector<8x8xi1>, vector<8x8xf32>
    %cst_85 = arith.constant dense<0xFF800000> : vector<8xf32>
    %210 = vector.multi_reduction <maximumf>, %209, %cst_85 [1] : vector<8x8xf32> to vector<8xf32>
    %211 = vector.shape_cast %210 : vector<8xf32> to vector<8x1xf32>
    %212 = vector.broadcast %211 : vector<8x1xf32> to vector<8x8xf32>
    %213 = arith.subf %209, %212 : vector<8x8xf32>
    %214 = math.exp %213 : vector<8x8xf32>
    %215 = arith.mulf %214, %3 : vector<8x8xf32>
    %cst_86 = arith.constant dense<0.000000e+00> : vector<8xf32>
    %216 = vector.multi_reduction <add>, %215, %cst_86 [1] : vector<8x8xf32> to vector<8xf32>
    %217 = vector.shape_cast %216 : vector<8xf32> to vector<8x1xf32>
    %218 = vector.broadcast %217 : vector<8x1xf32> to vector<8x8xf32>
    %219 = arith.divf %215, %218 : vector<8x8xf32>
    %220 = vector.shape_cast %219 : vector<8x8xf32> to vector<8x8x1xf32>
    %221 = vector.broadcast %220 : vector<8x8x1xf32> to vector<8x8x64xf32>
    %222 = arith.mulf %221, %2 : vector<8x8x64xf32>
    %cst_87 = arith.constant dense<0.000000e+00> : vector<8x64xf32>
    %223 = vector.multi_reduction <add>, %222, %cst_87 [1] : vector<8x8x64xf32> to vector<8x64xf32>
    %cst_88 = arith.constant dense<0.000000e+00> : vector<8x160xf32>
    %224 = tpu.matmul %223, %6, %cst_88 {dimension_numbers = #tpu.dot_dimension_numbers<[1], [0], [0], [1], [0, 0, 1, 1], [], []>} : vector<8x64xf32>, vector<64x160xf32>, vector<8x160xf32> -> vector<8x160xf32>
    %225 = vector.extract_strided_slice %224 {offsets = [0, 0], sizes = [8, 32], strides = [1, 1]} : vector<8x160xf32> to vector<8x32xf32>
    %226 = vector.extract_strided_slice %224 {offsets = [0, 32], sizes = [8, 128], strides = [1, 1]} : vector<8x160xf32> to vector<8x128xf32>
    %227 = arith.addf %196, %225 : vector<8x32xf32>
    %228 = vector.broadcast %9 : vector<1x32xf32> to vector<8x32xf32>
    %229 = arith.addf %227, %228 : vector<8x32xf32>
    %230 = math.tanh %229 : vector<8x32xf32>
    %cst_89 = arith.constant dense<0.000000e+00> : vector<8x128xf32>
    %231 = tpu.matmul %230, %7, %cst_89 {dimension_numbers = #tpu.dot_dimension_numbers<[1], [0], [0], [1], [0, 0, 1, 1], [], []>} : vector<8x32xf32>, vector<32x128xf32>, vector<8x128xf32> -> vector<8x128xf32>
    %232 = vector.broadcast %10 : vector<1x128xf32> to vector<8x128xf32>
    %233 = arith.addf %231, %232 : vector<8x128xf32>
    %c0_i32_90 = arith.constant 0 : i32
    %c0_i32_91 = arith.constant 0 : i32
    %c0_i32_92 = arith.constant 0 : i32
    %c0_i32_93 = arith.constant 0 : i32
    %c0_i32_94 = arith.constant 0 : i32
    %234 = tpu.memref_slice %arg14[%c0_i32_90, %c0_i32_93, %c0_i32_94] : memref<2x8x128xf32, #tpu.memory_space<vmem>> -> memref<1x8x128xf32, #tpu.memory_space<vmem>>
    %235 = tpu.memref_squeeze %234 : memref<1x8x128xf32, #tpu.memory_space<vmem>> -> memref<8x128xf32, #tpu.memory_space<vmem>>
    %c0_i32_95 = arith.constant 0 : i32
    %236 = tpu.memref_slice %arg13[%c0_i32_91, %1, %c0_i32_95] : memref<6x8x128xf32, #tpu.memory_space<any>> -> memref<1x8x128xf32, #tpu.memory_space<any>>
    %237 = tpu.memref_squeeze %236 : memref<1x8x128xf32, #tpu.memory_space<any>> -> memref<8x128xf32, #tpu.memory_space<any>>
    %238 = tpu.memref_slice %arg15[%c0_i32_92] : memref<2x!tpu.dma_semaphore, #tpu.memory_space<semaphore_mem>> -> memref<1x!tpu.dma_semaphore, #tpu.memory_space<semaphore_mem>>
    %239 = tpu.memref_squeeze %238 : memref<1x!tpu.dma_semaphore, #tpu.memory_space<semaphore_mem>> -> memref<!tpu.dma_semaphore, #tpu.memory_space<semaphore_mem>>
    tpu.wait_dma2 semaphore(%239 : memref<!tpu.dma_semaphore, #tpu.memory_space<semaphore_mem>>) src(%235 : memref<8x128xf32, #tpu.memory_space<vmem>>) dst(%237 : memref<8x128xf32, #tpu.memory_space<any>>)
    %c0_96 = arith.constant 0 : index
    %c0_97 = arith.constant 0 : index
    %c0_98 = arith.constant 0 : index
    %240 = vector.load %arg14[%c0_96, %c0_97, %c0_98] : memref<2x8x128xf32, #tpu.memory_space<vmem>>, vector<1x8x128xf32>
    %241 = vector.shape_cast %240 : vector<1x8x128xf32> to vector<8x128xf32>
    %242 = vector.shape_cast %233 : vector<8x128xf32> to vector<1x8x128xf32>
    tpu.vector_store %arg14[%c0_96, %c0_97, %c0_98], %242 {strides = array<i32>} : memref<2x8x128xf32, #tpu.memory_space<vmem>>, vector<1x8x128xf32>,
    %c0_i32_99 = arith.constant 0 : i32
    %c2_i32 = arith.constant 2 : i32
    %c0_i32_100 = arith.constant 0 : i32
    %c0_i32_101 = arith.constant 0 : i32
    %c0_i32_102 = arith.constant 0 : i32
    %243 = tpu.memref_slice %arg14[%c0_i32_99, %c0_i32_101, %c0_i32_102] : memref<2x8x128xf32, #tpu.memory_space<vmem>> -> memref<1x8x128xf32, #tpu.memory_space<vmem>>
    %244 = tpu.memref_squeeze %243 : memref<1x8x128xf32, #tpu.memory_space<vmem>> -> memref<8x128xf32, #tpu.memory_space<vmem>>
    %c0_i32_103 = arith.constant 0 : i32
    %245 = tpu.memref_slice %arg13[%c2_i32, %1, %c0_i32_103] : memref<6x8x128xf32, #tpu.memory_space<any>> -> memref<1x8x128xf32, #tpu.memory_space<any>>
    %246 = tpu.memref_squeeze %245 : memref<1x8x128xf32, #tpu.memory_space<any>> -> memref<8x128xf32, #tpu.memory_space<any>>
    %247 = tpu.memref_slice %arg15[%c0_i32_100] : memref<2x!tpu.dma_semaphore, #tpu.memory_space<semaphore_mem>> -> memref<1x!tpu.dma_semaphore, #tpu.memory_space<semaphore_mem>>
    %248 = tpu.memref_squeeze %247 : memref<1x!tpu.dma_semaphore, #tpu.memory_space<semaphore_mem>> -> memref<!tpu.dma_semaphore, #tpu.memory_space<semaphore_mem>>
    tpu.enqueue_dma source(%244 : memref<8x128xf32, #tpu.memory_space<vmem>>) target(%246 : memref<8x128xf32, #tpu.memory_space<any>>) target_semaphore(%248 : memref<!tpu.dma_semaphore, #tpu.memory_space<semaphore_mem>>)
    %c2 = arith.constant 2 : index
    %c0_104 = arith.constant 0 : index
    %c0_105 = arith.constant 0 : index
    %249 = vector.load %arg3[%c2, %c0_104, %c0_105] : memref<6x8x128xf32, #tpu.memory_space<vmem>>, vector<1x8x128xf32>
    %250 = vector.shape_cast %249 : vector<1x8x128xf32> to vector<8x128xf32>
    %251 = arith.addf %250, %197 : vector<8x128xf32>
    %252 = arith.addf %251, %226 : vector<8x128xf32>
    %253 = vector.broadcast %11 : vector<1x128xf32> to vector<8x128xf32>
    %254 = arith.addf %252, %253 : vector<8x128xf32>
    %255 = vector.extract_strided_slice %254 {offsets = [0, 0], sizes = [8, 32], strides = [1, 1]} : vector<8x128xf32> to vector<8x32xf32>
    %cst_106 = arith.constant 5.000000e-01 : f32
    %256 = vector.broadcast %cst_106 : f32 to vector<8x32xf32>
    %257 = arith.mulf %255, %256 : vector<8x32xf32>
    %258 = math.tanh %257 : vector<8x32xf32>
    %cst_107 = arith.constant 5.000000e-01 : f32
    %259 = vector.broadcast %cst_107 : f32 to vector<8x32xf32>
    %260 = arith.mulf %258, %259 : vector<8x32xf32>
    %cst_108 = arith.constant 5.000000e-01 : f32
    %261 = vector.broadcast %cst_108 : f32 to vector<8x32xf32>
    %262 = arith.addf %260, %261 : vector<8x32xf32>
    %263 = vector.extract_strided_slice %254 {offsets = [0, 32], sizes = [8, 32], strides = [1, 1]} : vector<8x128xf32> to vector<8x32xf32>
    %cst_109 = arith.constant 5.000000e-01 : f32
    %264 = vector.broadcast %cst_109 : f32 to vector<8x32xf32>
    %265 = arith.mulf %263, %264 : vector<8x32xf32>
    %266 = math.tanh %265 : vector<8x32xf32>
    %cst_110 = arith.constant 5.000000e-01 : f32
    %267 = vector.broadcast %cst_110 : f32 to vector<8x32xf32>
    %268 = arith.mulf %266, %267 : vector<8x32xf32>
    %cst_111 = arith.constant 5.000000e-01 : f32
    %269 = vector.broadcast %cst_111 : f32 to vector<8x32xf32>
    %270 = arith.addf %268, %269 : vector<8x32xf32>
    %271 = vector.extract_strided_slice %254 {offsets = [0, 64], sizes = [8, 32], strides = [1, 1]} : vector<8x128xf32> to vector<8x32xf32>
    %272 = math.tanh %271 : vector<8x32xf32>
    %273 = vector.extract_strided_slice %254 {offsets = [0, 96], sizes = [8, 32], strides = [1, 1]} : vector<8x128xf32> to vector<8x32xf32>
    %cst_112 = arith.constant 5.000000e-01 : f32
    %274 = vector.broadcast %cst_112 : f32 to vector<8x32xf32>
    %275 = arith.mulf %273, %274 : vector<8x32xf32>
    %276 = math.tanh %275 : vector<8x32xf32>
    %cst_113 = arith.constant 5.000000e-01 : f32
    %277 = vector.broadcast %cst_113 : f32 to vector<8x32xf32>
    %278 = arith.mulf %276, %277 : vector<8x32xf32>
    %cst_114 = arith.constant 5.000000e-01 : f32
    %279 = vector.broadcast %cst_114 : f32 to vector<8x32xf32>
    %280 = arith.addf %278, %279 : vector<8x32xf32>
    %281 = arith.mulf %270, %191 : vector<8x32xf32>
    %282 = arith.mulf %262, %272 : vector<8x32xf32>
    %283 = arith.addf %281, %282 : vector<8x32xf32>
    %284 = math.tanh %283 : vector<8x32xf32>
    %285 = arith.mulf %280, %284 : vector<8x32xf32>
    %cst_115 = arith.constant dense<0.000000e+00> : vector<8x192xf32>
    %286 = tpu.matmul %285, %5, %cst_115 {dimension_numbers = #tpu.dot_dimension_numbers<[1], [0], [0], [1], [0, 0, 1, 1], [], []>} : vector<8x32xf32>, vector<32x192xf32>, vector<8x192xf32> -> vector<8x192xf32>
    %287 = vector.extract_strided_slice %286 {offsets = [0, 0], sizes = [8, 32], strides = [1, 1]} : vector<8x192xf32> to vector<8x32xf32>
    %288 = vector.extract_strided_slice %286 {offsets = [0, 32], sizes = [8, 32], strides = [1, 1]} : vector<8x192xf32> to vector<8x32xf32>
    %289 = vector.extract_strided_slice %286 {offsets = [0, 64], sizes = [8, 128], strides = [1, 1]} : vector<8x192xf32> to vector<8x128xf32>
    %290 = vector.shape_cast %287 : vector<8x32xf32> to vector<8x1x32xf32>
    %291 = vector.broadcast %290 : vector<8x1x32xf32> to vector<8x8x32xf32>
    %292 = arith.addf %19, %291 : vector<8x8x32xf32>
    %293 = math.tanh %292 : vector<8x8x32xf32>
    %294 = vector.shape_cast %12 : vector<1x32xf32> to vector<1x1x32xf32>
    %295 = vector.broadcast %294 : vector<1x1x32xf32> to vector<8x8x32xf32>
    %296 = arith.mulf %293, %295 : vector<8x8x32xf32>
    %cst_116 = arith.constant dense<0.000000e+00> : vector<8x8xf32>
    %297 = vector.multi_reduction <add>, %296, %cst_116 [2] : vector<8x8x32xf32> to vector<8x8xf32>
    %cst_117 = arith.constant 0.000000e+00 : f32
    %298 = vector.broadcast %cst_117 : f32 to vector<8x8xf32>
    %299 = arith.cmpf ogt, %3, %298 : vector<8x8xf32>
    %cst_118 = arith.constant -1.000000e+10 : f32
    %300 = vector.broadcast %cst_118 : f32 to vector<8x8xf32>
    %301 = arith.select %299, %297, %300 : vector<8x8xi1>, vector<8x8xf32>
    %cst_119 = arith.constant dense<0xFF800000> : vector<8xf32>
    %302 = vector.multi_reduction <maximumf>, %301, %cst_119 [1] : vector<8x8xf32> to vector<8xf32>
    %303 = vector.shape_cast %302 : vector<8xf32> to vector<8x1xf32>
    %304 = vector.broadcast %303 : vector<8x1xf32> to vector<8x8xf32>
    %305 = arith.subf %301, %304 : vector<8x8xf32>
    %306 = math.exp %305 : vector<8x8xf32>
    %307 = arith.mulf %306, %3 : vector<8x8xf32>
    %cst_120 = arith.constant dense<0.000000e+00> : vector<8xf32>
    %308 = vector.multi_reduction <add>, %307, %cst_120 [1] : vector<8x8xf32> to vector<8xf32>
    %309 = vector.shape_cast %308 : vector<8xf32> to vector<8x1xf32>
    %310 = vector.broadcast %309 : vector<8x1xf32> to vector<8x8xf32>
    %311 = arith.divf %307, %310 : vector<8x8xf32>
    %312 = vector.shape_cast %311 : vector<8x8xf32> to vector<8x8x1xf32>
    %313 = vector.broadcast %312 : vector<8x8x1xf32> to vector<8x8x64xf32>
    %314 = arith.mulf %313, %2 : vector<8x8x64xf32>
    %cst_121 = arith.constant dense<0.000000e+00> : vector<8x64xf32>
    %315 = vector.multi_reduction <add>, %314, %cst_121 [1] : vector<8x8x64xf32> to vector<8x64xf32>
    %cst_122 = arith.constant dense<0.000000e+00> : vector<8x160xf32>
    %316 = tpu.matmul %315, %6, %cst_122 {dimension_numbers = #tpu.dot_dimension_numbers<[1], [0], [0], [1], [0, 0, 1, 1], [], []>} : vector<8x64xf32>, vector<64x160xf32>, vector<8x160xf32> -> vector<8x160xf32>
    %317 = vector.extract_strided_slice %316 {offsets = [0, 0], sizes = [8, 32], strides = [1, 1]} : vector<8x160xf32> to vector<8x32xf32>
    %318 = vector.extract_strided_slice %316 {offsets = [0, 32], sizes = [8, 128], strides = [1, 1]} : vector<8x160xf32> to vector<8x128xf32>
    %319 = arith.addf %288, %317 : vector<8x32xf32>
    %320 = vector.broadcast %9 : vector<1x32xf32> to vector<8x32xf32>
    %321 = arith.addf %319, %320 : vector<8x32xf32>
    %322 = math.tanh %321 : vector<8x32xf32>
    %cst_123 = arith.constant dense<0.000000e+00> : vector<8x128xf32>
    %323 = tpu.matmul %322, %7, %cst_123 {dimension_numbers = #tpu.dot_dimension_numbers<[1], [0], [0], [1], [0, 0, 1, 1], [], []>} : vector<8x32xf32>, vector<32x128xf32>, vector<8x128xf32> -> vector<8x128xf32>
    %324 = vector.broadcast %10 : vector<1x128xf32> to vector<8x128xf32>
    %325 = arith.addf %323, %324 : vector<8x128xf32>
    %c1_i32_124 = arith.constant 1 : i32
    %c1_i32_125 = arith.constant 1 : i32
    %c1_i32_126 = arith.constant 1 : i32
    %c0_i32_127 = arith.constant 0 : i32
    %c0_i32_128 = arith.constant 0 : i32
    %326 = tpu.memref_slice %arg14[%c1_i32_124, %c0_i32_127, %c0_i32_128] : memref<2x8x128xf32, #tpu.memory_space<vmem>> -> memref<1x8x128xf32, #tpu.memory_space<vmem>>
    %327 = tpu.memref_squeeze %326 : memref<1x8x128xf32, #tpu.memory_space<vmem>> -> memref<8x128xf32, #tpu.memory_space<vmem>>
    %c0_i32_129 = arith.constant 0 : i32
    %328 = tpu.memref_slice %arg13[%c1_i32_125, %1, %c0_i32_129] : memref<6x8x128xf32, #tpu.memory_space<any>> -> memref<1x8x128xf32, #tpu.memory_space<any>>
    %329 = tpu.memref_squeeze %328 : memref<1x8x128xf32, #tpu.memory_space<any>> -> memref<8x128xf32, #tpu.memory_space<any>>
    %330 = tpu.memref_slice %arg15[%c1_i32_126] : memref<2x!tpu.dma_semaphore, #tpu.memory_space<semaphore_mem>> -> memref<1x!tpu.dma_semaphore, #tpu.memory_space<semaphore_mem>>
    %331 = tpu.memref_squeeze %330 : memref<1x!tpu.dma_semaphore, #tpu.memory_space<semaphore_mem>> -> memref<!tpu.dma_semaphore, #tpu.memory_space<semaphore_mem>>
    tpu.wait_dma2 semaphore(%331 : memref<!tpu.dma_semaphore, #tpu.memory_space<semaphore_mem>>) src(%327 : memref<8x128xf32, #tpu.memory_space<vmem>>) dst(%329 : memref<8x128xf32, #tpu.memory_space<any>>)
    %c1_130 = arith.constant 1 : index
    %c0_131 = arith.constant 0 : index
    %c0_132 = arith.constant 0 : index
    %332 = vector.load %arg14[%c1_130, %c0_131, %c0_132] : memref<2x8x128xf32, #tpu.memory_space<vmem>>, vector<1x8x128xf32>
    %333 = vector.shape_cast %332 : vector<1x8x128xf32> to vector<8x128xf32>
    %334 = vector.shape_cast %325 : vector<8x128xf32> to vector<1x8x128xf32>
    tpu.vector_store %arg14[%c1_130, %c0_131, %c0_132], %334 {strides = array<i32>} : memref<2x8x128xf32, #tpu.memory_space<vmem>>, vector<1x8x128xf32>,
    %c1_i32_133 = arith.constant 1 : i32
    %c3_i32 = arith.constant 3 : i32
    %c1_i32_134 = arith.constant 1 : i32
    %c0_i32_135 = arith.constant 0 : i32
    %c0_i32_136 = arith.constant 0 : i32
    %335 = tpu.memref_slice %arg14[%c1_i32_133, %c0_i32_135, %c0_i32_136] : memref<2x8x128xf32, #tpu.memory_space<vmem>> -> memref<1x8x128xf32, #tpu.memory_space<vmem>>
    %336 = tpu.memref_squeeze %335 : memref<1x8x128xf32, #tpu.memory_space<vmem>> -> memref<8x128xf32, #tpu.memory_space<vmem>>
    %c0_i32_137 = arith.constant 0 : i32
    %337 = tpu.memref_slice %arg13[%c3_i32, %1, %c0_i32_137] : memref<6x8x128xf32, #tpu.memory_space<any>> -> memref<1x8x128xf32, #tpu.memory_space<any>>
    %338 = tpu.memref_squeeze %337 : memref<1x8x128xf32, #tpu.memory_space<any>> -> memref<8x128xf32, #tpu.memory_space<any>>
    %339 = tpu.memref_slice %arg15[%c1_i32_134] : memref<2x!tpu.dma_semaphore, #tpu.memory_space<semaphore_mem>> -> memref<1x!tpu.dma_semaphore, #tpu.memory_space<semaphore_mem>>
    %340 = tpu.memref_squeeze %339 : memref<1x!tpu.dma_semaphore, #tpu.memory_space<semaphore_mem>> -> memref<!tpu.dma_semaphore, #tpu.memory_space<semaphore_mem>>
    tpu.enqueue_dma source(%336 : memref<8x128xf32, #tpu.memory_space<vmem>>) target(%338 : memref<8x128xf32, #tpu.memory_space<any>>) target_semaphore(%340 : memref<!tpu.dma_semaphore, #tpu.memory_space<semaphore_mem>>)
    %c3 = arith.constant 3 : index
    %c0_138 = arith.constant 0 : index
    %c0_139 = arith.constant 0 : index
    %341 = vector.load %arg3[%c3, %c0_138, %c0_139] : memref<6x8x128xf32, #tpu.memory_space<vmem>>, vector<1x8x128xf32>
    %342 = vector.shape_cast %341 : vector<1x8x128xf32> to vector<8x128xf32>
    %343 = arith.addf %342, %289 : vector<8x128xf32>
    %344 = arith.addf %343, %318 : vector<8x128xf32>
    %345 = vector.broadcast %11 : vector<1x128xf32> to vector<8x128xf32>
    %346 = arith.addf %344, %345 : vector<8x128xf32>
    %347 = vector.extract_strided_slice %346 {offsets = [0, 0], sizes = [8, 32], strides = [1, 1]} : vector<8x128xf32> to vector<8x32xf32>
    %cst_140 = arith.constant 5.000000e-01 : f32
    %348 = vector.broadcast %cst_140 : f32 to vector<8x32xf32>
    %349 = arith.mulf %347, %348 : vector<8x32xf32>
    %350 = math.tanh %349 : vector<8x32xf32>
    %cst_141 = arith.constant 5.000000e-01 : f32
    %351 = vector.broadcast %cst_141 : f32 to vector<8x32xf32>
    %352 = arith.mulf %350, %351 : vector<8x32xf32>
    %cst_142 = arith.constant 5.000000e-01 : f32
    %353 = vector.broadcast %cst_142 : f32 to vector<8x32xf32>
    %354 = arith.addf %352, %353 : vector<8x32xf32>
    %355 = vector.extract_strided_slice %346 {offsets = [0, 32], sizes = [8, 32], strides = [1, 1]} : vector<8x128xf32> to vector<8x32xf32>
    %cst_143 = arith.constant 5.000000e-01 : f32
    %356 = vector.broadcast %cst_143 : f32 to vector<8x32xf32>
    %357 = arith.mulf %355, %356 : vector<8x32xf32>
    %358 = math.tanh %357 : vector<8x32xf32>
    %cst_144 = arith.constant 5.000000e-01 : f32
    %359 = vector.broadcast %cst_144 : f32 to vector<8x32xf32>
    %360 = arith.mulf %358, %359 : vector<8x32xf32>
    %cst_145 = arith.constant 5.000000e-01 : f32
    %361 = vector.broadcast %cst_145 : f32 to vector<8x32xf32>
    %362 = arith.addf %360, %361 : vector<8x32xf32>
    %363 = vector.extract_strided_slice %346 {offsets = [0, 64], sizes = [8, 32], strides = [1, 1]} : vector<8x128xf32> to vector<8x32xf32>
    %364 = math.tanh %363 : vector<8x32xf32>
    %365 = vector.extract_strided_slice %346 {offsets = [0, 96], sizes = [8, 32], strides = [1, 1]} : vector<8x128xf32> to vector<8x32xf32>
    %cst_146 = arith.constant 5.000000e-01 : f32
    %366 = vector.broadcast %cst_146 : f32 to vector<8x32xf32>
    %367 = arith.mulf %365, %366 : vector<8x32xf32>
    %368 = math.tanh %367 : vector<8x32xf32>
    %cst_147 = arith.constant 5.000000e-01 : f32
    %369 = vector.broadcast %cst_147 : f32 to vector<8x32xf32>
    %370 = arith.mulf %368, %369 : vector<8x32xf32>
    %cst_148 = arith.constant 5.000000e-01 : f32
    %371 = vector.broadcast %cst_148 : f32 to vector<8x32xf32>
    %372 = arith.addf %370, %371 : vector<8x32xf32>
    %373 = arith.mulf %362, %283 : vector<8x32xf32>
    %374 = arith.mulf %354, %364 : vector<8x32xf32>
    %375 = arith.addf %373, %374 : vector<8x32xf32>
    %376 = math.tanh %375 : vector<8x32xf32>
    %377 = arith.mulf %372, %376 : vector<8x32xf32>
    %cst_149 = arith.constant dense<0.000000e+00> : vector<8x192xf32>
    %378 = tpu.matmul %377, %5, %cst_149 {dimension_numbers = #tpu.dot_dimension_numbers<[1], [0], [0], [1], [0, 0, 1, 1], [], []>} : vector<8x32xf32>, vector<32x192xf32>, vector<8x192xf32> -> vector<8x192xf32>
    %379 = vector.extract_strided_slice %378 {offsets = [0, 0], sizes = [8, 32], strides = [1, 1]} : vector<8x192xf32> to vector<8x32xf32>
    %380 = vector.extract_strided_slice %378 {offsets = [0, 32], sizes = [8, 32], strides = [1, 1]} : vector<8x192xf32> to vector<8x32xf32>
    %381 = vector.extract_strided_slice %378 {offsets = [0, 64], sizes = [8, 128], strides = [1, 1]} : vector<8x192xf32> to vector<8x128xf32>
    %382 = vector.shape_cast %379 : vector<8x32xf32> to vector<8x1x32xf32>
    %383 = vector.broadcast %382 : vector<8x1x32xf32> to vector<8x8x32xf32>
    %384 = arith.addf %19, %383 : vector<8x8x32xf32>
    %385 = math.tanh %384 : vector<8x8x32xf32>
    %386 = vector.shape_cast %12 : vector<1x32xf32> to vector<1x1x32xf32>
    %387 = vector.broadcast %386 : vector<1x1x32xf32> to vector<8x8x32xf32>
    %388 = arith.mulf %385, %387 : vector<8x8x32xf32>
    %cst_150 = arith.constant dense<0.000000e+00> : vector<8x8xf32>
    %389 = vector.multi_reduction <add>, %388, %cst_150 [2] : vector<8x8x32xf32> to vector<8x8xf32>
    %cst_151 = arith.constant 0.000000e+00 : f32
    %390 = vector.broadcast %cst_151 : f32 to vector<8x8xf32>
    %391 = arith.cmpf ogt, %3, %390 : vector<8x8xf32>
    %cst_152 = arith.constant -1.000000e+10 : f32
    %392 = vector.broadcast %cst_152 : f32 to vector<8x8xf32>
    %393 = arith.select %391, %389, %392 : vector<8x8xi1>, vector<8x8xf32>
    %cst_153 = arith.constant dense<0xFF800000> : vector<8xf32>
    %394 = vector.multi_reduction <maximumf>, %393, %cst_153 [1] : vector<8x8xf32> to vector<8xf32>
    %395 = vector.shape_cast %394 : vector<8xf32> to vector<8x1xf32>
    %396 = vector.broadcast %395 : vector<8x1xf32> to vector<8x8xf32>
    %397 = arith.subf %393, %396 : vector<8x8xf32>
    %398 = math.exp %397 : vector<8x8xf32>
    %399 = arith.mulf %398, %3 : vector<8x8xf32>
    %cst_154 = arith.constant dense<0.000000e+00> : vector<8xf32>
    %400 = vector.multi_reduction <add>, %399, %cst_154 [1] : vector<8x8xf32> to vector<8xf32>
    %401 = vector.shape_cast %400 : vector<8xf32> to vector<8x1xf32>
    %402 = vector.broadcast %401 : vector<8x1xf32> to vector<8x8xf32>
    %403 = arith.divf %399, %402 : vector<8x8xf32>
    %404 = vector.shape_cast %403 : vector<8x8xf32> to vector<8x8x1xf32>
    %405 = vector.broadcast %404 : vector<8x8x1xf32> to vector<8x8x64xf32>
    %406 = arith.mulf %405, %2 : vector<8x8x64xf32>
    %cst_155 = arith.constant dense<0.000000e+00> : vector<8x64xf32>
    %407 = vector.multi_reduction <add>, %406, %cst_155 [1] : vector<8x8x64xf32> to vector<8x64xf32>
    %cst_156 = arith.constant dense<0.000000e+00> : vector<8x160xf32>
    %408 = tpu.matmul %407, %6, %cst_156 {dimension_numbers = #tpu.dot_dimension_numbers<[1], [0], [0], [1], [0, 0, 1, 1], [], []>} : vector<8x64xf32>, vector<64x160xf32>, vector<8x160xf32> -> vector<8x160xf32>
    %409 = vector.extract_strided_slice %408 {offsets = [0, 0], sizes = [8, 32], strides = [1, 1]} : vector<8x160xf32> to vector<8x32xf32>
    %410 = vector.extract_strided_slice %408 {offsets = [0, 32], sizes = [8, 128], strides = [1, 1]} : vector<8x160xf32> to vector<8x128xf32>
    %411 = arith.addf %380, %409 : vector<8x32xf32>
    %412 = vector.broadcast %9 : vector<1x32xf32> to vector<8x32xf32>
    %413 = arith.addf %411, %412 : vector<8x32xf32>
    %414 = math.tanh %413 : vector<8x32xf32>
    %cst_157 = arith.constant dense<0.000000e+00> : vector<8x128xf32>
    %415 = tpu.matmul %414, %7, %cst_157 {dimension_numbers = #tpu.dot_dimension_numbers<[1], [0], [0], [1], [0, 0, 1, 1], [], []>} : vector<8x32xf32>, vector<32x128xf32>, vector<8x128xf32> -> vector<8x128xf32>
    %416 = vector.broadcast %10 : vector<1x128xf32> to vector<8x128xf32>
    %417 = arith.addf %415, %416 : vector<8x128xf32>
    %c0_i32_158 = arith.constant 0 : i32
    %c2_i32_159 = arith.constant 2 : i32
    %c0_i32_160 = arith.constant 0 : i32
    %c0_i32_161 = arith.constant 0 : i32
    %c0_i32_162 = arith.constant 0 : i32
    %418 = tpu.memref_slice %arg14[%c0_i32_158, %c0_i32_161, %c0_i32_162] : memref<2x8x128xf32, #tpu.memory_space<vmem>> -> memref<1x8x128xf32, #tpu.memory_space<vmem>>
    %419 = tpu.memref_squeeze %418 : memref<1x8x128xf32, #tpu.memory_space<vmem>> -> memref<8x128xf32, #tpu.memory_space<vmem>>
    %c0_i32_163 = arith.constant 0 : i32
    %420 = tpu.memref_slice %arg13[%c2_i32_159, %1, %c0_i32_163] : memref<6x8x128xf32, #tpu.memory_space<any>> -> memref<1x8x128xf32, #tpu.memory_space<any>>
    %421 = tpu.memref_squeeze %420 : memref<1x8x128xf32, #tpu.memory_space<any>> -> memref<8x128xf32, #tpu.memory_space<any>>
    %422 = tpu.memref_slice %arg15[%c0_i32_160] : memref<2x!tpu.dma_semaphore, #tpu.memory_space<semaphore_mem>> -> memref<1x!tpu.dma_semaphore, #tpu.memory_space<semaphore_mem>>
    %423 = tpu.memref_squeeze %422 : memref<1x!tpu.dma_semaphore, #tpu.memory_space<semaphore_mem>> -> memref<!tpu.dma_semaphore, #tpu.memory_space<semaphore_mem>>
    tpu.wait_dma2 semaphore(%423 : memref<!tpu.dma_semaphore, #tpu.memory_space<semaphore_mem>>) src(%419 : memref<8x128xf32, #tpu.memory_space<vmem>>) dst(%421 : memref<8x128xf32, #tpu.memory_space<any>>)
    %c0_164 = arith.constant 0 : index
    %c0_165 = arith.constant 0 : index
    %c0_166 = arith.constant 0 : index
    %424 = vector.load %arg14[%c0_164, %c0_165, %c0_166] : memref<2x8x128xf32, #tpu.memory_space<vmem>>, vector<1x8x128xf32>
    %425 = vector.shape_cast %424 : vector<1x8x128xf32> to vector<8x128xf32>
    %426 = vector.shape_cast %417 : vector<8x128xf32> to vector<1x8x128xf32>
    tpu.vector_store %arg14[%c0_164, %c0_165, %c0_166], %426 {strides = array<i32>} : memref<2x8x128xf32, #tpu.memory_space<vmem>>, vector<1x8x128xf32>,
    %c0_i32_167 = arith.constant 0 : i32
    %c4_i32 = arith.constant 4 : i32
    %c0_i32_168 = arith.constant 0 : i32
    %c0_i32_169 = arith.constant 0 : i32
    %c0_i32_170 = arith.constant 0 : i32
    %427 = tpu.memref_slice %arg14[%c0_i32_167, %c0_i32_169, %c0_i32_170] : memref<2x8x128xf32, #tpu.memory_space<vmem>> -> memref<1x8x128xf32, #tpu.memory_space<vmem>>
    %428 = tpu.memref_squeeze %427 : memref<1x8x128xf32, #tpu.memory_space<vmem>> -> memref<8x128xf32, #tpu.memory_space<vmem>>
    %c0_i32_171 = arith.constant 0 : i32
    %429 = tpu.memref_slice %arg13[%c4_i32, %1, %c0_i32_171] : memref<6x8x128xf32, #tpu.memory_space<any>> -> memref<1x8x128xf32, #tpu.memory_space<any>>
    %430 = tpu.memref_squeeze %429 : memref<1x8x128xf32, #tpu.memory_space<any>> -> memref<8x128xf32, #tpu.memory_space<any>>
    %431 = tpu.memref_slice %arg15[%c0_i32_168] : memref<2x!tpu.dma_semaphore, #tpu.memory_space<semaphore_mem>> -> memref<1x!tpu.dma_semaphore, #tpu.memory_space<semaphore_mem>>
    %432 = tpu.memref_squeeze %431 : memref<1x!tpu.dma_semaphore, #tpu.memory_space<semaphore_mem>> -> memref<!tpu.dma_semaphore, #tpu.memory_space<semaphore_mem>>
    tpu.enqueue_dma source(%428 : memref<8x128xf32, #tpu.memory_space<vmem>>) target(%430 : memref<8x128xf32, #tpu.memory_space<any>>) target_semaphore(%432 : memref<!tpu.dma_semaphore, #tpu.memory_space<semaphore_mem>>)
    %c4 = arith.constant 4 : index
    %c0_172 = arith.constant 0 : index
    %c0_173 = arith.constant 0 : index
    %433 = vector.load %arg3[%c4, %c0_172, %c0_173] : memref<6x8x128xf32, #tpu.memory_space<vmem>>, vector<1x8x128xf32>
    %434 = vector.shape_cast %433 : vector<1x8x128xf32> to vector<8x128xf32>
    %435 = arith.addf %434, %381 : vector<8x128xf32>
    %436 = arith.addf %435, %410 : vector<8x128xf32>
    %437 = vector.broadcast %11 : vector<1x128xf32> to vector<8x128xf32>
    %438 = arith.addf %436, %437 : vector<8x128xf32>
    %439 = vector.extract_strided_slice %438 {offsets = [0, 0], sizes = [8, 32], strides = [1, 1]} : vector<8x128xf32> to vector<8x32xf32>
    %cst_174 = arith.constant 5.000000e-01 : f32
    %440 = vector.broadcast %cst_174 : f32 to vector<8x32xf32>
    %441 = arith.mulf %439, %440 : vector<8x32xf32>
    %442 = math.tanh %441 : vector<8x32xf32>
    %cst_175 = arith.constant 5.000000e-01 : f32
    %443 = vector.broadcast %cst_175 : f32 to vector<8x32xf32>
    %444 = arith.mulf %442, %443 : vector<8x32xf32>
    %cst_176 = arith.constant 5.000000e-01 : f32
    %445 = vector.broadcast %cst_176 : f32 to vector<8x32xf32>
    %446 = arith.addf %444, %445 : vector<8x32xf32>
    %447 = vector.extract_strided_slice %438 {offsets = [0, 32], sizes = [8, 32], strides = [1, 1]} : vector<8x128xf32> to vector<8x32xf32>
    %cst_177 = arith.constant 5.000000e-01 : f32
    %448 = vector.broadcast %cst_177 : f32 to vector<8x32xf32>
    %449 = arith.mulf %447, %448 : vector<8x32xf32>
    %450 = math.tanh %449 : vector<8x32xf32>
    %cst_178 = arith.constant 5.000000e-01 : f32
    %451 = vector.broadcast %cst_178 : f32 to vector<8x32xf32>
    %452 = arith.mulf %450, %451 : vector<8x32xf32>
    %cst_179 = arith.constant 5.000000e-01 : f32
    %453 = vector.broadcast %cst_179 : f32 to vector<8x32xf32>
    %454 = arith.addf %452, %453 : vector<8x32xf32>
    %455 = vector.extract_strided_slice %438 {offsets = [0, 64], sizes = [8, 32], strides = [1, 1]} : vector<8x128xf32> to vector<8x32xf32>
    %456 = math.tanh %455 : vector<8x32xf32>
    %457 = vector.extract_strided_slice %438 {offsets = [0, 96], sizes = [8, 32], strides = [1, 1]} : vector<8x128xf32> to vector<8x32xf32>
    %cst_180 = arith.constant 5.000000e-01 : f32
    %458 = vector.broadcast %cst_180 : f32 to vector<8x32xf32>
    %459 = arith.mulf %457, %458 : vector<8x32xf32>
    %460 = math.tanh %459 : vector<8x32xf32>
    %cst_181 = arith.constant 5.000000e-01 : f32
    %461 = vector.broadcast %cst_181 : f32 to vector<8x32xf32>
    %462 = arith.mulf %460, %461 : vector<8x32xf32>
    %cst_182 = arith.constant 5.000000e-01 : f32
    %463 = vector.broadcast %cst_182 : f32 to vector<8x32xf32>
    %464 = arith.addf %462, %463 : vector<8x32xf32>
    %465 = arith.mulf %454, %375 : vector<8x32xf32>
    %466 = arith.mulf %446, %456 : vector<8x32xf32>
    %467 = arith.addf %465, %466 : vector<8x32xf32>
    %468 = math.tanh %467 : vector<8x32xf32>
    %469 = arith.mulf %464, %468 : vector<8x32xf32>
    %cst_183 = arith.constant dense<0.000000e+00> : vector<8x192xf32>
    %470 = tpu.matmul %469, %5, %cst_183 {dimension_numbers = #tpu.dot_dimension_numbers<[1], [0], [0], [1], [0, 0, 1, 1], [], []>} : vector<8x32xf32>, vector<32x192xf32>, vector<8x192xf32> -> vector<8x192xf32>
    %471 = vector.extract_strided_slice %470 {offsets = [0, 0], sizes = [8, 32], strides = [1, 1]} : vector<8x192xf32> to vector<8x32xf32>
    %472 = vector.extract_strided_slice %470 {offsets = [0, 32], sizes = [8, 32], strides = [1, 1]} : vector<8x192xf32> to vector<8x32xf32>
    %473 = vector.shape_cast %471 : vector<8x32xf32> to vector<8x1x32xf32>
    %474 = vector.broadcast %473 : vector<8x1x32xf32> to vector<8x8x32xf32>
    %475 = arith.addf %19, %474 : vector<8x8x32xf32>
    %476 = math.tanh %475 : vector<8x8x32xf32>
    %477 = vector.shape_cast %12 : vector<1x32xf32> to vector<1x1x32xf32>
    %478 = vector.broadcast %477 : vector<1x1x32xf32> to vector<8x8x32xf32>
    %479 = arith.mulf %476, %478 : vector<8x8x32xf32>
    %cst_184 = arith.constant dense<0.000000e+00> : vector<8x8xf32>
    %480 = vector.multi_reduction <add>, %479, %cst_184 [2] : vector<8x8x32xf32> to vector<8x8xf32>
    %cst_185 = arith.constant 0.000000e+00 : f32
    %481 = vector.broadcast %cst_185 : f32 to vector<8x8xf32>
    %482 = arith.cmpf ogt, %3, %481 : vector<8x8xf32>
    %cst_186 = arith.constant -1.000000e+10 : f32
    %483 = vector.broadcast %cst_186 : f32 to vector<8x8xf32>
    %484 = arith.select %482, %480, %483 : vector<8x8xi1>, vector<8x8xf32>
    %cst_187 = arith.constant dense<0xFF800000> : vector<8xf32>
    %485 = vector.multi_reduction <maximumf>, %484, %cst_187 [1] : vector<8x8xf32> to vector<8xf32>
    %486 = vector.shape_cast %485 : vector<8xf32> to vector<8x1xf32>
    %487 = vector.broadcast %486 : vector<8x1xf32> to vector<8x8xf32>
    %488 = arith.subf %484, %487 : vector<8x8xf32>
    %489 = math.exp %488 : vector<8x8xf32>
    %490 = arith.mulf %489, %3 : vector<8x8xf32>
    %cst_188 = arith.constant dense<0.000000e+00> : vector<8xf32>
    %491 = vector.multi_reduction <add>, %490, %cst_188 [1] : vector<8x8xf32> to vector<8xf32>
    %492 = vector.shape_cast %491 : vector<8xf32> to vector<8x1xf32>
    %493 = vector.broadcast %492 : vector<8x1xf32> to vector<8x8xf32>
    %494 = arith.divf %490, %493 : vector<8x8xf32>
    %495 = vector.shape_cast %494 : vector<8x8xf32> to vector<8x8x1xf32>
    %496 = vector.broadcast %495 : vector<8x8x1xf32> to vector<8x8x64xf32>
    %497 = arith.mulf %496, %2 : vector<8x8x64xf32>
    %cst_189 = arith.constant dense<0.000000e+00> : vector<8x64xf32>
    %498 = vector.multi_reduction <add>, %497, %cst_189 [1] : vector<8x8x64xf32> to vector<8x64xf32>
    %cst_190 = arith.constant dense<0.000000e+00> : vector<8x160xf32>
    %499 = tpu.matmul %498, %6, %cst_190 {dimension_numbers = #tpu.dot_dimension_numbers<[1], [0], [0], [1], [0, 0, 1, 1], [], []>} : vector<8x64xf32>, vector<64x160xf32>, vector<8x160xf32> -> vector<8x160xf32>
    %500 = vector.extract_strided_slice %499 {offsets = [0, 0], sizes = [8, 32], strides = [1, 1]} : vector<8x160xf32> to vector<8x32xf32>
    %501 = arith.addf %472, %500 : vector<8x32xf32>
    %502 = vector.broadcast %9 : vector<1x32xf32> to vector<8x32xf32>
    %503 = arith.addf %501, %502 : vector<8x32xf32>
    %504 = math.tanh %503 : vector<8x32xf32>
    %cst_191 = arith.constant dense<0.000000e+00> : vector<8x128xf32>
    %505 = tpu.matmul %504, %7, %cst_191 {dimension_numbers = #tpu.dot_dimension_numbers<[1], [0], [0], [1], [0, 0, 1, 1], [], []>} : vector<8x32xf32>, vector<32x128xf32>, vector<8x128xf32> -> vector<8x128xf32>
    %506 = vector.broadcast %10 : vector<1x128xf32> to vector<8x128xf32>
    %507 = arith.addf %505, %506 : vector<8x128xf32>
    %c1_i32_192 = arith.constant 1 : i32
    %c3_i32_193 = arith.constant 3 : i32
    %c1_i32_194 = arith.constant 1 : i32
    %c0_i32_195 = arith.constant 0 : i32
    %c0_i32_196 = arith.constant 0 : i32
    %508 = tpu.memref_slice %arg14[%c1_i32_192, %c0_i32_195, %c0_i32_196] : memref<2x8x128xf32, #tpu.memory_space<vmem>> -> memref<1x8x128xf32, #tpu.memory_space<vmem>>
    %509 = tpu.memref_squeeze %508 : memref<1x8x128xf32, #tpu.memory_space<vmem>> -> memref<8x128xf32, #tpu.memory_space<vmem>>
    %c0_i32_197 = arith.constant 0 : i32
    %510 = tpu.memref_slice %arg13[%c3_i32_193, %1, %c0_i32_197] : memref<6x8x128xf32, #tpu.memory_space<any>> -> memref<1x8x128xf32, #tpu.memory_space<any>>
    %511 = tpu.memref_squeeze %510 : memref<1x8x128xf32, #tpu.memory_space<any>> -> memref<8x128xf32, #tpu.memory_space<any>>
    %512 = tpu.memref_slice %arg15[%c1_i32_194] : memref<2x!tpu.dma_semaphore, #tpu.memory_space<semaphore_mem>> -> memref<1x!tpu.dma_semaphore, #tpu.memory_space<semaphore_mem>>
    %513 = tpu.memref_squeeze %512 : memref<1x!tpu.dma_semaphore, #tpu.memory_space<semaphore_mem>> -> memref<!tpu.dma_semaphore, #tpu.memory_space<semaphore_mem>>
    tpu.wait_dma2 semaphore(%513 : memref<!tpu.dma_semaphore, #tpu.memory_space<semaphore_mem>>) src(%509 : memref<8x128xf32, #tpu.memory_space<vmem>>) dst(%511 : memref<8x128xf32, #tpu.memory_space<any>>)
    %c1_198 = arith.constant 1 : index
    %c0_199 = arith.constant 0 : index
    %c0_200 = arith.constant 0 : index
    %514 = vector.load %arg14[%c1_198, %c0_199, %c0_200] : memref<2x8x128xf32, #tpu.memory_space<vmem>>, vector<1x8x128xf32>
    %515 = vector.shape_cast %514 : vector<1x8x128xf32> to vector<8x128xf32>
    %516 = vector.shape_cast %507 : vector<8x128xf32> to vector<1x8x128xf32>
    tpu.vector_store %arg14[%c1_198, %c0_199, %c0_200], %516 {strides = array<i32>} : memref<2x8x128xf32, #tpu.memory_space<vmem>>, vector<1x8x128xf32>,
    %c1_i32_201 = arith.constant 1 : i32
    %c5_i32 = arith.constant 5 : i32
    %c1_i32_202 = arith.constant 1 : i32
    %c0_i32_203 = arith.constant 0 : i32
    %c0_i32_204 = arith.constant 0 : i32
    %517 = tpu.memref_slice %arg14[%c1_i32_201, %c0_i32_203, %c0_i32_204] : memref<2x8x128xf32, #tpu.memory_space<vmem>> -> memref<1x8x128xf32, #tpu.memory_space<vmem>>
    %518 = tpu.memref_squeeze %517 : memref<1x8x128xf32, #tpu.memory_space<vmem>> -> memref<8x128xf32, #tpu.memory_space<vmem>>
    %c0_i32_205 = arith.constant 0 : i32
    %519 = tpu.memref_slice %arg13[%c5_i32, %1, %c0_i32_205] : memref<6x8x128xf32, #tpu.memory_space<any>> -> memref<1x8x128xf32, #tpu.memory_space<any>>
    %520 = tpu.memref_squeeze %519 : memref<1x8x128xf32, #tpu.memory_space<any>> -> memref<8x128xf32, #tpu.memory_space<any>>
    %521 = tpu.memref_slice %arg15[%c1_i32_202] : memref<2x!tpu.dma_semaphore, #tpu.memory_space<semaphore_mem>> -> memref<1x!tpu.dma_semaphore, #tpu.memory_space<semaphore_mem>>
    %522 = tpu.memref_squeeze %521 : memref<1x!tpu.dma_semaphore, #tpu.memory_space<semaphore_mem>> -> memref<!tpu.dma_semaphore, #tpu.memory_space<semaphore_mem>>
    tpu.enqueue_dma source(%518 : memref<8x128xf32, #tpu.memory_space<vmem>>) target(%520 : memref<8x128xf32, #tpu.memory_space<any>>) target_semaphore(%522 : memref<!tpu.dma_semaphore, #tpu.memory_space<semaphore_mem>>)
    %c0_i32_206 = arith.constant 0 : i32
    %c4_i32_207 = arith.constant 4 : i32
    %c0_i32_208 = arith.constant 0 : i32
    %c0_i32_209 = arith.constant 0 : i32
    %c0_i32_210 = arith.constant 0 : i32
    %523 = tpu.memref_slice %arg14[%c0_i32_206, %c0_i32_209, %c0_i32_210] : memref<2x8x128xf32, #tpu.memory_space<vmem>> -> memref<1x8x128xf32, #tpu.memory_space<vmem>>
    %524 = tpu.memref_squeeze %523 : memref<1x8x128xf32, #tpu.memory_space<vmem>> -> memref<8x128xf32, #tpu.memory_space<vmem>>
    %c0_i32_211 = arith.constant 0 : i32
    %525 = tpu.memref_slice %arg13[%c4_i32_207, %1, %c0_i32_211] : memref<6x8x128xf32, #tpu.memory_space<any>> -> memref<1x8x128xf32, #tpu.memory_space<any>>
    %526 = tpu.memref_squeeze %525 : memref<1x8x128xf32, #tpu.memory_space<any>> -> memref<8x128xf32, #tpu.memory_space<any>>
    %527 = tpu.memref_slice %arg15[%c0_i32_208] : memref<2x!tpu.dma_semaphore, #tpu.memory_space<semaphore_mem>> -> memref<1x!tpu.dma_semaphore, #tpu.memory_space<semaphore_mem>>
    %528 = tpu.memref_squeeze %527 : memref<1x!tpu.dma_semaphore, #tpu.memory_space<semaphore_mem>> -> memref<!tpu.dma_semaphore, #tpu.memory_space<semaphore_mem>>
    tpu.wait_dma2 semaphore(%528 : memref<!tpu.dma_semaphore, #tpu.memory_space<semaphore_mem>>) src(%524 : memref<8x128xf32, #tpu.memory_space<vmem>>) dst(%526 : memref<8x128xf32, #tpu.memory_space<any>>)
    %c1_i32_212 = arith.constant 1 : i32
    %c5_i32_213 = arith.constant 5 : i32
    %c1_i32_214 = arith.constant 1 : i32
    %c0_i32_215 = arith.constant 0 : i32
    %c0_i32_216 = arith.constant 0 : i32
    %529 = tpu.memref_slice %arg14[%c1_i32_212, %c0_i32_215, %c0_i32_216] : memref<2x8x128xf32, #tpu.memory_space<vmem>> -> memref<1x8x128xf32, #tpu.memory_space<vmem>>
    %530 = tpu.memref_squeeze %529 : memref<1x8x128xf32, #tpu.memory_space<vmem>> -> memref<8x128xf32, #tpu.memory_space<vmem>>
    %c0_i32_217 = arith.constant 0 : i32
    %531 = tpu.memref_slice %arg13[%c5_i32_213, %1, %c0_i32_217] : memref<6x8x128xf32, #tpu.memory_space<any>> -> memref<1x8x128xf32, #tpu.memory_space<any>>
    %532 = tpu.memref_squeeze %531 : memref<1x8x128xf32, #tpu.memory_space<any>> -> memref<8x128xf32, #tpu.memory_space<any>>
    %533 = tpu.memref_slice %arg15[%c1_i32_214] : memref<2x!tpu.dma_semaphore, #tpu.memory_space<semaphore_mem>> -> memref<1x!tpu.dma_semaphore, #tpu.memory_space<semaphore_mem>>
    %534 = tpu.memref_squeeze %533 : memref<1x!tpu.dma_semaphore, #tpu.memory_space<semaphore_mem>> -> memref<!tpu.dma_semaphore, #tpu.memory_space<semaphore_mem>>
    tpu.wait_dma2 semaphore(%534 : memref<!tpu.dma_semaphore, #tpu.memory_space<semaphore_mem>>) src(%530 : memref<8x128xf32, #tpu.memory_space<vmem>>) dst(%532 : memref<8x128xf32, #tpu.memory_space<any>>)
    return
  }
  func.func @transform_0(%arg0: i32) -> (i32, i32, i32) {
    %c0_i32 = arith.constant 0 : i32
    %c0_i32_0 = arith.constant 0 : i32
    %c0_i32_1 = arith.constant 0 : i32
    return %arg0, %c0_i32, %c0_i32_0 : i32, i32, i32
  }
  func.func @transform_1(%arg0: i32) -> (i32, i32) {
    %c0_i32 = arith.constant 0 : i32
    %c0_i32_0 = arith.constant 0 : i32
    return %arg0, %c0_i32 : i32, i32
  }
  func.func @transform_2(%arg0: i32) -> (i32, i32, i32) {
    %c0_i32 = arith.constant 0 : i32
    %c0_i32_0 = arith.constant 0 : i32
    %c0_i32_1 = arith.constant 0 : i32
    return %c0_i32, %arg0, %c0_i32_0 : i32, i32, i32
  }
  func.func @transform_3(%arg0: i32) -> (i32, i32) {
    %c0_i32 = arith.constant 0 : i32
    %c0_i32_0 = arith.constant 0 : i32
    %c0_i32_1 = arith.constant 0 : i32
    return %c0_i32, %c0_i32_0 : i32, i32
  }
  func.func @transform_4(%arg0: i32) -> (i32, i32) {
    %c0_i32 = arith.constant 0 : i32
    %c0_i32_0 = arith.constant 0 : i32
    %c0_i32_1 = arith.constant 0 : i32
    return %c0_i32, %c0_i32_0 : i32, i32
  }
  func.func @transform_5(%arg0: i32) -> (i32, i32) {
    %c0_i32 = arith.constant 0 : i32
    %c0_i32_0 = arith.constant 0 : i32
    %c0_i32_1 = arith.constant 0 : i32
    return %c0_i32, %c0_i32_0 : i32, i32
  }
  func.func @transform_6(%arg0: i32) -> (i32, i32) {
    %c0_i32 = arith.constant 0 : i32
    %c0_i32_0 = arith.constant 0 : i32
    %c0_i32_1 = arith.constant 0 : i32
    return %c0_i32, %c0_i32_0 : i32, i32
  }
  func.func @transform_7(%arg0: i32) -> (i32, i32) {
    %c0_i32 = arith.constant 0 : i32
    %c0_i32_0 = arith.constant 0 : i32
    %c0_i32_1 = arith.constant 0 : i32
    return %c0_i32, %c0_i32_0 : i32, i32
  }
  func.func @transform_8(%arg0: i32) -> (i32, i32) {
    %c0_i32 = arith.constant 0 : i32
    %c0_i32_0 = arith.constant 0 : i32
    %c0_i32_1 = arith.constant 0 : i32
    return %c0_i32, %c0_i32_0 : i32, i32
  }
  func.func @transform_9(%arg0: i32) -> (i32, i32) {
    %c0_i32 = arith.constant 0 : i32
    %c0_i32_0 = arith.constant 0 : i32
    %c0_i32_1 = arith.constant 0 : i32
    return %c0_i32, %c0_i32_0 : i32, i32
  }
  func.func @transform_10(%arg0: i32) -> (i32, i32) {
    %c0_i32 = arith.constant 0 : i32
    %c0_i32_0 = arith.constant 0 : i32
    %c0_i32_1 = arith.constant 0 : i32
    return %c0_i32, %c0_i32_0 : i32, i32
  }
  func.func @transform_11(%arg0: i32) -> (i32, i32) {
    %c0_i32 = arith.constant 0 : i32
    %c0_i32_0 = arith.constant 0 : i32
    %c0_i32_1 = arith.constant 0 : i32
    return %c0_i32, %c0_i32_0 : i32, i32
  }
}

</mosaic_0001>

<bundles_post_ra>
// kernel: tpu_custom_call.1
= control target key start
LH: loop header
LB: loop body
LE: loop exit
PB: predicated region body
PF: predicated region fallthrough
CT: control target
= control target key end

     0   :  { %17 = vsyncpa [#allocation5], 0  ;;  %s6973_s0 = inlined_call_operand.vmem [shape: f32[8,8,64], index: 0, kind: input, shape index: {}]   ;;  %s6974_s1 = inlined_call_operand.hbm [shape: f32[8,8], index: 1, kind: input, shape index: {}]   ;;  %s6975_s2 = inlined_call_operand.hbm [shape: f32[6,8,128], index: 2, kind: input, shape index: {}]   ;;  %s6976_s3 = inlined_call_operand.vmem [shape: f32[64,32], index: 3, kind: input, shape index: {}]   ;;  %s6977_s4 = inlined_call_operand.hbm [shape: f32[32,192], index: 4, kind: input, shape index: {}]   ;;  %s6978_s5 = inlined_call_operand.hbm [shape: f32[64,160], index: 5, kind: input, shape index: {}]   ;;  %s6979_s6 = inlined_call_operand.vmem [shape: f32[32,128], index: 6, kind: input, shape index: {}]   ;;  %s6980_s7 = inlined_call_operand.vmem [shape: f32[1,32], index: 7, kind: input, shape index: {}]   ;;  %s6981_s8 = inlined_call_operand.vmem [shape: f32[1,32], index: 8, kind: input, shape index: {}]   ;;  %s6982_s9 = inlined_call_operand.vmem [shape: f32[1,128], index: 9, kind: input, shape index: {}]   ;;  %s6983_s10 = inlined_call_operand.vmem [shape: f32[1,128], index: 10, kind: input, shape index: {}]   ;;  %s6984_s11 = inlined_call_operand.vmem [shape: f32[1,32], index: 11, kind: input, shape index: {}]   ;;  %s6985_s12 = inlined_call_operand.hbm [shape: f32[6,8,128], index: 12, kind: output, shape index: {}]  }
   0x1   :  { %18 = vsyncpa [#allocation7], 0 }
   0x2   :  { %19 = vsyncpa [#allocation10], 0  ;;  %s5560_s21 = smov [#allocation6]   ;;  %s5307_s25 = scalar_lea.hbm %s6975_s2, 768 }
   0x3   :  { %s37_s22 = sshll.u32 %s5560_s21, 4  ;;  %p5308_p0 = scmp.ne.s32.totalorder %s6975_s2, %s5307_s25  ;;  %s38_s22 = int_to_ptr.vmem [resolvable:$true] %s37_s22 }
   0x4   :  { %p5311_p1 = scmp.lt.u32.totalorder %s5307_s25, %s6975_s2 }
   0x6   :  { %p5313_p2 = pnand %p5311_p1, %p5308_p0 }
   0x8   :  { %5316 = shalt.err (!%p5313_p2)
}
   0x9   :  { %s5317_s30 = scalar_lea.vmem %s38_s22, 768  ;;  %p5322_p4 = scmp.lt.s32.totalorder %s38_s22, %s38_s22 }
   0xa   :  { %p5318_p3 = scmp.ne.s32.totalorder %s38_s22, %s5317_s30  ;;  %p5323_p5 = scmp.lt.s32.totalorder %s5317_s30, %s5317_s30 }
   0xc   :  { %p5324_p6 = por %p5323_p5, %p5322_p4 }
   0xe   :  { %p5325_p7 = pnand %p5324_p6, %p5318_p3 }
  0x10   :  { %5328 = shalt.err (!%p5325_p7)
}
  0x11   :  { %s5561_s13 = smov 128   ;;  %s5562_s14 = smov 8  }
  0x12   :  { %43 = dma.hbm_to_vmem [thread:$0]  %s6975_s2, 768, %s38_s22, [#allocation7], %s5561_s13, %s5561_s13, %s5562_s14  }
  0x13   :  { %s5563_s17 = smov [#allocation4]   ;;  %s5564_s19 = smov [#allocation8]  }
  0x14   :  { %s28_s18 = sshll.u32 %s5563_s17, 4  ;;  %s51_s20 = sshll.u32 %s5564_s19, 4  ;;  %s29_s18 = int_to_ptr.vmem [resolvable:$true] %s28_s18  ;;  %s52_s20 = int_to_ptr.vmem [resolvable:$true] %s51_s20 }
  0x15   :  { %s5329_s24 = scalar_lea.hbm %s6974_s1, 128 }
  0x16   :  { %p5330_p8 = scmp.ne.s32.totalorder %s6974_s1, %s5329_s24  ;;  %p5333_p9 = scmp.lt.u32.totalorder %s5329_s24, %s6974_s1 }
  0x18   :  { %p5335_p10 = pnand %p5333_p9, %p5330_p8 }
  0x1a   :  { %5338 = shalt.err (!%p5335_p10)
}
  0x1b   :  { %s5339_s2 = scalar_lea.vmem %s29_s18, 128  ;;  %p5344_p12 = scmp.lt.s32.totalorder %s29_s18, %s29_s18 }
  0x1c   :  { %p5340_p11 = scmp.ne.s32.totalorder %s29_s18, %s5339_s2  ;;  %p5345_p13 = scmp.lt.s32.totalorder %s5339_s2, %s5339_s2 }
  0x1e   :  { %p5346_p0 = por %p5345_p13, %p5344_p12 }
  0x20   :  { %p5347_p1 = pnand %p5346_p0, %p5340_p11 }
  0x22   :  { %5350 = shalt.err (!%p5347_p1)
}
  0x23   :  { %31 = dma.hbm_to_vmem [thread:$0]  %s6974_s1, 128, %s29_s18, [#allocation5]  }
  0x24   :  { %s5351_s14 = scalar_lea.hbm %s6977_s4, 1024 }
  0x25   :  { %p5352_p2 = scmp.ne.s32.totalorder %s6977_s4, %s5351_s14  ;;  %p5355_p3 = scmp.lt.u32.totalorder %s5351_s14, %s6977_s4 }
  0x27   :  { %p5357_p4 = pnand %p5355_p3, %p5352_p2 }
  0x29   :  { %5360 = shalt.err (!%p5357_p4)
}
  0x2a   :  { %s5361_s21 = scalar_lea.vmem %s52_s20, 1024  ;;  %p5366_p6 = scmp.lt.s32.totalorder %s52_s20, %s52_s20 }
  0x2b   :  { %p5362_p5 = scmp.ne.s32.totalorder %s52_s20, %s5361_s21  ;;  %p5367_p7 = scmp.lt.s32.totalorder %s5361_s21, %s5361_s21 }
  0x2d   :  { %p5368_p8 = por %p5367_p7, %p5366_p6 }
  0x2f   :  { %p5369_p9 = pnand %p5368_p8, %p5362_p5 }
  0x31   :  { %5372 = shalt.err (!%p5369_p9)
}
  0x32   :  { %s5565_s1 = smov 256   ;;  %s5566_s18 = smov 16  }
  0x33   :  { %57 = dma.hbm_to_vmem [thread:$0]  %s6977_s4, 1024, %s52_s20, [#allocation7], %s5565_s1, %s5565_s1, %s5566_s18  }
  0x34   :  { %s5567_s25 = smov [#allocation9]   ;;  %s5373_s2 = scalar_lea.hbm %s6978_s5, 2048 }
  0x35   :  { %s63_s26 = sshll.u32 %s5567_s25, 4  ;;  %p5374_p10 = scmp.ne.s32.totalorder %s6978_s5, %s5373_s2  ;;  %s64_s26 = int_to_ptr.vmem [resolvable:$true] %s63_s26 }
  0x36   :  { %p5377_p11 = scmp.lt.u32.totalorder %s5373_s2, %s6978_s5 }
  0x38   :  { %p5379_p12 = pnand %p5377_p11, %p5374_p10 }
  0x3a   :  { %5382 = shalt.err (!%p5379_p12)
}
  0x3b   :  { %s5383_s14 = scalar_lea.vmem %s64_s26, 2048  ;;  %p5388_p0 = scmp.lt.s32.totalorder %s64_s26, %s64_s26 }
  0x3c   :  { %p5384_p13 = scmp.ne.s32.totalorder %s64_s26, %s5383_s14  ;;  %p5389_p1 = scmp.lt.s32.totalorder %s5383_s14, %s5383_s14 }
  0x3e   :  { %p5390_p2 = por %p5389_p1, %p5388_p0 }
  0x40   :  { %p5391_p3 = pnand %p5390_p2, %p5384_p13 }
  0x42   :  { %5394 = shalt.err (!%p5391_p3)
}
  0x43   :  { %69 = dma.hbm_to_vmem [thread:$0]  %s6978_s5, 2048, %s64_s26, [#allocation10], %s5565_s1, %s5565_s1, %s5566_s18  }
  0x44   :  { %5542 = dma.done.wait [#allocation5], 128  }
  0x45   :  { %5543 = vsyncadd [#allocation5], 4294967168 }
  0x46   :  { %5544 = dma.done.wait [#allocation7], 1792  }
  0x47   :  { %5545 = vsyncadd [#allocation7], 4294965504 }
  0x48   :  { %5546 = dma.done.wait [#allocation10], 2048  }
  0x49   :  { %5547 = vsyncadd [#allocation10], 4294965248  ;;  %v6986_v0 = vmov 0.0|0.0   ;;  %vm5569_vm0 = vmmov 0   ;;  %v6988_v1 = vmov 0.0   ;;  %v104_v2 = vld [vmem:[%s6976_s3] sm:$0xff]  ;;  %v816_v48 = vlaneseq }
  0x4a   :  { %4842 = vmatprep.subr.bf16.mxu0 %v6986_v0  ;;  %4640 = vmatprep.mubr.msk.f32.mxu0 %vm5569_vm0, %v6988_v1  ;;  %v105_v3 = vld [vmem:[%s6976_s3 + $0x8] sm:$0xff]  ;;  %v106_v4 = vld [vmem:[%s6976_s3 + $0x10] sm:$0xff]  ;;  %v107_v6 = vld [vmem:[%s6976_s3 + $0x18] sm:$0xff]  ;;  %vm151_vm1 = vcmask 523264   ;;  %v5571_v46 = vmov 1966171168  }
  0x4b   :  { %4854 = vmatprep.subr.bf16.mxu1 %v6986_v0  ;;  %4659 = vmatprep.mubr.msk.f32.mxu1 %vm5569_vm0, %v6988_v1  ;;  %v5705_v5 = vpack.c.bf16 %v105_v3, %v104_v2  ;;  %v5711_v7 = vpack.c.bf16 %v107_v6, %v106_v4  ;;  %v108_v8 = vld [vmem:[%s6976_s3 + $0x20] sm:$0xff]  ;;  %v109_v9 = vld [vmem:[%s6976_s3 + $0x28] sm:$0xff]  ;;  %v110_v11 = vld [vmem:[%s6976_s3 + $0x30] sm:$0xff]  ;;  %v814_v47 = vunpack.c.l.s4 %v5571_v46  ;;  %v5877_v52 = vshrl.u32 %v816_v48, 7  ;;  %s5572_s27 = smov 64   ;;  %s5573_s28 = smov 96  }
  0x4c   :  { %v5723_v10 = vpack.c.bf16 %v109_v9, %v108_v8  ;;  %v111_v12 = vld [vmem:[%s6976_s3 + $0x38] sm:$0xff]  ;;  %v5744_v14 = vld [vmem:[%s6973_s0] sm:$0xff]  ;;  %v5750_v15 = vld [vmem:[%s6973_s0 + $0x8] sm:$0xff]  ;;  %vm736_vm2 = vcmask 261120   ;;  %vm998_vm3 = vcmask 1041409   ;;  %vm1000_vm4 = vcmask 1042434  }
  0x4d   :  { %4844 = vmatpush3.bf16.msra.mxu0 %v5705_v5  ;;  %4856 = vmatpush3.bf16.msra.mxu1 %v5705_v5  ;;  %v5735_v13 = vpack.c.bf16 %v111_v12, %v110_v11  ;;  %7044 = vst [vmem:[#allocation34_spill] sm:$0xff] %v5744_v14  ;;  %7045 = vst [vmem:[#allocation35_spill] sm:$0xff] %v5750_v15  ;;  %v5778_v16 = vld [vmem:[%s6973_s0 + $0x10] sm:$0xff]  ;;  %v5786_v17 = vld [vmem:[%s6973_s0 + $0x18] sm:$0xff]  ;;  %v815_v51 = vunpack.c.0.s8 %v814_v47  ;;  %v5894_v61 = vsub.s32 0, %v5877_v52  ;;  %vm1002_vm5 = vcmask 1043459  }
  0x4e   :  { %4845 = vmatprep.subr.bf16.mxu0 %v6986_v0  ;;  %4857 = vmatprep.subr.bf16.mxu1 %v6986_v0  ;;  %7046 = vst [vmem:[#allocation36_spill] sm:$0xff] %v5778_v16  ;;  %7047 = vst [vmem:[#allocation37_spill] sm:$0xff] %v5786_v17  ;;  %v5812_v18 = vld [vmem:[%s6973_s0 + $0x20] sm:$0xff]  ;;  %v5819_v19 = vld [vmem:[%s6973_s0 + $0x28] sm:$0xff]  ;;  %vm1004_vm6 = vcmask 1044484   ;;  %vm1006_vm7 = vcmask 1045509  }
  0x4f   :  { %7048 = vst [vmem:[#allocation38_spill] sm:$0xff] %v5812_v18  ;;  %7049 = vst [vmem:[#allocation39_spill] sm:$0xff] %v5819_v19  ;;  %v113_v20 = vld [vmem:[#allocation8 + $0x8] sm:$0xff]  ;;  %v115_v21 = vld [vmem:[#allocation8 + $0x18] sm:$0xff]  ;;  %v5880_v55 = vsub.s32 %v815_v51, %v5877_v52  ;;  %vm1008_vm8 = vcmask 1046534   ;;  %vm1010_vm9 = vcmask 1047559  }
  0x50   :  { %v5840_v22 = vpack.c.bf16 %v115_v21, %v113_v20  ;;  %v112_v23 = vld [vmem:[#allocation8] sm:$0xff]  ;;  %v114_v24 = vld [vmem:[#allocation8 + $0x10] sm:$0xff]  ;;  %v117_v25 = vld [vmem:[#allocation8 + $0x28] sm:$0xff]  ;;  %vm1014_vm11 = vcmask 64512   ;;  %vm1359_vm12 = vcmask 785408   ;;  %s5574_s29 = smov 32  }
  0x51   :  { %4847 = vmatpush3.bf16.msra.mxu0 %v5711_v7  ;;  %4859 = vmatpush3.bf16.msra.mxu1 %v5711_v7  ;;  %v119_v26 = vld [vmem:[#allocation8 + $0x38] sm:$0xff]  ;;  %v5848_v27 = vld [vmem:[%s6973_s0 + $0x30] sm:$0xff]  ;;  %v5850_v28 = vpack.c.bf16 %v114_v24, %v112_v23  ;;  %v116_v30 = vld [vmem:[#allocation8 + $0x20] sm:$0xff] }
  0x52   :  { %4848 = vmatprep.subr.bf16.mxu0 %v6986_v0  ;;  %4860 = vmatprep.subr.bf16.mxu1 %v6986_v0  ;;  %7050 = vst [vmem:[#allocation40_spill] sm:$0xff] %v5840_v22  ;;  %7051 = vst [vmem:[#allocation41_spill] sm:$0xff] %v5848_v27  ;;  %v5853_v29 = vpack.c.bf16 %v119_v26, %v117_v25  ;;  %v118_v31 = vld [vmem:[#allocation8 + $0x30] sm:$0xff]  ;;  %v4490_v57 = vld [vmem:[%s6980_s7] ss:$0 sm:$0xff] }
  0x53   :  { %v5859_v32 = vld [vmem:[%s6973_s0 + $0x38] sm:$0xff]  ;;  %v5864_v33 = vpack.c.bf16 %v118_v31, %v116_v30  ;;  %v5936_v47 = vld [vmem:[%s6984_s11] ss:$0 sm:$0xff] }
  0x54   :  { %7052 = vst [vmem:[#allocation42_spill] sm:$0xff] %v5859_v32  ;;  %7054 = vst [vmem:[#allocation44_spill] sm:$0xff] %v5936_v47 }
  0x55   :  { %4850 = vmatpush3.bf16.msra.mxu0 %v5723_v10  ;;  %4862 = vmatpush3.bf16.msra.mxu1 %v5723_v10 }
  0x56   :  { %4851 = vmatprep.subr.bf16.mxu0 %v6986_v0  ;;  %4863 = vmatprep.subr.bf16.mxu1 %v6986_v0 }
  0x59   :  { %4853 = vmatpush3.bf16.msra.mxu0 %v5735_v13  ;;  %4865 = vmatpush3.bf16.msra.mxu1 %v5735_v13 }
  0x5a   :  { %4866 = vmatprep.subr.bf16.mxu0 %v6986_v0  ;;  %4878 = vmatprep.subr.bf16.mxu1 %v6986_v0 }
  0x5c   :  { %4641 = vmatmul.mubr.msk.f32.vlgmr.msra.gmra.mrb[0].mxu0 %vm151_vm1, %v5744_v14  ;;  %4660 = vmatmul.mubr.msk.f32.vlgmr.msra.gmra.mrb[0].mxu1 %vm151_vm1, %v5750_v15 }
  0x5d   :  { %4868 = vmatpush3.bf16.msra.mxu0 %v5705_v5  ;;  %4678 = vmatprep.mubr.msk.f32.mxu0 %vm5569_vm0, %v6988_v1 }
  0x5e   :  { %4869 = vmatprep.subr.bf16.mxu0 %v6986_v0  ;;  %4880 = vmatpush3.bf16.msra.mxu1 %v5705_v5 }
  0x5f   :  { %4881 = vmatprep.subr.bf16.mxu1 %v6986_v0  ;;  %4697 = vmatprep.mubr.msk.f32.mxu1 %vm5569_vm0, %v6988_v1 }
  0x61   :  { %4871 = vmatpush3.bf16.msra.mxu0 %v5711_v7 }
  0x62   :  { %4872 = vmatprep.subr.bf16.mxu0 %v6986_v0  ;;  %4883 = vmatpush3.bf16.msra.mxu1 %v5711_v7 }
  0x63   :  { %4884 = vmatprep.subr.bf16.mxu1 %v6986_v0 }
  0x65   :  { %4874 = vmatpush3.bf16.msra.mxu0 %v5723_v10 }
  0x66   :  { %4875 = vmatprep.subr.bf16.mxu0 %v6986_v0  ;;  %4886 = vmatpush3.bf16.msra.mxu1 %v5723_v10 }
  0x67   :  { %4887 = vmatprep.subr.bf16.mxu1 %v6986_v0 }
  0x69   :  { %4877 = vmatpush3.bf16.msra.mxu0 %v5735_v13 }
  0x6a   :  { %4890 = vmatprep.subr.bf16.mxu0 %v6986_v0  ;;  %4889 = vmatpush3.bf16.msra.mxu1 %v5735_v13 }
  0x6b   :  { %4902 = vmatprep.subr.bf16.mxu1 %v6986_v0 }
  0x6c   :  { %4679 = vmatmul.mubr.msk.f32.vlgmr.msra.gmra.mrb[2].mxu0 %vm151_vm1, %v5778_v16 }
  0x6d   :  { %4892 = vmatpush3.bf16.msra.mxu0 %v5705_v5  ;;  %4716 = vmatprep.mubr.msk.f32.mxu0 %vm5569_vm0, %v6988_v1 }
  0x6e   :  { %4893 = vmatprep.subr.bf16.mxu0 %v6986_v0  ;;  %4698 = vmatmul.mubr.msk.f32.vlgmr.msra.gmra.mrb[2].mxu1 %vm151_vm1, %v5786_v17 }
  0x6f   :  { %4904 = vmatpush3.bf16.msra.mxu1 %v5705_v5  ;;  %4735 = vmatprep.mubr.msk.f32.mxu1 %vm5569_vm0, %v6988_v1 }
  0x70   :  { %4905 = vmatprep.subr.bf16.mxu1 %v6986_v0 }
  0x71   :  { %4895 = vmatpush3.bf16.msra.mxu0 %v5711_v7 }
  0x72   :  { %4896 = vmatprep.subr.bf16.mxu0 %v6986_v0 }
  0x73   :  { %4907 = vmatpush3.bf16.msra.mxu1 %v5711_v7 }
  0x74   :  { %4908 = vmatprep.subr.bf16.mxu1 %v6986_v0 }
  0x75   :  { %4898 = vmatpush3.bf16.msra.mxu0 %v5723_v10 }
  0x76   :  { %4899 = vmatprep.subr.bf16.mxu0 %v6986_v0 }
  0x77   :  { %4910 = vmatpush3.bf16.msra.mxu1 %v5723_v10 }
  0x78   :  { %4911 = vmatprep.subr.bf16.mxu1 %v6986_v0 }
  0x79   :  { %4901 = vmatpush3.bf16.msra.mxu0 %v5735_v13 }
  0x7a   :  { %4914 = vmatprep.subr.bf16.mxu0 %v6986_v0 }
  0x7b   :  { %4913 = vmatpush3.bf16.msra.mxu1 %v5735_v13 }
  0x7c   :  { %4717 = vmatmul.mubr.msk.f32.vlgmr.msra.gmra.mrb[4].mxu0 %vm151_vm1, %v5812_v18  ;;  %4926 = vmatprep.subr.bf16.mxu1 %v6986_v0 }
  0x7d   :  { %4916 = vmatpush3.bf16.msra.mxu0 %v5705_v5  ;;  %4754 = vmatprep.mubr.msk.f32.mxu0 %vm5569_vm0, %v6988_v1 }
  0x7e   :  { %4917 = vmatprep.subr.bf16.mxu0 %v6986_v0  ;;  %4736 = vmatmul.mubr.msk.f32.vlgmr.msra.gmra.mrb[4].mxu1 %vm151_vm1, %v5819_v19 }
  0x7f   :  { %4928 = vmatpush3.bf16.msra.mxu1 %v5705_v5  ;;  %4773 = vmatprep.mubr.msk.f32.mxu1 %vm5569_vm0, %v6988_v1 }
  0x80   :  { %4929 = vmatprep.subr.bf16.mxu1 %v6986_v0 }
  0x81   :  { %4919 = vmatpush3.bf16.msra.mxu0 %v5711_v7 }
  0x82   :  { %4920 = vmatprep.subr.bf16.mxu0 %v6986_v0 }
  0x83   :  { %4931 = vmatpush3.bf16.msra.mxu1 %v5711_v7 }
  0x84   :  { %4932 = vmatprep.subr.bf16.mxu1 %v6986_v0 }
  0x85   :  { %4922 = vmatpush3.bf16.msra.mxu0 %v5723_v10 }
  0x86   :  { %4923 = vmatprep.subr.bf16.mxu0 %v6986_v0 }
  0x87   :  { %4934 = vmatpush3.bf16.msra.mxu1 %v5723_v10 }
  0x88   :  { %4935 = vmatprep.subr.bf16.mxu1 %v6986_v0 }
  0x89   :  { %4925 = vmatpush3.bf16.msra.mxu0 %v5735_v13 }
  0x8a   :  { %4939 = vmatprep.subr.bf16.mxu0 %v5840_v22 }
  0x8b   :  { %4937 = vmatpush3.bf16.msra.mxu1 %v5735_v13 }
  0x8c   :  { %4755 = vmatmul.mubr.msk.f32.vlgmr.msra.gmra.mrb[6].mxu0 %vm151_vm1, %v5848_v27 }
  0x8d   :  { %4941 = vmatpush1.bf16.msra.mxu0 %v5850_v28  ;;  %804 = vmatprep.mubr.f32.mxu0 %v6988_v1 }
  0x8e   :  { %4943 = vmatprep.subr.bf16.mxu0 %v5853_v29  ;;  %4774 = vmatmul.mubr.msk.f32.vlgmr.msra.gmra.mrb[6].mxu1 %vm151_vm1, %v5859_v32 }
  0x8f   :  { %1228 = vmatprep.mubr.f32.mxu1 %v6988_v1 }
  0x91   :  { %4945 = vmatpush1.bf16.msra.mxu0 %v5864_v33 }
  0x92   :  { %4962 = vmatprep.subr.bf16.mxu0 %v6986_v0 }
  0x94   :  { %805 = vmatmul.mubr.f32.vlgmr.msra.gmra.mrb[8].mxu0 %v6988_v1 }
  0x95   :  { %4784 = vmatprep.mubr.msk.f32.mxu0 %vm5569_vm0, %v6988_v1 }
 0x12f   :  { %v221_v34 = vpop.f32.mrb[0].mxu0  ;;  %v294_v35 = vpop.f32.mrb[0].mxu1 }
 0x130   :  { %v4642_v36 = vpop.f32.mrb[1].mxu0  ;;  %v4661_v37 = vpop.f32.mrb[1].mxu1  ;;  %v5898_v3 = vadd.f32 %v4490_v57, %v221_v34  ;;  %v5904_v9 = vadd.f32 %v4490_v57, %v294_v35 }
 0x13f   :  { %v367_v38 = vpop.f32.mrb[2].mxu0 }
 0x140   :  { %v4680_v39 = vpop.f32.mrb[3].mxu0  ;;  %v5902_v8 = vadd.f32 %v4490_v57, %v367_v38 }
 0x141   :  { %v440_v40 = vpop.f32.mrb[2].mxu1 }
 0x142   :  { %v4699_v41 = vpop.f32.mrb[3].mxu1  ;;  %v5906_v10 = vadd.f32 %v4490_v57, %v440_v40 }
 0x14f   :  { %v513_v42 = vpop.f32.mrb[4].mxu0 }
 0x150   :  { %v4718_v43 = vpop.f32.mrb[5].mxu0  ;;  %v5911_v23 = vadd.f32 %v4490_v57, %v513_v42 }
 0x151   :  { %v586_v44 = vpop.f32.mrb[4].mxu1 }
 0x152   :  { %v4737_v45 = vpop.f32.mrb[5].mxu1  ;;  %v5918_v34 = vadd.f32 %v4490_v57, %v586_v44 }
 0x15f   :  { %v659_v49 = vpop.f32.mrb[6].mxu0 }
 0x160   :  { %v4756_v50 = vpop.f32.mrb[7].mxu0  ;;  %v5927_v42 = vadd.f32 %v4490_v57, %v659_v49 }
 0x161   :  { %v732_v53 = vpop.f32.mrb[6].mxu1 }
 0x162   :  { %v4775_v54 = vpop.f32.mrb[7].mxu1  ;;  %v5924_v40 = vadd.f32 %v4490_v57, %v732_v53 }
 0x164   :  { %7053 = vst [vmem:[#allocation43_spill] sm:$0xff] %v5924_v40 }
 0x167   :  { %v5882_v56 = vpop.f32.mrb[8].mxu0 }
 0x168   :  { %v812_v58 = vcombine.high %v5882_v56, %v5882_v56  ;;  %v819_v59 = vrot.slane %v5882_v56, %v5880_v55  ;;  %v5891_v60 = vpop.f32.mrb[9].mxu0 }
 0x16a   :  { %v826_v62 = vrot.slane %v812_v58, %v5880_v55  ;;  %v827_v63 = vcombine.high %v819_v59, %v819_v59  ;;  %v835_v2 = vrot.slane %v819_v59, %v5880_v55 }
 0x16c   :  { %v828_v4 = vcombine.high %v826_v62, %v826_v62  ;;  %v842_v5 = vrot.slane %v826_v62, %v5880_v55  ;;  %v849_v6 = vrot.slane %v827_v63, %v5880_v55  ;;  %v857_v7 = vcombine.high %v835_v2, %v835_v2 }
 0x16d   :  { %v864_v11 = vrot.slane %v835_v2, %v5894_v61 }
 0x16e   :  { %v858_v12 = vcombine.high %v842_v5, %v842_v5  ;;  %v859_v13 = vcombine.high %v849_v6, %v849_v6  ;;  %v868_v20 = vrot.slane %v849_v6, %v5894_v61  ;;  %v872_v21 = vrot.slane %v857_v7, %v5894_v61 }
 0x16f   :  { %v880_v24 = vrot.slane %v842_v5, %v5894_v61  ;;  %v901_v25 = vadd.f32 %v864_v11, %v5898_v3  ;;  %v856_v26 = vrot.slane %v828_v4, %v5880_v55 }
 0x170   :  { %v876_v30 = vrot.slane %v859_v13, %v5894_v61  ;;  %v902_v31 = vadd.f32 %v868_v20, %v5904_v9  ;;  %v903_v35 = vadd.f32 %v872_v21, %v5902_v8  ;;  %v888_v36 = vrot.slane %v858_v12, %v5894_v61 }
 0x171   :  { %5135 = vtanh.f32 %v901_v25  ;;  %v884_v37 = vrot.slane %v856_v26, %v5894_v61  ;;  %v860_v38 = vcombine.high %v856_v26, %v856_v26  ;;  %v905_v39 = vadd.f32 %v880_v24, %v5911_v23 }
 0x172   :  { %5137 = vtanh.f32 %v903_v35  ;;  %v904_v41 = vadd.f32 %v876_v30, %v5906_v10  ;;  %v907_v45 = vadd.f32 %v888_v36, %v5927_v42 }
 0x173   :  { %v906_v43 = vadd.f32 %v884_v37, %v5918_v34  ;;  %v892_v44 = vrot.slane %v860_v38, %v5894_v61  ;;  %5139 = vtanh.f32 %v902_v31  ;;  %v965_v31 = vand.u32 127, %v816_v48 }
 0x174   :  { %5141 = vtanh.f32 %v904_v41 }
 0x175   :  { %5143 = vtanh.f32 %v906_v43  ;;  %v908_v46 = vadd.f32 %v892_v44, %v5924_v40  ;;  %v5956_v36 = vsub.s32 %v965_v31, %v5877_v52 }
 0x176   :  { %5145 = vtanh.f32 %v905_v39 }
 0x177   :  { %5147 = vtanh.f32 %v907_v45  ;;  %7055 = vst [vmem:[#allocation45_spill] sm:$0xff] %v5956_v36 }
 0x178   :  { %5149 = vtanh.f32 %v908_v46 }
 0x17b   :  { %v5136_v49 = vpop.eup %5135 }
 0x17c   :  { %v5138_v50 = vpop.eup %5137  ;;  %v923_v51 = vmul.f32 %v5136_v49, %v5936_v47 }
 0x17d   :  { %v5140_v53 = vpop.eup %5139  ;;  %v925_v54 = vmul.f32 %v5138_v50, %v5936_v47 }
 0x17e   :  { %v5142_v57 = vpop.eup %5141  ;;  %v931_v58 = vsel %vm736_vm2, %v923_v51, 0.0  ;;  %v924_v59 = vmul.f32 %v5140_v53, %v5936_v47 }
 0x17f   :  { %v5144_v62 = vpop.eup %5143  ;;  %932 = vadd.xlane.f32.xlu0 %v931_v58  ;;  %v937_v63 = vsel %vm736_vm2, %v925_v54, 0.0  ;;  %v926_v2 = vmul.f32 %v5142_v57, %v5936_v47  ;;  %v5968_v58 = vld [vmem:[#allocation4] sm:$0xff] }
 0x180   :  { %v5146_v4 = vpop.eup %5145  ;;  %938 = vadd.xlane.f32.xlu1 %v937_v63  ;;  %v934_v5 = vsel %vm736_vm2, %v924_v59, 0.0  ;;  %v928_v12 = vmul.f32 %v5144_v62, %v5936_v47  ;;  %7056 = vst [vmem:[#allocation46_spill] sm:$0xff] %v5968_v58  ;;  %vm955_vm10 = vcmp.gt.f32.partialorder %v5968_v58, 0.0 }
 0x181   :  { %v927_v6 = vmul.f32 %v5146_v4, %v5936_v47  ;;  %v5148_v7 = vpop.eup %5147  ;;  %v940_v11 = vsel %vm736_vm2, %v926_v2, 0.0 }
 0x182   :  { %v5150_v13 = vpop.eup %5149  ;;  %v929_v21 = vmul.f32 %v5148_v7, %v5936_v47  ;;  %v946_v24 = vsel %vm736_vm2, %v928_v12, 0.0 }
 0x183   :  { %935 = vadd.xlane.f32.xlu0 %v934_v5  ;;  %v943_v20 = vsel %vm736_vm2, %v927_v6, 0.0  ;;  %v930_v25 = vmul.f32 %v5150_v13, %v5936_v47 }
 0x184   :  { %941 = vadd.xlane.f32.xlu1 %v940_v11  ;;  %v949_v26 = vsel %vm736_vm2, %v929_v21, 0.0 }
 0x185   :  { %v952_v30 = vsel %vm736_vm2, %v930_v25, 0.0 }
 0x187   :  { %944 = vadd.xlane.f32.xlu0 %v943_v20 }
 0x188   :  { %947 = vadd.xlane.f32.xlu1 %v946_v24 }
 0x18b   :  { %950 = vadd.xlane.f32.xlu0 %v949_v26 }
 0x18c   :  { %953 = vadd.xlane.f32.xlu1 %v952_v30  ;;  %v5982_v30 = vsub.s32 1, %v5877_v52 }
 0x18e   :  { %7057 = vst [vmem:[#allocation47_spill] sm:$0xff] %v5982_v30 }
 0x20c   :  { %v933_v35 = vpop.xlane.xlu0 %932 }
 0x20d   :  { %v939_v37 = vpop.xlane.xlu1 %938  ;;  %v969_v39 = vrot.slane %v933_v35, %v5956_v36 }
 0x20e   :  { %v977_v44 = vrot.slane %v939_v37, %v5956_v36 }
 0x210   :  { %v936_v38 = vpop.xlane.xlu0 %935 }
 0x211   :  { %v973_v41 = vrot.slane %v936_v38, %v5956_v36  ;;  %v942_v43 = vpop.xlane.xlu1 %941 }
 0x212   :  { %v981_v45 = vrot.slane %v942_v43, %v5956_v36 }
 0x213   :  { %v999_v48 = vsel %vm998_vm3, %v973_v41, %v969_v39  ;;  %v5987_v39 = vsub.s32 2, %v5877_v52  ;;  %v5990_v41 = vsub.s32 4, %v5877_v52 }
 0x214   :  { %v1001_v46 = vsel %vm1000_vm4, %v977_v44, %v999_v48  ;;  %v945_v49 = vpop.xlane.xlu0 %944  ;;  %v5998_v48 = vsub.s32 6, %v5877_v52 }
 0x215   :  { %v1003_v50 = vsel %vm1002_vm5, %v981_v45, %v1001_v46  ;;  %v985_v51 = vrot.slane %v945_v49, %v5956_v36  ;;  %v948_v53 = vpop.xlane.xlu1 %947  ;;  %7058 = vst [vmem:[#allocation48_spill] sm:$0xff] %v5987_v39  ;;  %7059 = vst [vmem:[#allocation49_spill] sm:$0xff] %v5990_v41  ;;  %v5995_v45 = vsub.s32 3, %v5877_v52  ;;  %v121_v46 = vld [vmem:[#allocation9 + $0x8] sm:$0xff]  ;;  %v123_v49 = vld [vmem:[#allocation9 + $0x18] sm:$0xff] }
 0x216   :  { %v989_v54 = vrot.slane %v948_v53, %v5956_v36  ;;  %7061 = vst [vmem:[#allocation51_spill] sm:$0xff] %v5998_v48  ;;  %v122_v53 = vld [vmem:[#allocation9 + $0x10] sm:$0xff] }
 0x217   :  { %v1005_v57 = vsel %vm1004_vm6, %v985_v51, %v1003_v50  ;;  %7060 = vst [vmem:[#allocation50_spill] sm:$0xff] %v5995_v45  ;;  %v6000_v50 = vpack.c.bf16 %v123_v49, %v121_v46  ;;  %v120_v51 = vld [vmem:[#allocation9] sm:$0xff] }
 0x218   :  { %v1007_v59 = vsel %vm1006_vm7, %v989_v54, %v1005_v57  ;;  %v951_v62 = vpop.xlane.xlu0 %950 }
 0x219   :  { %v993_v63 = vrot.slane %v951_v62, %v5956_v36  ;;  %v954_v2 = vpop.xlane.xlu1 %953  ;;  %7062 = vst [vmem:[#allocation52_spill] sm:$0xff] %v6000_v50  ;;  %v6007_v62 = vpack.c.bf16 %v122_v53, %v120_v51  ;;  %4947 = vmatprep.subr.bf16.mxu1 %v6000_v50 }
 0x21a   :  { %v997_v4 = vrot.slane %v954_v2, %v5956_v36  ;;  %v127_v2 = vld [vmem:[#allocation9 + $0x38] sm:$0xff] }
 0x21b   :  { %v1009_v5 = vsel %vm1008_vm8, %v993_v63, %v1007_v59  ;;  %v6005_v59 = vsub.s32 5, %v5877_v52  ;;  %v125_v63 = vld [vmem:[#allocation9 + $0x28] sm:$0xff]  ;;  %4949 = vmatpush1.bf16.msra.mxu1 %v6007_v62 }
 0x21c   :  { %v1011_v6 = vsel %vm1010_vm9, %v997_v4, %v1009_v5  ;;  %v6011_v4 = vpack.c.bf16 %v127_v2, %v125_v63  ;;  %v124_v5 = vld [vmem:[#allocation9 + $0x20] sm:$0xff] }
 0x21d   :  { %v1013_v7 = vsel %vm955_vm10, %v1011_v6, -1e+10  ;;  %7063 = vst [vmem:[#allocation53_spill] sm:$0xff] %v6005_v59  ;;  %v126_v6 = vld [vmem:[#allocation9 + $0x30] sm:$0xff] }
 0x21e   :  { %v1015_v11 = vsel %vm1014_vm11, %v1013_v7, -inf  ;;  %4951 = vmatprep.subr.bf16.mxu1 %v6011_v4 }
 0x21f   :  { %1016 = vmax.xlane.f32.xlu0 %v1015_v11  ;;  %v6015_v11 = vsub.s32 7, %v5877_v52 }
 0x221   :  { %7064 = vst [vmem:[#allocation54_spill] sm:$0xff] %v6015_v11 }
 0x2ac   :  { %v1017_v12 = vpop.xlane.xlu0 %1016 }
 0x2ad   :  { %v1018_v13 = vsub.f32 %v1013_v7, %v1017_v12  ;;  %v6017_v12 = vpack.c.bf16 %v126_v6, %v124_v5 }
 0x2af   :  { %v1019_v20 = vmul.f32 1.442695, %v1018_v13  ;;  %v129_v13 = vld [vmem:[#allocation9 + $0x48] sm:$0xff]  ;;  %4953 = vmatpush1.bf16.msra.mxu1 %v6017_v12 }
 0x2b1   :  { %5151 = vpow2.f32 %v1019_v20  ;;  %v131_v20 = vld [vmem:[#allocation9 + $0x58] sm:$0xff] }
 0x2bb   :  { %v5152_v21 = vpop.eup %5151 }
 0x2bc   :  { %v1021_v24 = vmul.f32 %v5152_v21, %v5968_v58  ;;  %v6023_v21 = vpack.c.bf16 %v131_v20, %v129_v13 }
 0x2be   :  { %v1022_v25 = vsel %vm1014_vm11, %v1021_v24, 0.0  ;;  %4955 = vmatprep.subr.bf16.mxu1 %v6023_v21 }
 0x2bf   :  { %1023 = vadd.xlane.f32.xlu1 %v1022_v25  ;;  %v130_v25 = vld [vmem:[#allocation9 + $0x50] sm:$0xff] }
 0x34c   :  { %v1024_v26 = vpop.xlane.xlu1 %1023 }
 0x34d   :  { %5153 = vrcp.f32 %v1024_v26 }
 0x357   :  { %v5154_v31 = vpop.eup %5153 }
 0x358   :  { %v1026_v35 = vmul.f32 %v5154_v31, %v1021_v24  ;;  %v128_v24 = vld [vmem:[#allocation9 + $0x40] sm:$0xff]  ;;  %v133_v31 = vld [vmem:[#allocation9 + $0x68] sm:$0xff] }
 0x359   :  { %v6026_v26 = vpack.c.bf16 %v130_v25, %v128_v24 }
 0x35a   :  { %v1037_v37 = vrot.slane %v1026_v35, %v5982_v30  ;;  %v1030_v38 = vrot.slane %v1026_v35, %v5894_v61  ;;  %v1044_v43 = vrot.slane %v1026_v35, %v5987_v39  ;;  %v1058_v44 = vrot.slane %v1026_v35, %v5990_v41 }
 0x35b   :  { %v1051_v54 = vrot.slane %v1026_v35, %v5995_v45  ;;  %v1072_v57 = vrot.slane %v1026_v35, %v5998_v48  ;;  %v1065_v7 = vrot.slane %v1026_v35, %v6005_v59  ;;  %v1079_v52 = vrot.slane %v1026_v35, %v6015_v11  ;;  %4957 = vmatpush1.bf16.msra.mxu1 %v6026_v26 }
 0x35c   :  { %1039 = vbcast.lane.b32.xlu1 %v1037_v37, 256  ;;  %1032 = vbcast.lane.b32.xlu0 %v1030_v38, 256  ;;  %v135_v37 = vld [vmem:[#allocation9 + $0x78] sm:$0xff]  ;;  %v132_v38 = vld [vmem:[#allocation9 + $0x60] sm:$0xff] }
 0x360   :  { %1046 = vbcast.lane.b32.xlu1 %v1044_v43, 256  ;;  %1060 = vbcast.lane.b32.xlu0 %v1058_v44, 256  ;;  %v6030_v43 = vpack.c.bf16 %v135_v37, %v133_v31  ;;  %v134_v44 = vld [vmem:[#allocation9 + $0x70] sm:$0xff] }
 0x361   :  { %v6032_v46 = vpack.c.bf16 %v134_v44, %v132_v38 }
 0x362   :  { %4959 = vmatprep.subr.bf16.mxu1 %v6030_v43 }
 0x363   :  { %4961 = vmatpush1.bf16.msra.mxu1 %v6032_v46 }
 0x364   :  { %1053 = vbcast.lane.b32.xlu1 %v1051_v54, 256  ;;  %1074 = vbcast.lane.b32.xlu0 %v1072_v57, 256 }
 0x365   :  { %4977 = vmatprep.subr.bf16.mxu1 %v6000_v50 }
 0x368   :  { %1067 = vbcast.lane.b32.xlu1 %v1065_v7, 256  ;;  %1347 = vrot.lane.b32.xlu0 %v5882_v56, %s5572_s27 }
 0x36c   :  { %1081 = vbcast.lane.b32.xlu1 %v1079_v52, 256 }
 0x370   :  { %1349 = vrot.lane.b32.xlu1 %v5891_v60, %s5572_s27 }
 0x3ce   :  { %v1040_v35 = vpop.permute.xlu1 %1039  ;;  %v1033_v49 = vpop.permute.xlu0 %1032 }
 0x3cf   :  { %v1084_v51 = vmul.f32 %v1040_v35, %v5750_v15  ;;  %v1083_v53 = vmul.f32 %v1033_v49, %v5744_v14 }
 0x3d1   :  { %v1098_v54 = vsel %vm151_vm1, %v1084_v51, 0.0  ;;  %v1091_v57 = vsel %vm151_vm1, %v1083_v53, 0.0 }
 0x3d2   :  { %v1099_v63 = vrot.slane %v1098_v54, 4  ;;  %v1092_v2 = vrot.slane %v1091_v57, 4  ;;  %v1047_v5 = vpop.permute.xlu1 %1046  ;;  %v1061_v6 = vpop.permute.xlu0 %1060 }
 0x3d3   :  { %v1085_v60 = vmul.f32 %v1047_v5, %v5778_v16  ;;  %v1087_v7 = vmul.f32 %v1061_v6, %v5812_v18 }
 0x3d4   :  { %v1100_v13 = vadd.f32 %v1099_v63, %v1098_v54  ;;  %v1093_v20 = vadd.f32 %v1092_v2, %v1091_v57 }
 0x3d5   :  { %v1105_v24 = vsel %vm151_vm1, %v1085_v60, 0.0  ;;  %v1119_v25 = vsel %vm151_vm1, %v1087_v7, 0.0 }
 0x3d6   :  { %v1101_v52 = vrot.slane %v1100_v13, 2  ;;  %v1094_v31 = vrot.slane %v1093_v20, 2  ;;  %v1106_v37 = vrot.slane %v1105_v24, 4  ;;  %v1120_v38 = vrot.slane %v1119_v25, 4  ;;  %v1054_v44 = vpop.permute.xlu1 %1053  ;;  %v1075_v35 = vpop.permute.xlu0 %1074 }
 0x3d7   :  { %v1086_v49 = vmul.f32 %v1054_v44, %v5786_v17  ;;  %v1089_v51 = vmul.f32 %v1075_v35, %v5848_v27 }
 0x3d8   :  { %v1102_v53 = vadd.f32 %v1101_v52, %v1100_v13  ;;  %v1107_v5 = vadd.f32 %v1106_v37, %v1105_v24  ;;  %v1121_v0 = vadd.f32 %v1120_v38, %v1119_v25  ;;  %v1095_v6 = vadd.f32 %v1094_v31, %v1093_v20 }
 0x3d9   :  { %v1112_v54 = vsel %vm151_vm1, %v1086_v49, 0.0  ;;  %v1133_v57 = vsel %vm151_vm1, %v1089_v51, 0.0 }
 0x3da   :  { %v1108_v63 = vrot.slane %v1107_v5, 2  ;;  %v1068_v2 = vpop.permute.xlu1 %1067  ;;  %v1122_v60 = vrot.slane %v1121_v0, 2  ;;  %v1113_v7 = vrot.slane %v1112_v54, 4  ;;  %v1134_v1 = vrot.slane %v1133_v57, 4 }
 0x3db   :  { %v1088_v16 = vmul.f32 %v1068_v2, %v5819_v19  ;;  %v1103_v18 = vrot.slane %v1102_v53, 1  ;;  %v1096_v44 = vrot.slane %v1095_v6, 1 }
 0x3dc   :  { %v1109_v14 = vadd.f32 %v1108_v63, %v1107_v5  ;;  %v1114_v17 = vadd.f32 %v1113_v7, %v1112_v54  ;;  %v1135_v35 = vadd.f32 %v1134_v1, %v1133_v57  ;;  %v1123_v52 = vadd.f32 %v1122_v60, %v1121_v0 }
 0x3dd   :  { %v1126_v13 = vsel %vm151_vm1, %v1088_v16, 0.0  ;;  %v1104_v51 = vadd.f32 %v1103_v18, %v1102_v53  ;;  %v1097_v27 = vadd.f32 %v1096_v44, %v1095_v6 }
 0x3de   :  { %v1110_v24 = vrot.slane %v1109_v14, 1  ;;  %v1127_v20 = vrot.slane %v1126_v13, 4  ;;  %v1082_v25 = vpop.permute.xlu1 %1081  ;;  %v1115_v31 = vrot.slane %v1114_v17, 2  ;;  %v1136_v37 = vrot.slane %v1135_v35, 2 }
 0x3df   :  { %v1090_v38 = vmul.f32 %v1082_v25, %v5859_v32  ;;  %v1124_v1 = vrot.slane %v1123_v52, 1  ;;  %v1155_v0 = vsel %vm998_vm3, %v1104_v51, %v1097_v27 }
 0x3e0   :  { %v1128_v49 = vadd.f32 %v1127_v20, %v1126_v13  ;;  %v1116_v15 = vadd.f32 %v1115_v31, %v1114_v17  ;;  %v1111_v5 = vadd.f32 %v1110_v24, %v1109_v14  ;;  %v1137_v16 = vadd.f32 %v1136_v37, %v1135_v35 }
 0x3e1   :  { %v1140_v2 = vsel %vm151_vm1, %v1090_v38, 0.0  ;;  %v1125_v18 = vadd.f32 %v1124_v1, %v1123_v52  ;;  %v7065_v52 = vmov 0.0   ;;  %v1348_v38 = vpop.permute.xlu0 %1347 }
 0x3e2   :  { %v1129_v63 = vrot.slane %v1128_v49, 2  ;;  %v1141_v54 = vrot.slane %v1140_v2, 4  ;;  %v1117_v57 = vrot.slane %v1116_v15, 1  ;;  %v1156_v48 = vsel %vm1000_vm4, %v1111_v5, %v1155_v0  ;;  %v1350_v37 = vpop.permute.xlu1 %1349 }
 0x3e3   :  { %v1138_v53 = vrot.slane %v1137_v16, 1  ;;  %v1351_v51 = vsel %vm151_vm1, %v1348_v38, %v1350_v37 }
 0x3e4   :  { %v1130_v7 = vadd.f32 %v1129_v63, %v1128_v49  ;;  %v1142_v19 = vadd.f32 %v1141_v54, %v1140_v2  ;;  %v1118_v60 = vadd.f32 %v1117_v57, %v1116_v15  ;;  %v1345_v49 = vld [vmem:[#allocation6] sm:$0xff]  ;;  %v6078_v54 = vld [vmem:[%s6983_s10] ss:$0 sm:$0xff] }
 0x3e5   :  { %v1139_v20 = vadd.f32 %v1138_v53, %v1137_v16  ;;  %v1353_v5 = vadd.f32 %v1351_v51, %v1345_v49  ;;  %v4501_v53 = vld [vmem:[%s6981_s8] ss:$0 sm:$0xff] }
 0x3e6   :  { %v1131_v25 = vrot.slane %v1130_v7, 1  ;;  %v1143_v13 = vrot.slane %v1142_v19, 2  ;;  %v1157_v17 = vsel %vm1002_vm5, %v1118_v60, %v1156_v48 }
 0x3e7   :  { %v1158_v44 = vsel %vm1004_vm6, %v1125_v18, %v1157_v17 }
 0x3e8   :  { %v1132_v6 = vadd.f32 %v1131_v25, %v1130_v7  ;;  %v1144_v14 = vadd.f32 %v1143_v13, %v1142_v19 }
 0x3ea   :  { %v1145_v24 = vrot.slane %v1144_v14, 1  ;;  %v1159_v35 = vsel %vm1006_vm7, %v1132_v6, %v1158_v44  ;;  %v136_v6 = vld [vmem:[%s6979_s6] sm:$0xff] }
 0x3eb   :  { %v1160_v27 = vsel %vm1008_vm8, %v1139_v20, %v1159_v35 }
 0x3ec   :  { %v1146_v31 = vadd.f32 %v1145_v24, %v1144_v14  ;;  %v137_v14 = vld [vmem:[%s6979_s6 + $0x8] sm:$0xff]  ;;  %v7066_v24 = vmov 0.0|0.0  }
 0x3ed   :  { %v6095_v44 = vpack.c.bf16 %v137_v14, %v136_v6 }
 0x3ee   :  { %v1161_v15 = vsel %vm1010_vm9, %v1146_v31, %v1160_v27 }
 0x3ef   :  { %4500 = vmatmul.mubr.msk.f32.vlgmr.msra.gmra.mrb[8].mxu1 %vm151_vm1, %v1161_v15  ;;  %4964 = vmatpush3.bf16.msra.mxu0 %v6095_v44  ;;  %v138_v15 = vld [vmem:[%s6979_s6 + $0x10] sm:$0xff] }
 0x3f0   :  { %4979 = vmatpush1.bf16.msra.mxu1 %v6007_v62  ;;  %1868 = vmatprep.mubr.f32.mxu1 %v7065_v52 }
 0x3f1   :  { %4981 = vmatprep.subr.bf16.mxu1 %v6011_v4  ;;  %4965 = vmatprep.subr.bf16.mxu0 %v7066_v24 }
 0x3f4   :  { %4983 = vmatpush1.bf16.msra.mxu1 %v6017_v12 }
 0x3f5   :  { %4985 = vmatprep.subr.bf16.mxu1 %v6023_v21 }
 0x3f8   :  { %4987 = vmatpush1.bf16.msra.mxu1 %v6026_v26 }
 0x3f9   :  { %4989 = vmatprep.subr.bf16.mxu1 %v6030_v43 }
 0x3fc   :  { %4991 = vmatpush1.bf16.msra.mxu1 %v6032_v46 }
 0x3fd   :  { %5007 = vmatprep.subr.bf16.mxu1 %v6000_v50 }
 0x4c2   :  { %v1230_v19 = vpop.f32.mrb[8].mxu1 }
 0x4c3   :  { %1355 = vrot.lane.b32.xlu0 %v1230_v19, %s5573_s28  ;;  %v1232_v48 = vpop.f32.mrb[9].mxu1 }
 0x4c4   :  { %1357 = vrot.lane.b32.xlu1 %v1232_v48, %s5573_s28 }
 0x535   :  { %v1356_v2 = vpop.permute.xlu0 %1355 }
 0x536   :  { %v1358_v63 = vpop.permute.xlu1 %1357 }
 0x537   :  { %v1360_v1 = vsel %vm1359_vm12, %v1356_v2, %v1358_v63 }
 0x538   :  { %v1362_v57 = vadd.f32 %v1360_v1, %v1353_v5 }
 0x53a   :  { %v1369_v16 = vadd.f32 %v6078_v54, %v1362_v57  ;;  %v6135_v57 = vld [vmem:[%s6982_s9] ss:$0 sm:$0xff] }
 0x53c   :  { %5155 = vtanh.f32 %v1369_v16  ;;  %v1370_v0 = vmul.f32 0.5, %v1369_v16 }
 0x53e   :  { %5157 = vtanh.f32 %v1370_v0 }
 0x546   :  { %v5156_v7 = vpop.eup %5155 }
 0x547   :  { %1377 = vrot.lane.b32.xlu0 %v5156_v7, %s5572_s27 }
 0x548   :  { %v5158_v60 = vpop.eup %5157 }
 0x549   :  { %v1372_v25 = vmul.f32 0.5, %v5158_v60 }
 0x54b   :  { %1236 = vrot.lane.b32.xlu0 %v1230_v19, %s5574_s29  ;;  %v1373_v13 = vadd.f32 0.5, %v1372_v25  ;;  %v139_v19 = vld [vmem:[%s6979_s6 + $0x18] sm:$0xff] }
 0x54c   :  { %v6107_v48 = vpack.c.bf16 %v139_v19, %v138_v15 }
 0x54d   :  { %v1375_v35 = vmul.f32 0.0, %v1373_v13 }
 0x54e   :  { %4967 = vmatpush3.bf16.msra.mxu0 %v6107_v48 }
 0x54f   :  { %4969 = vmatprep.subr.bf16.mxu0 %v5840_v22 }
 0x5b9   :  { %v1378_v18 = vpop.permute.xlu0 %1377 }
 0x5ba   :  { %v1380_v17 = vmul.f32 %v1378_v18, %v1373_v13 }
 0x5bc   :  { %1382 = vrot.lane.b32.xlu1 %v1380_v17, %s5574_s29 }
 0x5bd   :  { %v1237_v20 = vpop.permute.xlu0 %1236 }
 0x5be   :  { %v1239_v37 = vadd.f32 %v1237_v20, %v5882_v56 }
 0x5c0   :  { %1245 = vrot.lane.b32.xlu1 %v4501_v53, %s5574_s29 }
 0x62e   :  { %v1383_v31 = vpop.permute.xlu1 %1382 }
 0x62f   :  { %v6099_v27 = vadd.f32 %v1383_v31, %v1375_v35 }
 0x631   :  { %5159 = vtanh.f32 %v6099_v27 }
 0x632   :  { %v6111_v38 = vpop.permute.xlu1 %1245 }
 0x633   :  { %v1248_v49 = vadd.f32 %v6111_v38, %v1239_v37 }
 0x635   :  { %5161 = vtanh.f32 %v1248_v49 }
 0x63b   :  { %v5160_v51 = vpop.eup %5159 }
 0x63c   :  { %1388 = vrot.lane.b32.xlu0 %v5160_v51, %s5572_s27 }
 0x63f   :  { %v5162_v2 = vpop.eup %5161 }
 0x640   :  { %1257 = vrot.lane.b32.xlu1 %v5162_v2, %s5573_s28 }
 0x6ae   :  { %v1389_v5 = vpop.permute.xlu0 %1388 }
 0x6af   :  { %v1391_v63 = vmul.f32 %v1389_v5, %v1373_v13 }
 0x6b1   :  { %1393 = vrot.lane.b32.xlu0 %v1391_v63, %s5574_s29 }
 0x6b2   :  { %v1258_v56 = vpop.permute.xlu1 %1257 }
 0x6b3   :  { %4785 = vmatmul.mubr.msk.f32.vlgmr.msra.gmra.mrb[10].mxu0 %vm736_vm2, %v1258_v56 }
 0x6b4   :  { %4971 = vmatpush1.bf16.msra.mxu0 %v5850_v28  ;;  %1461 = vmatprep.mubr.f32.mxu0 %v7065_v52 }
 0x6b5   :  { %4973 = vmatprep.subr.bf16.mxu0 %v5853_v29 }
 0x6b8   :  { %4975 = vmatpush1.bf16.msra.mxu0 %v5864_v33 }
 0x6b9   :  { %4992 = vmatprep.subr.bf16.mxu0 %v7066_v24 }
 0x723   :  { %v1394_v1 = vpop.permute.xlu0 %1393 }
 0x724   :  { %4505 = vmatmul.mubr.msk.f32.vlgmr.msra.gmra.mrb[12].mxu0 %vm736_vm2, %v1394_v1 }
 0x725   :  { %4994 = vmatpush3.bf16.msra.mxu0 %v6095_v44  ;;  %4795 = vmatprep.mubr.msk.f32.mxu0 %vm5569_vm0, %v7065_v52 }
 0x726   :  { %4995 = vmatprep.subr.bf16.mxu0 %v7066_v24 }
 0x729   :  { %4997 = vmatpush3.bf16.msra.mxu0 %v6107_v48 }
 0x72a   :  { %4999 = vmatprep.subr.bf16.mxu0 %v5840_v22 }
 0x786   :  { %v1327_v16 = vpop.f32.mrb[10].mxu0 }
 0x787   :  { %v1328_v7 = vadd.f32 %v6135_v57, %v1327_v16  ;;  %v4786_v0 = vpop.f32.mrb[11].mxu0 }
 0x789   :  { %1331 = vst [vmem:[#allocation2] sm:$0xff] %v1328_v7 }
 0x7f7   :  { %v6138_v60 = vpop.f32.mrb[12].mxu0 }
 0x7f8   :  { %v1469_v25 = vcombine.high %v6138_v60, %v6138_v60  ;;  %v1476_v13 = vrot.slane %v6138_v60, %v5880_v55  ;;  %v6144_v18 = vpop.f32.mrb[13].mxu0 }
 0x7fa   :  { %v1483_v17 = vrot.slane %v1469_v25, %v5880_v55  ;;  %v1484_v53 = vcombine.high %v1476_v13, %v1476_v13  ;;  %v1492_v6 = vrot.slane %v1476_v13, %v5880_v55 }
 0x7fc   :  { %v1485_v14 = vcombine.high %v1483_v17, %v1483_v17  ;;  %v1499_v35 = vrot.slane %v1483_v17, %v5880_v55  ;;  %v1506_v20 = vrot.slane %v1484_v53, %v5880_v55  ;;  %v1514_v31 = vcombine.high %v1492_v6, %v1492_v6 }
 0x7fd   :  { %v1521_v15 = vrot.slane %v1492_v6, %v5894_v61 }
 0x7fe   :  { %v1515_v19 = vcombine.high %v1499_v35, %v1499_v35  ;;  %v1516_v37 = vcombine.high %v1506_v20, %v1506_v20  ;;  %v1525_v49 = vrot.slane %v1506_v20, %v5894_v61  ;;  %v1513_v51 = vrot.slane %v1485_v14, %v5880_v55 }
 0x7ff   :  { %v1529_v2 = vrot.slane %v1514_v31, %v5894_v61  ;;  %v1537_v5 = vrot.slane %v1499_v35, %v5894_v61  ;;  %v1558_v63 = vadd.f32 %v1521_v15, %v5898_v3 }
 0x800   :  { %v1533_v56 = vrot.slane %v1516_v37, %v5894_v61  ;;  %v1545_v1 = vrot.slane %v1515_v19, %v5894_v61  ;;  %v1559_v16 = vadd.f32 %v1525_v49, %v5904_v9  ;;  %v1517_v13 = vcombine.high %v1513_v51, %v1513_v51 }
 0x801   :  { %v1560_v7 = vadd.f32 %v1529_v2, %v5902_v8  ;;  %v1562_v0 = vadd.f32 %v1537_v5, %v5911_v23  ;;  %5163 = vtanh.f32 %v1558_v63  ;;  %v1541_v17 = vrot.slane %v1513_v51, %v5894_v61 }
 0x802   :  { %v1564_v25 = vadd.f32 %v1545_v1, %v5927_v42  ;;  %5165 = vtanh.f32 %v1559_v16  ;;  %v1561_v53 = vadd.f32 %v1533_v56, %v5906_v10  ;;  %v1549_v6 = vrot.slane %v1517_v13, %v5894_v61 }
 0x803   :  { %5167 = vtanh.f32 %v1562_v0  ;;  %v1563_v14 = vadd.f32 %v1541_v17, %v5918_v34 }
 0x804   :  { %5169 = vtanh.f32 %v1560_v7  ;;  %v1565_v20 = vadd.f32 %v1549_v6, %v5924_v40 }
 0x805   :  { %5171 = vtanh.f32 %v1564_v25 }
 0x806   :  { %5173 = vtanh.f32 %v1561_v53 }
 0x807   :  { %5175 = vtanh.f32 %v1563_v14 }
 0x808   :  { %5177 = vtanh.f32 %v1565_v20 }
 0x80b   :  { %v5164_v35 = vpop.eup %5163 }
 0x80c   :  { %v1574_v31 = vmul.f32 %v5164_v35, %v5936_v47  ;;  %v5166_v15 = vpop.eup %5165 }
 0x80d   :  { %v5168_v19 = vpop.eup %5167  ;;  %v1575_v49 = vmul.f32 %v5166_v15, %v5936_v47 }
 0x80e   :  { %v1582_v37 = vsel %vm736_vm2, %v1574_v31, 0.0  ;;  %v5170_v51 = vpop.eup %5169  ;;  %v1578_v2 = vmul.f32 %v5168_v19, %v5936_v47 }
 0x80f   :  { %1583 = vadd.xlane.f32.xlu1 %v1582_v37  ;;  %v5172_v5 = vpop.eup %5171  ;;  %v1585_v63 = vsel %vm736_vm2, %v1575_v49, 0.0  ;;  %v1576_v56 = vmul.f32 %v5170_v51, %v5936_v47 }
 0x810   :  { %v5174_v1 = vpop.eup %5173  ;;  %1586 = vadd.xlane.f32.xlu0 %v1585_v63  ;;  %v1594_v16 = vsel %vm736_vm2, %v1578_v2, 0.0  ;;  %v1580_v7 = vmul.f32 %v5172_v5, %v5936_v47 }
 0x811   :  { %v1588_v0 = vsel %vm736_vm2, %v1576_v56, 0.0  ;;  %v1577_v25 = vmul.f32 %v5174_v1, %v5936_v47  ;;  %v5176_v13 = vpop.eup %5175 }
 0x812   :  { %v1600_v17 = vsel %vm736_vm2, %v1580_v7, 0.0  ;;  %v1579_v6 = vmul.f32 %v5176_v13, %v5936_v47  ;;  %v5178_v14 = vpop.eup %5177 }
 0x813   :  { %1595 = vadd.xlane.f32.xlu1 %v1594_v16  ;;  %v1591_v53 = vsel %vm736_vm2, %v1577_v25, 0.0  ;;  %v1581_v20 = vmul.f32 %v5178_v14, %v5936_v47 }
 0x814   :  { %1589 = vadd.xlane.f32.xlu0 %v1588_v0  ;;  %v1597_v35 = vsel %vm736_vm2, %v1579_v6, 0.0 }
 0x815   :  { %v1603_v31 = vsel %vm736_vm2, %v1581_v20, 0.0 }
 0x817   :  { %1601 = vadd.xlane.f32.xlu1 %v1600_v17 }
 0x818   :  { %1592 = vadd.xlane.f32.xlu0 %v1591_v53 }
 0x81c   :  { %1598 = vadd.xlane.f32.xlu0 %v1597_v35 }
 0x820   :  { %1604 = vadd.xlane.f32.xlu0 %v1603_v31 }
 0x89c   :  { %v1584_v19 = vpop.xlane.xlu1 %1583 }
 0x89d   :  { %v1587_v15 = vpop.xlane.xlu0 %1586  ;;  %v1617_v2 = vrot.slane %v1584_v19, %v5956_v36 }
 0x89e   :  { %v1621_v49 = vrot.slane %v1587_v15, %v5956_v36 }
 0x8a0   :  { %v1596_v5 = vpop.xlane.xlu1 %1595  ;;  %v1646_v56 = vsel %vm998_vm3, %v1621_v49, %v1617_v2 }
 0x8a1   :  { %v1590_v37 = vpop.xlane.xlu0 %1589  ;;  %v1633_v0 = vrot.slane %v1596_v5, %v5956_v36 }
 0x8a2   :  { %v1625_v51 = vrot.slane %v1590_v37, %v5956_v36 }
 0x8a4   :  { %v1647_v16 = vsel %vm1000_vm4, %v1625_v51, %v1646_v56  ;;  %v1602_v13 = vpop.xlane.xlu1 %1601 }
 0x8a5   :  { %v1593_v63 = vpop.xlane.xlu0 %1592  ;;  %v1641_v14 = vrot.slane %v1602_v13, %v5956_v36 }
 0x8a6   :  { %v1629_v1 = vrot.slane %v1593_v63, %v5956_v36 }
 0x8a8   :  { %v1648_v7 = vsel %vm1002_vm5, %v1629_v1, %v1647_v16 }
 0x8a9   :  { %v1599_v25 = vpop.xlane.xlu0 %1598  ;;  %v1649_v53 = vsel %vm1004_vm6, %v1633_v0, %v1648_v7 }
 0x8aa   :  { %v1637_v17 = vrot.slane %v1599_v25, %v5956_v36 }
 0x8ac   :  { %v1650_v6 = vsel %vm1006_vm7, %v1637_v17, %v1649_v53 }
 0x8ad   :  { %v1605_v35 = vpop.xlane.xlu0 %1604  ;;  %v1651_v31 = vsel %vm1008_vm8, %v1641_v14, %v1650_v6 }
 0x8ae   :  { %v1645_v20 = vrot.slane %v1605_v35, %v5956_v36  ;;  %v7067_v35 = vld [vmem:[#allocation51_spill] sm:$0xff] }
 0x8b0   :  { %v1652_v15 = vsel %vm1010_vm9, %v1645_v20, %v1651_v31 }
 0x8b1   :  { %v1654_v19 = vsel %vm955_vm10, %v1652_v15, -1e+10 }
 0x8b2   :  { %v1655_v37 = vsel %vm1014_vm11, %v1654_v19, -inf }
 0x8b3   :  { %1656 = vmax.xlane.f32.xlu1 %v1655_v37 }
 0x940   :  { %v1657_v49 = vpop.xlane.xlu1 %1656 }
 0x941   :  { %v1658_v51 = vsub.f32 %v1654_v19, %v1657_v49  ;;  %v6218_v19 = vld [vmem:[%s6973_s0 + $0x8] sm:$0xff]  ;;  %v6224_v49 = vld [vmem:[%s6973_s0] sm:$0xff] }
 0x942   :  { %7068 = vst [vmem:[#allocation55_spill] sm:$0xff] %v6218_v19  ;;  %7069 = vst [vmem:[#allocation56_spill] sm:$0xff] %v6224_v49 }
 0x943   :  { %v1659_v2 = vmul.f32 1.442695, %v1658_v51 }
 0x945   :  { %5179 = vpow2.f32 %v1659_v2 }
 0x94f   :  { %v5180_v5 = vpop.eup %5179 }
 0x950   :  { %v1661_v63 = vmul.f32 %v5180_v5, %v5968_v58 }
 0x952   :  { %v1662_v56 = vsel %vm1014_vm11, %v1661_v63, 0.0 }
 0x953   :  { %1663 = vadd.xlane.f32.xlu0 %v1662_v56 }
 0x9e0   :  { %v1664_v1 = vpop.xlane.xlu0 %1663 }
 0x9e1   :  { %5181 = vrcp.f32 %v1664_v1 }
 0x9eb   :  { %v5182_v16 = vpop.eup %5181 }
 0x9ec   :  { %v1666_v7 = vmul.f32 %v5182_v16, %v1661_v63  ;;  %v6232_v16 = vld [vmem:[%s6973_s0 + $0x28] sm:$0xff] }
 0x9ed   :  { %7070 = vst [vmem:[#allocation57_spill] sm:$0xff] %v6232_v16 }
 0x9ee   :  { %v1677_v0 = vrot.slane %v1666_v7, %v5982_v30  ;;  %v1670_v25 = vrot.slane %v1666_v7, %v5894_v61  ;;  %v1705_v13 = vrot.slane %v1666_v7, %v6005_v59  ;;  %v1684_v17 = vrot.slane %v1666_v7, %v5987_v39 }
 0x9ef   :  { %v1719_v53 = vrot.slane %v1666_v7, %v6015_v11  ;;  %v1691_v6 = vrot.slane %v1666_v7, %v5995_v45  ;;  %v1698_v14 = vrot.slane %v1666_v7, %v5990_v41  ;;  %v1712_v20 = vrot.slane %v1666_v7, %v7067_v35 }
 0x9f0   :  { %1679 = vbcast.lane.b32.xlu0 %v1677_v0, 256  ;;  %1672 = vbcast.lane.b32.xlu1 %v1670_v25, 256  ;;  %v6238_v0 = vld [vmem:[%s6973_s0 + $0x10] sm:$0xff] }
 0x9f1   :  { %7071 = vst [vmem:[#allocation58_spill] sm:$0xff] %v6238_v0 }
 0x9f4   :  { %1707 = vbcast.lane.b32.xlu0 %v1705_v13, 256  ;;  %1686 = vbcast.lane.b32.xlu1 %v1684_v17, 256 }
 0x9f8   :  { %1721 = vbcast.lane.b32.xlu0 %v1719_v53, 256  ;;  %1693 = vbcast.lane.b32.xlu1 %v1691_v6, 256 }
 0x9fc   :  { %1700 = vbcast.lane.b32.xlu1 %v1698_v14, 256  ;;  %1979 = vrot.lane.b32.xlu0 %v6144_v18, %s5572_s27 }
 0xa00   :  { %1714 = vbcast.lane.b32.xlu1 %v1712_v20, 256 }
 0xa04   :  { %1977 = vrot.lane.b32.xlu1 %v6138_v60, %s5572_s27 }
 0xa62   :  { %v1680_v31 = vpop.permute.xlu0 %1679  ;;  %v1673_v15 = vpop.permute.xlu1 %1672 }
 0xa63   :  { %v1724_v37 = vmul.f32 %v6218_v19, %v1680_v31  ;;  %v1723_v18 = vmul.f32 %v6224_v49, %v1673_v15 }
 0xa65   :  { %v1738_v51 = vsel %vm151_vm1, %v1724_v37, 0.0  ;;  %v1731_v2 = vsel %vm151_vm1, %v1723_v18, 0.0 }
 0xa66   :  { %v1739_v5 = vrot.slane %v1738_v51, 4  ;;  %v1732_v63 = vrot.slane %v1731_v2, 4  ;;  %v1708_v56 = vpop.permute.xlu0 %1707  ;;  %v1687_v1 = vpop.permute.xlu1 %1686 }
 0xa67   :  { %v1728_v7 = vmul.f32 %v6232_v16, %v1708_v56  ;;  %v1725_v25 = vmul.f32 %v6238_v0, %v1687_v1  ;;  %v6246_v56 = vld [vmem:[%s6973_s0 + $0x38] sm:$0xff] }
 0xa68   :  { %v1740_v13 = vadd.f32 %v1739_v5, %v1738_v51  ;;  %v1733_v17 = vadd.f32 %v1732_v63, %v1731_v2  ;;  %7072 = vst [vmem:[#allocation59_spill] sm:$0xff] %v6246_v56  ;;  %v6252_v51 = vld [vmem:[%s6973_s0 + $0x18] sm:$0xff] }
 0xa69   :  { %v1766_v53 = vsel %vm151_vm1, %v1728_v7, 0.0  ;;  %v1745_v6 = vsel %vm151_vm1, %v1725_v25, 0.0  ;;  %7073 = vst [vmem:[#allocation60_spill] sm:$0xff] %v6252_v51 }
 0xa6a   :  { %v1741_v14 = vrot.slane %v1740_v13, 2  ;;  %v1734_v20 = vrot.slane %v1733_v17, 2  ;;  %v1746_v31 = vrot.slane %v1745_v6, 4  ;;  %v1722_v15 = vpop.permute.xlu0 %1721  ;;  %v1694_v37 = vpop.permute.xlu1 %1693  ;;  %v1767_v18 = vrot.slane %v1766_v53, 4 }
 0xa6b   :  { %v1730_v32 = vmul.f32 %v6246_v56, %v1722_v15  ;;  %v1726_v2 = vmul.f32 %v6252_v51, %v1694_v37  ;;  %v6260_v15 = vld [vmem:[%s6973_s0 + $0x20] sm:$0xff] }
 0xa6c   :  { %v1747_v5 = vadd.f32 %v1746_v31, %v1745_v6  ;;  %v1742_v7 = vadd.f32 %v1741_v14, %v1740_v13  ;;  %v1735_v25 = vadd.f32 %v1734_v20, %v1733_v17  ;;  %v1768_v22 = vadd.f32 %v1767_v18, %v1766_v53  ;;  %7074 = vst [vmem:[#allocation61_spill] sm:$0xff] %v6260_v15  ;;  %v6267_v18 = vld [vmem:[%s6973_s0 + $0x30] sm:$0xff]  ;;  %s5575_s0 = smov [#allocation2]  }
 0xa6d   :  { %v1780_v63 = vsel %vm151_vm1, %v1730_v32, 0.0  ;;  %v1752_v1 = vsel %vm151_vm1, %v1726_v2, 0.0  ;;  %s1341_s13 = sshll.u32 %s5575_s0, 4  ;;  %s6309_s13 = int_to_ptr.vmem [resolvable:$true] %s1341_s13 }
 0xa6e   :  { %v1748_v47 = vrot.slane %v1747_v5, 2  ;;  %v1701_v50 = vpop.permute.xlu1 %1700  ;;  %v1781_v0 = vrot.slane %v1780_v63, 4  ;;  %v1753_v16 = vrot.slane %v1752_v1, 4  ;;  %v1743_v2 = vrot.slane %v1742_v7, 1  ;;  %s5395_s14 = scalar_lea.vmem %s6309_s13, 128  ;;  %s5399_s4 = scalar_lea.vmem %s6309_s13, 256 }
 0xa6f   :  { %v1727_v56 = vmul.f32 %v6260_v15, %v1701_v50  ;;  %v1736_v14 = vrot.slane %v1735_v25, 1  ;;  %v1769_v20 = vrot.slane %v1768_v22, 2  ;;  %p5396_p4 = scmp.ne.s32.totalorder %s6309_s13, %s5395_s14  ;;  %p5400_p5 = scmp.lt.s32.totalorder %s6309_s13, %s6309_s13 }
 0xa70   :  { %v1749_v37 = vadd.f32 %v1748_v47, %v1747_v5  ;;  %v1782_v6 = vadd.f32 %v1781_v0, %v1780_v63  ;;  %v1754_v31 = vadd.f32 %v1753_v16, %v1752_v1  ;;  %v1744_v63 = vadd.f32 %v1743_v2, %v1742_v7  ;;  %p5401_p6 = scmp.lt.s32.totalorder %s5399_s4, %s5395_s14 }
 0xa71   :  { %v1759_v32 = vsel %vm151_vm1, %v1727_v56, 0.0  ;;  %v1737_v1 = vadd.f32 %v1736_v14, %v1735_v25  ;;  %v1770_v15 = vadd.f32 %v1769_v20, %v1768_v22 }
 0xa72   :  { %v1760_v13 = vrot.slane %v1759_v32, 4  ;;  %v1715_v17 = vpop.permute.xlu1 %1714  ;;  %v1755_v53 = vrot.slane %v1754_v31, 2  ;;  %v1750_v49 = vrot.slane %v1749_v37, 1  ;;  %v1783_v47 = vrot.slane %v1782_v6, 2  ;;  %p5402_p7 = por %p5401_p6, %p5400_p5 }
 0xa73   :  { %v1729_v51 = vmul.f32 %v6267_v18, %v1715_v17  ;;  %v1795_v17 = vsel %vm998_vm3, %v1744_v63, %v1737_v1 }
 0xa74   :  { %v1761_v50 = vadd.f32 %v1760_v13, %v1759_v32  ;;  %v1756_v0 = vadd.f32 %v1755_v53, %v1754_v31  ;;  %v1751_v35 = vadd.f32 %v1750_v49, %v1749_v37  ;;  %v1784_v11 = vadd.f32 %v1783_v47, %v1782_v6  ;;  %p6318_p8 = pnand %p5402_p7, %p5396_p4 }
 0xa75   :  { %v1773_v16 = vsel %vm151_vm1, %v1729_v51, 0.0  ;;  %v1771_v32 = vrot.slane %v1770_v15, 1 }
 0xa76   :  { %v1762_v56 = vrot.slane %v1761_v50, 2  ;;  %v1774_v5 = vrot.slane %v1773_v16, 4  ;;  %v1757_v19 = vrot.slane %v1756_v0, 1  ;;  %v1796_v31 = vsel %vm1000_vm4, %v1751_v35, %v1795_v17 }
 0xa77   :  { %v1785_v53 = vrot.slane %v1784_v11, 1  ;;  %v1772_v49 = vadd.f32 %v1771_v32, %v1770_v15 }
 0xa78   :  { %v1763_v41 = vadd.f32 %v1762_v56, %v1761_v50  ;;  %v1775_v45 = vadd.f32 %v1774_v5, %v1773_v16  ;;  %v1758_v39 = vadd.f32 %v1757_v19, %v1756_v0 }
 0xa79   :  { %v1786_v2 = vadd.f32 %v1785_v53, %v1784_v11 }
 0xa7a   :  { %v1764_v59 = vrot.slane %v1763_v41, 1  ;;  %v1776_v30 = vrot.slane %v1775_v45, 2  ;;  %v1797_v7 = vsel %vm1002_vm5, %v1758_v39, %v1796_v31 }
 0xa7c   :  { %v1765_v13 = vadd.f32 %v1764_v59, %v1763_v41  ;;  %v1777_v51 = vadd.f32 %v1776_v30, %v1775_v45  ;;  %v1978_v41 = vpop.permute.xlu1 %1977  ;;  %v1980_v45 = vpop.permute.xlu0 %1979  ;;  %v1975_v59 = vld [vmem:[#allocation6 + $0x8] sm:$0xff] }
 0xa7d   :  { %v1981_v11 = vsel %vm151_vm1, %v1978_v41, %v1980_v45 }
 0xa7e   :  { %v1798_v22 = vsel %vm1004_vm6, %v1765_v13, %v1797_v7  ;;  %v1778_v25 = vrot.slane %v1777_v51, 1  ;;  %v1983_v15 = vadd.f32 %v1981_v11, %v1975_v59 }
 0xa7f   :  { %v1799_v19 = vsel %vm1006_vm7, %v1772_v49, %v1798_v22 }
 0xa80   :  { %v1779_v37 = vadd.f32 %v1778_v25, %v1777_v51 }
 0xa82   :  { %v1800_v6 = vsel %vm1008_vm8, %v1779_v37, %v1799_v19 }
 0xa83   :  { %v1801_v14 = vsel %vm1010_vm9, %v1786_v2, %v1800_v6 }
 0xa84   :  { %4506 = vmatmul.mubr.msk.f32.vlgmr.msra.gmra.mrb[10].mxu1 %vm151_vm1, %v1801_v14 }
 0xa85   :  { %5009 = vmatpush1.bf16.msra.mxu1 %v6007_v62  ;;  %2491 = vmatprep.mubr.f32.mxu1 %v7065_v52 }
 0xa86   :  { %5011 = vmatprep.subr.bf16.mxu1 %v6011_v4 }
 0xa89   :  { %5013 = vmatpush1.bf16.msra.mxu1 %v6017_v12 }
 0xa8a   :  { %5015 = vmatprep.subr.bf16.mxu1 %v6023_v21 }
 0xa8d   :  { %5017 = vmatpush1.bf16.msra.mxu1 %v6026_v26 }
 0xa8e   :  { %5019 = vmatprep.subr.bf16.mxu1 %v6030_v43 }
 0xa91   :  { %5021 = vmatpush1.bf16.msra.mxu1 %v6032_v46 }
 0xb57   :  { %v1870_v30 = vpop.f32.mrb[10].mxu1 }
 0xb58   :  { %1985 = vrot.lane.b32.xlu1 %v1870_v30, %s5573_s28  ;;  %v1872_v39 = vpop.f32.mrb[11].mxu1 }
 0xb59   :  { %1987 = vrot.lane.b32.xlu0 %v1872_v39, %s5573_s28 }
 0xbca   :  { %v1986_v35 = vpop.permute.xlu1 %1985 }
 0xbcb   :  { %v1988_v20 = vpop.permute.xlu0 %1987 }
 0xbcc   :  { %v1989_v50 = vsel %vm1359_vm12, %v1986_v35, %v1988_v20 }
 0xbcd   :  { %v1991_v47 = vadd.f32 %v1989_v50, %v1983_v15 }
 0xbcf   :  { %v1992_v0 = vadd.f32 %v6078_v54, %v1991_v47 }
 0xbd1   :  { %5183 = vtanh.f32 %v1992_v0  ;;  %v1993_v56 = vmul.f32 0.5, %v1992_v0 }
 0xbd3   :  { %5185 = vtanh.f32 %v1993_v56 }
 0xbdb   :  { %v5184_v16 = vpop.eup %5183 }
 0xbdc   :  { %2000 = vrot.lane.b32.xlu1 %v5184_v16, %s5572_s27 }
 0xbdd   :  { %v5186_v5 = vpop.eup %5185 }
 0xbde   :  { %v1995_v63 = vmul.f32 0.5, %v5186_v5 }
 0xbe0   :  { %1876 = vrot.lane.b32.xlu1 %v1870_v30, %s5574_s29  ;;  %v1996_v1 = vadd.f32 0.5, %v1995_v63 }
 0xbe2   :  { %v1998_v7 = vmul.f32 %v1996_v1, %v6099_v27 }
 0xc4e   :  { %v2001_v17 = vpop.permute.xlu1 %2000 }
 0xc4f   :  { %v2003_v32 = vmul.f32 %v2001_v17, %v1996_v1 }
 0xc51   :  { %2005 = vrot.lane.b32.xlu0 %v2003_v32, %s5574_s29 }
 0xc52   :  { %v1877_v31 = vpop.permute.xlu1 %1876 }
 0xc53   :  { %v1879_v13 = vadd.f32 %v1877_v31, %v6138_v60 }
 0xc55   :  { %v1880_v51 = vadd.f32 %v1879_v13, %v6111_v38 }
 0xc57   :  { %5187 = vtanh.f32 %v1880_v51 }
 0xc61   :  { %v5188_v53 = vpop.eup %5187 }
 0xc62   :  { %1883 = vrot.lane.b32.xlu1 %v5188_v53, %s5573_s28 }
 0xcc3   :  { %v2006_v22 = vpop.permute.xlu0 %2005 }
 0xcc4   :  { %v6299_v25 = vadd.f32 %v2006_v22, %v1998_v7 }
 0xcc6   :  { %5189 = vtanh.f32 %v6299_v25 }
 0xcd0   :  { %v5190_v49 = vpop.eup %5189 }
 0xcd1   :  { %2011 = vrot.lane.b32.xlu0 %v5190_v49, %s5572_s27 }
 0xcd4   :  { %v1884_v37 = vpop.permute.xlu1 %1883 }
 0xcd5   :  { %4796 = vmatmul.mubr.msk.f32.vlgmr.msra.gmra.mrb[14].mxu0 %vm736_vm2, %v1884_v37 }
 0xcd6   :  { %5001 = vmatpush1.bf16.msra.mxu0 %v5850_v28  ;;  %2084 = vmatprep.mubr.f32.mxu0 %v7065_v52 }
 0xcd7   :  { %5003 = vmatprep.subr.bf16.mxu0 %v5853_v29 }
 0xcda   :  { %5005 = vmatpush1.bf16.msra.mxu0 %v5864_v33 }
 0xcdb   :  { %5022 = vmatprep.subr.bf16.mxu0 %v7066_v24 }
 0xcdc   :  { %5406 = shalt.err (!%p6318_p8)  }
 0xcdd   :  { %s6327_s15 = scalar_lea.hbm %s6985_s12, 128  ;;  %s6336_s19 = scalar_lea.hbm %s6985_s12, 768 }
 0xcde   :  { %p5408_p9 = scmp.ne.s32.totalorder %s6985_s12, %s6327_s15  ;;  %p5410_p10 = scmp.lt.u32.totalorder %s6336_s19, %s6327_s15 }
 0xcdf   :  { %p5411_p11 = scmp.lt.u32.totalorder %s6327_s15, %s6985_s12 }
 0xce1   :  { %p5412_p12 = por %p5411_p11, %p5410_p10 }
 0xce3   :  { %p5413_p13 = pnand %p5412_p12, %p5408_p9 }
 0xce5   :  { %5416 = shalt.err (!%p5413_p13)  }
 0xce6   :  { %1344 = dma.vmem_to_hbm [thread:$0]  %s6309_s13, 128, %s6985_s12, [#allocation3] }
 0xd43   :  { %v2012_v27 = vpop.permute.xlu0 %2011 }
 0xd44   :  { %v2014_v60 = vmul.f32 %v2012_v27, %v1996_v1 }
 0xd46   :  { %2016 = vrot.lane.b32.xlu0 %v2014_v60, %s5574_s29 }
 0xda8   :  { %v1953_v2 = vpop.f32.mrb[14].mxu0 }
 0xda9   :  { %v1954_v19 = vadd.f32 %v6135_v57, %v1953_v2  ;;  %v4797_v6 = vpop.f32.mrb[15].mxu0 }
 0xdab   :  { %1958 = vst [vmem:[#allocation2 + $0x8] sm:$0xff] %v1954_v19 }
 0xdb8   :  { %v2017_v14 = vpop.permute.xlu0 %2016 }
 0xdb9   :  { %4508 = vmatmul.mubr.msk.f32.vlgmr.msra.gmra.mrb[16].mxu0 %vm736_vm2, %v2017_v14  ;;  %v5221_v14 = vld [vmem:[%s6984_s11] ss:$0 sm:$0xff]  ;;  %s5576_s11 = smov [#allocation2 + $0x8]  }
 0xdba   :  { %5024 = vmatpush3.bf16.msra.mxu0 %v6095_v44  ;;  %4806 = vmatprep.mubr.msk.f32.mxu0 %vm5569_vm0, %v7065_v52  ;;  %s1970_s2 = sshll.u32 %s5576_s11, 4  ;;  %s6457_s2 = int_to_ptr.vmem [resolvable:$true] %s1970_s2 }
 0xdbb   :  { %5025 = vmatprep.subr.bf16.mxu0 %v7066_v24  ;;  %s5417_s22 = scalar_lea.vmem %s6457_s2, 128  ;;  %p5422_p1 = scmp.lt.s32.totalorder %s6457_s2, %s6309_s13 }
 0xdbc   :  { %p5418_p0 = scmp.ne.s32.totalorder %s6457_s2, %s5417_s22  ;;  %p5423_p2 = scmp.lt.s32.totalorder %s5399_s4, %s5417_s22 }
 0xdbe   :  { %5027 = vmatpush3.bf16.msra.mxu0 %v6107_v48  ;;  %p5424_p3 = por %p5423_p2, %p5422_p1 }
 0xdc0   :  { %p6465_p4 = pnand %p5424_p3, %p5418_p0 }
 0xe8c   :  { %v6361_v30 = vpop.f32.mrb[16].mxu0 }
 0xe8d   :  { %v2092_v39 = vcombine.high %v6361_v30, %v6361_v30  ;;  %v2099_v41 = vrot.slane %v6361_v30, %v5880_v55  ;;  %v6367_v45 = vpop.f32.mrb[17].mxu0 }
 0xe8f   :  { %v2106_v59 = vrot.slane %v2092_v39, %v5880_v55  ;;  %v2107_v11 = vcombine.high %v2099_v41, %v2099_v41  ;;  %v2115_v35 = vrot.slane %v2099_v41, %v5880_v55 }
 0xe91   :  { %v2108_v15 = vcombine.high %v2106_v59, %v2106_v59  ;;  %v2122_v20 = vrot.slane %v2106_v59, %v5880_v55  ;;  %v2129_v50 = vrot.slane %v2107_v11, %v5880_v55  ;;  %v2137_v47 = vcombine.high %v2115_v35, %v2115_v35 }
 0xe92   :  { %v2144_v0 = vrot.slane %v2115_v35, %v5894_v61 }
 0xe93   :  { %v2138_v16 = vcombine.high %v2122_v20, %v2122_v20  ;;  %v2139_v56 = vcombine.high %v2129_v50, %v2129_v50  ;;  %v2148_v5 = vrot.slane %v2129_v50, %v5894_v61  ;;  %v2136_v63 = vrot.slane %v2108_v15, %v5880_v55 }
 0xe94   :  { %v2152_v1 = vrot.slane %v2137_v47, %v5894_v61  ;;  %v2160_v17 = vrot.slane %v2122_v20, %v5894_v61  ;;  %v2181_v32 = vadd.f32 %v2144_v0, %v5898_v3 }
 0xe95   :  { %v2156_v31 = vrot.slane %v2139_v56, %v5894_v61  ;;  %v2168_v13 = vrot.slane %v2138_v16, %v5894_v61  ;;  %v2182_v51 = vadd.f32 %v2148_v5, %v5904_v9  ;;  %v2140_v49 = vcombine.high %v2136_v63, %v2136_v63 }
 0xe96   :  { %v2183_v53 = vadd.f32 %v2152_v1, %v5902_v8  ;;  %v2185_v7 = vadd.f32 %v2160_v17, %v5911_v23  ;;  %5191 = vtanh.f32 %v2181_v32  ;;  %v2164_v37 = vrot.slane %v2136_v63, %v5894_v61 }
 0xe97   :  { %v2187_v22 = vadd.f32 %v2168_v13, %v5927_v42  ;;  %v2184_v27 = vadd.f32 %v2156_v31, %v5906_v10  ;;  %5193 = vtanh.f32 %v2182_v51  ;;  %v2172_v60 = vrot.slane %v2140_v49, %v5894_v61 }
 0xe98   :  { %5195 = vtanh.f32 %v2183_v53  ;;  %v2186_v2 = vadd.f32 %v2164_v37, %v5918_v34 }
 0xe99   :  { %5197 = vtanh.f32 %v2185_v7  ;;  %v2188_v6 = vadd.f32 %v2172_v60, %v5924_v40 }
 0xe9a   :  { %5199 = vtanh.f32 %v2187_v22 }
 0xe9b   :  { %5201 = vtanh.f32 %v2184_v27 }
 0xe9c   :  { %5203 = vtanh.f32 %v2186_v2 }
 0xe9d   :  { %5205 = vtanh.f32 %v2188_v6 }
 0xea0   :  { %v5192_v19 = vpop.eup %5191 }
 0xea1   :  { %v2197_v39 = vmul.f32 %v5221_v14, %v5192_v19  ;;  %v5194_v41 = vpop.eup %5193 }
 0xea2   :  { %v5196_v59 = vpop.eup %5195  ;;  %v2198_v35 = vmul.f32 %v5221_v14, %v5194_v41 }
 0xea3   :  { %v2205_v11 = vsel %vm736_vm2, %v2197_v39, 0.0  ;;  %v5198_v15 = vpop.eup %5197  ;;  %v2199_v0 = vmul.f32 %v5221_v14, %v5196_v59 }
 0xea4   :  { %2206 = vadd.xlane.f32.xlu1 %v2205_v11  ;;  %v5200_v20 = vpop.eup %5199  ;;  %v2208_v50 = vsel %vm736_vm2, %v2198_v35, 0.0  ;;  %v2201_v47 = vmul.f32 %v5221_v14, %v5198_v15 }
 0xea5   :  { %v5202_v16 = vpop.eup %5201  ;;  %2209 = vadd.xlane.f32.xlu0 %v2208_v50  ;;  %v2203_v5 = vmul.f32 %v5221_v14, %v5200_v20  ;;  %v2211_v63 = vsel %vm736_vm2, %v2199_v0, 0.0 }
 0xea6   :  { %v2217_v56 = vsel %vm736_vm2, %v2201_v47, 0.0  ;;  %v2200_v1 = vmul.f32 %v5221_v14, %v5202_v16  ;;  %v5204_v17 = vpop.eup %5203 }
 0xea7   :  { %v2223_v32 = vsel %vm736_vm2, %v2203_v5, 0.0  ;;  %v2202_v13 = vmul.f32 %v5221_v14, %v5204_v17  ;;  %v5206_v51 = vpop.eup %5205 }
 0xea8   :  { %2218 = vadd.xlane.f32.xlu1 %v2217_v56  ;;  %v2214_v31 = vsel %vm736_vm2, %v2200_v1, 0.0  ;;  %v2204_v7 = vmul.f32 %v5221_v14, %v5206_v51 }
 0xea9   :  { %2212 = vadd.xlane.f32.xlu0 %v2211_v63  ;;  %v2220_v53 = vsel %vm736_vm2, %v2202_v13, 0.0 }
 0xeaa   :  { %v2226_v22 = vsel %vm736_vm2, %v2204_v7, 0.0  ;;  %v5222_v7 = vld [vmem:[#allocation4] sm:$0xff] }
 0xeac   :  { %2224 = vadd.xlane.f32.xlu1 %v2223_v32 }
 0xead   :  { %2215 = vadd.xlane.f32.xlu0 %v2214_v31 }
 0xeb1   :  { %2221 = vadd.xlane.f32.xlu0 %v2220_v53 }
 0xeb5   :  { %2227 = vadd.xlane.f32.xlu0 %v2226_v22 }
 0xf31   :  { %v2207_v37 = vpop.xlane.xlu1 %2206 }
 0xf32   :  { %v2210_v49 = vpop.xlane.xlu0 %2209  ;;  %v2240_v19 = vrot.slane %v2207_v37, %v5956_v36 }
 0xf33   :  { %v2244_v60 = vrot.slane %v2210_v49, %v5956_v36 }
 0xf35   :  { %v2219_v6 = vpop.xlane.xlu1 %2218  ;;  %v2269_v41 = vsel %vm998_vm3, %v2244_v60, %v2240_v19 }
 0xf36   :  { %v2213_v27 = vpop.xlane.xlu0 %2212  ;;  %v2256_v35 = vrot.slane %v2219_v6, %v5956_v36 }
 0xf37   :  { %v2248_v2 = vrot.slane %v2213_v27, %v5956_v36 }
 0xf39   :  { %v2270_v14 = vsel %vm1000_vm4, %v2248_v2, %v2269_v41  ;;  %v2225_v20 = vpop.xlane.xlu1 %2224  ;;  %v7076_v2 = vld [vmem:[#allocation47_spill] sm:$0xff] }
 0xf3a   :  { %v2216_v39 = vpop.xlane.xlu0 %2215  ;;  %v2264_v16 = vrot.slane %v2225_v20, %v5956_v36 }
 0xf3b   :  { %v2252_v59 = vrot.slane %v2216_v39, %v5956_v36  ;;  %v7077_v39 = vld [vmem:[#allocation53_spill] sm:$0xff] }
 0xf3d   :  { %v2271_v11 = vsel %vm1002_vm5, %v2252_v59, %v2270_v14  ;;  %v7078_v59 = vld [vmem:[#allocation48_spill] sm:$0xff] }
 0xf3e   :  { %v2222_v15 = vpop.xlane.xlu0 %2221  ;;  %v2272_v47 = vsel %vm1004_vm6, %v2256_v35, %v2271_v11  ;;  %v7079_v11 = vld [vmem:[#allocation54_spill] sm:$0xff] }
 0xf3f   :  { %v2260_v50 = vrot.slane %v2222_v15, %v5956_v36  ;;  %v7080_v15 = vld [vmem:[#allocation50_spill] sm:$0xff] }
 0xf41   :  { %v2273_v0 = vsel %vm1006_vm7, %v2260_v50, %v2272_v47  ;;  %v7081_v50 = vld [vmem:[#allocation49_spill] sm:$0xff] }
 0xf42   :  { %v2228_v56 = vpop.xlane.xlu0 %2227  ;;  %v2274_v63 = vsel %vm1008_vm8, %v2264_v16, %v2273_v0  ;;  %v7082_v0 = vld [vmem:[#allocation51_spill] sm:$0xff] }
 0xf43   :  { %v2268_v5 = vrot.slane %v2228_v56, %v5956_v36 }
 0xf45   :  { %v2275_v1 = vsel %vm1010_vm9, %v2268_v5, %v2274_v63  ;;  %v7083_v63 = vld [vmem:[#allocation55_spill] sm:$0xff] }
 0xf46   :  { %v2277_v17 = vsel %vm955_vm10, %v2275_v1, -1e+10 }
 0xf47   :  { %v2278_v32 = vsel %vm1014_vm11, %v2277_v17, -inf }
 0xf48   :  { %2279 = vmax.xlane.f32.xlu1 %v2278_v32 }
 0xfd5   :  { %v2280_v31 = vpop.xlane.xlu1 %2279 }
 0xfd6   :  { %v2281_v13 = vsub.f32 %v2277_v17, %v2280_v31  ;;  %v7084_v17 = vld [vmem:[#allocation56_spill] sm:$0xff] }
 0xfd8   :  { %v2282_v51 = vmul.f32 1.442695, %v2281_v13 }
 0xfda   :  { %5207 = vpow2.f32 %v2282_v51 }
 0xfe4   :  { %v5208_v53 = vpop.eup %5207 }
 0xfe5   :  { %v2284_v22 = vmul.f32 %v5222_v7, %v5208_v53 }
 0xfe7   :  { %v2285_v49 = vsel %vm1014_vm11, %v2284_v22, 0.0 }
 0xfe8   :  { %2286 = vadd.xlane.f32.xlu0 %v2285_v49  ;;  %v7085_v49 = vld [vmem:[#allocation57_spill] sm:$0xff] }
0x1075   :  { %v2287_v37 = vpop.xlane.xlu0 %2286 }
0x1076   :  { %5209 = vrcp.f32 %v2287_v37 }
0x1080   :  { %v5210_v27 = vpop.eup %5209 }
0x1081   :  { %v2289_v60 = vmul.f32 %v5210_v27, %v2284_v22  ;;  %v7086_v27 = vld [vmem:[#allocation58_spill] sm:$0xff] }
0x1083   :  { %v2300_v19 = vrot.slane %v2289_v60, %v7076_v2  ;;  %v2293_v6 = vrot.slane %v2289_v60, %v5894_v61  ;;  %v2328_v41 = vrot.slane %v2289_v60, %v7077_v39  ;;  %v2307_v14 = vrot.slane %v2289_v60, %v7078_v59 }
0x1084   :  { %v2342_v35 = vrot.slane %v2289_v60, %v7079_v11  ;;  %v2314_v20 = vrot.slane %v2289_v60, %v7080_v15  ;;  %v2321_v47 = vrot.slane %v2289_v60, %v7081_v50  ;;  %v2335_v16 = vrot.slane %v2289_v60, %v7082_v0 }
0x1085   :  { %2302 = vbcast.lane.b32.xlu0 %v2300_v19, 256  ;;  %2295 = vbcast.lane.b32.xlu1 %v2293_v6, 256 }
0x1089   :  { %2330 = vbcast.lane.b32.xlu0 %v2328_v41, 256  ;;  %2309 = vbcast.lane.b32.xlu1 %v2307_v14, 256 }
0x108d   :  { %2344 = vbcast.lane.b32.xlu0 %v2342_v35, 256  ;;  %2316 = vbcast.lane.b32.xlu1 %v2314_v20, 256 }
0x1091   :  { %2323 = vbcast.lane.b32.xlu1 %v2321_v47, 256 }
0x1095   :  { %2337 = vbcast.lane.b32.xlu1 %v2335_v16, 256 }
0x10f7   :  { %v2303_v56 = vpop.permute.xlu0 %2302  ;;  %v2296_v5 = vpop.permute.xlu1 %2295 }
0x10f8   :  { %v2347_v1 = vmul.f32 %v7083_v63, %v2303_v56  ;;  %v2346_v32 = vmul.f32 %v7084_v17, %v2296_v5  ;;  %v7087_v63 = vld [vmem:[#allocation59_spill] sm:$0xff]  ;;  %v7088_v17 = vld [vmem:[#allocation60_spill] sm:$0xff] }
0x10fa   :  { %v2361_v31 = vsel %vm151_vm1, %v2347_v1, 0.0  ;;  %v2354_v13 = vsel %vm151_vm1, %v2346_v32, 0.0 }
0x10fb   :  { %v2362_v51 = vrot.slane %v2361_v31, 4  ;;  %v2355_v53 = vrot.slane %v2354_v13, 4  ;;  %v2331_v7 = vpop.permute.xlu0 %2330  ;;  %v2310_v22 = vpop.permute.xlu1 %2309 }
0x10fc   :  { %v2351_v37 = vmul.f32 %v7085_v49, %v2331_v7  ;;  %v2348_v19 = vmul.f32 %v7086_v27, %v2310_v22 }
0x10fd   :  { %v2363_v60 = vadd.f32 %v2362_v51, %v2361_v31  ;;  %v2356_v6 = vadd.f32 %v2355_v53, %v2354_v13 }
0x10fe   :  { %v2389_v41 = vsel %vm151_vm1, %v2351_v37, 0.0  ;;  %v2368_v14 = vsel %vm151_vm1, %v2348_v19, 0.0  ;;  %v7089_v19 = vld [vmem:[#allocation61_spill] sm:$0xff] }
0x10ff   :  { %v2364_v35 = vrot.slane %v2363_v60, 2  ;;  %v2357_v20 = vrot.slane %v2356_v6, 2  ;;  %v2369_v47 = vrot.slane %v2368_v14, 4  ;;  %v2345_v16 = vpop.permute.xlu0 %2344  ;;  %v2317_v56 = vpop.permute.xlu1 %2316  ;;  %v2390_v5 = vrot.slane %v2389_v41, 4 }
0x1100   :  { %v2353_v1 = vmul.f32 %v7087_v63, %v2345_v16  ;;  %v2349_v32 = vmul.f32 %v7088_v17, %v2317_v56 }
0x1101   :  { %v2370_v11 = vadd.f32 %v2369_v47, %v2368_v14  ;;  %v2365_v13 = vadd.f32 %v2364_v35, %v2363_v60  ;;  %v2358_v51 = vadd.f32 %v2357_v20, %v2356_v6  ;;  %v2391_v49 = vadd.f32 %v2390_v5, %v2389_v41 }
0x1102   :  { %v2403_v7 = vsel %vm151_vm1, %v2353_v1, 0.0  ;;  %v2375_v31 = vsel %vm151_vm1, %v2349_v32, 0.0 }
0x1103   :  { %v2371_v53 = vrot.slane %v2370_v11, 2  ;;  %v2324_v22 = vpop.permute.xlu1 %2323  ;;  %v2404_v37 = vrot.slane %v2403_v7, 4  ;;  %v2376_v27 = vrot.slane %v2375_v31, 4  ;;  %v2366_v56 = vrot.slane %v2365_v13, 1 }
0x1104   :  { %v2350_v39 = vmul.f32 %v7089_v19, %v2324_v22  ;;  %v2359_v63 = vrot.slane %v2358_v51, 1  ;;  %v2392_v1 = vrot.slane %v2391_v49, 2 }
0x1105   :  { %v2372_v15 = vadd.f32 %v2371_v53, %v2370_v11  ;;  %v2405_v0 = vadd.f32 %v2404_v37, %v2403_v7  ;;  %v2377_v59 = vadd.f32 %v2376_v27, %v2375_v31  ;;  %v2367_v7 = vadd.f32 %v2366_v56, %v2365_v13 }
0x1106   :  { %v2382_v16 = vsel %vm151_vm1, %v2350_v39, 0.0  ;;  %v2360_v31 = vadd.f32 %v2359_v63, %v2358_v51  ;;  %v2393_v53 = vadd.f32 %v2392_v1, %v2391_v49 }
0x1107   :  { %v2383_v14 = vrot.slane %v2382_v16, 4  ;;  %v2338_v47 = vpop.permute.xlu1 %2337  ;;  %v2378_v17 = vrot.slane %v2377_v59, 2  ;;  %v2373_v6 = vrot.slane %v2372_v15, 1  ;;  %v2406_v41 = vrot.slane %v2405_v0, 2 }
0x1108   :  { %v2352_v60 = vmul.f32 %v6267_v18, %v2338_v47  ;;  %v2418_v18 = vsel %vm998_vm3, %v2367_v7, %v2360_v31 }
0x1109   :  { %v2384_v35 = vadd.f32 %v2383_v14, %v2382_v16  ;;  %v2379_v20 = vadd.f32 %v2378_v17, %v2377_v59  ;;  %v2374_v22 = vadd.f32 %v2373_v6, %v2372_v15  ;;  %v2407_v19 = vadd.f32 %v2406_v41, %v2405_v0 }
0x110a   :  { %v2396_v5 = vsel %vm151_vm1, %v2352_v60, 0.0  ;;  %v2394_v16 = vrot.slane %v2393_v53, 1 }
0x110b   :  { %v2385_v32 = vrot.slane %v2384_v35, 2  ;;  %v2397_v11 = vrot.slane %v2396_v5, 4  ;;  %v2380_v39 = vrot.slane %v2379_v20, 1  ;;  %v2419_v59 = vsel %vm1000_vm4, %v2374_v22, %v2418_v18 }
0x110c   :  { %v2408_v17 = vrot.slane %v2407_v19, 1  ;;  %v2395_v15 = vadd.f32 %v2394_v16, %v2393_v53 }
0x110d   :  { %v2386_v37 = vadd.f32 %v2385_v32, %v2384_v35  ;;  %v2398_v27 = vadd.f32 %v2397_v11, %v2396_v5  ;;  %v2381_v50 = vadd.f32 %v2380_v39, %v2379_v20 }
0x110e   :  { %v2409_v63 = vadd.f32 %v2408_v17, %v2407_v19 }
0x110f   :  { %v2387_v2 = vrot.slane %v2386_v37, 1  ;;  %v2399_v58 = vrot.slane %v2398_v27, 2  ;;  %v2420_v13 = vsel %vm1002_vm5, %v2381_v50, %v2419_v59 }
0x1111   :  { %v2388_v14 = vadd.f32 %v2387_v2, %v2386_v37  ;;  %v2400_v47 = vadd.f32 %v2399_v58, %v2398_v27 }
0x1113   :  { %v2421_v51 = vsel %vm1004_vm6, %v2388_v14, %v2420_v13  ;;  %v2401_v49 = vrot.slane %v2400_v47, 1 }
0x1114   :  { %v2422_v0 = vsel %vm1006_vm7, %v2395_v15, %v2421_v51 }
0x1115   :  { %v2402_v56 = vadd.f32 %v2401_v49, %v2400_v47 }
0x1117   :  { %v2423_v1 = vsel %vm1008_vm8, %v2402_v56, %v2422_v0 }
0x1118   :  { %v2424_v60 = vsel %vm1010_vm9, %v2409_v63, %v2423_v1 }
0x1119   :  { %4509 = vmatmul.mubr.msk.f32.vlgmr.msra.gmra.mrb[12].mxu1 %vm151_vm1, %v2424_v60 }
0x11ec   :  { %v2493_v6 = vpop.f32.mrb[12].mxu1 }
0x11ed   :  { %2499 = vrot.lane.b32.xlu1 %v2493_v6, %s5574_s29  ;;  %v2495_v58 = vpop.f32.mrb[13].mxu1 }
0x125f   :  { %v2500_v2 = vpop.permute.xlu1 %2499 }
0x1260   :  { %v2502_v50 = vadd.f32 %v2500_v2, %v6361_v30 }
0x1262   :  { %v2503_v35 = vadd.f32 %v2502_v50, %v6111_v38 }
0x1264   :  { %5211 = vtanh.f32 %v2503_v35 }
0x126e   :  { %v5212_v41 = vpop.eup %5211 }
0x126f   :  { %2506 = vrot.lane.b32.xlu0 %v5212_v41, %s5573_s28 }
0x12e1   :  { %v2507_v20 = vpop.permute.xlu0 %2506 }
0x12e2   :  { %4807 = vmatmul.mubr.msk.f32.vlgmr.msra.gmra.mrb[18].mxu0 %vm736_vm2, %v2507_v20 }
0x12e3   :  { %5428 = shalt.err (!%p6465_p4)  }
0x12e4   :  { %s6474_s0 = scalar_lea.hbm %s6985_s12, 256 }
0x12e5   :  { %p5430_p5 = scmp.ne.s32.totalorder %s6327_s15, %s6474_s0  ;;  %p5433_p6 = scmp.lt.u32.totalorder %s6336_s19, %s6474_s0 }
0x12e6   :  { %p5435_p9 = scmp.lt.u32.totalorder %s6474_s0, %s6327_s15 }
0x12e7   :  { %p5434_p7 = por %p5433_p6, %p5411_p11 }
0x12e9   :  { %p5436_p10 = por %p5435_p9, %p5434_p7 }
0x12eb   :  { %p5437_p12 = pnand %p5436_p10, %p5430_p5 }
0x12ed   :  { %5440 = shalt.err (!%p5437_p12)  }
0x12ee   :  { %1973 = dma.vmem_to_hbm [thread:$0]  %s6457_s2, 128, %s6327_s15, [#allocation3 + $0x1]  ;;  %2609 = vrot.lane.b32.xlu1 %v2493_v6, %s5573_s28  ;;  %2601 = vrot.lane.b32.xlu0 %v6361_v30, %s5572_s27 }
0x13b5   :  { %v2576_v5 = vpop.f32.mrb[18].mxu0 }
0x13b6   :  { %v2577_v32 = vadd.f32 %v6135_v57, %v2576_v5  ;;  %v4808_v11 = vpop.f32.mrb[19].mxu0 }
0x13b7   :  { %5548 = dma.done.wait [#allocation3], 128 }
0x13b8   :  { %5549 = vsyncadd [#allocation3], 4294967168  ;;  %2583 = vst [vmem:[#allocation2] sm:$0xff] %v2577_v32  ;;  %v7091_v7 = vld [vmem:[#allocation40_spill] sm:$0xff]  ;;  %2708 = vmatprep.mubr.f32.mxu0 %v7065_v52  ;;  %2611 = vrot.lane.b32.xlu1 %v2495_v58, %s5573_s28  ;;  %v2610_v30 = vpop.permute.xlu1 %2609  ;;  %v2599_v53 = vld [vmem:[#allocation6 + $0x10] sm:$0xff] }
0x13b9   :  { %5029 = vmatprep.subr.bf16.mxu0 %v7091_v7  ;;  %v7092_v31 = vld [vmem:[#allocation52_spill] sm:$0xff]  ;;  %2603 = vrot.lane.b32.xlu0 %v6367_v45, %s5572_s27  ;;  %v2602_v45 = vpop.permute.xlu0 %2601 }
0x13ba   :  { %5031 = vmatpush1.bf16.msra.mxu0 %v5850_v28  ;;  %5037 = vmatprep.subr.bf16.mxu1 %v7092_v31 }
0x13bb   :  { %5033 = vmatprep.subr.bf16.mxu0 %v5853_v29  ;;  %5039 = vmatpush1.bf16.msra.mxu1 %v6007_v62 }
0x13bc   :  { %5041 = vmatprep.subr.bf16.mxu1 %v6011_v4  ;;  %3115 = vmatprep.mubr.f32.mxu1 %v7065_v52 }
0x13be   :  { %5035 = vmatpush1.bf16.msra.mxu0 %v5864_v33 }
0x13bf   :  { %5043 = vmatpush1.bf16.msra.mxu1 %v6017_v12  ;;  %5052 = vmatprep.subr.bf16.mxu0 %v7066_v24 }
0x13c0   :  { %5045 = vmatprep.subr.bf16.mxu1 %v6023_v21 }
0x13c3   :  { %5047 = vmatpush1.bf16.msra.mxu1 %v6026_v26 }
0x13c4   :  { %5049 = vmatprep.subr.bf16.mxu1 %v6030_v43 }
0x13c7   :  { %5051 = vmatpush1.bf16.msra.mxu1 %v6032_v46 }
0x142a   :  { %v2612_v39 = vpop.permute.xlu1 %2611 }
0x142b   :  { %v2604_v22 = vpop.permute.xlu0 %2603  ;;  %v2613_v19 = vsel %vm1359_vm12, %v2610_v30, %v2612_v39 }
0x142c   :  { %v2605_v37 = vsel %vm151_vm1, %v2602_v45, %v2604_v22 }
0x142d   :  { %v2607_v27 = vadd.f32 %v2605_v37, %v2599_v53 }
0x142f   :  { %v2615_v18 = vadd.f32 %v2613_v19, %v2607_v27 }
0x1431   :  { %v2616_v16 = vadd.f32 %v6078_v54, %v2615_v18 }
0x1433   :  { %5223 = vtanh.f32 %v2616_v16  ;;  %v2617_v14 = vmul.f32 0.5, %v2616_v16 }
0x1435   :  { %5225 = vtanh.f32 %v2617_v14 }
0x143d   :  { %v5224_v59 = vpop.eup %5223 }
0x143e   :  { %2624 = vrot.lane.b32.xlu0 %v5224_v59, %s5572_s27 }
0x143f   :  { %v5226_v47 = vpop.eup %5225 }
0x1440   :  { %v2619_v17 = vmul.f32 0.5, %v5226_v47 }
0x1442   :  { %v2620_v13 = vadd.f32 0.5, %v2619_v17 }
0x1444   :  { %v2622_v15 = vmul.f32 %v2620_v13, %v6299_v25 }
0x14b0   :  { %v2625_v51 = vpop.permute.xlu0 %2624 }
0x14b1   :  { %v2627_v49 = vmul.f32 %v2625_v51, %v2620_v13 }
0x14b3   :  { %2629 = vrot.lane.b32.xlu1 %v2627_v49, %s5574_s29 }
0x1525   :  { %v2630_v56 = vpop.permute.xlu1 %2629 }
0x1526   :  { %v6517_v63 = vadd.f32 %v2630_v56, %v2622_v15 }
0x1528   :  { %5227 = vtanh.f32 %v6517_v63 }
0x1532   :  { %v5228_v0 = vpop.eup %5227 }
0x1533   :  { %2635 = vrot.lane.b32.xlu0 %v5228_v0, %s5572_s27 }
0x15a5   :  { %v2636_v1 = vpop.permute.xlu0 %2635 }
0x15a6   :  { %v2638_v60 = vmul.f32 %v2636_v1, %v2620_v13 }
0x15a8   :  { %2640 = vrot.lane.b32.xlu1 %v2638_v60, %s5574_s29 }
0x161a   :  { %v2641_v6 = vpop.permute.xlu1 %2640 }
0x161b   :  { %4511 = vmatmul.mubr.msk.f32.vlgmr.msra.gmra.mrb[20].mxu0 %vm736_vm2, %v2641_v6  ;;  %v7093_v6 = vld [vmem:[#allocation44_spill] sm:$0xff] }
0x161c   :  { %5054 = vmatpush3.bf16.msra.mxu0 %v6095_v44  ;;  %4817 = vmatprep.mubr.msk.f32.mxu0 %vm5569_vm0, %v7065_v52 }
0x161d   :  { %5055 = vmatprep.subr.bf16.mxu0 %v7066_v24 }
0x1620   :  { %5057 = vmatpush3.bf16.msra.mxu0 %v6107_v48 }
0x16ee   :  { %v6528_v25 = vpop.f32.mrb[20].mxu0 }
0x16ef   :  { %v2716_v58 = vcombine.high %v6528_v25, %v6528_v25  ;;  %v2723_v2 = vrot.slane %v6528_v25, %v5880_v55  ;;  %v6534_v50 = vpop.f32.mrb[21].mxu0 }
0x16f1   :  { %v2730_v35 = vrot.slane %v2716_v58, %v5880_v55  ;;  %v2731_v41 = vcombine.high %v2723_v2, %v2723_v2  ;;  %v2739_v20 = vrot.slane %v2723_v2, %v5880_v55 }
0x16f3   :  { %v2732_v5 = vcombine.high %v2730_v35, %v2730_v35  ;;  %v2746_v32 = vrot.slane %v2730_v35, %v5880_v55  ;;  %v2753_v11 = vrot.slane %v2731_v41, %v5880_v55  ;;  %v2768_v30 = vrot.slane %v2739_v20, %v5894_v61 }
0x16f4   :  { %v2761_v45 = vcombine.high %v2739_v20, %v2739_v20 }
0x16f5   :  { %v2760_v53 = vrot.slane %v2732_v5, %v5880_v55  ;;  %v2805_v39 = vadd.f32 %v2768_v30, %v5898_v3  ;;  %v2772_v22 = vrot.slane %v2753_v11, %v5894_v61  ;;  %v2784_v37 = vrot.slane %v2746_v32, %v5894_v61 }
0x16f6   :  { %v2776_v27 = vrot.slane %v2761_v45, %v5894_v61  ;;  %v2763_v19 = vcombine.high %v2753_v11, %v2753_v11  ;;  %v2762_v18 = vcombine.high %v2746_v32, %v2746_v32 }
0x16f7   :  { %5229 = vtanh.f32 %v2805_v39  ;;  %v2806_v16 = vadd.f32 %v2772_v22, %v5904_v9  ;;  %v2809_v59 = vadd.f32 %v2784_v37, %v5911_v23  ;;  %v2788_v14 = vrot.slane %v2760_v53, %v5894_v61 }
0x16f8   :  { %v2807_v47 = vadd.f32 %v2776_v27, %v5902_v8  ;;  %v2780_v17 = vrot.slane %v2763_v19, %v5894_v61  ;;  %v2792_v13 = vrot.slane %v2762_v18, %v5894_v61  ;;  %v2764_v51 = vcombine.high %v2760_v53, %v2760_v53 }
0x16f9   :  { %5231 = vtanh.f32 %v2806_v16  ;;  %v2810_v56 = vadd.f32 %v2788_v14, %v5918_v34 }
0x16fa   :  { %5233 = vtanh.f32 %v2807_v47  ;;  %v2808_v49 = vadd.f32 %v2780_v17, %v5906_v10  ;;  %v2811_v15 = vadd.f32 %v2792_v13, %v5927_v42  ;;  %v2796_v0 = vrot.slane %v2764_v51, %v5894_v61 }
0x16fb   :  { %5235 = vtanh.f32 %v2809_v59 }
0x16fc   :  { %5237 = vtanh.f32 %v2808_v49  ;;  %v2812_v1 = vadd.f32 %v2796_v0, %v5924_v40 }
0x16fd   :  { %5239 = vtanh.f32 %v2811_v15 }
0x16fe   :  { %5241 = vtanh.f32 %v2810_v56 }
0x16ff   :  { %5243 = vtanh.f32 %v2812_v1 }
0x1701   :  { %v5230_v60 = vpop.eup %5229 }
0x1702   :  { %v2821_v58 = vmul.f32 %v5230_v60, %v7093_v6 }
0x1703   :  { %v5232_v2 = vpop.eup %5231 }
0x1704   :  { %v5234_v35 = vpop.eup %5233  ;;  %v2829_v41 = vsel %vm736_vm2, %v2821_v58, 0.0  ;;  %v2822_v20 = vmul.f32 %v5232_v2, %v7093_v6 }
0x1705   :  { %v5236_v5 = vpop.eup %5235  ;;  %2830 = vadd.xlane.f32.xlu0 %v2829_v41  ;;  %v2823_v32 = vmul.f32 %v5234_v35, %v7093_v6 }
0x1706   :  { %v5238_v11 = vpop.eup %5237  ;;  %v2832_v30 = vsel %vm736_vm2, %v2822_v20, 0.0  ;;  %v2825_v45 = vmul.f32 %v5236_v5, %v7093_v6 }
0x1707   :  { %v5240_v53 = vpop.eup %5239  ;;  %2833 = vadd.xlane.f32.xlu1 %v2832_v30  ;;  %v2835_v39 = vsel %vm736_vm2, %v2823_v32, 0.0  ;;  %v2824_v22 = vmul.f32 %v5238_v11, %v7093_v6 }
0x1708   :  { %v5242_v37 = vpop.eup %5241  ;;  %v2841_v27 = vsel %vm736_vm2, %v2825_v45, 0.0  ;;  %v2827_v19 = vmul.f32 %v5240_v53, %v7093_v6 }
0x1709   :  { %2836 = vadd.xlane.f32.xlu0 %v2835_v39  ;;  %v2838_v18 = vsel %vm736_vm2, %v2824_v22, 0.0  ;;  %v2826_v16 = vmul.f32 %v5242_v37, %v7093_v6  ;;  %v5244_v59 = vpop.eup %5243 }
0x170a   :  { %v2847_v14 = vsel %vm736_vm2, %v2827_v19, 0.0  ;;  %v2828_v17 = vmul.f32 %v5244_v59, %v7093_v6 }
0x170b   :  { %2842 = vadd.xlane.f32.xlu1 %v2841_v27  ;;  %v2844_v47 = vsel %vm736_vm2, %v2826_v16, 0.0 }
0x170c   :  { %v2850_v13 = vsel %vm736_vm2, %v2828_v17, 0.0 }
0x170d   :  { %2839 = vadd.xlane.f32.xlu0 %v2838_v18  ;;  %v7094_v18 = vld [vmem:[#allocation46_spill] sm:$0xff] }
0x170f   :  { %2848 = vadd.xlane.f32.xlu1 %v2847_v14 }
0x1711   :  { %2845 = vadd.xlane.f32.xlu0 %v2844_v47 }
0x1715   :  { %2851 = vadd.xlane.f32.xlu0 %v2850_v13 }
0x1792   :  { %v2831_v51 = vpop.xlane.xlu0 %2830 }
0x1793   :  { %v2864_v0 = vrot.slane %v2831_v51, %v5956_v36 }
0x1794   :  { %v2834_v49 = vpop.xlane.xlu1 %2833 }
0x1795   :  { %v2868_v15 = vrot.slane %v2834_v49, %v5956_v36 }
0x1796   :  { %v2837_v56 = vpop.xlane.xlu0 %2836 }
0x1797   :  { %v2872_v1 = vrot.slane %v2837_v56, %v5956_v36  ;;  %v2893_v60 = vsel %vm998_vm3, %v2868_v15, %v2864_v0 }
0x1798   :  { %v2843_v58 = vpop.xlane.xlu1 %2842 }
0x1799   :  { %v2894_v41 = vsel %vm1000_vm4, %v2872_v1, %v2893_v60  ;;  %v2880_v5 = vrot.slane %v2843_v58, %v5956_v36  ;;  %v7095_v1 = vld [vmem:[#allocation47_spill] sm:$0xff] }
0x179a   :  { %v2840_v2 = vpop.xlane.xlu0 %2839 }
0x179b   :  { %v2876_v35 = vrot.slane %v2840_v2, %v5956_v36  ;;  %v7096_v2 = vld [vmem:[#allocation49_spill] sm:$0xff] }
0x179c   :  { %v2849_v11 = vpop.xlane.xlu1 %2848 }
0x179d   :  { %v2895_v20 = vsel %vm1002_vm5, %v2876_v35, %v2894_v41  ;;  %v2888_v39 = vrot.slane %v2849_v11, %v5956_v36  ;;  %v7097_v41 = vld [vmem:[#allocation48_spill] sm:$0xff]  ;;  %v7099_v11 = vld [vmem:[#allocation50_spill] sm:$0xff] }
0x179e   :  { %v2846_v32 = vpop.xlane.xlu0 %2845  ;;  %v2896_v45 = vsel %vm1004_vm6, %v2880_v5, %v2895_v20  ;;  %v7098_v5 = vld [vmem:[#allocation51_spill] sm:$0xff] }
0x179f   :  { %v2884_v30 = vrot.slane %v2846_v32, %v5956_v36 }
0x17a1   :  { %v2897_v53 = vsel %vm1006_vm7, %v2884_v30, %v2896_v45  ;;  %v7100_v45 = vld [vmem:[#allocation53_spill] sm:$0xff] }
0x17a2   :  { %v2852_v22 = vpop.xlane.xlu0 %2851  ;;  %v2898_v27 = vsel %vm1008_vm8, %v2888_v39, %v2897_v53  ;;  %v7101_v39 = vld [vmem:[#allocation54_spill] sm:$0xff] }
0x17a3   :  { %v2892_v37 = vrot.slane %v2852_v22, %v5956_v36 }
0x17a5   :  { %v2899_v19 = vsel %vm1010_vm9, %v2892_v37, %v2898_v27 }
0x17a6   :  { %v2901_v16 = vsel %vm955_vm10, %v2899_v19, -1e+10  ;;  %v7102_v19 = vld [vmem:[#allocation35_spill] sm:$0xff] }
0x17a7   :  { %v2902_v59 = vsel %vm1014_vm11, %v2901_v16, -inf }
0x17a8   :  { %2903 = vmax.xlane.f32.xlu1 %v2902_v59  ;;  %v7103_v59 = vld [vmem:[#allocation34_spill] sm:$0xff] }
0x1835   :  { %v2904_v14 = vpop.xlane.xlu1 %2903 }
0x1836   :  { %v2905_v47 = vsub.f32 %v2901_v16, %v2904_v14 }
0x1838   :  { %v2906_v17 = vmul.f32 1.442695, %v2905_v47 }
0x183a   :  { %5245 = vpow2.f32 %v2906_v17 }
0x1844   :  { %v5246_v13 = vpop.eup %5245 }
0x1845   :  { %v2908_v51 = vmul.f32 %v5246_v13, %v7094_v18 }
0x1847   :  { %v2909_v49 = vsel %vm1014_vm11, %v2908_v51, 0.0 }
0x1848   :  { %2910 = vadd.xlane.f32.xlu0 %v2909_v49 }
0x18d5   :  { %v2911_v15 = vpop.xlane.xlu0 %2910 }
0x18d6   :  { %5247 = vrcp.f32 %v2911_v15 }
0x18e0   :  { %v5248_v56 = vpop.eup %5247 }
0x18e1   :  { %v2913_v0 = vmul.f32 %v5248_v56, %v2908_v51  ;;  %v7104_v56 = vld [vmem:[#allocation38_spill] sm:$0xff] }
0x18e3   :  { %v2924_v60 = vrot.slane %v2913_v0, %v7095_v1  ;;  %v2917_v58 = vrot.slane %v2913_v0, %v5894_v61  ;;  %v2945_v35 = vrot.slane %v2913_v0, %v7096_v2  ;;  %v2931_v20 = vrot.slane %v2913_v0, %v7097_v41 }
0x18e4   :  { %v2959_v32 = vrot.slane %v2913_v0, %v7098_v5  ;;  %v2938_v30 = vrot.slane %v2913_v0, %v7099_v11  ;;  %v2952_v53 = vrot.slane %v2913_v0, %v7100_v45  ;;  %v2966_v22 = vrot.slane %v2913_v0, %v7101_v39  ;;  %v7107_v39 = vld [vmem:[#allocation37_spill] sm:$0xff]  ;;  %v7108_v5 = vld [vmem:[#allocation39_spill] sm:$0xff] }
0x18e5   :  { %2926 = vbcast.lane.b32.xlu0 %v2924_v60, 256  ;;  %2919 = vbcast.lane.b32.xlu1 %v2917_v58, 256  ;;  %v7105_v58 = vld [vmem:[#allocation36_spill] sm:$0xff] }
0x18e9   :  { %2947 = vbcast.lane.b32.xlu0 %v2945_v35, 256  ;;  %2933 = vbcast.lane.b32.xlu1 %v2931_v20, 256 }
0x18ed   :  { %2961 = vbcast.lane.b32.xlu0 %v2959_v32, 256  ;;  %2940 = vbcast.lane.b32.xlu1 %v2938_v30, 256 }
0x18f1   :  { %2954 = vbcast.lane.b32.xlu1 %v2952_v53, 256 }
0x18f5   :  { %2968 = vbcast.lane.b32.xlu1 %v2966_v22, 256 }
0x1957   :  { %v2927_v37 = vpop.permute.xlu0 %2926  ;;  %v2920_v27 = vpop.permute.xlu1 %2919 }
0x1958   :  { %v2971_v16 = vmul.f32 %v2927_v37, %v7102_v19  ;;  %v2970_v14 = vmul.f32 %v2920_v27, %v7103_v59  ;;  %v7106_v59 = vld [vmem:[#allocation41_spill] sm:$0xff] }
0x195a   :  { %v2985_v47 = vsel %vm151_vm1, %v2971_v16, 0.0  ;;  %v2978_v17 = vsel %vm151_vm1, %v2970_v14, 0.0 }
0x195b   :  { %v2986_v13 = vrot.slane %v2985_v47, 4  ;;  %v2979_v51 = vrot.slane %v2978_v17, 4  ;;  %v2948_v49 = vpop.permute.xlu0 %2947  ;;  %v2934_v15 = vpop.permute.xlu1 %2933 }
0x195c   :  { %v2974_v60 = vmul.f32 %v2948_v49, %v7104_v56  ;;  %v2972_v35 = vmul.f32 %v2934_v15, %v7105_v58 }
0x195d   :  { %v2987_v0 = vadd.f32 %v2986_v13, %v2985_v47  ;;  %v2980_v20 = vadd.f32 %v2979_v51, %v2978_v17 }
0x195e   :  { %v3006_v32 = vsel %vm151_vm1, %v2974_v60, 0.0  ;;  %v2992_v30 = vsel %vm151_vm1, %v2972_v35, 0.0 }
0x195f   :  { %v2988_v53 = vrot.slane %v2987_v0, 2  ;;  %v2981_v22 = vrot.slane %v2980_v20, 2  ;;  %v3007_v37 = vrot.slane %v3006_v32, 4  ;;  %v2993_v27 = vrot.slane %v2992_v30, 4  ;;  %v2962_v16 = vpop.permute.xlu0 %2961  ;;  %v2941_v14 = vpop.permute.xlu1 %2940 }
0x1960   :  { %v2976_v19 = vmul.f32 %v2962_v16, %v7106_v59  ;;  %v2973_v45 = vmul.f32 %v2941_v14, %v7107_v39 }
0x1961   :  { %v2989_v11 = vadd.f32 %v2988_v53, %v2987_v0  ;;  %v3008_v49 = vadd.f32 %v3007_v37, %v3006_v32  ;;  %v2994_v56 = vadd.f32 %v2993_v27, %v2992_v30  ;;  %v2982_v15 = vadd.f32 %v2981_v22, %v2980_v20  ;;  %v7109_v22 = vld [vmem:[#allocation42_spill] sm:$0xff] }
0x1962   :  { %v3020_v47 = vsel %vm151_vm1, %v2976_v19, 0.0  ;;  %v2999_v17 = vsel %vm151_vm1, %v2973_v45, 0.0 }
0x1963   :  { %v2995_v13 = vrot.slane %v2994_v56, 2  ;;  %v2955_v51 = vpop.permute.xlu1 %2954  ;;  %v3009_v60 = vrot.slane %v3008_v49, 2  ;;  %v3021_v35 = vrot.slane %v3020_v47, 4  ;;  %v3000_v58 = vrot.slane %v2999_v17, 4 }
0x1964   :  { %v2975_v41 = vmul.f32 %v2955_v51, %v7108_v5  ;;  %v2990_v2 = vrot.slane %v2989_v11, 1  ;;  %v2983_v16 = vrot.slane %v2982_v15, 1 }
0x1965   :  { %v2996_v1 = vadd.f32 %v2995_v13, %v2994_v56  ;;  %v3022_v59 = vadd.f32 %v3021_v35, %v3020_v47  ;;  %v3001_v14 = vadd.f32 %v3000_v58, %v2999_v17  ;;  %v3010_v19 = vadd.f32 %v3009_v60, %v3008_v49 }
0x1966   :  { %v3013_v0 = vsel %vm151_vm1, %v2975_v41, 0.0  ;;  %v2991_v39 = vadd.f32 %v2990_v2, %v2989_v11  ;;  %v2984_v18 = vadd.f32 %v2983_v16, %v2982_v15 }
0x1967   :  { %v2997_v32 = vrot.slane %v2996_v1, 1  ;;  %v3014_v20 = vrot.slane %v3013_v0, 4  ;;  %v2969_v30 = vpop.permute.xlu1 %2968  ;;  %v3023_v53 = vrot.slane %v3022_v59, 2  ;;  %v3002_v45 = vrot.slane %v3001_v14, 2 }
0x1968   :  { %v2977_v37 = vmul.f32 %v2969_v30, %v7109_v22  ;;  %v3011_v58 = vrot.slane %v3010_v19, 1  ;;  %v3042_v49 = vsel %vm998_vm3, %v2991_v39, %v2984_v18 }
0x1969   :  { %v3015_v27 = vadd.f32 %v3014_v20, %v3013_v0  ;;  %v3003_v36 = vadd.f32 %v3002_v45, %v3001_v14  ;;  %v2998_v56 = vadd.f32 %v2997_v32, %v2996_v1  ;;  %v3024_v17 = vadd.f32 %v3023_v53, %v3022_v59 }
0x196a   :  { %v3027_v51 = vsel %vm151_vm1, %v2977_v37, 0.0  ;;  %v3012_v2 = vadd.f32 %v3011_v58, %v3010_v19 }
0x196b   :  { %v3016_v13 = vrot.slane %v3015_v27, 2  ;;  %v3028_v47 = vrot.slane %v3027_v51, 4  ;;  %v3004_v41 = vrot.slane %v3003_v36, 1  ;;  %v3043_v0 = vsel %vm1000_vm4, %v2998_v56, %v3042_v49 }
0x196c   :  { %v3025_v11 = vrot.slane %v3024_v17, 1 }
0x196d   :  { %v3017_v35 = vadd.f32 %v3016_v13, %v3015_v27  ;;  %v3029_v5 = vadd.f32 %v3028_v47, %v3027_v51  ;;  %v3005_v6 = vadd.f32 %v3004_v41, %v3003_v36 }
0x196e   :  { %v3026_v20 = vadd.f32 %v3025_v11, %v3024_v17 }
0x196f   :  { %v3018_v60 = vrot.slane %v3017_v35, 1  ;;  %v3030_v40 = vrot.slane %v3029_v5, 2  ;;  %v3044_v15 = vsel %vm1002_vm5, %v3005_v6, %v3043_v0 }
0x1970   :  { %v3045_v14 = vsel %vm1004_vm6, %v3012_v2, %v3044_v15 }
0x1971   :  { %v3031_v16 = vadd.f32 %v3030_v40, %v3029_v5  ;;  %v3019_v1 = vadd.f32 %v3018_v60, %v3017_v35 }
0x1973   :  { %v3032_v32 = vrot.slane %v3031_v16, 1  ;;  %v3046_v59 = vsel %vm1006_vm7, %v3019_v1, %v3045_v14 }
0x1974   :  { %v3047_v18 = vsel %vm1008_vm8, %v3026_v20, %v3046_v59 }
0x1975   :  { %v3033_v36 = vadd.f32 %v3032_v32, %v3031_v16 }
0x1977   :  { %v3048_v39 = vsel %vm1010_vm9, %v3033_v36, %v3047_v18 }
0x1978   :  { %4512 = vmatmul.mubr.msk.f32.vlgmr.msra.gmra.mrb[14].mxu1 %vm151_vm1, %v3048_v39 }
0x1a4b   :  { %v3117_v30 = vpop.f32.mrb[14].mxu1 }
0x1a4c   :  { %3123 = vrot.lane.b32.xlu0 %v3117_v30, %s5574_s29  ;;  %v3119_v6 = vpop.f32.mrb[15].mxu1 }
0x1abe   :  { %v3124_v40 = vpop.permute.xlu0 %3123 }
0x1abf   :  { %v3126_v5 = vadd.f32 %v3124_v40, %v6528_v25 }
0x1ac1   :  { %v3127_v19 = vadd.f32 %v3126_v5, %v6111_v38 }
0x1ac3   :  { %5249 = vtanh.f32 %v3127_v19 }
0x1acd   :  { %v5250_v53 = vpop.eup %5249 }
0x1ace   :  { %3130 = vrot.lane.b32.xlu1 %v5250_v53, %s5573_s28 }
0x1b40   :  { %v3131_v45 = vpop.permute.xlu1 %3130 }
0x1b41   :  { %4818 = vmatmul.mubr.msk.f32.vlgmr.msra.gmra.mrb[22].mxu0 %vm736_vm2, %v3131_v45 }
0x1b42   :  { %5453 = shalt.err (!%p6318_p8)  }
0x1b43   :  { %s6635_s15 = scalar_lea.hbm %s6985_s12, 384  ;;  %p5457_p13 = scmp.lt.u32.totalorder %s6474_s0, %s6985_s12 }
0x1b44   :  { %p5455_p11 = scmp.ne.s32.totalorder %s6474_s0, %s6635_s15  ;;  %p5458_p0 = scmp.lt.u32.totalorder %s6336_s19, %s6635_s15 }
0x1b45   :  { %p5460_p2 = scmp.lt.u32.totalorder %s6635_s15, %s6474_s0 }
0x1b46   :  { %p5459_p1 = por %p5458_p0, %p5457_p13 }
0x1b48   :  { %p5461_p3 = por %p5460_p2, %p5459_p1 }
0x1b4a   :  { %p5462_p5 = pnand %p5461_p3, %p5455_p11 }
0x1b4c   :  { %5465 = shalt.err (!%p5462_p5)  }
0x1b4d   :  { %2597 = dma.vmem_to_hbm [thread:$0]  %s6309_s13, 128, %s6474_s0, [#allocation3]  ;;  %3232 = vrot.lane.b32.xlu1 %v3117_v30, %s5573_s28  ;;  %3224 = vrot.lane.b32.xlu0 %v6528_v25, %s5572_s27 }
0x1c14   :  { %v3200_v37 = vpop.f32.mrb[22].mxu0 }
0x1c15   :  { %v3201_v27 = vadd.f32 %v6135_v57, %v3200_v37  ;;  %v4819_v51 = vpop.f32.mrb[23].mxu0 }
0x1c16   :  { %5550 = dma.done.wait [#allocation3 + $0x1], 128 }
0x1c17   :  { %5551 = vsyncadd [#allocation3 + $0x1], 4294967168  ;;  %3206 = vst [vmem:[#allocation2 + $0x8] sm:$0xff] %v3201_v27  ;;  %5059 = vmatprep.subr.bf16.mxu0 %v7091_v7  ;;  %3331 = vmatprep.mubr.f32.mxu0 %v7065_v52  ;;  %v3233_v25 = vpop.permute.xlu1 %3232  ;;  %v3222_v56 = vld [vmem:[#allocation6 + $0x18] sm:$0xff] }
0x1c18   :  { %5061 = vmatpush1.bf16.msra.mxu0 %v5850_v28  ;;  %5067 = vmatprep.subr.bf16.mxu1 %v7092_v31 }
0x1c19   :  { %5063 = vmatprep.subr.bf16.mxu0 %v5853_v29  ;;  %5069 = vmatpush1.bf16.msra.mxu1 %v6007_v62 }
0x1c1a   :  { %3234 = vrot.lane.b32.xlu1 %v3119_v6, %s5573_s28  ;;  %3226 = vrot.lane.b32.xlu0 %v6534_v50, %s5572_s27  ;;  %v3225_v50 = vpop.permute.xlu0 %3224 }
0x1c1b   :  { %5071 = vmatprep.subr.bf16.mxu1 %v6011_v4  ;;  %3738 = vmatprep.mubr.f32.mxu1 %v7065_v52 }
0x1c1c   :  { %5065 = vmatpush1.bf16.msra.mxu0 %v5864_v33 }
0x1c1d   :  { %5073 = vmatpush1.bf16.msra.mxu1 %v6017_v12  ;;  %5082 = vmatprep.subr.bf16.mxu0 %v7066_v24 }
0x1c1e   :  { %5075 = vmatprep.subr.bf16.mxu1 %v6023_v21 }
0x1c21   :  { %5077 = vmatpush1.bf16.msra.mxu1 %v6026_v26 }
0x1c22   :  { %5079 = vmatprep.subr.bf16.mxu1 %v6030_v43 }
0x1c25   :  { %5081 = vmatpush1.bf16.msra.mxu1 %v6032_v46 }
0x1c8c   :  { %v3235_v13 = vpop.permute.xlu1 %3234  ;;  %v3227_v47 = vpop.permute.xlu0 %3226 }
0x1c8d   :  { %v3228_v58 = vsel %vm151_vm1, %v3225_v50, %v3227_v47  ;;  %v3236_v41 = vsel %vm1359_vm12, %v3233_v25, %v3235_v13 }
0x1c8e   :  { %v3230_v17 = vadd.f32 %v3228_v58, %v3222_v56 }
0x1c90   :  { %v3238_v35 = vadd.f32 %v3236_v41, %v3230_v17 }
0x1c92   :  { %v3239_v49 = vadd.f32 %v6078_v54, %v3238_v35 }
0x1c94   :  { %5251 = vtanh.f32 %v3239_v49  ;;  %v3240_v0 = vmul.f32 0.5, %v3239_v49 }
0x1c96   :  { %5253 = vtanh.f32 %v3240_v0 }
0x1c9e   :  { %v5252_v60 = vpop.eup %5251 }
0x1c9f   :  { %3247 = vrot.lane.b32.xlu0 %v5252_v60, %s5572_s27 }
0x1ca0   :  { %v5254_v2 = vpop.eup %5253 }
0x1ca1   :  { %v3242_v11 = vmul.f32 0.5, %v5254_v2 }
0x1ca3   :  { %v3243_v15 = vadd.f32 0.5, %v3242_v11 }
0x1ca5   :  { %v3245_v14 = vmul.f32 %v3243_v15, %v6517_v63 }
0x1d11   :  { %v3248_v16 = vpop.permute.xlu0 %3247 }
0x1d12   :  { %v3250_v1 = vmul.f32 %v3248_v16, %v3243_v15 }
0x1d14   :  { %3252 = vrot.lane.b32.xlu1 %v3250_v1, %s5574_s29 }
0x1d86   :  { %v3253_v32 = vpop.permute.xlu1 %3252 }
0x1d87   :  { %v6677_v59 = vadd.f32 %v3253_v32, %v3245_v14 }
0x1d89   :  { %5255 = vtanh.f32 %v6677_v59 }
0x1d93   :  { %v5256_v20 = vpop.eup %5255 }
0x1d94   :  { %3258 = vrot.lane.b32.xlu0 %v5256_v20, %s5572_s27  ;;  %v7110_v20 = vld [vmem:[#allocation43_spill] sm:$0xff] }
0x1e06   :  { %v3259_v36 = vpop.permute.xlu0 %3258 }
0x1e07   :  { %v3261_v18 = vmul.f32 %v3259_v36, %v3243_v15 }
0x1e09   :  { %3263 = vrot.lane.b32.xlu1 %v3261_v18, %s5574_s29 }
0x1e7b   :  { %v3264_v39 = vpop.permute.xlu1 %3263 }
0x1e7c   :  { %4514 = vmatmul.mubr.msk.f32.vlgmr.msra.gmra.mrb[24].mxu0 %vm736_vm2, %v3264_v39  ;;  %v7111_v39 = vld [vmem:[#allocation44_spill] sm:$0xff] }
0x1e7d   :  { %5084 = vmatpush3.bf16.msra.mxu0 %v6095_v44  ;;  %4828 = vmatprep.mubr.msk.f32.mxu0 %vm5569_vm0, %v7065_v52 }
0x1e7e   :  { %5085 = vmatprep.subr.bf16.mxu0 %v7066_v24 }
0x1e81   :  { %5087 = vmatpush3.bf16.msra.mxu0 %v6107_v48 }
0x1f4f   :  { %v6688_v63 = vpop.f32.mrb[24].mxu0 }
0x1f50   :  { %v3339_v30 = vcombine.high %v6688_v63, %v6688_v63  ;;  %v3346_v6 = vrot.slane %v6688_v63, %v5880_v55  ;;  %v6694_v40 = vpop.f32.mrb[25].mxu0 }
0x1f52   :  { %v3353_v5 = vrot.slane %v3339_v30, %v5880_v55  ;;  %v3354_v19 = vcombine.high %v3346_v6, %v3346_v6  ;;  %v3362_v53 = vrot.slane %v3346_v6, %v5880_v55 }
0x1f54   :  { %v3355_v45 = vcombine.high %v3353_v5, %v3353_v5  ;;  %v3369_v37 = vrot.slane %v3353_v5, %v5880_v55  ;;  %v3376_v27 = vrot.slane %v3354_v19, %v5880_v55  ;;  %v3391_v51 = vrot.slane %v3362_v53, %v5894_v61 }
0x1f55   :  { %v3384_v25 = vcombine.high %v3362_v53, %v3362_v53 }
0x1f56   :  { %v3383_v50 = vrot.slane %v3355_v45, %v5880_v55  ;;  %v3428_v56 = vadd.f32 %v3391_v51, %v5898_v3  ;;  %v3395_v13 = vrot.slane %v3376_v27, %v5894_v61  ;;  %v3407_v47 = vrot.slane %v3369_v37, %v5894_v61 }
0x1f57   :  { %v3399_v58 = vrot.slane %v3384_v25, %v5894_v61  ;;  %v3386_v17 = vcombine.high %v3376_v27, %v3376_v27  ;;  %v3385_v41 = vcombine.high %v3369_v37, %v3369_v37 }
0x1f58   :  { %5257 = vtanh.f32 %v3428_v56  ;;  %v3429_v35 = vadd.f32 %v3395_v13, %v5904_v9  ;;  %v3432_v49 = vadd.f32 %v3407_v47, %v5911_v23  ;;  %v3411_v60 = vrot.slane %v3383_v50, %v5894_v61 }
0x1f59   :  { %v3430_v0 = vadd.f32 %v3399_v58, %v5902_v8  ;;  %v3403_v2 = vrot.slane %v3386_v17, %v5894_v61  ;;  %v3415_v11 = vrot.slane %v3385_v41, %v5894_v61  ;;  %v3387_v15 = vcombine.high %v3383_v50, %v3383_v50 }
0x1f5a   :  { %5259 = vtanh.f32 %v3429_v35  ;;  %v3433_v14 = vadd.f32 %v3411_v60, %v5918_v34 }
0x1f5b   :  { %5261 = vtanh.f32 %v3430_v0  ;;  %v3431_v16 = vadd.f32 %v3403_v2, %v5906_v10  ;;  %v3434_v1 = vadd.f32 %v3415_v11, %v5927_v42  ;;  %v3419_v32 = vrot.slane %v3387_v15, %v5894_v61 }
0x1f5c   :  { %5263 = vtanh.f32 %v3432_v49 }
0x1f5d   :  { %5265 = vtanh.f32 %v3431_v16  ;;  %v3435_v36 = vadd.f32 %v3419_v32, %v7110_v20 }
0x1f5e   :  { %5267 = vtanh.f32 %v3434_v1  ;;  %v7112_v1 = vld [vmem:[#allocation45_spill] sm:$0xff] }
0x1f5f   :  { %5269 = vtanh.f32 %v3433_v14 }
0x1f60   :  { %5271 = vtanh.f32 %v3435_v36 }
0x1f62   :  { %v5258_v18 = vpop.eup %5257 }
0x1f63   :  { %v3444_v30 = vmul.f32 %v5258_v18, %v7111_v39 }
0x1f64   :  { %v5260_v6 = vpop.eup %5259 }
0x1f65   :  { %v5262_v5 = vpop.eup %5261  ;;  %v3452_v19 = vsel %vm736_vm2, %v3444_v30, 0.0  ;;  %v3445_v53 = vmul.f32 %v5260_v6, %v7111_v39 }
0x1f66   :  { %v5264_v45 = vpop.eup %5263  ;;  %3453 = vadd.xlane.f32.xlu0 %v3452_v19  ;;  %v3446_v37 = vmul.f32 %v5262_v5, %v7111_v39 }
0x1f67   :  { %v5266_v27 = vpop.eup %5265  ;;  %v3455_v51 = vsel %vm736_vm2, %v3445_v53, 0.0  ;;  %v3448_v25 = vmul.f32 %v5264_v45, %v7111_v39 }
0x1f68   :  { %v5268_v50 = vpop.eup %5267  ;;  %3456 = vadd.xlane.f32.xlu1 %v3455_v51  ;;  %v3458_v56 = vsel %vm736_vm2, %v3446_v37, 0.0  ;;  %v3447_v13 = vmul.f32 %v5266_v27, %v7111_v39 }
0x1f69   :  { %v5270_v47 = vpop.eup %5269  ;;  %v3464_v58 = vsel %vm736_vm2, %v3448_v25, 0.0  ;;  %v3450_v17 = vmul.f32 %v5268_v50, %v7111_v39 }
0x1f6a   :  { %3459 = vadd.xlane.f32.xlu0 %v3458_v56  ;;  %v3461_v41 = vsel %vm736_vm2, %v3447_v13, 0.0  ;;  %v3449_v35 = vmul.f32 %v5270_v47, %v7111_v39  ;;  %v5272_v49 = vpop.eup %5271 }
0x1f6b   :  { %v3470_v60 = vsel %vm736_vm2, %v3450_v17, 0.0  ;;  %v3451_v2 = vmul.f32 %v5272_v49, %v7111_v39 }
0x1f6c   :  { %3465 = vadd.xlane.f32.xlu1 %v3464_v58  ;;  %v3467_v0 = vsel %vm736_vm2, %v3449_v35, 0.0  ;;  %v7113_v35 = vld [vmem:[#allocation46_spill] sm:$0xff] }
0x1f6d   :  { %v3473_v11 = vsel %vm736_vm2, %v3451_v2, 0.0 }
0x1f6e   :  { %3462 = vadd.xlane.f32.xlu0 %v3461_v41 }
0x1f70   :  { %3471 = vadd.xlane.f32.xlu1 %v3470_v60 }
0x1f72   :  { %3468 = vadd.xlane.f32.xlu0 %v3467_v0 }
0x1f76   :  { %3474 = vadd.xlane.f32.xlu0 %v3473_v11 }
0x1ff3   :  { %v3454_v15 = vpop.xlane.xlu0 %3453 }
0x1ff4   :  { %v3487_v36 = vrot.slane %v3454_v15, %v7112_v1 }
0x1ff5   :  { %v3457_v16 = vpop.xlane.xlu1 %3456 }
0x1ff6   :  { %v3491_v14 = vrot.slane %v3457_v16, %v7112_v1 }
0x1ff7   :  { %v3460_v32 = vpop.xlane.xlu0 %3459 }
0x1ff8   :  { %v3495_v18 = vrot.slane %v3460_v32, %v7112_v1  ;;  %v3516_v30 = vsel %vm998_vm3, %v3491_v14, %v3487_v36 }
0x1ff9   :  { %v3466_v6 = vpop.xlane.xlu1 %3465 }
0x1ffa   :  { %v3517_v53 = vsel %vm1000_vm4, %v3495_v18, %v3516_v30  ;;  %v3503_v37 = vrot.slane %v3466_v6, %v7112_v1  ;;  %v7114_v30 = vld [vmem:[#allocation47_spill] sm:$0xff] }
0x1ffb   :  { %v3463_v5 = vpop.xlane.xlu0 %3462 }
0x1ffc   :  { %v3499_v19 = vrot.slane %v3463_v5, %v7112_v1 }
0x1ffd   :  { %v3472_v51 = vpop.xlane.xlu1 %3471 }
0x1ffe   :  { %v3518_v45 = vsel %vm1002_vm5, %v3499_v19, %v3517_v53  ;;  %v3511_v13 = vrot.slane %v3472_v51, %v7112_v1  ;;  %v7115_v19 = vld [vmem:[#allocation49_spill] sm:$0xff] }
0x1fff   :  { %v3469_v27 = vpop.xlane.xlu0 %3468  ;;  %v3519_v50 = vsel %vm1004_vm6, %v3503_v37, %v3518_v45  ;;  %v7116_v45 = vld [vmem:[#allocation48_spill] sm:$0xff] }
0x2000   :  { %v3507_v25 = vrot.slane %v3469_v27, %v7112_v1  ;;  %v7117_v27 = vld [vmem:[#allocation51_spill] sm:$0xff] }
0x2002   :  { %v3520_v56 = vsel %vm1006_vm7, %v3507_v25, %v3519_v50  ;;  %v7118_v25 = vld [vmem:[#allocation50_spill] sm:$0xff] }
0x2003   :  { %v3475_v47 = vpop.xlane.xlu0 %3474  ;;  %v3521_v17 = vsel %vm1008_vm8, %v3511_v13, %v3520_v56  ;;  %v7119_v56 = vld [vmem:[#allocation53_spill] sm:$0xff] }
0x2004   :  { %v3515_v58 = vrot.slane %v3475_v47, %v7112_v1  ;;  %v7120_v47 = vld [vmem:[#allocation54_spill] sm:$0xff] }
0x2006   :  { %v3522_v41 = vsel %vm1010_vm9, %v3515_v58, %v3521_v17 }
0x2007   :  { %v3524_v49 = vsel %vm955_vm10, %v3522_v41, -1e+10 }
0x2008   :  { %v3525_v60 = vsel %vm1014_vm11, %v3524_v49, -inf }
0x2009   :  { %3526 = vmax.xlane.f32.xlu1 %v3525_v60 }
0x2096   :  { %v3527_v0 = vpop.xlane.xlu1 %3526 }
0x2097   :  { %v3528_v2 = vsub.f32 %v3524_v49, %v3527_v0  ;;  %v7121_v49 = vld [vmem:[#allocation35_spill] sm:$0xff]  ;;  %v7122_v0 = vld [vmem:[#allocation34_spill] sm:$0xff] }
0x2099   :  { %v3529_v11 = vmul.f32 1.442695, %v3528_v2 }
0x209b   :  { %5273 = vpow2.f32 %v3529_v11 }
0x20a5   :  { %v5274_v15 = vpop.eup %5273 }
0x20a6   :  { %v3531_v16 = vmul.f32 %v5274_v15, %v7113_v35 }
0x20a8   :  { %v3532_v14 = vsel %vm1014_vm11, %v3531_v16, 0.0 }
0x20a9   :  { %3533 = vadd.xlane.f32.xlu0 %v3532_v14 }
0x2136   :  { %v3534_v32 = vpop.xlane.xlu0 %3533 }
0x2137   :  { %5275 = vrcp.f32 %v3534_v32 }
0x2141   :  { %v5276_v36 = vpop.eup %5275 }
0x2142   :  { %v3536_v18 = vmul.f32 %v5276_v36, %v3531_v16 }
0x2144   :  { %v3547_v6 = vrot.slane %v3536_v18, %v7114_v30  ;;  %v3540_v5 = vrot.slane %v3536_v18, %v5894_v61  ;;  %v3568_v53 = vrot.slane %v3536_v18, %v7115_v19  ;;  %v3554_v37 = vrot.slane %v3536_v18, %v7116_v45  ;;  %v7127_v45 = vld [vmem:[#allocation39_spill] sm:$0xff] }
0x2145   :  { %v3582_v51 = vrot.slane %v3536_v18, %v7117_v27  ;;  %v3561_v50 = vrot.slane %v3536_v18, %v7118_v25  ;;  %v3575_v13 = vrot.slane %v3536_v18, %v7119_v56  ;;  %v3589_v58 = vrot.slane %v3536_v18, %v7120_v47  ;;  %v7126_v56 = vld [vmem:[#allocation37_spill] sm:$0xff] }
0x2146   :  { %3549 = vbcast.lane.b32.xlu0 %v3547_v6, 256  ;;  %3542 = vbcast.lane.b32.xlu1 %v3540_v5, 256  ;;  %v7123_v6 = vld [vmem:[#allocation38_spill] sm:$0xff] }
0x214a   :  { %3570 = vbcast.lane.b32.xlu0 %v3568_v53, 256  ;;  %3556 = vbcast.lane.b32.xlu1 %v3554_v37, 256  ;;  %v7124_v53 = vld [vmem:[#allocation36_spill] sm:$0xff] }
0x214e   :  { %3584 = vbcast.lane.b32.xlu0 %v3582_v51, 256  ;;  %3563 = vbcast.lane.b32.xlu1 %v3561_v50, 256 }
0x2152   :  { %3577 = vbcast.lane.b32.xlu1 %v3575_v13, 256 }
0x2156   :  { %3591 = vbcast.lane.b32.xlu1 %v3589_v58, 256 }
0x21b8   :  { %v3550_v17 = vpop.permute.xlu0 %3549  ;;  %v3543_v41 = vpop.permute.xlu1 %3542 }
0x21b9   :  { %v3594_v60 = vmul.f32 %v3550_v17, %v7121_v49  ;;  %v3593_v2 = vmul.f32 %v3543_v41, %v7122_v0  ;;  %v7125_v49 = vld [vmem:[#allocation41_spill] sm:$0xff] }
0x21bb   :  { %v3608_v11 = vsel %vm151_vm1, %v3594_v60, 0.0  ;;  %v3601_v15 = vsel %vm151_vm1, %v3593_v2, 0.0 }
0x21bc   :  { %v3609_v16 = vrot.slane %v3608_v11, 4  ;;  %v3602_v14 = vrot.slane %v3601_v15, 4  ;;  %v3571_v32 = vpop.permute.xlu0 %3570  ;;  %v3557_v36 = vpop.permute.xlu1 %3556 }
0x21bd   :  { %v3597_v5 = vmul.f32 %v3571_v32, %v7123_v6  ;;  %v3595_v37 = vmul.f32 %v3557_v36, %v7124_v53 }
0x21be   :  { %v3610_v18 = vadd.f32 %v3609_v16, %v3608_v11  ;;  %v3603_v51 = vadd.f32 %v3602_v14, %v3601_v15 }
0x21bf   :  { %v3629_v50 = vsel %vm151_vm1, %v3597_v5, 0.0  ;;  %v3615_v13 = vsel %vm151_vm1, %v3595_v37, 0.0 }
0x21c0   :  { %v3611_v58 = vrot.slane %v3610_v18, 2  ;;  %v3604_v17 = vrot.slane %v3603_v51, 2  ;;  %v3630_v41 = vrot.slane %v3629_v50, 4  ;;  %v3616_v60 = vrot.slane %v3615_v13, 4  ;;  %v3585_v0 = vpop.permute.xlu0 %3584  ;;  %v3564_v2 = vpop.permute.xlu1 %3563 }
0x21c1   :  { %v3599_v47 = vmul.f32 %v3585_v0, %v7125_v49  ;;  %v3596_v25 = vmul.f32 %v3564_v2, %v7126_v56 }
0x21c2   :  { %v3612_v27 = vadd.f32 %v3611_v58, %v3610_v18  ;;  %v3631_v32 = vadd.f32 %v3630_v41, %v3629_v50  ;;  %v3617_v6 = vadd.f32 %v3616_v60, %v3615_v13  ;;  %v3605_v36 = vadd.f32 %v3604_v17, %v3603_v51 }
0x21c3   :  { %v3643_v11 = vsel %vm151_vm1, %v3599_v47, 0.0  ;;  %v3622_v15 = vsel %vm151_vm1, %v3596_v25, 0.0 }
0x21c4   :  { %v3618_v16 = vrot.slane %v3617_v6, 2  ;;  %v3578_v14 = vpop.permute.xlu1 %3577  ;;  %v3632_v5 = vrot.slane %v3631_v32, 2  ;;  %v3644_v37 = vrot.slane %v3643_v11, 4  ;;  %v3623_v53 = vrot.slane %v3622_v15, 4 }
0x21c5   :  { %v3598_v19 = vmul.f32 %v3578_v14, %v7127_v45  ;;  %v3613_v30 = vrot.slane %v3612_v27, 1  ;;  %v3606_v0 = vrot.slane %v3605_v36, 1 }
0x21c6   :  { %v3619_v35 = vadd.f32 %v3618_v16, %v3617_v6  ;;  %v3645_v49 = vadd.f32 %v3644_v37, %v3643_v11  ;;  %v3624_v2 = vadd.f32 %v3623_v53, %v3622_v15  ;;  %v3633_v47 = vadd.f32 %v3632_v5, %v3631_v32 }
0x21c7   :  { %v3636_v18 = vsel %vm151_vm1, %v3598_v19, 0.0  ;;  %v3614_v60 = vadd.f32 %v3613_v30, %v3612_v27  ;;  %v3607_v56 = vadd.f32 %v3606_v0, %v3605_v36 }
0x21c8   :  { %v3620_v50 = vrot.slane %v3619_v35, 1  ;;  %v3637_v51 = vrot.slane %v3636_v18, 4  ;;  %v3592_v13 = vpop.permute.xlu1 %3591  ;;  %v3646_v58 = vrot.slane %v3645_v49, 2  ;;  %v3625_v25 = vrot.slane %v3624_v2, 2 }
0x21c9   :  { %v3600_v17 = vmul.f32 %v3592_v13, %v7109_v22  ;;  %v3634_v53 = vrot.slane %v3633_v47, 1  ;;  %v3665_v32 = vsel %vm998_vm3, %v3614_v60, %v3607_v56 }
0x21ca   :  { %v3638_v41 = vadd.f32 %v3637_v51, %v3636_v18  ;;  %v3626_v1 = vadd.f32 %v3625_v25, %v3624_v2  ;;  %v3621_v6 = vadd.f32 %v3620_v50, %v3619_v35  ;;  %v3647_v15 = vadd.f32 %v3646_v58, %v3645_v49 }
0x21cb   :  { %v3650_v14 = vsel %vm151_vm1, %v3600_v17, 0.0  ;;  %v3635_v30 = vadd.f32 %v3634_v53, %v3633_v47 }
0x21cc   :  { %v3639_v16 = vrot.slane %v3638_v41, 2  ;;  %v3651_v11 = vrot.slane %v3650_v14, 4  ;;  %v3627_v19 = vrot.slane %v3626_v1, 1  ;;  %v3666_v18 = vsel %vm1000_vm4, %v3621_v6, %v3665_v32 }
0x21cd   :  { %v3648_v27 = vrot.slane %v3647_v15, 1 }
0x21ce   :  { %v3640_v37 = vadd.f32 %v3639_v16, %v3638_v41  ;;  %v3652_v45 = vadd.f32 %v3651_v11, %v3650_v14  ;;  %v3628_v39 = vadd.f32 %v3627_v19, %v3626_v1 }
0x21cf   :  { %v3649_v51 = vadd.f32 %v3648_v27, %v3647_v15 }
0x21d0   :  { %v3641_v5 = vrot.slane %v3640_v37, 1  ;;  %v3653_v20 = vrot.slane %v3652_v45, 2  ;;  %v3667_v36 = vsel %vm1002_vm5, %v3628_v39, %v3666_v18 }
0x21d1   :  { %v3668_v2 = vsel %vm1004_vm6, %v3635_v30, %v3667_v36 }
0x21d2   :  { %v3654_v0 = vadd.f32 %v3653_v20, %v3652_v45  ;;  %v3642_v35 = vadd.f32 %v3641_v5, %v3640_v37 }
0x21d4   :  { %v3655_v50 = vrot.slane %v3654_v0, 1  ;;  %v3669_v49 = vsel %vm1006_vm7, %v3642_v35, %v3668_v2 }
0x21d5   :  { %v3670_v56 = vsel %vm1008_vm8, %v3649_v51, %v3669_v49 }
0x21d6   :  { %v3656_v1 = vadd.f32 %v3655_v50, %v3654_v0 }
0x21d8   :  { %v3671_v13 = vsel %vm1010_vm9, %v3656_v1, %v3670_v56 }
0x21d9   :  { %4515 = vmatmul.mubr.msk.f32.vlgmr.msra.gmra.mrb[16].mxu1 %vm151_vm1, %v3671_v13 }
0x22ac   :  { %v3740_v47 = vpop.f32.mrb[16].mxu1 }
0x22ad   :  { %3746 = vrot.lane.b32.xlu0 %v3740_v47, %s5574_s29  ;;  %v3742_v39 = vpop.f32.mrb[17].mxu1 }
0x231f   :  { %v3747_v20 = vpop.permute.xlu0 %3746 }
0x2320   :  { %v3749_v45 = vadd.f32 %v3747_v20, %v6688_v63 }
0x2322   :  { %v3750_v58 = vadd.f32 %v3749_v45, %v6111_v38 }
0x2324   :  { %5277 = vtanh.f32 %v3750_v58 }
0x232e   :  { %v5278_v25 = vpop.eup %5277 }
0x232f   :  { %3753 = vrot.lane.b32.xlu1 %v5278_v25, %s5573_s28 }
0x23a1   :  { %v3754_v17 = vpop.permute.xlu1 %3753 }
0x23a2   :  { %4829 = vmatmul.mubr.msk.f32.vlgmr.msra.gmra.mrb[26].mxu0 %vm736_vm2, %v3754_v17 }
0x23a3   :  { %5478 = shalt.err (!%p6465_p4)  }
0x23a4   :  { %s6795_s21 = scalar_lea.hbm %s6985_s12, 512  ;;  %p5482_p7 = scmp.lt.u32.totalorder %s6635_s15, %s6985_s12 }
0x23a5   :  { %p5480_p6 = scmp.ne.s32.totalorder %s6635_s15, %s6795_s21  ;;  %p5483_p9 = scmp.lt.u32.totalorder %s6336_s19, %s6795_s21 }
0x23a6   :  { %p5485_p12 = scmp.lt.u32.totalorder %s6795_s21, %s6635_s15 }
0x23a7   :  { %p5484_p10 = por %p5483_p9, %p5482_p7 }
0x23a9   :  { %p5486_p11 = por %p5485_p12, %p5484_p10 }
0x23ab   :  { %p5487_p13 = pnand %p5486_p11, %p5480_p6 }
0x23ad   :  { %5490 = shalt.err (!%p5487_p13)  }
0x23ae   :  { %3220 = dma.vmem_to_hbm [thread:$0]  %s6457_s2, 128, %s6635_s15, [#allocation3 + $0x1]  ;;  %3855 = vrot.lane.b32.xlu1 %v3740_v47, %s5573_s28  ;;  %3847 = vrot.lane.b32.xlu0 %v6688_v63, %s5572_s27 }
0x2475   :  { %v3823_v41 = vpop.f32.mrb[26].mxu0 }
0x2476   :  { %v3824_v60 = vadd.f32 %v6135_v57, %v3823_v41  ;;  %v4830_v14 = vpop.f32.mrb[27].mxu0 }
0x2477   :  { %5552 = dma.done.wait [#allocation3], 128 }
0x2478   :  { %5553 = vsyncadd [#allocation3], 4294967168  ;;  %3829 = vst [vmem:[#allocation2] sm:$0xff] %v3824_v60  ;;  %5089 = vmatprep.subr.bf16.mxu0 %v7091_v7  ;;  %3954 = vmatprep.mubr.f32.mxu0 %v7065_v52 }
0x2479   :  { %5091 = vmatpush1.bf16.msra.mxu0 %v5850_v28  ;;  %5097 = vmatprep.subr.bf16.mxu1 %v7092_v31  ;;  %v3856_v28 = vpop.permute.xlu1 %3855 }
0x247a   :  { %5093 = vmatprep.subr.bf16.mxu0 %v5853_v29  ;;  %5099 = vmatpush1.bf16.msra.mxu1 %v6007_v62  ;;  %v3848_v29 = vpop.permute.xlu0 %3847  ;;  %v3845_v62 = vld [vmem:[#allocation6 + $0x20] sm:$0xff] }
0x247b   :  { %3857 = vrot.lane.b32.xlu1 %v3742_v39, %s5573_s28  ;;  %3849 = vrot.lane.b32.xlu0 %v6694_v40, %s5572_s27 }
0x247c   :  { %5101 = vmatprep.subr.bf16.mxu1 %v6011_v4  ;;  %4360 = vmatprep.mubr.f32.mxu1 %v7065_v52 }
0x247d   :  { %5095 = vmatpush1.bf16.msra.mxu0 %v5864_v33 }
0x247e   :  { %5103 = vmatpush1.bf16.msra.mxu1 %v6017_v12  ;;  %5112 = vmatprep.subr.bf16.mxu0 %v7066_v24 }
0x247f   :  { %5105 = vmatprep.subr.bf16.mxu1 %v6023_v21 }
0x2482   :  { %5107 = vmatpush1.bf16.msra.mxu1 %v6026_v26 }
0x2483   :  { %5109 = vmatprep.subr.bf16.mxu1 %v6030_v43 }
0x2486   :  { %5111 = vmatpush1.bf16.msra.mxu1 %v6032_v46 }
0x24ed   :  { %v3858_v4 = vpop.permute.xlu1 %3857  ;;  %v3850_v7 = vpop.permute.xlu0 %3849 }
0x24ee   :  { %v3851_v31 = vsel %vm151_vm1, %v3848_v29, %v3850_v7  ;;  %v3859_v12 = vsel %vm1359_vm12, %v3856_v28, %v3858_v4  ;;  %v7129_v28 = vld [vmem:[#allocation44_spill] sm:$0xff] }
0x24ef   :  { %v3853_v33 = vadd.f32 %v3851_v31, %v3845_v62 }
0x24f1   :  { %v3861_v63 = vadd.f32 %v3859_v12, %v3853_v33 }
0x24f3   :  { %v3862_v40 = vadd.f32 %v6078_v54, %v3861_v63 }
0x24f5   :  { %5279 = vtanh.f32 %v3862_v40  ;;  %v3863_v26 = vmul.f32 0.5, %v3862_v40 }
0x24f7   :  { %5281 = vtanh.f32 %v3863_v26 }
0x24ff   :  { %v5280_v21 = vpop.eup %5279 }
0x2500   :  { %3870 = vrot.lane.b32.xlu0 %v5280_v21, %s5572_s27 }
0x2501   :  { %v5282_v43 = vpop.eup %5281 }
0x2502   :  { %v3865_v46 = vmul.f32 0.5, %v5282_v43 }
0x2504   :  { %v3866_v6 = vadd.f32 0.5, %v3865_v46 }
0x2506   :  { %v3868_v53 = vmul.f32 %v3866_v6, %v6677_v59 }
0x2572   :  { %v3871_v16 = vpop.permute.xlu0 %3870 }
0x2573   :  { %v3873_v11 = vmul.f32 %v3871_v16, %v3866_v6 }
0x2575   :  { %3875 = vrot.lane.b32.xlu1 %v3873_v11, %s5574_s29 }
0x25e7   :  { %v3876_v15 = vpop.permute.xlu1 %3875 }
0x25e8   :  { %v3878_v19 = vadd.f32 %v3876_v15, %v3868_v53 }
0x25ea   :  { %5283 = vtanh.f32 %v3878_v19 }
0x25f4   :  { %v5284_v37 = vpop.eup %5283 }
0x25f5   :  { %3881 = vrot.lane.b32.xlu0 %v5284_v37, %s5572_s27 }
0x2667   :  { %v3882_v54 = vpop.permute.xlu0 %3881 }
0x2668   :  { %v3884_v32 = vmul.f32 %v3882_v54, %v3866_v6 }
0x266a   :  { %3886 = vrot.lane.b32.xlu1 %v3884_v32, %s5574_s29 }
0x26dc   :  { %v3887_v5 = vpop.permute.xlu1 %3886 }
0x26dd   :  { %4517 = vmatmul.mubr.msk.f32.vlgmr.msra.gmra.mrb[28].mxu0 %vm736_vm2, %v3887_v5  ;;  %v7130_v5 = vld [vmem:[#allocation45_spill] sm:$0xff] }
0x26de   :  { %5114 = vmatpush3.bf16.msra.mxu0 %v6095_v44  ;;  %4839 = vmatprep.mubr.msk.f32.mxu0 %vm5569_vm0, %v7065_v52 }
0x26df   :  { %5115 = vmatprep.subr.bf16.mxu0 %v7066_v24 }
0x26e2   :  { %5117 = vmatpush3.bf16.msra.mxu0 %v6107_v48 }
0x27b0   :  { %v6845_v59 = vpop.f32.mrb[28].mxu0 }
0x27b1   :  { %v3961_v18 = vcombine.high %v6845_v59, %v6845_v59  ;;  %v3968_v30 = vrot.slane %v6845_v59, %v5880_v55  ;;  %v3958_v27 = vpop.f32.mrb[29].mxu0 }
0x27b3   :  { %v3975_v36 = vrot.slane %v3961_v18, %v5880_v55  ;;  %v3976_v0 = vcombine.high %v3968_v30, %v3968_v30  ;;  %v3984_v44 = vrot.slane %v3968_v30, %v5880_v55 }
0x27b5   :  { %v3977_v35 = vcombine.high %v3975_v36, %v3975_v36  ;;  %v3991_v52 = vrot.slane %v3975_v36, %v5880_v55  ;;  %v3998_v24 = vrot.slane %v3976_v0, %v5880_v55  ;;  %v4013_v48 = vrot.slane %v3984_v44, %v5894_v61 }
0x27b6   :  { %v4006_v2 = vcombine.high %v3984_v44, %v3984_v44 }
0x27b7   :  { %v4005_v50 = vrot.slane %v3977_v35, %v5880_v55  ;;  %v4050_v49 = vadd.f32 %v4013_v48, %v5898_v3  ;;  %v4017_v51 = vrot.slane %v3998_v24, %v5894_v61  ;;  %v4029_v1 = vrot.slane %v3991_v52, %v5894_v61 }
0x27b8   :  { %v4021_v56 = vrot.slane %v4006_v2, %v5894_v61  ;;  %v4008_v13 = vcombine.high %v3998_v24, %v3998_v24  ;;  %v4007_v47 = vcombine.high %v3991_v52, %v3991_v52 }
0x27b9   :  { %5285 = vtanh.f32 %v4050_v49  ;;  %v4051_v39 = vadd.f32 %v4017_v51, %v5904_v9  ;;  %v4054_v20 = vadd.f32 %v4029_v1, %v5911_v23  ;;  %v4033_v45 = vrot.slane %v4005_v50, %v5894_v61 }
0x27ba   :  { %v4052_v58 = vadd.f32 %v4021_v56, %v5902_v8  ;;  %v4025_v55 = vrot.slane %v4008_v13, %v5894_v61  ;;  %v4037_v3 = vrot.slane %v4007_v47, %v5894_v61  ;;  %v4009_v25 = vcombine.high %v4005_v50, %v4005_v50  ;;  %v7128_v8 = vld [vmem:[#allocation43_spill] sm:$0xff] }
0x27bb   :  { %5287 = vtanh.f32 %v4051_v39  ;;  %v4055_v9 = vadd.f32 %v4033_v45, %v5918_v34 }
0x27bc   :  { %5289 = vtanh.f32 %v4052_v58  ;;  %v4053_v17 = vadd.f32 %v4025_v55, %v5906_v10  ;;  %v4056_v41 = vadd.f32 %v4037_v3, %v5927_v42  ;;  %v4041_v23 = vrot.slane %v4009_v25, %v5894_v61  ;;  %v7131_v58 = vld [vmem:[#allocation46_spill] sm:$0xff] }
0x27bd   :  { %5291 = vtanh.f32 %v4054_v20 }
0x27be   :  { %5293 = vtanh.f32 %v4053_v17  ;;  %v4057_v60 = vadd.f32 %v4041_v23, %v7128_v8 }
0x27bf   :  { %5295 = vtanh.f32 %v4056_v41 }
0x27c0   :  { %5297 = vtanh.f32 %v4055_v9 }
0x27c1   :  { %5299 = vtanh.f32 %v4057_v60 }
0x27c3   :  { %v5286_v14 = vpop.eup %5285 }
0x27c4   :  { %v4066_v29 = vmul.f32 %v5286_v14, %v7129_v28 }
0x27c5   :  { %v5288_v62 = vpop.eup %5287 }
0x27c6   :  { %v5290_v4 = vpop.eup %5289  ;;  %v4074_v10 = vsel %vm736_vm2, %v4066_v29, 0.0  ;;  %v4067_v42 = vmul.f32 %v5288_v62, %v7129_v28  ;;  %v7132_v29 = vld [vmem:[#allocation47_spill] sm:$0xff] }
0x27c7   :  { %v5292_v7 = vpop.eup %5291  ;;  %4075 = vadd.xlane.f32.xlu0 %v4074_v10  ;;  %v4068_v34 = vmul.f32 %v5290_v4, %v7129_v28  ;;  %v7133_v10 = vld [vmem:[#allocation49_spill] sm:$0xff] }
0x27c8   :  { %v5294_v31 = vpop.eup %5293  ;;  %v4077_v33 = vsel %vm736_vm2, %v4067_v42, 0.0  ;;  %v4070_v12 = vmul.f32 %v5292_v7, %v7129_v28  ;;  %v7134_v7 = vld [vmem:[#allocation48_spill] sm:$0xff] }
0x27c9   :  { %v5296_v63 = vpop.eup %5295  ;;  %4078 = vadd.xlane.f32.xlu1 %v4077_v33  ;;  %v4080_v40 = vsel %vm736_vm2, %v4068_v34, 0.0  ;;  %v4069_v21 = vmul.f32 %v5294_v31, %v7129_v28  ;;  %v7135_v31 = vld [vmem:[#allocation51_spill] sm:$0xff] }
0x27ca   :  { %v5298_v26 = vpop.eup %5297  ;;  %v4086_v43 = vsel %vm736_vm2, %v4070_v12, 0.0  ;;  %v4072_v46 = vmul.f32 %v5296_v63, %v7129_v28  ;;  %v7136_v12 = vld [vmem:[#allocation50_spill] sm:$0xff] }
0x27cb   :  { %4081 = vadd.xlane.f32.xlu0 %v4080_v40  ;;  %v4083_v6 = vsel %vm736_vm2, %v4069_v21, 0.0  ;;  %v4071_v16 = vmul.f32 %v5298_v26, %v7129_v28  ;;  %v5300_v11 = vpop.eup %5299  ;;  %v7137_v40 = vld [vmem:[#allocation53_spill] sm:$0xff]  ;;  %v7138_v26 = vld [vmem:[#allocation54_spill] sm:$0xff] }
0x27cc   :  { %v4092_v53 = vsel %vm736_vm2, %v4072_v46, 0.0  ;;  %v4073_v19 = vmul.f32 %v5300_v11, %v7129_v28  ;;  %v7140_v11 = vld [vmem:[#allocation34_spill] sm:$0xff] }
0x27cd   :  { %4087 = vadd.xlane.f32.xlu1 %v4086_v43  ;;  %v4089_v15 = vsel %vm736_vm2, %v4071_v16, 0.0 }
0x27ce   :  { %v4095_v37 = vsel %vm736_vm2, %v4073_v19, 0.0 }
0x27cf   :  { %4084 = vadd.xlane.f32.xlu0 %v4083_v6  ;;  %v7139_v6 = vld [vmem:[#allocation35_spill] sm:$0xff] }
0x27d1   :  { %4093 = vadd.xlane.f32.xlu1 %v4092_v53 }
0x27d3   :  { %4090 = vadd.xlane.f32.xlu0 %v4089_v15 }
0x27d7   :  { %4096 = vadd.xlane.f32.xlu0 %v4095_v37 }
0x2854   :  { %v4076_v54 = vpop.xlane.xlu0 %4075 }
0x2855   :  { %v4109_v27 = vrot.slane %v4076_v54, %v7130_v5 }
0x2856   :  { %v4079_v32 = vpop.xlane.xlu1 %4078 }
0x2857   :  { %v4113_v18 = vrot.slane %v4079_v32, %v7130_v5 }
0x2858   :  { %v4082_v30 = vpop.xlane.xlu0 %4081 }
0x2859   :  { %v4117_v36 = vrot.slane %v4082_v30, %v7130_v5  ;;  %v4138_v0 = vsel %vm998_vm3, %v4113_v18, %v4109_v27  ;;  %v7141_v18 = vld [vmem:[#allocation38_spill] sm:$0xff]  ;;  %v7142_v27 = vld [vmem:[#allocation36_spill] sm:$0xff] }
0x285a   :  { %v4088_v44 = vpop.xlane.xlu1 %4087 }
0x285b   :  { %v4139_v24 = vsel %vm1000_vm4, %v4117_v36, %v4138_v0  ;;  %v4125_v2 = vrot.slane %v4088_v44, %v7130_v5 }
0x285c   :  { %v4085_v35 = vpop.xlane.xlu0 %4084 }
0x285d   :  { %v4121_v52 = vrot.slane %v4085_v35, %v7130_v5 }
0x285e   :  { %v4094_v49 = vpop.xlane.xlu1 %4093 }
0x285f   :  { %v4140_v48 = vsel %vm1002_vm5, %v4121_v52, %v4139_v24  ;;  %v4133_v13 = vrot.slane %v4094_v49, %v7130_v5 }
0x2860   :  { %v4091_v50 = vpop.xlane.xlu0 %4090  ;;  %v4141_v1 = vsel %vm1004_vm6, %v4125_v2, %v4140_v48 }
0x2861   :  { %v4129_v51 = vrot.slane %v4091_v50, %v7130_v5 }
0x2863   :  { %v4142_v56 = vsel %vm1006_vm7, %v4129_v51, %v4141_v1  ;;  %v7143_v1 = vld [vmem:[#allocation41_spill] sm:$0xff] }
0x2864   :  { %v4097_v47 = vpop.xlane.xlu0 %4096  ;;  %v4143_v20 = vsel %vm1008_vm8, %v4133_v13, %v4142_v56  ;;  %v7144_v13 = vld [vmem:[#allocation37_spill] sm:$0xff] }
0x2865   :  { %v4137_v39 = vrot.slane %v4097_v47, %v7130_v5 }
0x2867   :  { %v4144_v45 = vsel %vm1010_vm9, %v4137_v39, %v4143_v20 }
0x2868   :  { %v4146_v55 = vsel %vm955_vm10, %v4144_v45, -1e+10 }
0x2869   :  { %v4147_v3 = vsel %vm1014_vm11, %v4146_v55, -inf }
0x286a   :  { %4148 = vmax.xlane.f32.xlu1 %v4147_v3 }
0x28f7   :  { %v4149_v25 = vpop.xlane.xlu1 %4148 }
0x28f8   :  { %v4150_v17 = vsub.f32 %v4146_v55, %v4149_v25 }
0x28fa   :  { %v4151_v41 = vmul.f32 1.442695, %v4150_v17 }
0x28fc   :  { %5301 = vpow2.f32 %v4151_v41 }
0x2906   :  { %v5302_v9 = vpop.eup %5301 }
0x2907   :  { %v4153_v23 = vmul.f32 %v5302_v9, %v7131_v58 }
0x2909   :  { %v4154_v8 = vsel %vm1014_vm11, %v4153_v23, 0.0 }
0x290a   :  { %4155 = vadd.xlane.f32.xlu0 %v4154_v8  ;;  %v7145_v8 = vld [vmem:[#allocation39_spill] sm:$0xff] }
0x2997   :  { %v4156_v60 = vpop.xlane.xlu0 %4155 }
0x2998   :  { %5303 = vrcp.f32 %v4156_v60 }
0x29a2   :  { %v5304_v14 = vpop.eup %5303 }
0x29a3   :  { %v4158_v28 = vmul.f32 %v5304_v14, %v4153_v23 }
0x29a5   :  { %v4169_v62 = vrot.slane %v4158_v28, %v7132_v29  ;;  %v4162_v4 = vrot.slane %v4158_v28, %v5894_v61  ;;  %v4190_v42 = vrot.slane %v4158_v28, %v7133_v10  ;;  %v4176_v34 = vrot.slane %v4158_v28, %v7134_v7 }
0x29a6   :  { %v4204_v33 = vrot.slane %v4158_v28, %v7135_v31  ;;  %v4183_v63 = vrot.slane %v4158_v28, %v7136_v12  ;;  %v4197_v21 = vrot.slane %v4158_v28, %v7137_v40  ;;  %v4211_v43 = vrot.slane %v4158_v28, %v7138_v26 }
0x29a7   :  { %4171 = vbcast.lane.b32.xlu0 %v4169_v62, 256  ;;  %4164 = vbcast.lane.b32.xlu1 %v4162_v4, 256 }
0x29ab   :  { %4192 = vbcast.lane.b32.xlu0 %v4190_v42, 256  ;;  %4178 = vbcast.lane.b32.xlu1 %v4176_v34, 256 }
0x29af   :  { %4206 = vbcast.lane.b32.xlu0 %v4204_v33, 256  ;;  %4185 = vbcast.lane.b32.xlu1 %v4183_v63, 256 }
0x29b3   :  { %4199 = vbcast.lane.b32.xlu1 %v4197_v21, 256 }
0x29b7   :  { %4213 = vbcast.lane.b32.xlu1 %v4211_v43, 256 }
0x2a19   :  { %v4172_v61 = vpop.permute.xlu0 %4171  ;;  %v4165_v46 = vpop.permute.xlu1 %4164 }
0x2a1a   :  { %v4216_v16 = vmul.f32 %v4172_v61, %v7139_v6  ;;  %v4215_v53 = vmul.f32 %v4165_v46, %v7140_v11 }
0x2a1c   :  { %v4230_v15 = vsel %vm151_vm1, %v4216_v16, 0.0  ;;  %v4223_v19 = vsel %vm151_vm1, %v4215_v53, 0.0 }
0x2a1d   :  { %v4231_v37 = vrot.slane %v4230_v15, 4  ;;  %v4224_v54 = vrot.slane %v4223_v19, 4  ;;  %v4193_v32 = vpop.permute.xlu0 %4192  ;;  %v4179_v5 = vpop.permute.xlu1 %4178 }
0x2a1e   :  { %v4219_v30 = vmul.f32 %v4193_v32, %v7141_v18  ;;  %v4217_v36 = vmul.f32 %v4179_v5, %v7142_v27 }
0x2a1f   :  { %v4232_v0 = vadd.f32 %v4231_v37, %v4230_v15  ;;  %v4225_v44 = vadd.f32 %v4224_v54, %v4223_v19 }
0x2a20   :  { %v4251_v35 = vsel %vm151_vm1, %v4219_v30, 0.0  ;;  %v4237_v52 = vsel %vm151_vm1, %v4217_v36, 0.0 }
0x2a21   :  { %v4233_v24 = vrot.slane %v4232_v0, 2  ;;  %v4226_v48 = vrot.slane %v4225_v44, 2  ;;  %v4252_v2 = vrot.slane %v4251_v35, 4  ;;  %v4238_v50 = vrot.slane %v4237_v52, 4  ;;  %v4207_v49 = vpop.permute.xlu0 %4206  ;;  %v4186_v51 = vpop.permute.xlu1 %4185 }
0x2a22   :  { %v4221_v56 = vmul.f32 %v4207_v49, %v7143_v1  ;;  %v4218_v47 = vmul.f32 %v4186_v51, %v7144_v13 }
0x2a23   :  { %v4234_v39 = vadd.f32 %v4233_v24, %v4232_v0  ;;  %v4253_v20 = vadd.f32 %v4252_v2, %v4251_v35  ;;  %v4239_v45 = vadd.f32 %v4238_v50, %v4237_v52  ;;  %v4227_v58 = vadd.f32 %v4226_v48, %v4225_v44 }
0x2a24   :  { %v4265_v55 = vsel %vm151_vm1, %v4221_v56, 0.0  ;;  %v4244_v3 = vsel %vm151_vm1, %v4218_v47, 0.0 }
0x2a25   :  { %v4240_v25 = vrot.slane %v4239_v45, 2  ;;  %v4200_v17 = vpop.permute.xlu1 %4199  ;;  %v4254_v41 = vrot.slane %v4253_v20, 2  ;;  %v4266_v9 = vrot.slane %v4265_v55, 4  ;;  %v4245_v23 = vrot.slane %v4244_v3, 4 }
0x2a26   :  { %v4220_v60 = vmul.f32 %v4200_v17, %v7145_v8  ;;  %v4235_v14 = vrot.slane %v4234_v39, 1  ;;  %v4228_v29 = vrot.slane %v4227_v58, 1 }
0x2a27   :  { %v4241_v28 = vadd.f32 %v4240_v25, %v4239_v45  ;;  %v4267_v62 = vadd.f32 %v4266_v9, %v4265_v55  ;;  %v4246_v4 = vadd.f32 %v4245_v23, %v4244_v3  ;;  %v4255_v31 = vadd.f32 %v4254_v41, %v4253_v20 }
0x2a28   :  { %v4258_v10 = vsel %vm151_vm1, %v4220_v60, 0.0  ;;  %v4236_v21 = vadd.f32 %v4235_v14, %v4234_v39  ;;  %v4229_v26 = vadd.f32 %v4228_v29, %v4227_v58 }
0x2a29   :  { %v4242_v42 = vrot.slane %v4241_v28, 1  ;;  %v4259_v7 = vrot.slane %v4258_v10, 4  ;;  %v4214_v34 = vpop.permute.xlu1 %4213  ;;  %v4268_v33 = vrot.slane %v4267_v62, 2  ;;  %v4247_v12 = vrot.slane %v4246_v4, 2 }
0x2a2a   :  { %v4222_v63 = vmul.f32 %v4214_v34, %v7109_v22  ;;  %v4256_v11 = vrot.slane %v4255_v31, 1  ;;  %v4287_v32 = vsel %vm998_vm3, %v4236_v21, %v4229_v26 }
0x2a2b   :  { %v4260_v40 = vadd.f32 %v4259_v7, %v4258_v10  ;;  %v4248_v43 = vadd.f32 %v4247_v12, %v4246_v4  ;;  %v4243_v46 = vadd.f32 %v4242_v42, %v4241_v28  ;;  %v4269_v53 = vadd.f32 %v4268_v33, %v4267_v62 }
0x2a2c   :  { %v4272_v61 = vsel %vm151_vm1, %v4222_v63, 0.0  ;;  %v4257_v30 = vadd.f32 %v4256_v11, %v4255_v31 }
0x2a2d   :  { %v4261_v6 = vrot.slane %v4260_v40, 2  ;;  %v4273_v16 = vrot.slane %v4272_v61, 4  ;;  %v4249_v15 = vrot.slane %v4248_v43, 1  ;;  %v4288_v22 = vsel %vm1000_vm4, %v4243_v46, %v4287_v32 }
0x2a2e   :  { %v4270_v27 = vrot.slane %v4269_v53, 1 }
0x2a2f   :  { %v4262_v19 = vadd.f32 %v4261_v6, %v4260_v40  ;;  %v4274_v37 = vadd.f32 %v4273_v16, %v4272_v61  ;;  %v4250_v54 = vadd.f32 %v4249_v15, %v4248_v43 }
0x2a30   :  { %v4271_v48 = vadd.f32 %v4270_v27, %v4269_v53 }
0x2a31   :  { %v4263_v5 = vrot.slane %v4262_v19, 1  ;;  %v4275_v18 = vrot.slane %v4274_v37, 2  ;;  %v4289_v36 = vsel %vm1002_vm5, %v4250_v54, %v4288_v22 }
0x2a32   :  { %v4290_v35 = vsel %vm1004_vm6, %v4257_v30, %v4289_v36 }
0x2a33   :  { %v4276_v0 = vadd.f32 %v4275_v18, %v4274_v37  ;;  %v4264_v44 = vadd.f32 %v4263_v5, %v4262_v19 }
0x2a35   :  { %v4277_v52 = vrot.slane %v4276_v0, 1  ;;  %v4291_v24 = vsel %vm1006_vm7, %v4264_v44, %v4290_v35 }
0x2a36   :  { %v4292_v50 = vsel %vm1008_vm8, %v4271_v48, %v4291_v24 }
0x2a37   :  { %v4278_v2 = vadd.f32 %v4277_v52, %v4276_v0 }
0x2a39   :  { %v4293_v49 = vsel %vm1010_vm9, %v4278_v2, %v4292_v50 }
0x2a3a   :  { %4518 = vmatmul.mubr.msk.f32.vlgmr.msra.gmra.mrb[18].mxu1 %vm151_vm1, %v4293_v49 }
0x2b0d   :  { %v4362_v51 = vpop.f32.mrb[18].mxu1 }
0x2b0e   :  { %4367 = vrot.lane.b32.xlu0 %v4362_v51, %s5574_s29  ;;  %v4364_v1 = vpop.f32.mrb[19].mxu1 }
0x2b80   :  { %v4368_v56 = vpop.permute.xlu0 %4367 }
0x2b81   :  { %v4370_v13 = vadd.f32 %v4368_v56, %v6845_v59 }
0x2b83   :  { %v4371_v47 = vadd.f32 %v4370_v13, %v6111_v38 }
0x2b85   :  { %5305 = vtanh.f32 %v4371_v47 }
0x2b8f   :  { %v5306_v39 = vpop.eup %5305 }
0x2b90   :  { %4374 = vrot.lane.b32.xlu1 %v5306_v39, %s5573_s28 }
0x2c02   :  { %v4375_v20 = vpop.permute.xlu1 %4374 }
0x2c03   :  { %4840 = vmatmul.mubr.msk.f32.vlgmr.msra.gmra.mrb[30].mxu0 %vm736_vm2, %v4375_v20 }
0x2c04   :  { %5503 = shalt.err (!%p6318_p8)  }
0x2c05   :  { %s5516_s29 = scalar_lea.hbm %s6985_s12, 640  ;;  %p5507_p1 = scmp.lt.u32.totalorder %s6795_s21, %s6985_s12 }
0x2c06   :  { %p5505_p0 = scmp.ne.s32.totalorder %s6795_s21, %s5516_s29  ;;  %p5508_p2 = scmp.lt.u32.totalorder %s6336_s19, %s5516_s29 }
0x2c07   :  { %p5510_p5 = scmp.lt.u32.totalorder %s5516_s29, %s6795_s21 }
0x2c08   :  { %p5509_p3 = por %p5508_p2, %p5507_p1 }
0x2c0a   :  { %p5511_p6 = por %p5510_p5, %p5509_p3 }
0x2c0c   :  { %p5512_p8 = pnand %p5511_p6, %p5505_p0 }
0x2c0e   :  { %5515 = shalt.err (!%p5512_p8)  }
0x2c0f   :  { %3843 = dma.vmem_to_hbm [thread:$0]  %s6309_s13, 128, %s6795_s21, [#allocation3] }
0x2cd6   :  { %v4444_v38 = vpop.f32.mrb[30].mxu0 }
0x2cd7   :  { %v4445_v59 = vadd.f32 %v6135_v57, %v4444_v38  ;;  %v4841_v45 = vpop.f32.mrb[31].mxu0 }
0x2cd8   :  { %5554 = dma.done.wait [#allocation3 + $0x1], 128 }
0x2cd9   :  { %5555 = vsyncadd [#allocation3 + $0x1], 4294967168  ;;  %4450 = vst [vmem:[#allocation2 + $0x8] sm:$0xff] %v4445_v59 }
0x2cda   :  { %5528 = shalt.err (!%p6465_p4)  }
0x2cdb   :  { %p5530_p7 = scmp.ne.s32.totalorder %s5516_s29, %s6336_s19  ;;  %p5532_p9 = scmp.lt.u32.totalorder %s5516_s29, %s6985_s12 }
0x2cdc   :  { %p5533_p10 = scmp.lt.u32.totalorder %s6336_s19, %s6336_s19 }
0x2cde   :  { %p5534_p12 = por %p5533_p10, %p5532_p9 }
0x2ce0   :  { %p5536_p11 = por %p5534_p12, %p5508_p2 }
0x2ce2   :  { %p5537_p13 = pnand %p5536_p11, %p5530_p7 }
0x2ce4   :  { %5540 = shalt.err (!%p5537_p13)  }
0x2ce5   :  { %4464 = dma.vmem_to_hbm [thread:$0]  %s6457_s2, 128, %s5516_s29, [#allocation3 + $0x1] }
0x2ce6   :  { %5556 = dma.done.wait [#allocation3], 128 }
0x2ce7   :  { %5557 = vsyncadd [#allocation3], 4294967168 }
0x2ce8   :  { %5558 = dma.done.wait [#allocation3 + $0x1], 128 }
0x2ce9   :  { %5559 = vsyncadd [#allocation3 + $0x1], 4294967168 }
0x2cea   :  { %4469 = vsyncpa [#allocation5], 1 }
0x2ceb   :  { %4470 = vsyncpa [#allocation7], 1 }
0x2cec   :  { %4471 = vsyncpa [#allocation10], 1 }
0x2ced   :  { %4472 = vsyncmov [#allocation3] }
0x2cf0   :  { %s4473_s13 = vpop.sfrf %4472 }
0x2cf1   :  { %p4520_p4 = scmp.ne.s32.totalorder %s4473_s13, 0 }
0x2cf3   :  { %4477 = shalt.err (%p4520_p4)  }
0x2cf4   :  { %4479 = vsyncmov [#allocation3 + $0x1] }
0x2cf7   :  { %s4480_s12 = vpop.sfrf %4479 }
0x2cf8   :  { %p4521_p0 = scmp.ne.s32.totalorder %s4480_s12, 0 }
0x2cfa   :  { %4484 = shalt.err (%p4521_p0)  }

// kernel: tpu_custom_call.1
= control target key start
LH: loop header
LB: loop body
LE: loop exit
PB: predicated region body
PF: predicated region fallthrough
CT: control target
= control target key end

     0   :  { %17 = vsyncpa [#allocation5], 0  ;;  %s6973_s0 = inlined_call_operand.vmem [shape: f32[8,8,64], index: 0, kind: input, shape index: {}]   ;;  %s6974_s1 = inlined_call_operand.hbm [shape: f32[8,8], index: 1, kind: input, shape index: {}]   ;;  %s6975_s2 = inlined_call_operand.hbm [shape: f32[6,8,128], index: 2, kind: input, shape index: {}]   ;;  %s6976_s3 = inlined_call_operand.vmem [shape: f32[64,32], index: 3, kind: input, shape index: {}]   ;;  %s6977_s4 = inlined_call_operand.hbm [shape: f32[32,192], index: 4, kind: input, shape index: {}]   ;;  %s6978_s5 = inlined_call_operand.hbm [shape: f32[64,160], index: 5, kind: input, shape index: {}]   ;;  %s6979_s6 = inlined_call_operand.vmem [shape: f32[32,128], index: 6, kind: input, shape index: {}]   ;;  %s6980_s7 = inlined_call_operand.vmem [shape: f32[1,32], index: 7, kind: input, shape index: {}]   ;;  %s6981_s8 = inlined_call_operand.vmem [shape: f32[1,32], index: 8, kind: input, shape index: {}]   ;;  %s6982_s9 = inlined_call_operand.vmem [shape: f32[1,128], index: 9, kind: input, shape index: {}]   ;;  %s6983_s10 = inlined_call_operand.vmem [shape: f32[1,128], index: 10, kind: input, shape index: {}]   ;;  %s6984_s11 = inlined_call_operand.vmem [shape: f32[1,32], index: 11, kind: input, shape index: {}]   ;;  %s6985_s12 = inlined_call_operand.hbm [shape: f32[6,8,128], index: 12, kind: output, shape index: {}]  }
   0x1   :  { %18 = vsyncpa [#allocation7], 0 }
   0x2   :  { %19 = vsyncpa [#allocation10], 0  ;;  %s5560_s21 = smov [#allocation6]   ;;  %s5307_s25 = scalar_lea.hbm %s6975_s2, 768 }
   0x3   :  { %s37_s22 = sshll.u32 %s5560_s21, 4  ;;  %p5308_p0 = scmp.ne.s32.totalorder %s6975_s2, %s5307_s25  ;;  %s38_s22 = int_to_ptr.vmem [resolvable:$true] %s37_s22 }
   0x4   :  { %p5311_p1 = scmp.lt.u32.totalorder %s5307_s25, %s6975_s2 }
   0x6   :  { %p5313_p2 = pnand %p5311_p1, %p5308_p0 }
   0x8   :  { %5316 = shalt.err (!%p5313_p2)
}
   0x9   :  { %s5317_s30 = scalar_lea.vmem %s38_s22, 768  ;;  %p5322_p4 = scmp.lt.s32.totalorder %s38_s22, %s38_s22 }
   0xa   :  { %p5318_p3 = scmp.ne.s32.totalorder %s38_s22, %s5317_s30  ;;  %p5323_p5 = scmp.lt.s32.totalorder %s5317_s30, %s5317_s30 }
   0xc   :  { %p5324_p6 = por %p5323_p5, %p5322_p4 }
   0xe   :  { %p5325_p7 = pnand %p5324_p6, %p5318_p3 }
  0x10   :  { %5328 = shalt.err (!%p5325_p7)
}
  0x11   :  { %s5561_s13 = smov 128   ;;  %s5562_s14 = smov 8  }
  0x12   :  { %43 = dma.hbm_to_vmem [thread:$0]  %s6975_s2, 768, %s38_s22, [#allocation7], %s5561_s13, %s5561_s13, %s5562_s14  }
  0x13   :  { %s5563_s17 = smov [#allocation4]   ;;  %s5564_s19 = smov [#allocation8]  }
  0x14   :  { %s28_s18 = sshll.u32 %s5563_s17, 4  ;;  %s51_s20 = sshll.u32 %s5564_s19, 4  ;;  %s29_s18 = int_to_ptr.vmem [resolvable:$true] %s28_s18  ;;  %s52_s20 = int_to_ptr.vmem [resolvable:$true] %s51_s20 }
  0x15   :  { %s5329_s24 = scalar_lea.hbm %s6974_s1, 128 }
  0x16   :  { %p5330_p8 = scmp.ne.s32.totalorder %s6974_s1, %s5329_s24  ;;  %p5333_p9 = scmp.lt.u32.totalorder %s5329_s24, %s6974_s1 }
  0x18   :  { %p5335_p10 = pnand %p5333_p9, %p5330_p8 }
  0x1a   :  { %5338 = shalt.err (!%p5335_p10)
}
  0x1b   :  { %s5339_s2 = scalar_lea.vmem %s29_s18, 128  ;;  %p5344_p12 = scmp.lt.s32.totalorder %s29_s18, %s29_s18 }
  0x1c   :  { %p5340_p11 = scmp.ne.s32.totalorder %s29_s18, %s5339_s2  ;;  %p5345_p13 = scmp.lt.s32.totalorder %s5339_s2, %s5339_s2 }
  0x1e   :  { %p5346_p0 = por %p5345_p13, %p5344_p12 }
  0x20   :  { %p5347_p1 = pnand %p5346_p0, %p5340_p11 }
  0x22   :  { %5350 = shalt.err (!%p5347_p1)
}
  0x23   :  { %31 = dma.hbm_to_vmem [thread:$0]  %s6974_s1, 128, %s29_s18, [#allocation5]  }
  0x24   :  { %s5351_s14 = scalar_lea.hbm %s6977_s4, 1024 }
  0x25   :  { %p5352_p2 = scmp.ne.s32.totalorder %s6977_s4, %s5351_s14  ;;  %p5355_p3 = scmp.lt.u32.totalorder %s5351_s14, %s6977_s4 }
  0x27   :  { %p5357_p4 = pnand %p5355_p3, %p5352_p2 }
  0x29   :  { %5360 = shalt.err (!%p5357_p4)
}
  0x2a   :  { %s5361_s21 = scalar_lea.vmem %s52_s20, 1024  ;;  %p5366_p6 = scmp.lt.s32.totalorder %s52_s20, %s52_s20 }
  0x2b   :  { %p5362_p5 = scmp.ne.s32.totalorder %s52_s20, %s5361_s21  ;;  %p5367_p7 = scmp.lt.s32.totalorder %s5361_s21, %s5361_s21 }
  0x2d   :  { %p5368_p8 = por %p5367_p7, %p5366_p6 }
  0x2f   :  { %p5369_p9 = pnand %p5368_p8, %p5362_p5 }
  0x31   :  { %5372 = shalt.err (!%p5369_p9)
}
  0x32   :  { %s5565_s1 = smov 256   ;;  %s5566_s18 = smov 16  }
  0x33   :  { %57 = dma.hbm_to_vmem [thread:$0]  %s6977_s4, 1024, %s52_s20, [#allocation7], %s5565_s1, %s5565_s1, %s5566_s18  }
  0x34   :  { %s5567_s25 = smov [#allocation9]   ;;  %s5373_s2 = scalar_lea.hbm %s6978_s5, 2048 }
  0x35   :  { %s63_s26 = sshll.u32 %s5567_s25, 4  ;;  %p5374_p10 = scmp.ne.s32.totalorder %s6978_s5, %s5373_s2  ;;  %s64_s26 = int_to_ptr.vmem [resolvable:$true] %s63_s26 }
  0x36   :  { %p5377_p11 = scmp.lt.u32.totalorder %s5373_s2, %s6978_s5 }
  0x38   :  { %p5379_p12 = pnand %p5377_p11, %p5374_p10 }
  0x3a   :  { %5382 = shalt.err (!%p5379_p12)
}
  0x3b   :  { %s5383_s14 = scalar_lea.vmem %s64_s26, 2048  ;;  %p5388_p0 = scmp.lt.s32.totalorder %s64_s26, %s64_s26 }
  0x3c   :  { %p5384_p13 = scmp.ne.s32.totalorder %s64_s26, %s5383_s14  ;;  %p5389_p1 = scmp.lt.s32.totalorder %s5383_s14, %s5383_s14 }
  0x3e   :  { %p5390_p2 = por %p5389_p1, %p5388_p0 }
  0x40   :  { %p5391_p3 = pnand %p5390_p2, %p5384_p13 }
  0x42   :  { %5394 = shalt.err (!%p5391_p3)
}
  0x43   :  { %69 = dma.hbm_to_vmem [thread:$0]  %s6978_s5, 2048, %s64_s26, [#allocation10], %s5565_s1, %s5565_s1, %s5566_s18  }
  0x44   :  { %5542 = dma.done.wait [#allocation5], 128  }
  0x45   :  { %5543 = vsyncadd [#allocation5], 4294967168 }
  0x46   :  { %5544 = dma.done.wait [#allocation7], 1792  }
  0x47   :  { %5545 = vsyncadd [#allocation7], 4294965504 }
  0x48   :  { %5546 = dma.done.wait [#allocation10], 2048  }
  0x49   :  { %5547 = vsyncadd [#allocation10], 4294965248  ;;  %v6986_v0 = vmov 0.0|0.0   ;;  %vm5569_vm0 = vmmov 0   ;;  %v6988_v1 = vmov 0.0   ;;  %v104_v2 = vld [vmem:[%s6976_s3] sm:$0xff]  ;;  %v816_v48 = vlaneseq }
  0x4a   :  { %4842 = vmatprep.subr.bf16.mxu0 %v6986_v0  ;;  %4640 = vmatprep.mubr.msk.f32.mxu0 %vm5569_vm0, %v6988_v1  ;;  %v105_v3 = vld [vmem:[%s6976_s3 + $0x8] sm:$0xff]  ;;  %v106_v4 = vld [vmem:[%s6976_s3 + $0x10] sm:$0xff]  ;;  %v107_v6 = vld [vmem:[%s6976_s3 + $0x18] sm:$0xff]  ;;  %vm151_vm1 = vcmask 523264   ;;  %v5571_v46 = vmov 1966171168  }
  0x4b   :  { %4854 = vmatprep.subr.bf16.mxu1 %v6986_v0  ;;  %4659 = vmatprep.mubr.msk.f32.mxu1 %vm5569_vm0, %v6988_v1  ;;  %v5705_v5 = vpack.c.bf16 %v105_v3, %v104_v2  ;;  %v5711_v7 = vpack.c.bf16 %v107_v6, %v106_v4  ;;  %v108_v8 = vld [vmem:[%s6976_s3 + $0x20] sm:$0xff]  ;;  %v109_v9 = vld [vmem:[%s6976_s3 + $0x28] sm:$0xff]  ;;  %v110_v11 = vld [vmem:[%s6976_s3 + $0x30] sm:$0xff]  ;;  %v814_v47 = vunpack.c.l.s4 %v5571_v46  ;;  %v5877_v52 = vshrl.u32 %v816_v48, 7  ;;  %s5572_s27 = smov 64   ;;  %s5573_s28 = smov 96  }
  0x4c   :  { %v5723_v10 = vpack.c.bf16 %v109_v9, %v108_v8  ;;  %v111_v12 = vld [vmem:[%s6976_s3 + $0x38] sm:$0xff]  ;;  %v5744_v14 = vld [vmem:[%s6973_s0] sm:$0xff]  ;;  %v5750_v15 = vld [vmem:[%s6973_s0 + $0x8] sm:$0xff]  ;;  %vm736_vm2 = vcmask 261120   ;;  %vm998_vm3 = vcmask 1041409   ;;  %vm1000_vm4 = vcmask 1042434  }
  0x4d   :  { %4844 = vmatpush3.bf16.msra.mxu0 %v5705_v5  ;;  %4856 = vmatpush3.bf16.msra.mxu1 %v5705_v5  ;;  %v5735_v13 = vpack.c.bf16 %v111_v12, %v110_v11  ;;  %7044 = vst [vmem:[#allocation34_spill] sm:$0xff] %v5744_v14  ;;  %7045 = vst [vmem:[#allocation35_spill] sm:$0xff] %v5750_v15  ;;  %v5778_v16 = vld [vmem:[%s6973_s0 + $0x10] sm:$0xff]  ;;  %v5786_v17 = vld [vmem:[%s6973_s0 + $0x18] sm:$0xff]  ;;  %v815_v51 = vunpack.c.0.s8 %v814_v47  ;;  %v5894_v61 = vsub.s32 0, %v5877_v52  ;;  %vm1002_vm5 = vcmask 1043459  }
  0x4e   :  { %4845 = vmatprep.subr.bf16.mxu0 %v6986_v0  ;;  %4857 = vmatprep.subr.bf16.mxu1 %v6986_v0  ;;  %7046 = vst [vmem:[#allocation36_spill] sm:$0xff] %v5778_v16  ;;  %7047 = vst [vmem:[#allocation37_spill] sm:$0xff] %v5786_v17  ;;  %v5812_v18 = vld [vmem:[%s6973_s0 + $0x20] sm:$0xff]  ;;  %v5819_v19 = vld [vmem:[%s6973_s0 + $0x28] sm:$0xff]  ;;  %vm1004_vm6 = vcmask 1044484   ;;  %vm1006_vm7 = vcmask 1045509  }
  0x4f   :  { %7048 = vst [vmem:[#allocation38_spill] sm:$0xff] %v5812_v18  ;;  %7049 = vst [vmem:[#allocation39_spill] sm:$0xff] %v5819_v19  ;;  %v113_v20 = vld [vmem:[#allocation8 + $0x8] sm:$0xff]  ;;  %v115_v21 = vld [vmem:[#allocation8 + $0x18] sm:$0xff]  ;;  %v5880_v55 = vsub.s32 %v815_v51, %v5877_v52  ;;  %vm1008_vm8 = vcmask 1046534   ;;  %vm1010_vm9 = vcmask 1047559  }
  0x50   :  { %v5840_v22 = vpack.c.bf16 %v115_v21, %v113_v20  ;;  %v112_v23 = vld [vmem:[#allocation8] sm:$0xff]  ;;  %v114_v24 = vld [vmem:[#allocation8 + $0x10] sm:$0xff]  ;;  %v117_v25 = vld [vmem:[#allocation8 + $0x28] sm:$0xff]  ;;  %vm1014_vm11 = vcmask 64512   ;;  %vm1359_vm12 = vcmask 785408   ;;  %s5574_s29 = smov 32  }
  0x51   :  { %4847 = vmatpush3.bf16.msra.mxu0 %v5711_v7  ;;  %4859 = vmatpush3.bf16.msra.mxu1 %v5711_v7  ;;  %v119_v26 = vld [vmem:[#allocation8 + $0x38] sm:$0xff]  ;;  %v5848_v27 = vld [vmem:[%s6973_s0 + $0x30] sm:$0xff]  ;;  %v5850_v28 = vpack.c.bf16 %v114_v24, %v112_v23  ;;  %v116_v30 = vld [vmem:[#allocation8 + $0x20] sm:$0xff] }
  0x52   :  { %4848 = vmatprep.subr.bf16.mxu0 %v6986_v0  ;;  %4860 = vmatprep.subr.bf16.mxu1 %v6986_v0  ;;  %7050 = vst [vmem:[#allocation40_spill] sm:$0xff] %v5840_v22  ;;  %7051 = vst [vmem:[#allocation41_spill] sm:$0xff] %v5848_v27  ;;  %v5853_v29 = vpack.c.bf16 %v119_v26, %v117_v25  ;;  %v118_v31 = vld [vmem:[#allocation8 + $0x30] sm:$0xff]  ;;  %v4490_v57 = vld [vmem:[%s6980_s7] ss:$0 sm:$0xff] }
  0x53   :  { %v5859_v32 = vld [vmem:[%s6973_s0 + $0x38] sm:$0xff]  ;;  %v5864_v33 = vpack.c.bf16 %v118_v31, %v116_v30  ;;  %v5936_v47 = vld [vmem:[%s6984_s11] ss:$0 sm:$0xff] }
  0x54   :  { %7052 = vst [vmem:[#allocation42_spill] sm:$0xff] %v5859_v32  ;;  %7054 = vst [vmem:[#allocation44_spill] sm:$0xff] %v5936_v47 }
  0x55   :  { %4850 = vmatpush3.bf16.msra.mxu0 %v5723_v10  ;;  %4862 = vmatpush3.bf16.msra.mxu1 %v5723_v10 }
  0x56   :  { %4851 = vmatprep.subr.bf16.mxu0 %v6986_v0  ;;  %4863 = vmatprep.subr.bf16.mxu1 %v6986_v0 }
  0x59   :  { %4853 = vmatpush3.bf16.msra.mxu0 %v5735_v13  ;;  %4865 = vmatpush3.bf16.msra.mxu1 %v5735_v13 }
  0x5a   :  { %4866 = vmatprep.subr.bf16.mxu0 %v6986_v0  ;;  %4878 = vmatprep.subr.bf16.mxu1 %v6986_v0 }
  0x5c   :  { %4641 = vmatmul.mubr.msk.f32.vlgmr.msra.gmra.mrb[0].mxu0 %vm151_vm1, %v5744_v14  ;;  %4660 = vmatmul.mubr.msk.f32.vlgmr.msra.gmra.mrb[0].mxu1 %vm151_vm1, %v5750_v15 }
  0x5d   :  { %4868 = vmatpush3.bf16.msra.mxu0 %v5705_v5  ;;  %4678 = vmatprep.mubr.msk.f32.mxu0 %vm5569_vm0, %v6988_v1 }
  0x5e   :  { %4869 = vmatprep.subr.bf16.mxu0 %v6986_v0  ;;  %4880 = vmatpush3.bf16.msra.mxu1 %v5705_v5 }
  0x5f   :  { %4881 = vmatprep.subr.bf16.mxu1 %v6986_v0  ;;  %4697 = vmatprep.mubr.msk.f32.mxu1 %vm5569_vm0, %v6988_v1 }
  0x61   :  { %4871 = vmatpush3.bf16.msra.mxu0 %v5711_v7 }
  0x62   :  { %4872 = vmatprep.subr.bf16.mxu0 %v6986_v0  ;;  %4883 = vmatpush3.bf16.msra.mxu1 %v5711_v7 }
  0x63   :  { %4884 = vmatprep.subr.bf16.mxu1 %v6986_v0 }
  0x65   :  { %4874 = vmatpush3.bf16.msra.mxu0 %v5723_v10 }
  0x66   :  { %4875 = vmatprep.subr.bf16.mxu0 %v6986_v0  ;;  %4886 = vmatpush3.bf16.msra.mxu1 %v5723_v10 }
  0x67   :  { %4887 = vmatprep.subr.bf16.mxu1 %v6986_v0 }
  0x69   :  { %4877 = vmatpush3.bf16.msra.mxu0 %v5735_v13 }
  0x6a   :  { %4890 = vmatprep.subr.bf16.mxu0 %v6986_v0  ;;  %4889 = vmatpush3.bf16.msra.mxu1 %v5735_v13 }
  0x6b   :  { %4902 = vmatprep.subr.bf16.mxu1 %v6986_v0 }
  0x6c   :  { %4679 = vmatmul.mubr.msk.f32.vlgmr.msra.gmra.mrb[2].mxu0 %vm151_vm1, %v5778_v16 }
  0x6d   :  { %4892 = vmatpush3.bf16.msra.mxu0 %v5705_v5  ;;  %4716 = vmatprep.mubr.msk.f32.mxu0 %vm5569_vm0, %v6988_v1 }
  0x6e   :  { %4893 = vmatprep.subr.bf16.mxu0 %v6986_v0  ;;  %4698 = vmatmul.mubr.msk.f32.vlgmr.msra.gmra.mrb[2].mxu1 %vm151_vm1, %v5786_v17 }
  0x6f   :  { %4904 = vmatpush3.bf16.msra.mxu1 %v5705_v5  ;;  %4735 = vmatprep.mubr.msk.f32.mxu1 %vm5569_vm0, %v6988_v1 }
  0x70   :  { %4905 = vmatprep.subr.bf16.mxu1 %v6986_v0 }
  0x71   :  { %4895 = vmatpush3.bf16.msra.mxu0 %v5711_v7 }
  0x72   :  { %4896 = vmatprep.subr.bf16.mxu0 %v6986_v0 }
  0x73   :  { %4907 = vmatpush3.bf16.msra.mxu1 %v5711_v7 }
  0x74   :  { %4908 = vmatprep.subr.bf16.mxu1 %v6986_v0 }
  0x75   :  { %4898 = vmatpush3.bf16.msra.mxu0 %v5723_v10 }
  0x76   :  { %4899 = vmatprep.subr.bf16.mxu0 %v6986_v0 }
  0x77   :  { %4910 = vmatpush3.bf16.msra.mxu1 %v5723_v10 }
  0x78   :  { %4911 = vmatprep.subr.bf16.mxu1 %v6986_v0 }
  0x79   :  { %4901 = vmatpush3.bf16.msra.mxu0 %v5735_v13 }
  0x7a   :  { %4914 = vmatprep.subr.bf16.mxu0 %v6986_v0 }
  0x7b   :  { %4913 = vmatpush3.bf16.msra.mxu1 %v5735_v13 }
  0x7c   :  { %4717 = vmatmul.mubr.msk.f32.vlgmr.msra.gmra.mrb[4].mxu0 %vm151_vm1, %v5812_v18  ;;  %4926 = vmatprep.subr.bf16.mxu1 %v6986_v0 }
  0x7d   :  { %4916 = vmatpush3.bf16.msra.mxu0 %v5705_v5  ;;  %4754 = vmatprep.mubr.msk.f32.mxu0 %vm5569_vm0, %v6988_v1 }
  0x7e   :  { %4917 = vmatprep.subr.bf16.mxu0 %v6986_v0  ;;  %4736 = vmatmul.mubr.msk.f32.vlgmr.msra.gmra.mrb[4].mxu1 %vm151_vm1, %v5819_v19 }
  0x7f   :  { %4928 = vmatpush3.bf16.msra.mxu1 %v5705_v5  ;;  %4773 = vmatprep.mubr.msk.f32.mxu1 %vm5569_vm0, %v6988_v1 }
  0x80   :  { %4929 = vmatprep.subr.bf16.mxu1 %v6986_v0 }
  0x81   :  { %4919 = vmatpush3.bf16.msra.mxu0 %v5711_v7 }
  0x82   :  { %4920 = vmatprep.subr.bf16.mxu0 %v6986_v0 }
  0x83   :  { %4931 = vmatpush3.bf16.msra.mxu1 %v5711_v7 }
  0x84   :  { %4932 = vmatprep.subr.bf16.mxu1 %v6986_v0 }
  0x85   :  { %4922 = vmatpush3.bf16.msra.mxu0 %v5723_v10 }
  0x86   :  { %4923 = vmatprep.subr.bf16.mxu0 %v6986_v0 }
  0x87   :  { %4934 = vmatpush3.bf16.msra.mxu1 %v5723_v10 }
  0x88   :  { %4935 = vmatprep.subr.bf16.mxu1 %v6986_v0 }
  0x89   :  { %4925 = vmatpush3.bf16.msra.mxu0 %v5735_v13 }
  0x8a   :  { %4939 = vmatprep.subr.bf16.mxu0 %v5840_v22 }
  0x8b   :  { %4937 = vmatpush3.bf16.msra.mxu1 %v5735_v13 }
  0x8c   :  { %4755 = vmatmul.mubr.msk.f32.vlgmr.msra.gmra.mrb[6].mxu0 %vm151_vm1, %v5848_v27 }
  0x8d   :  { %4941 = vmatpush1.bf16.msra.mxu0 %v5850_v28  ;;  %804 = vmatprep.mubr.f32.mxu0 %v6988_v1 }
  0x8e   :  { %4943 = vmatprep.subr.bf16.mxu0 %v5853_v29  ;;  %4774 = vmatmul.mubr.msk.f32.vlgmr.msra.gmra.mrb[6].mxu1 %vm151_vm1, %v5859_v32 }
  0x8f   :  { %1228 = vmatprep.mubr.f32.mxu1 %v6988_v1 }
  0x91   :  { %4945 = vmatpush1.bf16.msra.mxu0 %v5864_v33 }
  0x92   :  { %4962 = vmatprep.subr.bf16.mxu0 %v6986_v0 }
  0x94   :  { %805 = vmatmul.mubr.f32.vlgmr.msra.gmra.mrb[8].mxu0 %v6988_v1 }
  0x95   :  { %4784 = vmatprep.mubr.msk.f32.mxu0 %vm5569_vm0, %v6988_v1 }
 0x12f   :  { %v221_v34 = vpop.f32.mrb[0].mxu0  ;;  %v294_v35 = vpop.f32.mrb[0].mxu1 }
 0x130   :  { %v4642_v36 = vpop.f32.mrb[1].mxu0  ;;  %v4661_v37 = vpop.f32.mrb[1].mxu1  ;;  %v5898_v3 = vadd.f32 %v4490_v57, %v221_v34  ;;  %v5904_v9 = vadd.f32 %v4490_v57, %v294_v35 }
 0x13f   :  { %v367_v38 = vpop.f32.mrb[2].mxu0 }
 0x140   :  { %v4680_v39 = vpop.f32.mrb[3].mxu0  ;;  %v5902_v8 = vadd.f32 %v4490_v57, %v367_v38 }
 0x141   :  { %v440_v40 = vpop.f32.mrb[2].mxu1 }
 0x142   :  { %v4699_v41 = vpop.f32.mrb[3].mxu1  ;;  %v5906_v10 = vadd.f32 %v4490_v57, %v440_v40 }
 0x14f   :  { %v513_v42 = vpop.f32.mrb[4].mxu0 }
 0x150   :  { %v4718_v43 = vpop.f32.mrb[5].mxu0  ;;  %v5911_v23 = vadd.f32 %v4490_v57, %v513_v42 }
 0x151   :  { %v586_v44 = vpop.f32.mrb[4].mxu1 }
 0x152   :  { %v4737_v45 = vpop.f32.mrb[5].mxu1  ;;  %v5918_v34 = vadd.f32 %v4490_v57, %v586_v44 }
 0x15f   :  { %v659_v49 = vpop.f32.mrb[6].mxu0 }
 0x160   :  { %v4756_v50 = vpop.f32.mrb[7].mxu0  ;;  %v5927_v42 = vadd.f32 %v4490_v57, %v659_v49 }
 0x161   :  { %v732_v53 = vpop.f32.mrb[6].mxu1 }
 0x162   :  { %v4775_v54 = vpop.f32.mrb[7].mxu1  ;;  %v5924_v40 = vadd.f32 %v4490_v57, %v732_v53 }
 0x164   :  { %7053 = vst [vmem:[#allocation43_spill] sm:$0xff] %v5924_v40 }
 0x167   :  { %v5882_v56 = vpop.f32.mrb[8].mxu0 }
 0x168   :  { %v812_v58 = vcombine.high %v5882_v56, %v5882_v56  ;;  %v819_v59 = vrot.slane %v5882_v56, %v5880_v55  ;;  %v5891_v60 = vpop.f32.mrb[9].mxu0 }
 0x16a   :  { %v826_v62 = vrot.slane %v812_v58, %v5880_v55  ;;  %v827_v63 = vcombine.high %v819_v59, %v819_v59  ;;  %v835_v2 = vrot.slane %v819_v59, %v5880_v55 }
 0x16c   :  { %v828_v4 = vcombine.high %v826_v62, %v826_v62  ;;  %v842_v5 = vrot.slane %v826_v62, %v5880_v55  ;;  %v849_v6 = vrot.slane %v827_v63, %v5880_v55  ;;  %v857_v7 = vcombine.high %v835_v2, %v835_v2 }
 0x16d   :  { %v864_v11 = vrot.slane %v835_v2, %v5894_v61 }
 0x16e   :  { %v858_v12 = vcombine.high %v842_v5, %v842_v5  ;;  %v859_v13 = vcombine.high %v849_v6, %v849_v6  ;;  %v868_v20 = vrot.slane %v849_v6, %v5894_v61  ;;  %v872_v21 = vrot.slane %v857_v7, %v5894_v61 }
 0x16f   :  { %v880_v24 = vrot.slane %v842_v5, %v5894_v61  ;;  %v901_v25 = vadd.f32 %v864_v11, %v5898_v3  ;;  %v856_v26 = vrot.slane %v828_v4, %v5880_v55 }
 0x170   :  { %v876_v30 = vrot.slane %v859_v13, %v5894_v61  ;;  %v902_v31 = vadd.f32 %v868_v20, %v5904_v9  ;;  %v903_v35 = vadd.f32 %v872_v21, %v5902_v8  ;;  %v888_v36 = vrot.slane %v858_v12, %v5894_v61 }
 0x171   :  { %5135 = vtanh.f32 %v901_v25  ;;  %v884_v37 = vrot.slane %v856_v26, %v5894_v61  ;;  %v860_v38 = vcombine.high %v856_v26, %v856_v26  ;;  %v905_v39 = vadd.f32 %v880_v24, %v5911_v23 }
 0x172   :  { %5137 = vtanh.f32 %v903_v35  ;;  %v904_v41 = vadd.f32 %v876_v30, %v5906_v10  ;;  %v907_v45 = vadd.f32 %v888_v36, %v5927_v42 }
 0x173   :  { %v906_v43 = vadd.f32 %v884_v37, %v5918_v34  ;;  %v892_v44 = vrot.slane %v860_v38, %v5894_v61  ;;  %5139 = vtanh.f32 %v902_v31  ;;  %v965_v31 = vand.u32 127, %v816_v48 }
 0x174   :  { %5141 = vtanh.f32 %v904_v41 }
 0x175   :  { %5143 = vtanh.f32 %v906_v43  ;;  %v908_v46 = vadd.f32 %v892_v44, %v5924_v40  ;;  %v5956_v36 = vsub.s32 %v965_v31, %v5877_v52 }
 0x176   :  { %5145 = vtanh.f32 %v905_v39 }
 0x177   :  { %5147 = vtanh.f32 %v907_v45  ;;  %7055 = vst [vmem:[#allocation45_spill] sm:$0xff] %v5956_v36 }
 0x178   :  { %5149 = vtanh.f32 %v908_v46 }
 0x17b   :  { %v5136_v49 = vpop.eup %5135 }
 0x17c   :  { %v5138_v50 = vpop.eup %5137  ;;  %v923_v51 = vmul.f32 %v5136_v49, %v5936_v47 }
 0x17d   :  { %v5140_v53 = vpop.eup %5139  ;;  %v925_v54 = vmul.f32 %v5138_v50, %v5936_v47 }
 0x17e   :  { %v5142_v57 = vpop.eup %5141  ;;  %v931_v58 = vsel %vm736_vm2, %v923_v51, 0.0  ;;  %v924_v59 = vmul.f32 %v5140_v53, %v5936_v47 }
 0x17f   :  { %v5144_v62 = vpop.eup %5143  ;;  %932 = vadd.xlane.f32.xlu0 %v931_v58  ;;  %v937_v63 = vsel %vm736_vm2, %v925_v54, 0.0  ;;  %v926_v2 = vmul.f32 %v5142_v57, %v5936_v47  ;;  %v5968_v58 = vld [vmem:[#allocation4] sm:$0xff] }
 0x180   :  { %v5146_v4 = vpop.eup %5145  ;;  %938 = vadd.xlane.f32.xlu1 %v937_v63  ;;  %v934_v5 = vsel %vm736_vm2, %v924_v59, 0.0  ;;  %v928_v12 = vmul.f32 %v5144_v62, %v5936_v47  ;;  %7056 = vst [vmem:[#allocation46_spill] sm:$0xff] %v5968_v58  ;;  %vm955_vm10 = vcmp.gt.f32.partialorder %v5968_v58, 0.0 }
 0x181   :  { %v927_v6 = vmul.f32 %v5146_v4, %v5936_v47  ;;  %v5148_v7 = vpop.eup %5147  ;;  %v940_v11 = vsel %vm736_vm2, %v926_v2, 0.0 }
 0x182   :  { %v5150_v13 = vpop.eup %5149  ;;  %v929_v21 = vmul.f32 %v5148_v7, %v5936_v47  ;;  %v946_v24 = vsel %vm736_vm2, %v928_v12, 0.0 }
 0x183   :  { %935 = vadd.xlane.f32.xlu0 %v934_v5  ;;  %v943_v20 = vsel %vm736_vm2, %v927_v6, 0.0  ;;  %v930_v25 = vmul.f32 %v5150_v13, %v5936_v47 }
 0x184   :  { %941 = vadd.xlane.f32.xlu1 %v940_v11  ;;  %v949_v26 = vsel %vm736_vm2, %v929_v21, 0.0 }
 0x185   :  { %v952_v30 = vsel %vm736_vm2, %v930_v25, 0.0 }
 0x187   :  { %944 = vadd.xlane.f32.xlu0 %v943_v20 }
 0x188   :  { %947 = vadd.xlane.f32.xlu1 %v946_v24 }
 0x18b   :  { %950 = vadd.xlane.f32.xlu0 %v949_v26 }
 0x18c   :  { %953 = vadd.xlane.f32.xlu1 %v952_v30  ;;  %v5982_v30 = vsub.s32 1, %v5877_v52 }
 0x18e   :  { %7057 = vst [vmem:[#allocation47_spill] sm:$0xff] %v5982_v30 }
 0x20c   :  { %v933_v35 = vpop.xlane.xlu0 %932 }
 0x20d   :  { %v939_v37 = vpop.xlane.xlu1 %938  ;;  %v969_v39 = vrot.slane %v933_v35, %v5956_v36 }
 0x20e   :  { %v977_v44 = vrot.slane %v939_v37, %v5956_v36 }
 0x210   :  { %v936_v38 = vpop.xlane.xlu0 %935 }
 0x211   :  { %v973_v41 = vrot.slane %v936_v38, %v5956_v36  ;;  %v942_v43 = vpop.xlane.xlu1 %941 }
 0x212   :  { %v981_v45 = vrot.slane %v942_v43, %v5956_v36 }
 0x213   :  { %v999_v48 = vsel %vm998_vm3, %v973_v41, %v969_v39  ;;  %v5987_v39 = vsub.s32 2, %v5877_v52  ;;  %v5990_v41 = vsub.s32 4, %v5877_v52 }
 0x214   :  { %v1001_v46 = vsel %vm1000_vm4, %v977_v44, %v999_v48  ;;  %v945_v49 = vpop.xlane.xlu0 %944  ;;  %v5998_v48 = vsub.s32 6, %v5877_v52 }
 0x215   :  { %v1003_v50 = vsel %vm1002_vm5, %v981_v45, %v1001_v46  ;;  %v985_v51 = vrot.slane %v945_v49, %v5956_v36  ;;  %v948_v53 = vpop.xlane.xlu1 %947  ;;  %7058 = vst [vmem:[#allocation48_spill] sm:$0xff] %v5987_v39  ;;  %7059 = vst [vmem:[#allocation49_spill] sm:$0xff] %v5990_v41  ;;  %v5995_v45 = vsub.s32 3, %v5877_v52  ;;  %v121_v46 = vld [vmem:[#allocation9 + $0x8] sm:$0xff]  ;;  %v123_v49 = vld [vmem:[#allocation9 + $0x18] sm:$0xff] }
 0x216   :  { %v989_v54 = vrot.slane %v948_v53, %v5956_v36  ;;  %7061 = vst [vmem:[#allocation51_spill] sm:$0xff] %v5998_v48  ;;  %v122_v53 = vld [vmem:[#allocation9 + $0x10] sm:$0xff] }
 0x217   :  { %v1005_v57 = vsel %vm1004_vm6, %v985_v51, %v1003_v50  ;;  %7060 = vst [vmem:[#allocation50_spill] sm:$0xff] %v5995_v45  ;;  %v6000_v50 = vpack.c.bf16 %v123_v49, %v121_v46  ;;  %v120_v51 = vld [vmem:[#allocation9] sm:$0xff] }
 0x218   :  { %v1007_v59 = vsel %vm1006_vm7, %v989_v54, %v1005_v57  ;;  %v951_v62 = vpop.xlane.xlu0 %950 }
 0x219   :  { %v993_v63 = vrot.slane %v951_v62, %v5956_v36  ;;  %v954_v2 = vpop.xlane.xlu1 %953  ;;  %7062 = vst [vmem:[#allocation52_spill] sm:$0xff] %v6000_v50  ;;  %v6007_v62 = vpack.c.bf16 %v122_v53, %v120_v51  ;;  %4947 = vmatprep.subr.bf16.mxu1 %v6000_v50 }
 0x21a   :  { %v997_v4 = vrot.slane %v954_v2, %v5956_v36  ;;  %v127_v2 = vld [vmem:[#allocation9 + $0x38] sm:$0xff] }
 0x21b   :  { %v1009_v5 = vsel %vm1008_vm8, %v993_v63, %v1007_v59  ;;  %v6005_v59 = vsub.s32 5, %v5877_v52  ;;  %v125_v63 = vld [vmem:[#allocation9 + $0x28] sm:$0xff]  ;;  %4949 = vmatpush1.bf16.msra.mxu1 %v6007_v62 }
 0x21c   :  { %v1011_v6 = vsel %vm1010_vm9, %v997_v4, %v1009_v5  ;;  %v6011_v4 = vpack.c.bf16 %v127_v2, %v125_v63  ;;  %v124_v5 = vld [vmem:[#allocation9 + $0x20] sm:$0xff] }
 0x21d   :  { %v1013_v7 = vsel %vm955_vm10, %v1011_v6, -1e+10  ;;  %7063 = vst [vmem:[#allocation53_spill] sm:$0xff] %v6005_v59  ;;  %v126_v6 = vld [vmem:[#allocation9 + $0x30] sm:$0xff] }
 0x21e   :  { %v1015_v11 = vsel %vm1014_vm11, %v1013_v7, -inf  ;;  %4951 = vmatprep.subr.bf16.mxu1 %v6011_v4 }
 0x21f   :  { %1016 = vmax.xlane.f32.xlu0 %v1015_v11  ;;  %v6015_v11 = vsub.s32 7, %v5877_v52 }
 0x221   :  { %7064 = vst [vmem:[#allocation54_spill] sm:$0xff] %v6015_v11 }
 0x2ac   :  { %v1017_v12 = vpop.xlane.xlu0 %1016 }
 0x2ad   :  { %v1018_v13 = vsub.f32 %v1013_v7, %v1017_v12  ;;  %v6017_v12 = vpack.c.bf16 %v126_v6, %v124_v5 }
 0x2af   :  { %v1019_v20 = vmul.f32 1.442695, %v1018_v13  ;;  %v129_v13 = vld [vmem:[#allocation9 + $0x48] sm:$0xff]  ;;  %4953 = vmatpush1.bf16.msra.mxu1 %v6017_v12 }
 0x2b1   :  { %5151 = vpow2.f32 %v1019_v20  ;;  %v131_v20 = vld [vmem:[#allocation9 + $0x58] sm:$0xff] }
 0x2bb   :  { %v5152_v21 = vpop.eup %5151 }
 0x2bc   :  { %v1021_v24 = vmul.f32 %v5152_v21, %v5968_v58  ;;  %v6023_v21 = vpack.c.bf16 %v131_v20, %v129_v13 }
 0x2be   :  { %v1022_v25 = vsel %vm1014_vm11, %v1021_v24, 0.0  ;;  %4955 = vmatprep.subr.bf16.mxu1 %v6023_v21 }
 0x2bf   :  { %1023 = vadd.xlane.f32.xlu1 %v1022_v25  ;;  %v130_v25 = vld [vmem:[#allocation9 + $0x50] sm:$0xff] }
 0x34c   :  { %v1024_v26 = vpop.xlane.xlu1 %1023 }
 0x34d   :  { %5153 = vrcp.f32 %v1024_v26 }
 0x357   :  { %v5154_v31 = vpop.eup %5153 }
 0x358   :  { %v1026_v35 = vmul.f32 %v5154_v31, %v1021_v24  ;;  %v128_v24 = vld [vmem:[#allocation9 + $0x40] sm:$0xff]  ;;  %v133_v31 = vld [vmem:[#allocation9 + $0x68] sm:$0xff] }
 0x359   :  { %v6026_v26 = vpack.c.bf16 %v130_v25, %v128_v24 }
 0x35a   :  { %v1037_v37 = vrot.slane %v1026_v35, %v5982_v30  ;;  %v1030_v38 = vrot.slane %v1026_v35, %v5894_v61  ;;  %v1044_v43 = vrot.slane %v1026_v35, %v5987_v39  ;;  %v1058_v44 = vrot.slane %v1026_v35, %v5990_v41 }
 0x35b   :  { %v1051_v54 = vrot.slane %v1026_v35, %v5995_v45  ;;  %v1072_v57 = vrot.slane %v1026_v35, %v5998_v48  ;;  %v1065_v7 = vrot.slane %v1026_v35, %v6005_v59  ;;  %v1079_v52 = vrot.slane %v1026_v35, %v6015_v11  ;;  %4957 = vmatpush1.bf16.msra.mxu1 %v6026_v26 }
 0x35c   :  { %1039 = vbcast.lane.b32.xlu1 %v1037_v37, 256  ;;  %1032 = vbcast.lane.b32.xlu0 %v1030_v38, 256  ;;  %v135_v37 = vld [vmem:[#allocation9 + $0x78] sm:$0xff]  ;;  %v132_v38 = vld [vmem:[#allocation9 + $0x60] sm:$0xff] }
 0x360   :  { %1046 = vbcast.lane.b32.xlu1 %v1044_v43, 256  ;;  %1060 = vbcast.lane.b32.xlu0 %v1058_v44, 256  ;;  %v6030_v43 = vpack.c.bf16 %v135_v37, %v133_v31  ;;  %v134_v44 = vld [vmem:[#allocation9 + $0x70] sm:$0xff] }
 0x361   :  { %v6032_v46 = vpack.c.bf16 %v134_v44, %v132_v38 }
 0x362   :  { %4959 = vmatprep.subr.bf16.mxu1 %v6030_v43 }
 0x363   :  { %4961 = vmatpush1.bf16.msra.mxu1 %v6032_v46 }
 0x364   :  { %1053 = vbcast.lane.b32.xlu1 %v1051_v54, 256  ;;  %1074 = vbcast.lane.b32.xlu0 %v1072_v57, 256 }
 0x365   :  { %4977 = vmatprep.subr.bf16.mxu1 %v6000_v50 }
 0x368   :  { %1067 = vbcast.lane.b32.xlu1 %v1065_v7, 256  ;;  %1347 = vrot.lane.b32.xlu0 %v5882_v56, %s5572_s27 }
 0x36c   :  { %1081 = vbcast.lane.b32.xlu1 %v1079_v52, 256 }
 0x370   :  { %1349 = vrot.lane.b32.xlu1 %v5891_v60, %s5572_s27 }
 0x3ce   :  { %v1040_v35 = vpop.permute.xlu1 %1039  ;;  %v1033_v49 = vpop.permute.xlu0 %1032 }
 0x3cf   :  { %v1084_v51 = vmul.f32 %v1040_v35, %v5750_v15  ;;  %v1083_v53 = vmul.f32 %v1033_v49, %v5744_v14 }
 0x3d1   :  { %v1098_v54 = vsel %vm151_vm1, %v1084_v51, 0.0  ;;  %v1091_v57 = vsel %vm151_vm1, %v1083_v53, 0.0 }
 0x3d2   :  { %v1099_v63 = vrot.slane %v1098_v54, 4  ;;  %v1092_v2 = vrot.slane %v1091_v57, 4  ;;  %v1047_v5 = vpop.permute.xlu1 %1046  ;;  %v1061_v6 = vpop.permute.xlu0 %1060 }
 0x3d3   :  { %v1085_v60 = vmul.f32 %v1047_v5, %v5778_v16  ;;  %v1087_v7 = vmul.f32 %v1061_v6, %v5812_v18 }
 0x3d4   :  { %v1100_v13 = vadd.f32 %v1099_v63, %v1098_v54  ;;  %v1093_v20 = vadd.f32 %v1092_v2, %v1091_v57 }
 0x3d5   :  { %v1105_v24 = vsel %vm151_vm1, %v1085_v60, 0.0  ;;  %v1119_v25 = vsel %vm151_vm1, %v1087_v7, 0.0 }
 0x3d6   :  { %v1101_v52 = vrot.slane %v1100_v13, 2  ;;  %v1094_v31 = vrot.slane %v1093_v20, 2  ;;  %v1106_v37 = vrot.slane %v1105_v24, 4  ;;  %v1120_v38 = vrot.slane %v1119_v25, 4  ;;  %v1054_v44 = vpop.permute.xlu1 %1053  ;;  %v1075_v35 = vpop.permute.xlu0 %1074 }
 0x3d7   :  { %v1086_v49 = vmul.f32 %v1054_v44, %v5786_v17  ;;  %v1089_v51 = vmul.f32 %v1075_v35, %v5848_v27 }
 0x3d8   :  { %v1102_v53 = vadd.f32 %v1101_v52, %v1100_v13  ;;  %v1107_v5 = vadd.f32 %v1106_v37, %v1105_v24  ;;  %v1121_v0 = vadd.f32 %v1120_v38, %v1119_v25  ;;  %v1095_v6 = vadd.f32 %v1094_v31, %v1093_v20 }
 0x3d9   :  { %v1112_v54 = vsel %vm151_vm1, %v1086_v49, 0.0  ;;  %v1133_v57 = vsel %vm151_vm1, %v1089_v51, 0.0 }
 0x3da   :  { %v1108_v63 = vrot.slane %v1107_v5, 2  ;;  %v1068_v2 = vpop.permute.xlu1 %1067  ;;  %v1122_v60 = vrot.slane %v1121_v0, 2  ;;  %v1113_v7 = vrot.slane %v1112_v54, 4  ;;  %v1134_v1 = vrot.slane %v1133_v57, 4 }
 0x3db   :  { %v1088_v16 = vmul.f32 %v1068_v2, %v5819_v19  ;;  %v1103_v18 = vrot.slane %v1102_v53, 1  ;;  %v1096_v44 = vrot.slane %v1095_v6, 1 }
 0x3dc   :  { %v1109_v14 = vadd.f32 %v1108_v63, %v1107_v5  ;;  %v1114_v17 = vadd.f32 %v1113_v7, %v1112_v54  ;;  %v1135_v35 = vadd.f32 %v1134_v1, %v1133_v57  ;;  %v1123_v52 = vadd.f32 %v1122_v60, %v1121_v0 }
 0x3dd   :  { %v1126_v13 = vsel %vm151_vm1, %v1088_v16, 0.0  ;;  %v1104_v51 = vadd.f32 %v1103_v18, %v1102_v53  ;;  %v1097_v27 = vadd.f32 %v1096_v44, %v1095_v6 }
 0x3de   :  { %v1110_v24 = vrot.slane %v1109_v14, 1  ;;  %v1127_v20 = vrot.slane %v1126_v13, 4  ;;  %v1082_v25 = vpop.permute.xlu1 %1081  ;;  %v1115_v31 = vrot.slane %v1114_v17, 2  ;;  %v1136_v37 = vrot.slane %v1135_v35, 2 }
 0x3df   :  { %v1090_v38 = vmul.f32 %v1082_v25, %v5859_v32  ;;  %v1124_v1 = vrot.slane %v1123_v52, 1  ;;  %v1155_v0 = vsel %vm998_vm3, %v1104_v51, %v1097_v27 }
 0x3e0   :  { %v1128_v49 = vadd.f32 %v1127_v20, %v1126_v13  ;;  %v1116_v15 = vadd.f32 %v1115_v31, %v1114_v17  ;;  %v1111_v5 = vadd.f32 %v1110_v24, %v1109_v14  ;;  %v1137_v16 = vadd.f32 %v1136_v37, %v1135_v35 }
 0x3e1   :  { %v1140_v2 = vsel %vm151_vm1, %v1090_v38, 0.0  ;;  %v1125_v18 = vadd.f32 %v1124_v1, %v1123_v52  ;;  %v7065_v52 = vmov 0.0   ;;  %v1348_v38 = vpop.permute.xlu0 %1347 }
 0x3e2   :  { %v1129_v63 = vrot.slane %v1128_v49, 2  ;;  %v1141_v54 = vrot.slane %v1140_v2, 4  ;;  %v1117_v57 = vrot.slane %v1116_v15, 1  ;;  %v1156_v48 = vsel %vm1000_vm4, %v1111_v5, %v1155_v0  ;;  %v1350_v37 = vpop.permute.xlu1 %1349 }
 0x3e3   :  { %v1138_v53 = vrot.slane %v1137_v16, 1  ;;  %v1351_v51 = vsel %vm151_vm1, %v1348_v38, %v1350_v37 }
 0x3e4   :  { %v1130_v7 = vadd.f32 %v1129_v63, %v1128_v49  ;;  %v1142_v19 = vadd.f32 %v1141_v54, %v1140_v2  ;;  %v1118_v60 = vadd.f32 %v1117_v57, %v1116_v15  ;;  %v1345_v49 = vld [vmem:[#allocation6] sm:$0xff]  ;;  %v6078_v54 = vld [vmem:[%s6983_s10] ss:$0 sm:$0xff] }
 0x3e5   :  { %v1139_v20 = vadd.f32 %v1138_v53, %v1137_v16  ;;  %v1353_v5 = vadd.f32 %v1351_v51, %v1345_v49  ;;  %v4501_v53 = vld [vmem:[%s6981_s8] ss:$0 sm:$0xff] }
 0x3e6   :  { %v1131_v25 = vrot.slane %v1130_v7, 1  ;;  %v1143_v13 = vrot.slane %v1142_v19, 2  ;;  %v1157_v17 = vsel %vm1002_vm5, %v1118_v60, %v1156_v48 }
 0x3e7   :  { %v1158_v44 = vsel %vm1004_vm6, %v1125_v18, %v1157_v17 }
 0x3e8   :  { %v1132_v6 = vadd.f32 %v1131_v25, %v1130_v7  ;;  %v1144_v14 = vadd.f32 %v1143_v13, %v1142_v19 }
 0x3ea   :  { %v1145_v24 = vrot.slane %v1144_v14, 1  ;;  %v1159_v35 = vsel %vm1006_vm7, %v1132_v6, %v1158_v44  ;;  %v136_v6 = vld [vmem:[%s6979_s6] sm:$0xff] }
 0x3eb   :  { %v1160_v27 = vsel %vm1008_vm8, %v1139_v20, %v1159_v35 }
 0x3ec   :  { %v1146_v31 = vadd.f32 %v1145_v24, %v1144_v14  ;;  %v137_v14 = vld [vmem:[%s6979_s6 + $0x8] sm:$0xff]  ;;  %v7066_v24 = vmov 0.0|0.0  }
 0x3ed   :  { %v6095_v44 = vpack.c.bf16 %v137_v14, %v136_v6 }
 0x3ee   :  { %v1161_v15 = vsel %vm1010_vm9, %v1146_v31, %v1160_v27 }
 0x3ef   :  { %4500 = vmatmul.mubr.msk.f32.vlgmr.msra.gmra.mrb[8].mxu1 %vm151_vm1, %v1161_v15  ;;  %4964 = vmatpush3.bf16.msra.mxu0 %v6095_v44  ;;  %v138_v15 = vld [vmem:[%s6979_s6 + $0x10] sm:$0xff] }
 0x3f0   :  { %4979 = vmatpush1.bf16.msra.mxu1 %v6007_v62  ;;  %1868 = vmatprep.mubr.f32.mxu1 %v7065_v52 }
 0x3f1   :  { %4981 = vmatprep.subr.bf16.mxu1 %v6011_v4  ;;  %4965 = vmatprep.subr.bf16.mxu0 %v7066_v24 }
 0x3f4   :  { %4983 = vmatpush1.bf16.msra.mxu1 %v6017_v12 }
 0x3f5   :  { %4985 = vmatprep.subr.bf16.mxu1 %v6023_v21 }
 0x3f8   :  { %4987 = vmatpush1.bf16.msra.mxu1 %v6026_v26 }
 0x3f9   :  { %4989 = vmatprep.subr.bf16.mxu1 %v6030_v43 }
 0x3fc   :  { %4991 = vmatpush1.bf16.msra.mxu1 %v6032_v46 }
 0x3fd   :  { %5007 = vmatprep.subr.bf16.mxu1 %v6000_v50 }
 0x4c2   :  { %v1230_v19 = vpop.f32.mrb[8].mxu1 }
 0x4c3   :  { %1355 = vrot.lane.b32.xlu0 %v1230_v19, %s5573_s28  ;;  %v1232_v48 = vpop.f32.mrb[9].mxu1 }
 0x4c4   :  { %1357 = vrot.lane.b32.xlu1 %v1232_v48, %s5573_s28 }
 0x535   :  { %v1356_v2 = vpop.permute.xlu0 %1355 }
 0x536   :  { %v1358_v63 = vpop.permute.xlu1 %1357 }
 0x537   :  { %v1360_v1 = vsel %vm1359_vm12, %v1356_v2, %v1358_v63 }
 0x538   :  { %v1362_v57 = vadd.f32 %v1360_v1, %v1353_v5 }
 0x53a   :  { %v1369_v16 = vadd.f32 %v6078_v54, %v1362_v57  ;;  %v6135_v57 = vld [vmem:[%s6982_s9] ss:$0 sm:$0xff] }
 0x53c   :  { %5155 = vtanh.f32 %v1369_v16  ;;  %v1370_v0 = vmul.f32 0.5, %v1369_v16 }
 0x53e   :  { %5157 = vtanh.f32 %v1370_v0 }
 0x546   :  { %v5156_v7 = vpop.eup %5155 }
 0x547   :  { %1377 = vrot.lane.b32.xlu0 %v5156_v7, %s5572_s27 }
 0x548   :  { %v5158_v60 = vpop.eup %5157 }
 0x549   :  { %v1372_v25 = vmul.f32 0.5, %v5158_v60 }
 0x54b   :  { %1236 = vrot.lane.b32.xlu0 %v1230_v19, %s5574_s29  ;;  %v1373_v13 = vadd.f32 0.5, %v1372_v25  ;;  %v139_v19 = vld [vmem:[%s6979_s6 + $0x18] sm:$0xff] }
 0x54c   :  { %v6107_v48 = vpack.c.bf16 %v139_v19, %v138_v15 }
 0x54d   :  { %v1375_v35 = vmul.f32 0.0, %v1373_v13 }
 0x54e   :  { %4967 = vmatpush3.bf16.msra.mxu0 %v6107_v48 }
 0x54f   :  { %4969 = vmatprep.subr.bf16.mxu0 %v5840_v22 }
 0x5b9   :  { %v1378_v18 = vpop.permute.xlu0 %1377 }
 0x5ba   :  { %v1380_v17 = vmul.f32 %v1378_v18, %v1373_v13 }
 0x5bc   :  { %1382 = vrot.lane.b32.xlu1 %v1380_v17, %s5574_s29 }
 0x5bd   :  { %v1237_v20 = vpop.permute.xlu0 %1236 }
 0x5be   :  { %v1239_v37 = vadd.f32 %v1237_v20, %v5882_v56 }
 0x5c0   :  { %1245 = vrot.lane.b32.xlu1 %v4501_v53, %s5574_s29 }
 0x62e   :  { %v1383_v31 = vpop.permute.xlu1 %1382 }
 0x62f   :  { %v6099_v27 = vadd.f32 %v1383_v31, %v1375_v35 }
 0x631   :  { %5159 = vtanh.f32 %v6099_v27 }
 0x632   :  { %v6111_v38 = vpop.permute.xlu1 %1245 }
 0x633   :  { %v1248_v49 = vadd.f32 %v6111_v38, %v1239_v37 }
 0x635   :  { %5161 = vtanh.f32 %v1248_v49 }
 0x63b   :  { %v5160_v51 = vpop.eup %5159 }
 0x63c   :  { %1388 = vrot.lane.b32.xlu0 %v5160_v51, %s5572_s27 }
 0x63f   :  { %v5162_v2 = vpop.eup %5161 }
 0x640   :  { %1257 = vrot.lane.b32.xlu1 %v5162_v2, %s5573_s28 }
 0x6ae   :  { %v1389_v5 = vpop.permute.xlu0 %1388 }
 0x6af   :  { %v1391_v63 = vmul.f32 %v1389_v5, %v1373_v13 }
 0x6b1   :  { %1393 = vrot.lane.b32.xlu0 %v1391_v63, %s5574_s29 }
 0x6b2   :  { %v1258_v56 = vpop.permute.xlu1 %1257 }
 0x6b3   :  { %4785 = vmatmul.mubr.msk.f32.vlgmr.msra.gmra.mrb[10].mxu0 %vm736_vm2, %v1258_v56 }
 0x6b4   :  { %4971 = vmatpush1.bf16.msra.mxu0 %v5850_v28  ;;  %1461 = vmatprep.mubr.f32.mxu0 %v7065_v52 }
 0x6b5   :  { %4973 = vmatprep.subr.bf16.mxu0 %v5853_v29 }
 0x6b8   :  { %4975 = vmatpush1.bf16.msra.mxu0 %v5864_v33 }
 0x6b9   :  { %4992 = vmatprep.subr.bf16.mxu0 %v7066_v24 }
 0x723   :  { %v1394_v1 = vpop.permute.xlu0 %1393 }
 0x724   :  { %4505 = vmatmul.mubr.msk.f32.vlgmr.msra.gmra.mrb[12].mxu0 %vm736_vm2, %v1394_v1 }
 0x725   :  { %4994 = vmatpush3.bf16.msra.mxu0 %v6095_v44  ;;  %4795 = vmatprep.mubr.msk.f32.mxu0 %vm5569_vm0, %v7065_v52 }
 0x726   :  { %4995 = vmatprep.subr.bf16.mxu0 %v7066_v24 }
 0x729   :  { %4997 = vmatpush3.bf16.msra.mxu0 %v6107_v48 }
 0x72a   :  { %4999 = vmatprep.subr.bf16.mxu0 %v5840_v22 }
 0x786   :  { %v1327_v16 = vpop.f32.mrb[10].mxu0 }
 0x787   :  { %v1328_v7 = vadd.f32 %v6135_v57, %v1327_v16  ;;  %v4786_v0 = vpop.f32.mrb[11].mxu0 }
 0x789   :  { %1331 = vst [vmem:[#allocation2] sm:$0xff] %v1328_v7 }
 0x7f7   :  { %v6138_v60 = vpop.f32.mrb[12].mxu0 }
 0x7f8   :  { %v1469_v25 = vcombine.high %v6138_v60, %v6138_v60  ;;  %v1476_v13 = vrot.slane %v6138_v60, %v5880_v55  ;;  %v6144_v18 = vpop.f32.mrb[13].mxu0 }
 0x7fa   :  { %v1483_v17 = vrot.slane %v1469_v25, %v5880_v55  ;;  %v1484_v53 = vcombine.high %v1476_v13, %v1476_v13  ;;  %v1492_v6 = vrot.slane %v1476_v13, %v5880_v55 }
 0x7fc   :  { %v1485_v14 = vcombine.high %v1483_v17, %v1483_v17  ;;  %v1499_v35 = vrot.slane %v1483_v17, %v5880_v55  ;;  %v1506_v20 = vrot.slane %v1484_v53, %v5880_v55  ;;  %v1514_v31 = vcombine.high %v1492_v6, %v1492_v6 }
 0x7fd   :  { %v1521_v15 = vrot.slane %v1492_v6, %v5894_v61 }
 0x7fe   :  { %v1515_v19 = vcombine.high %v1499_v35, %v1499_v35  ;;  %v1516_v37 = vcombine.high %v1506_v20, %v1506_v20  ;;  %v1525_v49 = vrot.slane %v1506_v20, %v5894_v61  ;;  %v1513_v51 = vrot.slane %v1485_v14, %v5880_v55 }
 0x7ff   :  { %v1529_v2 = vrot.slane %v1514_v31, %v5894_v61  ;;  %v1537_v5 = vrot.slane %v1499_v35, %v5894_v61  ;;  %v1558_v63 = vadd.f32 %v1521_v15, %v5898_v3 }
 0x800   :  { %v1533_v56 = vrot.slane %v1516_v37, %v5894_v61  ;;  %v1545_v1 = vrot.slane %v1515_v19, %v5894_v61  ;;  %v1559_v16 = vadd.f32 %v1525_v49, %v5904_v9  ;;  %v1517_v13 = vcombine.high %v1513_v51, %v1513_v51 }
 0x801   :  { %v1560_v7 = vadd.f32 %v1529_v2, %v5902_v8  ;;  %v1562_v0 = vadd.f32 %v1537_v5, %v5911_v23  ;;  %5163 = vtanh.f32 %v1558_v63  ;;  %v1541_v17 = vrot.slane %v1513_v51, %v5894_v61 }
 0x802   :  { %v1564_v25 = vadd.f32 %v1545_v1, %v5927_v42  ;;  %5165 = vtanh.f32 %v1559_v16  ;;  %v1561_v53 = vadd.f32 %v1533_v56, %v5906_v10  ;;  %v1549_v6 = vrot.slane %v1517_v13, %v5894_v61 }
 0x803   :  { %5167 = vtanh.f32 %v1562_v0  ;;  %v1563_v14 = vadd.f32 %v1541_v17, %v5918_v34 }
 0x804   :  { %5169 = vtanh.f32 %v1560_v7  ;;  %v1565_v20 = vadd.f32 %v1549_v6, %v5924_v40 }
 0x805   :  { %5171 = vtanh.f32 %v1564_v25 }
 0x806   :  { %5173 = vtanh.f32 %v1561_v53 }
 0x807   :  { %5175 = vtanh.f32 %v1563_v14 }
 0x808   :  { %5177 = vtanh.f32 %v1565_v20 }
 0x80b   :  { %v5164_v35 = vpop.eup %5163 }
 0x80c   :  { %v1574_v31 = vmul.f32 %v5164_v35, %v5936_v47  ;;  %v5166_v15 = vpop.eup %5165 }
 0x80d   :  { %v5168_v19 = vpop.eup %5167  ;;  %v1575_v49 = vmul.f32 %v5166_v15, %v5936_v47 }
 0x80e   :  { %v1582_v37 = vsel %vm736_vm2, %v1574_v31, 0.0  ;;  %v5170_v51 = vpop.eup %5169  ;;  %v1578_v2 = vmul.f32 %v5168_v19, %v5936_v47 }
 0x80f   :  { %1583 = vadd.xlane.f32.xlu1 %v1582_v37  ;;  %v5172_v5 = vpop.eup %5171  ;;  %v1585_v63 = vsel %vm736_vm2, %v1575_v49, 0.0  ;;  %v1576_v56 = vmul.f32 %v5170_v51, %v5936_v47 }
 0x810   :  { %v5174_v1 = vpop.eup %5173  ;;  %1586 = vadd.xlane.f32.xlu0 %v1585_v63  ;;  %v1594_v16 = vsel %vm736_vm2, %v1578_v2, 0.0  ;;  %v1580_v7 = vmul.f32 %v5172_v5, %v5936_v47 }
 0x811   :  { %v1588_v0 = vsel %vm736_vm2, %v1576_v56, 0.0  ;;  %v1577_v25 = vmul.f32 %v5174_v1, %v5936_v47  ;;  %v5176_v13 = vpop.eup %5175 }
 0x812   :  { %v1600_v17 = vsel %vm736_vm2, %v1580_v7, 0.0  ;;  %v1579_v6 = vmul.f32 %v5176_v13, %v5936_v47  ;;  %v5178_v14 = vpop.eup %5177 }
 0x813   :  { %1595 = vadd.xlane.f32.xlu1 %v1594_v16  ;;  %v1591_v53 = vsel %vm736_vm2, %v1577_v25, 0.0  ;;  %v1581_v20 = vmul.f32 %v5178_v14, %v5936_v47 }
 0x814   :  { %1589 = vadd.xlane.f32.xlu0 %v1588_v0  ;;  %v1597_v35 = vsel %vm736_vm2, %v1579_v6, 0.0 }
 0x815   :  { %v1603_v31 = vsel %vm736_vm2, %v1581_v20, 0.0 }
 0x817   :  { %1601 = vadd.xlane.f32.xlu1 %v1600_v17 }
 0x818   :  { %1592 = vadd.xlane.f32.xlu0 %v1591_v53 }
 0x81c   :  { %1598 = vadd.xlane.f32.xlu0 %v1597_v35 }
 0x820   :  { %1604 = vadd.xlane.f32.xlu0 %v1603_v31 }
 0x89c   :  { %v1584_v19 = vpop.xlane.xlu1 %1583 }
 0x89d   :  { %v1587_v15 = vpop.xlane.xlu0 %1586  ;;  %v1617_v2 = vrot.slane %v1584_v19, %v5956_v36 }
 0x89e   :  { %v1621_v49 = vrot.slane %v1587_v15, %v5956_v36 }
 0x8a0   :  { %v1596_v5 = vpop.xlane.xlu1 %1595  ;;  %v1646_v56 = vsel %vm998_vm3, %v1621_v49, %v1617_v2 }
 0x8a1   :  { %v1590_v37 = vpop.xlane.xlu0 %1589  ;;  %v1633_v0 = vrot.slane %v1596_v5, %v5956_v36 }
 0x8a2   :  { %v1625_v51 = vrot.slane %v1590_v37, %v5956_v36 }
 0x8a4   :  { %v1647_v16 = vsel %vm1000_vm4, %v1625_v51, %v1646_v56  ;;  %v1602_v13 = vpop.xlane.xlu1 %1601 }
 0x8a5   :  { %v1593_v63 = vpop.xlane.xlu0 %1592  ;;  %v1641_v14 = vrot.slane %v1602_v13, %v5956_v36 }
 0x8a6   :  { %v1629_v1 = vrot.slane %v1593_v63, %v5956_v36 }
 0x8a8   :  { %v1648_v7 = vsel %vm1002_vm5, %v1629_v1, %v1647_v16 }
 0x8a9   :  { %v1599_v25 = vpop.xlane.xlu0 %1598  ;;  %v1649_v53 = vsel %vm1004_vm6, %v1633_v0, %v1648_v7 }
 0x8aa   :  { %v1637_v17 = vrot.slane %v1599_v25, %v5956_v36 }
 0x8ac   :  { %v1650_v6 = vsel %vm1006_vm7, %v1637_v17, %v1649_v53 }
 0x8ad   :  { %v1605_v35 = vpop.xlane.xlu0 %1604  ;;  %v1651_v31 = vsel %vm1008_vm8, %v1641_v14, %v1650_v6 }
 0x8ae   :  { %v1645_v20 = vrot.slane %v1605_v35, %v5956_v36  ;;  %v7067_v35 = vld [vmem:[#allocation51_spill] sm:$0xff] }
 0x8b0   :  { %v1652_v15 = vsel %vm1010_vm9, %v1645_v20, %v1651_v31 }
 0x8b1   :  { %v1654_v19 = vsel %vm955_vm10, %v1652_v15, -1e+10 }
 0x8b2   :  { %v1655_v37 = vsel %vm1014_vm11, %v1654_v19, -inf }
 0x8b3   :  { %1656 = vmax.xlane.f32.xlu1 %v1655_v37 }
 0x940   :  { %v1657_v49 = vpop.xlane.xlu1 %1656 }
 0x941   :  { %v1658_v51 = vsub.f32 %v1654_v19, %v1657_v49  ;;  %v6218_v19 = vld [vmem:[%s6973_s0 + $0x8] sm:$0xff]  ;;  %v6224_v49 = vld [vmem:[%s6973_s0] sm:$0xff] }
 0x942   :  { %7068 = vst [vmem:[#allocation55_spill] sm:$0xff] %v6218_v19  ;;  %7069 = vst [vmem:[#allocation56_spill] sm:$0xff] %v6224_v49 }
 0x943   :  { %v1659_v2 = vmul.f32 1.442695, %v1658_v51 }
 0x945   :  { %5179 = vpow2.f32 %v1659_v2 }
 0x94f   :  { %v5180_v5 = vpop.eup %5179 }
 0x950   :  { %v1661_v63 = vmul.f32 %v5180_v5, %v5968_v58 }
 0x952   :  { %v1662_v56 = vsel %vm1014_vm11, %v1661_v63, 0.0 }
 0x953   :  { %1663 = vadd.xlane.f32.xlu0 %v1662_v56 }
 0x9e0   :  { %v1664_v1 = vpop.xlane.xlu0 %1663 }
 0x9e1   :  { %5181 = vrcp.f32 %v1664_v1 }
 0x9eb   :  { %v5182_v16 = vpop.eup %5181 }
 0x9ec   :  { %v1666_v7 = vmul.f32 %v5182_v16, %v1661_v63  ;;  %v6232_v16 = vld [vmem:[%s6973_s0 + $0x28] sm:$0xff] }
 0x9ed   :  { %7070 = vst [vmem:[#allocation57_spill] sm:$0xff] %v6232_v16 }
 0x9ee   :  { %v1677_v0 = vrot.slane %v1666_v7, %v5982_v30  ;;  %v1670_v25 = vrot.slane %v1666_v7, %v5894_v61  ;;  %v1705_v13 = vrot.slane %v1666_v7, %v6005_v59  ;;  %v1684_v17 = vrot.slane %v1666_v7, %v5987_v39 }
 0x9ef   :  { %v1719_v53 = vrot.slane %v1666_v7, %v6015_v11  ;;  %v1691_v6 = vrot.slane %v1666_v7, %v5995_v45  ;;  %v1698_v14 = vrot.slane %v1666_v7, %v5990_v41  ;;  %v1712_v20 = vrot.slane %v1666_v7, %v7067_v35 }
 0x9f0   :  { %1679 = vbcast.lane.b32.xlu0 %v1677_v0, 256  ;;  %1672 = vbcast.lane.b32.xlu1 %v1670_v25, 256  ;;  %v6238_v0 = vld [vmem:[%s6973_s0 + $0x10] sm:$0xff] }
 0x9f1   :  { %7071 = vst [vmem:[#allocation58_spill] sm:$0xff] %v6238_v0 }
 0x9f4   :  { %1707 = vbcast.lane.b32.xlu0 %v1705_v13, 256  ;;  %1686 = vbcast.lane.b32.xlu1 %v1684_v17, 256 }
 0x9f8   :  { %1721 = vbcast.lane.b32.xlu0 %v1719_v53, 256  ;;  %1693 = vbcast.lane.b32.xlu1 %v1691_v6, 256 }
 0x9fc   :  { %1700 = vbcast.lane.b32.xlu1 %v1698_v14, 256  ;;  %1979 = vrot.lane.b32.xlu0 %v6144_v18, %s5572_s27 }
 0xa00   :  { %1714 = vbcast.lane.b32.xlu1 %v1712_v20, 256 }
 0xa04   :  { %1977 = vrot.lane.b32.xlu1 %v6138_v60, %s5572_s27 }
 0xa62   :  { %v1680_v31 = vpop.permute.xlu0 %1679  ;;  %v1673_v15 = vpop.permute.xlu1 %1672 }
 0xa63   :  { %v1724_v37 = vmul.f32 %v6218_v19, %v1680_v31  ;;  %v1723_v18 = vmul.f32 %v6224_v49, %v1673_v15 }
 0xa65   :  { %v1738_v51 = vsel %vm151_vm1, %v1724_v37, 0.0  ;;  %v1731_v2 = vsel %vm151_vm1, %v1723_v18, 0.0 }
 0xa66   :  { %v1739_v5 = vrot.slane %v1738_v51, 4  ;;  %v1732_v63 = vrot.slane %v1731_v2, 4  ;;  %v1708_v56 = vpop.permute.xlu0 %1707  ;;  %v1687_v1 = vpop.permute.xlu1 %1686 }
 0xa67   :  { %v1728_v7 = vmul.f32 %v6232_v16, %v1708_v56  ;;  %v1725_v25 = vmul.f32 %v6238_v0, %v1687_v1  ;;  %v6246_v56 = vld [vmem:[%s6973_s0 + $0x38] sm:$0xff] }
 0xa68   :  { %v1740_v13 = vadd.f32 %v1739_v5, %v1738_v51  ;;  %v1733_v17 = vadd.f32 %v1732_v63, %v1731_v2  ;;  %7072 = vst [vmem:[#allocation59_spill] sm:$0xff] %v6246_v56  ;;  %v6252_v51 = vld [vmem:[%s6973_s0 + $0x18] sm:$0xff] }
 0xa69   :  { %v1766_v53 = vsel %vm151_vm1, %v1728_v7, 0.0  ;;  %v1745_v6 = vsel %vm151_vm1, %v1725_v25, 0.0  ;;  %7073 = vst [vmem:[#allocation60_spill] sm:$0xff] %v6252_v51 }
 0xa6a   :  { %v1741_v14 = vrot.slane %v1740_v13, 2  ;;  %v1734_v20 = vrot.slane %v1733_v17, 2  ;;  %v1746_v31 = vrot.slane %v1745_v6, 4  ;;  %v1722_v15 = vpop.permute.xlu0 %1721  ;;  %v1694_v37 = vpop.permute.xlu1 %1693  ;;  %v1767_v18 = vrot.slane %v1766_v53, 4 }
 0xa6b   :  { %v1730_v32 = vmul.f32 %v6246_v56, %v1722_v15  ;;  %v1726_v2 = vmul.f32 %v6252_v51, %v1694_v37  ;;  %v6260_v15 = vld [vmem:[%s6973_s0 + $0x20] sm:$0xff] }
 0xa6c   :  { %v1747_v5 = vadd.f32 %v1746_v31, %v1745_v6  ;;  %v1742_v7 = vadd.f32 %v1741_v14, %v1740_v13  ;;  %v1735_v25 = vadd.f32 %v1734_v20, %v1733_v17  ;;  %v1768_v22 = vadd.f32 %v1767_v18, %v1766_v53  ;;  %7074 = vst [vmem:[#allocation61_spill] sm:$0xff] %v6260_v15  ;;  %v6267_v18 = vld [vmem:[%s6973_s0 + $0x30] sm:$0xff]  ;;  %s5575_s0 = smov [#allocation2]  }
 0xa6d   :  { %v1780_v63 = vsel %vm151_vm1, %v1730_v32, 0.0  ;;  %v1752_v1 = vsel %vm151_vm1, %v1726_v2, 0.0  ;;  %s1341_s13 = sshll.u32 %s5575_s0, 4  ;;  %s6309_s13 = int_to_ptr.vmem [resolvable:$true] %s1341_s13 }
 0xa6e   :  { %v1748_v47 = vrot.slane %v1747_v5, 2  ;;  %v1701_v50 = vpop.permute.xlu1 %1700  ;;  %v1781_v0 = vrot.slane %v1780_v63, 4  ;;  %v1753_v16 = vrot.slane %v1752_v1, 4  ;;  %v1743_v2 = vrot.slane %v1742_v7, 1  ;;  %s5395_s14 = scalar_lea.vmem %s6309_s13, 128  ;;  %s5399_s4 = scalar_lea.vmem %s6309_s13, 256 }
 0xa6f   :  { %v1727_v56 = vmul.f32 %v6260_v15, %v1701_v50  ;;  %v1736_v14 = vrot.slane %v1735_v25, 1  ;;  %v1769_v20 = vrot.slane %v1768_v22, 2  ;;  %p5396_p4 = scmp.ne.s32.totalorder %s6309_s13, %s5395_s14  ;;  %p5400_p5 = scmp.lt.s32.totalorder %s6309_s13, %s6309_s13 }
 0xa70   :  { %v1749_v37 = vadd.f32 %v1748_v47, %v1747_v5  ;;  %v1782_v6 = vadd.f32 %v1781_v0, %v1780_v63  ;;  %v1754_v31 = vadd.f32 %v1753_v16, %v1752_v1  ;;  %v1744_v63 = vadd.f32 %v1743_v2, %v1742_v7  ;;  %p5401_p6 = scmp.lt.s32.totalorder %s5399_s4, %s5395_s14 }
 0xa71   :  { %v1759_v32 = vsel %vm151_vm1, %v1727_v56, 0.0  ;;  %v1737_v1 = vadd.f32 %v1736_v14, %v1735_v25  ;;  %v1770_v15 = vadd.f32 %v1769_v20, %v1768_v22 }
 0xa72   :  { %v1760_v13 = vrot.slane %v1759_v32, 4  ;;  %v1715_v17 = vpop.permute.xlu1 %1714  ;;  %v1755_v53 = vrot.slane %v1754_v31, 2  ;;  %v1750_v49 = vrot.slane %v1749_v37, 1  ;;  %v1783_v47 = vrot.slane %v1782_v6, 2  ;;  %p5402_p7 = por %p5401_p6, %p5400_p5 }
 0xa73   :  { %v1729_v51 = vmul.f32 %v6267_v18, %v1715_v17  ;;  %v1795_v17 = vsel %vm998_vm3, %v1744_v63, %v1737_v1 }
 0xa74   :  { %v1761_v50 = vadd.f32 %v1760_v13, %v1759_v32  ;;  %v1756_v0 = vadd.f32 %v1755_v53, %v1754_v31  ;;  %v1751_v35 = vadd.f32 %v1750_v49, %v1749_v37  ;;  %v1784_v11 = vadd.f32 %v1783_v47, %v1782_v6  ;;  %p6318_p8 = pnand %p5402_p7, %p5396_p4 }
 0xa75   :  { %v1773_v16 = vsel %vm151_vm1, %v1729_v51, 0.0  ;;  %v1771_v32 = vrot.slane %v1770_v15, 1 }
 0xa76   :  { %v1762_v56 = vrot.slane %v1761_v50, 2  ;;  %v1774_v5 = vrot.slane %v1773_v16, 4  ;;  %v1757_v19 = vrot.slane %v1756_v0, 1  ;;  %v1796_v31 = vsel %vm1000_vm4, %v1751_v35, %v1795_v17 }
 0xa77   :  { %v1785_v53 = vrot.slane %v1784_v11, 1  ;;  %v1772_v49 = vadd.f32 %v1771_v32, %v1770_v15 }
 0xa78   :  { %v1763_v41 = vadd.f32 %v1762_v56, %v1761_v50  ;;  %v1775_v45 = vadd.f32 %v1774_v5, %v1773_v16  ;;  %v1758_v39 = vadd.f32 %v1757_v19, %v1756_v0 }
 0xa79   :  { %v1786_v2 = vadd.f32 %v1785_v53, %v1784_v11 }
 0xa7a   :  { %v1764_v59 = vrot.slane %v1763_v41, 1  ;;  %v1776_v30 = vrot.slane %v1775_v45, 2  ;;  %v1797_v7 = vsel %vm1002_vm5, %v1758_v39, %v1796_v31 }
 0xa7c   :  { %v1765_v13 = vadd.f32 %v1764_v59, %v1763_v41  ;;  %v1777_v51 = vadd.f32 %v1776_v30, %v1775_v45  ;;  %v1978_v41 = vpop.permute.xlu1 %1977  ;;  %v1980_v45 = vpop.permute.xlu0 %1979  ;;  %v1975_v59 = vld [vmem:[#allocation6 + $0x8] sm:$0xff] }
 0xa7d   :  { %v1981_v11 = vsel %vm151_vm1, %v1978_v41, %v1980_v45 }
 0xa7e   :  { %v1798_v22 = vsel %vm1004_vm6, %v1765_v13, %v1797_v7  ;;  %v1778_v25 = vrot.slane %v1777_v51, 1  ;;  %v1983_v15 = vadd.f32 %v1981_v11, %v1975_v59 }
 0xa7f   :  { %v1799_v19 = vsel %vm1006_vm7, %v1772_v49, %v1798_v22 }
 0xa80   :  { %v1779_v37 = vadd.f32 %v1778_v25, %v1777_v51 }
 0xa82   :  { %v1800_v6 = vsel %vm1008_vm8, %v1779_v37, %v1799_v19 }
 0xa83   :  { %v1801_v14 = vsel %vm1010_vm9, %v1786_v2, %v1800_v6 }
 0xa84   :  { %4506 = vmatmul.mubr.msk.f32.vlgmr.msra.gmra.mrb[10].mxu1 %vm151_vm1, %v1801_v14 }
 0xa85   :  { %5009 = vmatpush1.bf16.msra.mxu1 %v6007_v62  ;;  %2491 = vmatprep.mubr.f32.mxu1 %v7065_v52 }
 0xa86   :  { %5011 = vmatprep.subr.bf16.mxu1 %v6011_v4 }
 0xa89   :  { %5013 = vmatpush1.bf16.msra.mxu1 %v6017_v12 }
 0xa8a   :  { %5015 = vmatprep.subr.bf16.mxu1 %v6023_v21 }
 0xa8d   :  { %5017 = vmatpush1.bf16.msra.mxu1 %v6026_v26 }
 0xa8e   :  { %5019 = vmatprep.subr.bf16.mxu1 %v6030_v43 }
 0xa91   :  { %5021 = vmatpush1.bf16.msra.mxu1 %v6032_v46 }
 0xb57   :  { %v1870_v30 = vpop.f32.mrb[10].mxu1 }
 0xb58   :  { %1985 = vrot.lane.b32.xlu1 %v1870_v30, %s5573_s28  ;;  %v1872_v39 = vpop.f32.mrb[11].mxu1 }
 0xb59   :  { %1987 = vrot.lane.b32.xlu0 %v1872_v39, %s5573_s28 }
 0xbca   :  { %v1986_v35 = vpop.permute.xlu1 %1985 }
 0xbcb   :  { %v1988_v20 = vpop.permute.xlu0 %1987 }
 0xbcc   :  { %v1989_v50 = vsel %vm1359_vm12, %v1986_v35, %v1988_v20 }
 0xbcd   :  { %v1991_v47 = vadd.f32 %v1989_v50, %v1983_v15 }
 0xbcf   :  { %v1992_v0 = vadd.f32 %v6078_v54, %v1991_v47 }
 0xbd1   :  { %5183 = vtanh.f32 %v1992_v0  ;;  %v1993_v56 = vmul.f32 0.5, %v1992_v0 }
 0xbd3   :  { %5185 = vtanh.f32 %v1993_v56 }
 0xbdb   :  { %v5184_v16 = vpop.eup %5183 }
 0xbdc   :  { %2000 = vrot.lane.b32.xlu1 %v5184_v16, %s5572_s27 }
 0xbdd   :  { %v5186_v5 = vpop.eup %5185 }
 0xbde   :  { %v1995_v63 = vmul.f32 0.5, %v5186_v5 }
 0xbe0   :  { %1876 = vrot.lane.b32.xlu1 %v1870_v30, %s5574_s29  ;;  %v1996_v1 = vadd.f32 0.5, %v1995_v63 }
 0xbe2   :  { %v1998_v7 = vmul.f32 %v1996_v1, %v6099_v27 }
 0xc4e   :  { %v2001_v17 = vpop.permute.xlu1 %2000 }
 0xc4f   :  { %v2003_v32 = vmul.f32 %v2001_v17, %v1996_v1 }
 0xc51   :  { %2005 = vrot.lane.b32.xlu0 %v2003_v32, %s5574_s29 }
 0xc52   :  { %v1877_v31 = vpop.permute.xlu1 %1876 }
 0xc53   :  { %v1879_v13 = vadd.f32 %v1877_v31, %v6138_v60 }
 0xc55   :  { %v1880_v51 = vadd.f32 %v1879_v13, %v6111_v38 }
 0xc57   :  { %5187 = vtanh.f32 %v1880_v51 }
 0xc61   :  { %v5188_v53 = vpop.eup %5187 }
 0xc62   :  { %1883 = vrot.lane.b32.xlu1 %v5188_v53, %s5573_s28 }
 0xcc3   :  { %v2006_v22 = vpop.permute.xlu0 %2005 }
 0xcc4   :  { %v6299_v25 = vadd.f32 %v2006_v22, %v1998_v7 }
 0xcc6   :  { %5189 = vtanh.f32 %v6299_v25 }
 0xcd0   :  { %v5190_v49 = vpop.eup %5189 }
 0xcd1   :  { %2011 = vrot.lane.b32.xlu0 %v5190_v49, %s5572_s27 }
 0xcd4   :  { %v1884_v37 = vpop.permute.xlu1 %1883 }
 0xcd5   :  { %4796 = vmatmul.mubr.msk.f32.vlgmr.msra.gmra.mrb[14].mxu0 %vm736_vm2, %v1884_v37 }
 0xcd6   :  { %5001 = vmatpush1.bf16.msra.mxu0 %v5850_v28  ;;  %2084 = vmatprep.mubr.f32.mxu0 %v7065_v52 }
 0xcd7   :  { %5003 = vmatprep.subr.bf16.mxu0 %v5853_v29 }
 0xcda   :  { %5005 = vmatpush1.bf16.msra.mxu0 %v5864_v33 }
 0xcdb   :  { %5022 = vmatprep.subr.bf16.mxu0 %v7066_v24 }
 0xcdc   :  { %5406 = shalt.err (!%p6318_p8)  }
 0xcdd   :  { %s6327_s15 = scalar_lea.hbm %s6985_s12, 128  ;;  %s6336_s19 = scalar_lea.hbm %s6985_s12, 768 }
 0xcde   :  { %p5408_p9 = scmp.ne.s32.totalorder %s6985_s12, %s6327_s15  ;;  %p5410_p10 = scmp.lt.u32.totalorder %s6336_s19, %s6327_s15 }
 0xcdf   :  { %p5411_p11 = scmp.lt.u32.totalorder %s6327_s15, %s6985_s12 }
 0xce1   :  { %p5412_p12 = por %p5411_p11, %p5410_p10 }
 0xce3   :  { %p5413_p13 = pnand %p5412_p12, %p5408_p9 }
 0xce5   :  { %5416 = shalt.err (!%p5413_p13)  }
 0xce6   :  { %1344 = dma.vmem_to_hbm [thread:$0]  %s6309_s13, 128, %s6985_s12, [#allocation3] }
 0xd43   :  { %v2012_v27 = vpop.permute.xlu0 %2011 }
 0xd44   :  { %v2014_v60 = vmul.f32 %v2012_v27, %v1996_v1 }
 0xd46   :  { %2016 = vrot.lane.b32.xlu0 %v2014_v60, %s5574_s29 }
 0xda8   :  { %v1953_v2 = vpop.f32.mrb[14].mxu0 }
 0xda9   :  { %v1954_v19 = vadd.f32 %v6135_v57, %v1953_v2  ;;  %v4797_v6 = vpop.f32.mrb[15].mxu0 }
 0xdab   :  { %1958 = vst [vmem:[#allocation2 + $0x8] sm:$0xff] %v1954_v19 }
 0xdb8   :  { %v2017_v14 = vpop.permute.xlu0 %2016 }
 0xdb9   :  { %4508 = vmatmul.mubr.msk.f32.vlgmr.msra.gmra.mrb[16].mxu0 %vm736_vm2, %v2017_v14  ;;  %v5221_v14 = vld [vmem:[%s6984_s11] ss:$0 sm:$0xff]  ;;  %s5576_s11 = smov [#allocation2 + $0x8]  }
 0xdba   :  { %5024 = vmatpush3.bf16.msra.mxu0 %v6095_v44  ;;  %4806 = vmatprep.mubr.msk.f32.mxu0 %vm5569_vm0, %v7065_v52  ;;  %s1970_s2 = sshll.u32 %s5576_s11, 4  ;;  %s6457_s2 = int_to_ptr.vmem [resolvable:$true] %s1970_s2 }
 0xdbb   :  { %5025 = vmatprep.subr.bf16.mxu0 %v7066_v24  ;;  %s5417_s22 = scalar_lea.vmem %s6457_s2, 128  ;;  %p5422_p1 = scmp.lt.s32.totalorder %s6457_s2, %s6309_s13 }
 0xdbc   :  { %p5418_p0 = scmp.ne.s32.totalorder %s6457_s2, %s5417_s22  ;;  %p5423_p2 = scmp.lt.s32.totalorder %s5399_s4, %s5417_s22 }
 0xdbe   :  { %5027 = vmatpush3.bf16.msra.mxu0 %v6107_v48  ;;  %p5424_p3 = por %p5423_p2, %p5422_p1 }
 0xdc0   :  { %p6465_p4 = pnand %p5424_p3, %p5418_p0 }
 0xe8c   :  { %v6361_v30 = vpop.f32.mrb[16].mxu0 }
 0xe8d   :  { %v2092_v39 = vcombine.high %v6361_v30, %v6361_v30  ;;  %v2099_v41 = vrot.slane %v6361_v30, %v5880_v55  ;;  %v6367_v45 = vpop.f32.mrb[17].mxu0 }
 0xe8f   :  { %v2106_v59 = vrot.slane %v2092_v39, %v5880_v55  ;;  %v2107_v11 = vcombine.high %v2099_v41, %v2099_v41  ;;  %v2115_v35 = vrot.slane %v2099_v41, %v5880_v55 }
 0xe91   :  { %v2108_v15 = vcombine.high %v2106_v59, %v2106_v59  ;;  %v2122_v20 = vrot.slane %v2106_v59, %v5880_v55  ;;  %v2129_v50 = vrot.slane %v2107_v11, %v5880_v55  ;;  %v2137_v47 = vcombine.high %v2115_v35, %v2115_v35 }
 0xe92   :  { %v2144_v0 = vrot.slane %v2115_v35, %v5894_v61 }
 0xe93   :  { %v2138_v16 = vcombine.high %v2122_v20, %v2122_v20  ;;  %v2139_v56 = vcombine.high %v2129_v50, %v2129_v50  ;;  %v2148_v5 = vrot.slane %v2129_v50, %v5894_v61  ;;  %v2136_v63 = vrot.slane %v2108_v15, %v5880_v55 }
 0xe94   :  { %v2152_v1 = vrot.slane %v2137_v47, %v5894_v61  ;;  %v2160_v17 = vrot.slane %v2122_v20, %v5894_v61  ;;  %v2181_v32 = vadd.f32 %v2144_v0, %v5898_v3 }
 0xe95   :  { %v2156_v31 = vrot.slane %v2139_v56, %v5894_v61  ;;  %v2168_v13 = vrot.slane %v2138_v16, %v5894_v61  ;;  %v2182_v51 = vadd.f32 %v2148_v5, %v5904_v9  ;;  %v2140_v49 = vcombine.high %v2136_v63, %v2136_v63 }
 0xe96   :  { %v2183_v53 = vadd.f32 %v2152_v1, %v5902_v8  ;;  %v2185_v7 = vadd.f32 %v2160_v17, %v5911_v23  ;;  %5191 = vtanh.f32 %v2181_v32  ;;  %v2164_v37 = vrot.slane %v2136_v63, %v5894_v61 }
 0xe97   :  { %v2187_v22 = vadd.f32 %v2168_v13, %v5927_v42  ;;  %v2184_v27 = vadd.f32 %v2156_v31, %v5906_v10  ;;  %5193 = vtanh.f32 %v2182_v51  ;;  %v2172_v60 = vrot.slane %v2140_v49, %v5894_v61 }
 0xe98   :  { %5195 = vtanh.f32 %v2183_v53  ;;  %v2186_v2 = vadd.f32 %v2164_v37, %v5918_v34 }
 0xe99   :  { %5197 = vtanh.f32 %v2185_v7  ;;  %v2188_v6 = vadd.f32 %v2172_v60, %v5924_v40 }
 0xe9a   :  { %5199 = vtanh.f32 %v2187_v22 }
 0xe9b   :  { %5201 = vtanh.f32 %v2184_v27 }
 0xe9c   :  { %5203 = vtanh.f32 %v2186_v2 }
 0xe9d   :  { %5205 = vtanh.f32 %v2188_v6 }
 0xea0   :  { %v5192_v19 = vpop.eup %5191 }
 0xea1   :  { %v2197_v39 = vmul.f32 %v5221_v14, %v5192_v19  ;;  %v5194_v41 = vpop.eup %5193 }
 0xea2   :  { %v5196_v59 = vpop.eup %5195  ;;  %v2198_v35 = vmul.f32 %v5221_v14, %v5194_v41 }
 0xea3   :  { %v2205_v11 = vsel %vm736_vm2, %v2197_v39, 0.0  ;;  %v5198_v15 = vpop.eup %5197  ;;  %v2199_v0 = vmul.f32 %v5221_v14, %v5196_v59 }
 0xea4   :  { %2206 = vadd.xlane.f32.xlu1 %v2205_v11  ;;  %v5200_v20 = vpop.eup %5199  ;;  %v2208_v50 = vsel %vm736_vm2, %v2198_v35, 0.0  ;;  %v2201_v47 = vmul.f32 %v5221_v14, %v5198_v15 }
 0xea5   :  { %v5202_v16 = vpop.eup %5201  ;;  %2209 = vadd.xlane.f32.xlu0 %v2208_v50  ;;  %v2203_v5 = vmul.f32 %v5221_v14, %v5200_v20  ;;  %v2211_v63 = vsel %vm736_vm2, %v2199_v0, 0.0 }
 0xea6   :  { %v2217_v56 = vsel %vm736_vm2, %v2201_v47, 0.0  ;;  %v2200_v1 = vmul.f32 %v5221_v14, %v5202_v16  ;;  %v5204_v17 = vpop.eup %5203 }
 0xea7   :  { %v2223_v32 = vsel %vm736_vm2, %v2203_v5, 0.0  ;;  %v2202_v13 = vmul.f32 %v5221_v14, %v5204_v17  ;;  %v5206_v51 = vpop.eup %5205 }
 0xea8   :  { %2218 = vadd.xlane.f32.xlu1 %v2217_v56  ;;  %v2214_v31 = vsel %vm736_vm2, %v2200_v1, 0.0  ;;  %v2204_v7 = vmul.f32 %v5221_v14, %v5206_v51 }
 0xea9   :  { %2212 = vadd.xlane.f32.xlu0 %v2211_v63  ;;  %v2220_v53 = vsel %vm736_vm2, %v2202_v13, 0.0 }
 0xeaa   :  { %v2226_v22 = vsel %vm736_vm2, %v2204_v7, 0.0  ;;  %v5222_v7 = vld [vmem:[#allocation4] sm:$0xff] }
 0xeac   :  { %2224 = vadd.xlane.f32.xlu1 %v2223_v32 }
 0xead   :  { %2215 = vadd.xlane.f32.xlu0 %v2214_v31 }
 0xeb1   :  { %2221 = vadd.xlane.f32.xlu0 %v2220_v53 }
 0xeb5   :  { %2227 = vadd.xlane.f32.xlu0 %v2226_v22 }
 0xf31   :  { %v2207_v37 = vpop.xlane.xlu1 %2206 }
 0xf32   :  { %v2210_v49 = vpop.xlane.xlu0 %2209  ;;  %v2240_v19 = vrot.slane %v2207_v37, %v5956_v36 }
 0xf33   :  { %v2244_v60 = vrot.slane %v2210_v49, %v5956_v36 }
 0xf35   :  { %v2219_v6 = vpop.xlane.xlu1 %2218  ;;  %v2269_v41 = vsel %vm998_vm3, %v2244_v60, %v2240_v19 }
 0xf36   :  { %v2213_v27 = vpop.xlane.xlu0 %2212  ;;  %v2256_v35 = vrot.slane %v2219_v6, %v5956_v36 }
 0xf37   :  { %v2248_v2 = vrot.slane %v2213_v27, %v5956_v36 }
 0xf39   :  { %v2270_v14 = vsel %vm1000_vm4, %v2248_v2, %v2269_v41  ;;  %v2225_v20 = vpop.xlane.xlu1 %2224  ;;  %v7076_v2 = vld [vmem:[#allocation47_spill] sm:$0xff] }
 0xf3a   :  { %v2216_v39 = vpop.xlane.xlu0 %2215  ;;  %v2264_v16 = vrot.slane %v2225_v20, %v5956_v36 }
 0xf3b   :  { %v2252_v59 = vrot.slane %v2216_v39, %v5956_v36  ;;  %v7077_v39 = vld [vmem:[#allocation53_spill] sm:$0xff] }
 0xf3d   :  { %v2271_v11 = vsel %vm1002_vm5, %v2252_v59, %v2270_v14  ;;  %v7078_v59 = vld [vmem:[#allocation48_spill] sm:$0xff] }
 0xf3e   :  { %v2222_v15 = vpop.xlane.xlu0 %2221  ;;  %v2272_v47 = vsel %vm1004_vm6, %v2256_v35, %v2271_v11  ;;  %v7079_v11 = vld [vmem:[#allocation54_spill] sm:$0xff] }
 0xf3f   :  { %v2260_v50 = vrot.slane %v2222_v15, %v5956_v36  ;;  %v7080_v15 = vld [vmem:[#allocation50_spill] sm:$0xff] }
 0xf41   :  { %v2273_v0 = vsel %vm1006_vm7, %v2260_v50, %v2272_v47  ;;  %v7081_v50 = vld [vmem:[#allocation49_spill] sm:$0xff] }
 0xf42   :  { %v2228_v56 = vpop.xlane.xlu0 %2227  ;;  %v2274_v63 = vsel %vm1008_vm8, %v2264_v16, %v2273_v0  ;;  %v7082_v0 = vld [vmem:[#allocation51_spill] sm:$0xff] }
 0xf43   :  { %v2268_v5 = vrot.slane %v2228_v56, %v5956_v36 }
 0xf45   :  { %v2275_v1 = vsel %vm1010_vm9, %v2268_v5, %v2274_v63  ;;  %v7083_v63 = vld [vmem:[#allocation55_spill] sm:$0xff] }
 0xf46   :  { %v2277_v17 = vsel %vm955_vm10, %v2275_v1, -1e+10 }
 0xf47   :  { %v2278_v32 = vsel %vm1014_vm11, %v2277_v17, -inf }
 0xf48   :  { %2279 = vmax.xlane.f32.xlu1 %v2278_v32 }
 0xfd5   :  { %v2280_v31 = vpop.xlane.xlu1 %2279 }
 0xfd6   :  { %v2281_v13 = vsub.f32 %v2277_v17, %v2280_v31  ;;  %v7084_v17 = vld [vmem:[#allocation56_spill] sm:$0xff] }
 0xfd8   :  { %v2282_v51 = vmul.f32 1.442695, %v2281_v13 }
 0xfda   :  { %5207 = vpow2.f32 %v2282_v51 }
 0xfe4   :  { %v5208_v53 = vpop.eup %5207 }
 0xfe5   :  { %v2284_v22 = vmul.f32 %v5222_v7, %v5208_v53 }
 0xfe7   :  { %v2285_v49 = vsel %vm1014_vm11, %v2284_v22, 0.0 }
 0xfe8   :  { %2286 = vadd.xlane.f32.xlu0 %v2285_v49  ;;  %v7085_v49 = vld [vmem:[#allocation57_spill] sm:$0xff] }
0x1075   :  { %v2287_v37 = vpop.xlane.xlu0 %2286 }
0x1076   :  { %5209 = vrcp.f32 %v2287_v37 }
0x1080   :  { %v5210_v27 = vpop.eup %5209 }
0x1081   :  { %v2289_v60 = vmul.f32 %v5210_v27, %v2284_v22  ;;  %v7086_v27 = vld [vmem:[#allocation58_spill] sm:$0xff] }
0x1083   :  { %v2300_v19 = vrot.slane %v2289_v60, %v7076_v2  ;;  %v2293_v6 = vrot.slane %v2289_v60, %v5894_v61  ;;  %v2328_v41 = vrot.slane %v2289_v60, %v7077_v39  ;;  %v2307_v14 = vrot.slane %v2289_v60, %v7078_v59 }
0x1084   :  { %v2342_v35 = vrot.slane %v2289_v60, %v7079_v11  ;;  %v2314_v20 = vrot.slane %v2289_v60, %v7080_v15  ;;  %v2321_v47 = vrot.slane %v2289_v60, %v7081_v50  ;;  %v2335_v16 = vrot.slane %v2289_v60, %v7082_v0 }
0x1085   :  { %2302 = vbcast.lane.b32.xlu0 %v2300_v19, 256  ;;  %2295 = vbcast.lane.b32.xlu1 %v2293_v6, 256 }
0x1089   :  { %2330 = vbcast.lane.b32.xlu0 %v2328_v41, 256  ;;  %2309 = vbcast.lane.b32.xlu1 %v2307_v14, 256 }
0x108d   :  { %2344 = vbcast.lane.b32.xlu0 %v2342_v35, 256  ;;  %2316 = vbcast.lane.b32.xlu1 %v2314_v20, 256 }
0x1091   :  { %2323 = vbcast.lane.b32.xlu1 %v2321_v47, 256 }
0x1095   :  { %2337 = vbcast.lane.b32.xlu1 %v2335_v16, 256 }
0x10f7   :  { %v2303_v56 = vpop.permute.xlu0 %2302  ;;  %v2296_v5 = vpop.permute.xlu1 %2295 }
0x10f8   :  { %v2347_v1 = vmul.f32 %v7083_v63, %v2303_v56  ;;  %v2346_v32 = vmul.f32 %v7084_v17, %v2296_v5  ;;  %v7087_v63 = vld [vmem:[#allocation59_spill] sm:$0xff]  ;;  %v7088_v17 = vld [vmem:[#allocation60_spill] sm:$0xff] }
0x10fa   :  { %v2361_v31 = vsel %vm151_vm1, %v2347_v1, 0.0  ;;  %v2354_v13 = vsel %vm151_vm1, %v2346_v32, 0.0 }
0x10fb   :  { %v2362_v51 = vrot.slane %v2361_v31, 4  ;;  %v2355_v53 = vrot.slane %v2354_v13, 4  ;;  %v2331_v7 = vpop.permute.xlu0 %2330  ;;  %v2310_v22 = vpop.permute.xlu1 %2309 }
0x10fc   :  { %v2351_v37 = vmul.f32 %v7085_v49, %v2331_v7  ;;  %v2348_v19 = vmul.f32 %v7086_v27, %v2310_v22 }
0x10fd   :  { %v2363_v60 = vadd.f32 %v2362_v51, %v2361_v31  ;;  %v2356_v6 = vadd.f32 %v2355_v53, %v2354_v13 }
0x10fe   :  { %v2389_v41 = vsel %vm151_vm1, %v2351_v37, 0.0  ;;  %v2368_v14 = vsel %vm151_vm1, %v2348_v19, 0.0  ;;  %v7089_v19 = vld [vmem:[#allocation61_spill] sm:$0xff] }
0x10ff   :  { %v2364_v35 = vrot.slane %v2363_v60, 2  ;;  %v2357_v20 = vrot.slane %v2356_v6, 2  ;;  %v2369_v47 = vrot.slane %v2368_v14, 4  ;;  %v2345_v16 = vpop.permute.xlu0 %2344  ;;  %v2317_v56 = vpop.permute.xlu1 %2316  ;;  %v2390_v5 = vrot.slane %v2389_v41, 4 }
0x1100   :  { %v2353_v1 = vmul.f32 %v7087_v63, %v2345_v16  ;;  %v2349_v32 = vmul.f32 %v7088_v17, %v2317_v56 }
0x1101   :  { %v2370_v11 = vadd.f32 %v2369_v47, %v2368_v14  ;;  %v2365_v13 = vadd.f32 %v2364_v35, %v2363_v60  ;;  %v2358_v51 = vadd.f32 %v2357_v20, %v2356_v6  ;;  %v2391_v49 = vadd.f32 %v2390_v5, %v2389_v41 }
0x1102   :  { %v2403_v7 = vsel %vm151_vm1, %v2353_v1, 0.0  ;;  %v2375_v31 = vsel %vm151_vm1, %v2349_v32, 0.0 }
0x1103   :  { %v2371_v53 = vrot.slane %v2370_v11, 2  ;;  %v2324_v22 = vpop.permute.xlu1 %2323  ;;  %v2404_v37 = vrot.slane %v2403_v7, 4  ;;  %v2376_v27 = vrot.slane %v2375_v31, 4  ;;  %v2366_v56 = vrot.slane %v2365_v13, 1 }
0x1104   :  { %v2350_v39 = vmul.f32 %v7089_v19, %v2324_v22  ;;  %v2359_v63 = vrot.slane %v2358_v51, 1  ;;  %v2392_v1 = vrot.slane %v2391_v49, 2 }
0x1105   :  { %v2372_v15 = vadd.f32 %v2371_v53, %v2370_v11  ;;  %v2405_v0 = vadd.f32 %v2404_v37, %v2403_v7  ;;  %v2377_v59 = vadd.f32 %v2376_v27, %v2375_v31  ;;  %v2367_v7 = vadd.f32 %v2366_v56, %v2365_v13 }
0x1106   :  { %v2382_v16 = vsel %vm151_vm1, %v2350_v39, 0.0  ;;  %v2360_v31 = vadd.f32 %v2359_v63, %v2358_v51  ;;  %v2393_v53 = vadd.f32 %v2392_v1, %v2391_v49 }
0x1107   :  { %v2383_v14 = vrot.slane %v2382_v16, 4  ;;  %v2338_v47 = vpop.permute.xlu1 %2337  ;;  %v2378_v17 = vrot.slane %v2377_v59, 2  ;;  %v2373_v6 = vrot.slane %v2372_v15, 1  ;;  %v2406_v41 = vrot.slane %v2405_v0, 2 }
0x1108   :  { %v2352_v60 = vmul.f32 %v6267_v18, %v2338_v47  ;;  %v2418_v18 = vsel %vm998_vm3, %v2367_v7, %v2360_v31 }
0x1109   :  { %v2384_v35 = vadd.f32 %v2383_v14, %v2382_v16  ;;  %v2379_v20 = vadd.f32 %v2378_v17, %v2377_v59  ;;  %v2374_v22 = vadd.f32 %v2373_v6, %v2372_v15  ;;  %v2407_v19 = vadd.f32 %v2406_v41, %v2405_v0 }
0x110a   :  { %v2396_v5 = vsel %vm151_vm1, %v2352_v60, 0.0  ;;  %v2394_v16 = vrot.slane %v2393_v53, 1 }
0x110b   :  { %v2385_v32 = vrot.slane %v2384_v35, 2  ;;  %v2397_v11 = vrot.slane %v2396_v5, 4  ;;  %v2380_v39 = vrot.slane %v2379_v20, 1  ;;  %v2419_v59 = vsel %vm1000_vm4, %v2374_v22, %v2418_v18 }
0x110c   :  { %v2408_v17 = vrot.slane %v2407_v19, 1  ;;  %v2395_v15 = vadd.f32 %v2394_v16, %v2393_v53 }
0x110d   :  { %v2386_v37 = vadd.f32 %v2385_v32, %v2384_v35  ;;  %v2398_v27 = vadd.f32 %v2397_v11, %v2396_v5  ;;  %v2381_v50 = vadd.f32 %v2380_v39, %v2379_v20 }
0x110e   :  { %v2409_v63 = vadd.f32 %v2408_v17, %v2407_v19 }
0x110f   :  { %v2387_v2 = vrot.slane %v2386_v37, 1  ;;  %v2399_v58 = vrot.slane %v2398_v27, 2  ;;  %v2420_v13 = vsel %vm1002_vm5, %v2381_v50, %v2419_v59 }
0x1111   :  { %v2388_v14 = vadd.f32 %v2387_v2, %v2386_v37  ;;  %v2400_v47 = vadd.f32 %v2399_v58, %v2398_v27 }
0x1113   :  { %v2421_v51 = vsel %vm1004_vm6, %v2388_v14, %v2420_v13  ;;  %v2401_v49 = vrot.slane %v2400_v47, 1 }
0x1114   :  { %v2422_v0 = vsel %vm1006_vm7, %v2395_v15, %v2421_v51 }
0x1115   :  { %v2402_v56 = vadd.f32 %v2401_v49, %v2400_v47 }
0x1117   :  { %v2423_v1 = vsel %vm1008_vm8, %v2402_v56, %v2422_v0 }
0x1118   :  { %v2424_v60 = vsel %vm1010_vm9, %v2409_v63, %v2423_v1 }
0x1119   :  { %4509 = vmatmul.mubr.msk.f32.vlgmr.msra.gmra.mrb[12].mxu1 %vm151_vm1, %v2424_v60 }
0x11ec   :  { %v2493_v6 = vpop.f32.mrb[12].mxu1 }
0x11ed   :  { %2499 = vrot.lane.b32.xlu1 %v2493_v6, %s5574_s29  ;;  %v2495_v58 = vpop.f32.mrb[13].mxu1 }
0x125f   :  { %v2500_v2 = vpop.permute.xlu1 %2499 }
0x1260   :  { %v2502_v50 = vadd.f32 %v2500_v2, %v6361_v30 }
0x1262   :  { %v2503_v35 = vadd.f32 %v2502_v50, %v6111_v38 }
0x1264   :  { %5211 = vtanh.f32 %v2503_v35 }
0x126e   :  { %v5212_v41 = vpop.eup %5211 }
0x126f   :  { %2506 = vrot.lane.b32.xlu0 %v5212_v41, %s5573_s28 }
0x12e1   :  { %v2507_v20 = vpop.permute.xlu0 %2506 }
0x12e2   :  { %4807 = vmatmul.mubr.msk.f32.vlgmr.msra.gmra.mrb[18].mxu0 %vm736_vm2, %v2507_v20 }
0x12e3   :  { %5428 = shalt.err (!%p6465_p4)  }
0x12e4   :  { %s6474_s0 = scalar_lea.hbm %s6985_s12, 256 }
0x12e5   :  { %p5430_p5 = scmp.ne.s32.totalorder %s6327_s15, %s6474_s0  ;;  %p5433_p6 = scmp.lt.u32.totalorder %s6336_s19, %s6474_s0 }
0x12e6   :  { %p5435_p9 = scmp.lt.u32.totalorder %s6474_s0, %s6327_s15 }
0x12e7   :  { %p5434_p7 = por %p5433_p6, %p5411_p11 }
0x12e9   :  { %p5436_p10 = por %p5435_p9, %p5434_p7 }
0x12eb   :  { %p5437_p12 = pnand %p5436_p10, %p5430_p5 }
0x12ed   :  { %5440 = shalt.err (!%p5437_p12)  }
0x12ee   :  { %1973 = dma.vmem_to_hbm [thread:$0]  %s6457_s2, 128, %s6327_s15, [#allocation3 + $0x1]  ;;  %2609 = vrot.lane.b32.xlu1 %v2493_v6, %s5573_s28  ;;  %2601 = vrot.lane.b32.xlu0 %v6361_v30, %s5572_s27 }
0x13b5   :  { %v2576_v5 = vpop.f32.mrb[18].mxu0 }
0x13b6   :  { %v2577_v32 = vadd.f32 %v6135_v57, %v2576_v5  ;;  %v4808_v11 = vpop.f32.mrb[19].mxu0 }
0x13b7   :  { %5548 = dma.done.wait [#allocation3], 128 }
0x13b8   :  { %5549 = vsyncadd [#allocation3], 4294967168  ;;  %2583 = vst [vmem:[#allocation2] sm:$0xff] %v2577_v32  ;;  %v7091_v7 = vld [vmem:[#allocation40_spill] sm:$0xff]  ;;  %2708 = vmatprep.mubr.f32.mxu0 %v7065_v52  ;;  %2611 = vrot.lane.b32.xlu1 %v2495_v58, %s5573_s28  ;;  %v2610_v30 = vpop.permute.xlu1 %2609  ;;  %v2599_v53 = vld [vmem:[#allocation6 + $0x10] sm:$0xff] }
0x13b9   :  { %5029 = vmatprep.subr.bf16.mxu0 %v7091_v7  ;;  %v7092_v31 = vld [vmem:[#allocation52_spill] sm:$0xff]  ;;  %2603 = vrot.lane.b32.xlu0 %v6367_v45, %s5572_s27  ;;  %v2602_v45 = vpop.permute.xlu0 %2601 }
0x13ba   :  { %5031 = vmatpush1.bf16.msra.mxu0 %v5850_v28  ;;  %5037 = vmatprep.subr.bf16.mxu1 %v7092_v31 }
0x13bb   :  { %5033 = vmatprep.subr.bf16.mxu0 %v5853_v29  ;;  %5039 = vmatpush1.bf16.msra.mxu1 %v6007_v62 }
0x13bc   :  { %5041 = vmatprep.subr.bf16.mxu1 %v6011_v4  ;;  %3115 = vmatprep.mubr.f32.mxu1 %v7065_v52 }
0x13be   :  { %5035 = vmatpush1.bf16.msra.mxu0 %v5864_v33 }
0x13bf   :  { %5043 = vmatpush1.bf16.msra.mxu1 %v6017_v12  ;;  %5052 = vmatprep.subr.bf16.mxu0 %v7066_v24 }
0x13c0   :  { %5045 = vmatprep.subr.bf16.mxu1 %v6023_v21 }
0x13c3   :  { %5047 = vmatpush1.bf16.msra.mxu1 %v6026_v26 }
0x13c4   :  { %5049 = vmatprep.subr.bf16.mxu1 %v6030_v43 }
0x13c7   :  { %5051 = vmatpush1.bf16.msra.mxu1 %v6032_v46 }
0x142a   :  { %v2612_v39 = vpop.permute.xlu1 %2611 }
0x142b   :  { %v2604_v22 = vpop.permute.xlu0 %2603  ;;  %v2613_v19 = vsel %vm1359_vm12, %v2610_v30, %v2612_v39 }
0x142c   :  { %v2605_v37 = vsel %vm151_vm1, %v2602_v45, %v2604_v22 }
0x142d   :  { %v2607_v27 = vadd.f32 %v2605_v37, %v2599_v53 }
0x142f   :  { %v2615_v18 = vadd.f32 %v2613_v19, %v2607_v27 }
0x1431   :  { %v2616_v16 = vadd.f32 %v6078_v54, %v2615_v18 }
0x1433   :  { %5223 = vtanh.f32 %v2616_v16  ;;  %v2617_v14 = vmul.f32 0.5, %v2616_v16 }
0x1435   :  { %5225 = vtanh.f32 %v2617_v14 }
0x143d   :  { %v5224_v59 = vpop.eup %5223 }
0x143e   :  { %2624 = vrot.lane.b32.xlu0 %v5224_v59, %s5572_s27 }
0x143f   :  { %v5226_v47 = vpop.eup %5225 }
0x1440   :  { %v2619_v17 = vmul.f32 0.5, %v5226_v47 }
0x1442   :  { %v2620_v13 = vadd.f32 0.5, %v2619_v17 }
0x1444   :  { %v2622_v15 = vmul.f32 %v2620_v13, %v6299_v25 }
0x14b0   :  { %v2625_v51 = vpop.permute.xlu0 %2624 }
0x14b1   :  { %v2627_v49 = vmul.f32 %v2625_v51, %v2620_v13 }
0x14b3   :  { %2629 = vrot.lane.b32.xlu1 %v2627_v49, %s5574_s29 }
0x1525   :  { %v2630_v56 = vpop.permute.xlu1 %2629 }
0x1526   :  { %v6517_v63 = vadd.f32 %v2630_v56, %v2622_v15 }
0x1528   :  { %5227 = vtanh.f32 %v6517_v63 }
0x1532   :  { %v5228_v0 = vpop.eup %5227 }
0x1533   :  { %2635 = vrot.lane.b32.xlu0 %v5228_v0, %s5572_s27 }
0x15a5   :  { %v2636_v1 = vpop.permute.xlu0 %2635 }
0x15a6   :  { %v2638_v60 = vmul.f32 %v2636_v1, %v2620_v13 }
0x15a8   :  { %2640 = vrot.lane.b32.xlu1 %v2638_v60, %s5574_s29 }
0x161a   :  { %v2641_v6 = vpop.permute.xlu1 %2640 }
0x161b   :  { %4511 = vmatmul.mubr.msk.f32.vlgmr.msra.gmra.mrb[20].mxu0 %vm736_vm2, %v2641_v6  ;;  %v7093_v6 = vld [vmem:[#allocation44_spill] sm:$0xff] }
0x161c   :  { %5054 = vmatpush3.bf16.msra.mxu0 %v6095_v44  ;;  %4817 = vmatprep.mubr.msk.f32.mxu0 %vm5569_vm0, %v7065_v52 }
0x161d   :  { %5055 = vmatprep.subr.bf16.mxu0 %v7066_v24 }
0x1620   :  { %5057 = vmatpush3.bf16.msra.mxu0 %v6107_v48 }
0x16ee   :  { %v6528_v25 = vpop.f32.mrb[20].mxu0 }
0x16ef   :  { %v2716_v58 = vcombine.high %v6528_v25, %v6528_v25  ;;  %v2723_v2 = vrot.slane %v6528_v25, %v5880_v55  ;;  %v6534_v50 = vpop.f32.mrb[21].mxu0 }
0x16f1   :  { %v2730_v35 = vrot.slane %v2716_v58, %v5880_v55  ;;  %v2731_v41 = vcombine.high %v2723_v2, %v2723_v2  ;;  %v2739_v20 = vrot.slane %v2723_v2, %v5880_v55 }
0x16f3   :  { %v2732_v5 = vcombine.high %v2730_v35, %v2730_v35  ;;  %v2746_v32 = vrot.slane %v2730_v35, %v5880_v55  ;;  %v2753_v11 = vrot.slane %v2731_v41, %v5880_v55  ;;  %v2768_v30 = vrot.slane %v2739_v20, %v5894_v61 }
0x16f4   :  { %v2761_v45 = vcombine.high %v2739_v20, %v2739_v20 }
0x16f5   :  { %v2760_v53 = vrot.slane %v2732_v5, %v5880_v55  ;;  %v2805_v39 = vadd.f32 %v2768_v30, %v5898_v3  ;;  %v2772_v22 = vrot.slane %v2753_v11, %v5894_v61  ;;  %v2784_v37 = vrot.slane %v2746_v32, %v5894_v61 }
0x16f6   :  { %v2776_v27 = vrot.slane %v2761_v45, %v5894_v61  ;;  %v2763_v19 = vcombine.high %v2753_v11, %v2753_v11  ;;  %v2762_v18 = vcombine.high %v2746_v32, %v2746_v32 }
0x16f7   :  { %5229 = vtanh.f32 %v2805_v39  ;;  %v2806_v16 = vadd.f32 %v2772_v22, %v5904_v9  ;;  %v2809_v59 = vadd.f32 %v2784_v37, %v5911_v23  ;;  %v2788_v14 = vrot.slane %v2760_v53, %v5894_v61 }
0x16f8   :  { %v2807_v47 = vadd.f32 %v2776_v27, %v5902_v8  ;;  %v2780_v17 = vrot.slane %v2763_v19, %v5894_v61  ;;  %v2792_v13 = vrot.slane %v2762_v18, %v5894_v61  ;;  %v2764_v51 = vcombine.high %v2760_v53, %v2760_v53 }
0x16f9   :  { %5231 = vtanh.f32 %v2806_v16  ;;  %v2810_v56 = vadd.f32 %v2788_v14, %v5918_v34 }
0x16fa   :  { %5233 = vtanh.f32 %v2807_v47  ;;  %v2808_v49 = vadd.f32 %v2780_v17, %v5906_v10  ;;  %v2811_v15 = vadd.f32 %v2792_v13, %v5927_v42  ;;  %v2796_v0 = vrot.slane %v2764_v51, %v5894_v61 }
0x16fb   :  { %5235 = vtanh.f32 %v2809_v59 }
0x16fc   :  { %5237 = vtanh.f32 %v2808_v49  ;;  %v2812_v1 = vadd.f32 %v2796_v0, %v5924_v40 }
0x16fd   :  { %5239 = vtanh.f32 %v2811_v15 }
0x16fe   :  { %5241 = vtanh.f32 %v2810_v56 }
0x16ff   :  { %5243 = vtanh.f32 %v2812_v1 }
0x1701   :  { %v5230_v60 = vpop.eup %5229 }
0x1702   :  { %v2821_v58 = vmul.f32 %v5230_v60, %v7093_v6 }
0x1703   :  { %v5232_v2 = vpop.eup %5231 }
0x1704   :  { %v5234_v35 = vpop.eup %5233  ;;  %v2829_v41 = vsel %vm736_vm2, %v2821_v58, 0.0  ;;  %v2822_v20 = vmul.f32 %v5232_v2, %v7093_v6 }
0x1705   :  { %v5236_v5 = vpop.eup %5235  ;;  %2830 = vadd.xlane.f32.xlu0 %v2829_v41  ;;  %v2823_v32 = vmul.f32 %v5234_v35, %v7093_v6 }
0x1706   :  { %v5238_v11 = vpop.eup %5237  ;;  %v2832_v30 = vsel %vm736_vm2, %v2822_v20, 0.0  ;;  %v2825_v45 = vmul.f32 %v5236_v5, %v7093_v6 }
0x1707   :  { %v5240_v53 = vpop.eup %5239  ;;  %2833 = vadd.xlane.f32.xlu1 %v2832_v30  ;;  %v2835_v39 = vsel %vm736_vm2, %v2823_v32, 0.0  ;;  %v2824_v22 = vmul.f32 %v5238_v11, %v7093_v6 }
0x1708   :  { %v5242_v37 = vpop.eup %5241  ;;  %v2841_v27 = vsel %vm736_vm2, %v2825_v45, 0.0  ;;  %v2827_v19 = vmul.f32 %v5240_v53, %v7093_v6 }
0x1709   :  { %2836 = vadd.xlane.f32.xlu0 %v2835_v39  ;;  %v2838_v18 = vsel %vm736_vm2, %v2824_v22, 0.0  ;;  %v2826_v16 = vmul.f32 %v5242_v37, %v7093_v6  ;;  %v5244_v59 = vpop.eup %5243 }
0x170a   :  { %v2847_v14 = vsel %vm736_vm2, %v2827_v19, 0.0  ;;  %v2828_v17 = vmul.f32 %v5244_v59, %v7093_v6 }
0x170b   :  { %2842 = vadd.xlane.f32.xlu1 %v2841_v27  ;;  %v2844_v47 = vsel %vm736_vm2, %v2826_v16, 0.0 }
0x170c   :  { %v2850_v13 = vsel %vm736_vm2, %v2828_v17, 0.0 }
0x170d   :  { %2839 = vadd.xlane.f32.xlu0 %v2838_v18  ;;  %v7094_v18 = vld [vmem:[#allocation46_spill] sm:$0xff] }
0x170f   :  { %2848 = vadd.xlane.f32.xlu1 %v2847_v14 }
0x1711   :  { %2845 = vadd.xlane.f32.xlu0 %v2844_v47 }
0x1715   :  { %2851 = vadd.xlane.f32.xlu0 %v2850_v13 }
0x1792   :  { %v2831_v51 = vpop.xlane.xlu0 %2830 }
0x1793   :  { %v2864_v0 = vrot.slane %v2831_v51, %v5956_v36 }
0x1794   :  { %v2834_v49 = vpop.xlane.xlu1 %2833 }
0x1795   :  { %v2868_v15 = vrot.slane %v2834_v49, %v5956_v36 }
0x1796   :  { %v2837_v56 = vpop.xlane.xlu0 %2836 }
0x1797   :  { %v2872_v1 = vrot.slane %v2837_v56, %v5956_v36  ;;  %v2893_v60 = vsel %vm998_vm3, %v2868_v15, %v2864_v0 }
0x1798   :  { %v2843_v58 = vpop.xlane.xlu1 %2842 }
0x1799   :  { %v2894_v41 = vsel %vm1000_vm4, %v2872_v1, %v2893_v60  ;;  %v2880_v5 = vrot.slane %v2843_v58, %v5956_v36  ;;  %v7095_v1 = vld [vmem:[#allocation47_spill] sm:$0xff] }
0x179a   :  { %v2840_v2 = vpop.xlane.xlu0 %2839 }
0x179b   :  { %v2876_v35 = vrot.slane %v2840_v2, %v5956_v36  ;;  %v7096_v2 = vld [vmem:[#allocation49_spill] sm:$0xff] }
0x179c   :  { %v2849_v11 = vpop.xlane.xlu1 %2848 }
0x179d   :  { %v2895_v20 = vsel %vm1002_vm5, %v2876_v35, %v2894_v41  ;;  %v2888_v39 = vrot.slane %v2849_v11, %v5956_v36  ;;  %v7097_v41 = vld [vmem:[#allocation48_spill] sm:$0xff]  ;;  %v7099_v11 = vld [vmem:[#allocation50_spill] sm:$0xff] }
0x179e   :  { %v2846_v32 = vpop.xlane.xlu0 %2845  ;;  %v2896_v45 = vsel %vm1004_vm6, %v2880_v5, %v2895_v20  ;;  %v7098_v5 = vld [vmem:[#allocation51_spill] sm:$0xff] }
0x179f   :  { %v2884_v30 = vrot.slane %v2846_v32, %v5956_v36 }
0x17a1   :  { %v2897_v53 = vsel %vm1006_vm7, %v2884_v30, %v2896_v45  ;;  %v7100_v45 = vld [vmem:[#allocation53_spill] sm:$0xff] }
0x17a2   :  { %v2852_v22 = vpop.xlane.xlu0 %2851  ;;  %v2898_v27 = vsel %vm1008_vm8, %v2888_v39, %v2897_v53  ;;  %v7101_v39 = vld [vmem:[#allocation54_spill] sm:$0xff] }
0x17a3   :  { %v2892_v37 = vrot.slane %v2852_v22, %v5956_v36 }
0x17a5   :  { %v2899_v19 = vsel %vm1010_vm9, %v2892_v37, %v2898_v27 }
0x17a6   :  { %v2901_v16 = vsel %vm955_vm10, %v2899_v19, -1e+10  ;;  %v7102_v19 = vld [vmem:[#allocation35_spill] sm:$0xff] }
0x17a7   :  { %v2902_v59 = vsel %vm1014_vm11, %v2901_v16, -inf }
0x17a8   :  { %2903 = vmax.xlane.f32.xlu1 %v2902_v59  ;;  %v7103_v59 = vld [vmem:[#allocation34_spill] sm:$0xff] }
0x1835   :  { %v2904_v14 = vpop.xlane.xlu1 %2903 }
0x1836   :  { %v2905_v47 = vsub.f32 %v2901_v16, %v2904_v14 }
0x1838   :  { %v2906_v17 = vmul.f32 1.442695, %v2905_v47 }
0x183a   :  { %5245 = vpow2.f32 %v2906_v17 }
0x1844   :  { %v5246_v13 = vpop.eup %5245 }
0x1845   :  { %v2908_v51 = vmul.f32 %v5246_v13, %v7094_v18 }
0x1847   :  { %v2909_v49 = vsel %vm1014_vm11, %v2908_v51, 0.0 }
0x1848   :  { %2910 = vadd.xlane.f32.xlu0 %v2909_v49 }
0x18d5   :  { %v2911_v15 = vpop.xlane.xlu0 %2910 }
0x18d6   :  { %5247 = vrcp.f32 %v2911_v15 }
0x18e0   :  { %v5248_v56 = vpop.eup %5247 }
0x18e1   :  { %v2913_v0 = vmul.f32 %v5248_v56, %v2908_v51  ;;  %v7104_v56 = vld [vmem:[#allocation38_spill] sm:$0xff] }
0x18e3   :  { %v2924_v60 = vrot.slane %v2913_v0, %v7095_v1  ;;  %v2917_v58 = vrot.slane %v2913_v0, %v5894_v61  ;;  %v2945_v35 = vrot.slane %v2913_v0, %v7096_v2  ;;  %v2931_v20 = vrot.slane %v2913_v0, %v7097_v41 }
0x18e4   :  { %v2959_v32 = vrot.slane %v2913_v0, %v7098_v5  ;;  %v2938_v30 = vrot.slane %v2913_v0, %v7099_v11  ;;  %v2952_v53 = vrot.slane %v2913_v0, %v7100_v45  ;;  %v2966_v22 = vrot.slane %v2913_v0, %v7101_v39  ;;  %v7107_v39 = vld [vmem:[#allocation37_spill] sm:$0xff]  ;;  %v7108_v5 = vld [vmem:[#allocation39_spill] sm:$0xff] }
0x18e5   :  { %2926 = vbcast.lane.b32.xlu0 %v2924_v60, 256  ;;  %2919 = vbcast.lane.b32.xlu1 %v2917_v58, 256  ;;  %v7105_v58 = vld [vmem:[#allocation36_spill] sm:$0xff] }
0x18e9   :  { %2947 = vbcast.lane.b32.xlu0 %v2945_v35, 256  ;;  %2933 = vbcast.lane.b32.xlu1 %v2931_v20, 256 }
0x18ed   :  { %2961 = vbcast.lane.b32.xlu0 %v2959_v32, 256  ;;  %2940 = vbcast.lane.b32.xlu1 %v2938_v30, 256 }
0x18f1   :  { %2954 = vbcast.lane.b32.xlu1 %v2952_v53, 256 }
0x18f5   :  { %2968 = vbcast.lane.b32.xlu1 %v2966_v22, 256 }
0x1957   :  { %v2927_v37 = vpop.permute.xlu0 %2926  ;;  %v2920_v27 = vpop.permute.xlu1 %2919 }
0x1958   :  { %v2971_v16 = vmul.f32 %v2927_v37, %v7102_v19  ;;  %v2970_v14 = vmul.f32 %v2920_v27, %v7103_v59  ;;  %v7106_v59 = vld [vmem:[#allocation41_spill] sm:$0xff] }
0x195a   :  { %v2985_v47 = vsel %vm151_vm1, %v2971_v16, 0.0  ;;  %v2978_v17 = vsel %vm151_vm1, %v2970_v14, 0.0 }
0x195b   :  { %v2986_v13 = vrot.slane %v2985_v47, 4  ;;  %v2979_v51 = vrot.slane %v2978_v17, 4  ;;  %v2948_v49 = vpop.permute.xlu0 %2947  ;;  %v2934_v15 = vpop.permute.xlu1 %2933 }
0x195c   :  { %v2974_v60 = vmul.f32 %v2948_v49, %v7104_v56  ;;  %v2972_v35 = vmul.f32 %v2934_v15, %v7105_v58 }
0x195d   :  { %v2987_v0 = vadd.f32 %v2986_v13, %v2985_v47  ;;  %v2980_v20 = vadd.f32 %v2979_v51, %v2978_v17 }
0x195e   :  { %v3006_v32 = vsel %vm151_vm1, %v2974_v60, 0.0  ;;  %v2992_v30 = vsel %vm151_vm1, %v2972_v35, 0.0 }
0x195f   :  { %v2988_v53 = vrot.slane %v2987_v0, 2  ;;  %v2981_v22 = vrot.slane %v2980_v20, 2  ;;  %v3007_v37 = vrot.slane %v3006_v32, 4  ;;  %v2993_v27 = vrot.slane %v2992_v30, 4  ;;  %v2962_v16 = vpop.permute.xlu0 %2961  ;;  %v2941_v14 = vpop.permute.xlu1 %2940 }
0x1960   :  { %v2976_v19 = vmul.f32 %v2962_v16, %v7106_v59  ;;  %v2973_v45 = vmul.f32 %v2941_v14, %v7107_v39 }
0x1961   :  { %v2989_v11 = vadd.f32 %v2988_v53, %v2987_v0  ;;  %v3008_v49 = vadd.f32 %v3007_v37, %v3006_v32  ;;  %v2994_v56 = vadd.f32 %v2993_v27, %v2992_v30  ;;  %v2982_v15 = vadd.f32 %v2981_v22, %v2980_v20  ;;  %v7109_v22 = vld [vmem:[#allocation42_spill] sm:$0xff] }
0x1962   :  { %v3020_v47 = vsel %vm151_vm1, %v2976_v19, 0.0  ;;  %v2999_v17 = vsel %vm151_vm1, %v2973_v45, 0.0 }
0x1963   :  { %v2995_v13 = vrot.slane %v2994_v56, 2  ;;  %v2955_v51 = vpop.permute.xlu1 %2954  ;;  %v3009_v60 = vrot.slane %v3008_v49, 2  ;;  %v3021_v35 = vrot.slane %v3020_v47, 4  ;;  %v3000_v58 = vrot.slane %v2999_v17, 4 }
0x1964   :  { %v2975_v41 = vmul.f32 %v2955_v51, %v7108_v5  ;;  %v2990_v2 = vrot.slane %v2989_v11, 1  ;;  %v2983_v16 = vrot.slane %v2982_v15, 1 }
0x1965   :  { %v2996_v1 = vadd.f32 %v2995_v13, %v2994_v56  ;;  %v3022_v59 = vadd.f32 %v3021_v35, %v3020_v47  ;;  %v3001_v14 = vadd.f32 %v3000_v58, %v2999_v17  ;;  %v3010_v19 = vadd.f32 %v3009_v60, %v3008_v49 }
0x1966   :  { %v3013_v0 = vsel %vm151_vm1, %v2975_v41, 0.0  ;;  %v2991_v39 = vadd.f32 %v2990_v2, %v2989_v11  ;;  %v2984_v18 = vadd.f32 %v2983_v16, %v2982_v15 }
0x1967   :  { %v2997_v32 = vrot.slane %v2996_v1, 1  ;;  %v3014_v20 = vrot.slane %v3013_v0, 4  ;;  %v2969_v30 = vpop.permute.xlu1 %2968  ;;  %v3023_v53 = vrot.slane %v3022_v59, 2  ;;  %v3002_v45 = vrot.slane %v3001_v14, 2 }
0x1968   :  { %v2977_v37 = vmul.f32 %v2969_v30, %v7109_v22  ;;  %v3011_v58 = vrot.slane %v3010_v19, 1  ;;  %v3042_v49 = vsel %vm998_vm3, %v2991_v39, %v2984_v18 }
0x1969   :  { %v3015_v27 = vadd.f32 %v3014_v20, %v3013_v0  ;;  %v3003_v36 = vadd.f32 %v3002_v45, %v3001_v14  ;;  %v2998_v56 = vadd.f32 %v2997_v32, %v2996_v1  ;;  %v3024_v17 = vadd.f32 %v3023_v53, %v3022_v59 }
0x196a   :  { %v3027_v51 = vsel %vm151_vm1, %v2977_v37, 0.0  ;;  %v3012_v2 = vadd.f32 %v3011_v58, %v3010_v19 }
0x196b   :  { %v3016_v13 = vrot.slane %v3015_v27, 2  ;;  %v3028_v47 = vrot.slane %v3027_v51, 4  ;;  %v3004_v41 = vrot.slane %v3003_v36, 1  ;;  %v3043_v0 = vsel %vm1000_vm4, %v2998_v56, %v3042_v49 }
0x196c   :  { %v3025_v11 = vrot.slane %v3024_v17, 1 }
0x196d   :  { %v3017_v35 = vadd.f32 %v3016_v13, %v3015_v27  ;;  %v3029_v5 = vadd.f32 %v3028_v47, %v3027_v51  ;;  %v3005_v6 = vadd.f32 %v3004_v41, %v3003_v36 }
0x196e   :  { %v3026_v20 = vadd.f32 %v3025_v11, %v3024_v17 }
0x196f   :  { %v3018_v60 = vrot.slane %v3017_v35, 1  ;;  %v3030_v40 = vrot.slane %v3029_v5, 2  ;;  %v3044_v15 = vsel %vm1002_vm5, %v3005_v6, %v3043_v0 }
0x1970   :  { %v3045_v14 = vsel %vm1004_vm6, %v3012_v2, %v3044_v15 }
0x1971   :  { %v3031_v16 = vadd.f32 %v3030_v40, %v3029_v5  ;;  %v3019_v1 = vadd.f32 %v3018_v60, %v3017_v35 }
0x1973   :  { %v3032_v32 = vrot.slane %v3031_v16, 1  ;;  %v3046_v59 = vsel %vm1006_vm7, %v3019_v1, %v3045_v14 }
0x1974   :  { %v3047_v18 = vsel %vm1008_vm8, %v3026_v20, %v3046_v59 }
0x1975   :  { %v3033_v36 = vadd.f32 %v3032_v32, %v3031_v16 }
0x1977   :  { %v3048_v39 = vsel %vm1010_vm9, %v3033_v36, %v3047_v18 }
0x1978   :  { %4512 = vmatmul.mubr.msk.f32.vlgmr.msra.gmra.mrb[14].mxu1 %vm151_vm1, %v3048_v39 }
0x1a4b   :  { %v3117_v30 = vpop.f32.mrb[14].mxu1 }
0x1a4c   :  { %3123 = vrot.lane.b32.xlu0 %v3117_v30, %s5574_s29  ;;  %v3119_v6 = vpop.f32.mrb[15].mxu1 }
0x1abe   :  { %v3124_v40 = vpop.permute.xlu0 %3123 }
0x1abf   :  { %v3126_v5 = vadd.f32 %v3124_v40, %v6528_v25 }
0x1ac1   :  { %v3127_v19 = vadd.f32 %v3126_v5, %v6111_v38 }
0x1ac3   :  { %5249 = vtanh.f32 %v3127_v19 }
0x1acd   :  { %v5250_v53 = vpop.eup %5249 }
0x1ace   :  { %3130 = vrot.lane.b32.xlu1 %v5250_v53, %s5573_s28 }
0x1b40   :  { %v3131_v45 = vpop.permute.xlu1 %3130 }
0x1b41   :  { %4818 = vmatmul.mubr.msk.f32.vlgmr.msra.gmra.mrb[22].mxu0 %vm736_vm2, %v3131_v45 }
0x1b42   :  { %5453 = shalt.err (!%p6318_p8)  }
0x1b43   :  { %s6635_s15 = scalar_lea.hbm %s6985_s12, 384  ;;  %p5457_p13 = scmp.lt.u32.totalorder %s6474_s0, %s6985_s12 }
0x1b44   :  { %p5455_p11 = scmp.ne.s32.totalorder %s6474_s0, %s6635_s15  ;;  %p5458_p0 = scmp.lt.u32.totalorder %s6336_s19, %s6635_s15 }
0x1b45   :  { %p5460_p2 = scmp.lt.u32.totalorder %s6635_s15, %s6474_s0 }
0x1b46   :  { %p5459_p1 = por %p5458_p0, %p5457_p13 }
0x1b48   :  { %p5461_p3 = por %p5460_p2, %p5459_p1 }
0x1b4a   :  { %p5462_p5 = pnand %p5461_p3, %p5455_p11 }
0x1b4c   :  { %5465 = shalt.err (!%p5462_p5)  }
0x1b4d   :  { %2597 = dma.vmem_to_hbm [thread:$0]  %s6309_s13, 128, %s6474_s0, [#allocation3]  ;;  %3232 = vrot.lane.b32.xlu1 %v3117_v30, %s5573_s28  ;;  %3224 = vrot.lane.b32.xlu0 %v6528_v25, %s5572_s27 }
0x1c14   :  { %v3200_v37 = vpop.f32.mrb[22].mxu0 }
0x1c15   :  { %v3201_v27 = vadd.f32 %v6135_v57, %v3200_v37  ;;  %v4819_v51 = vpop.f32.mrb[23].mxu0 }
0x1c16   :  { %5550 = dma.done.wait [#allocation3 + $0x1], 128 }
0x1c17   :  { %5551 = vsyncadd [#allocation3 + $0x1], 4294967168  ;;  %3206 = vst [vmem:[#allocation2 + $0x8] sm:$0xff] %v3201_v27  ;;  %5059 = vmatprep.subr.bf16.mxu0 %v7091_v7  ;;  %3331 = vmatprep.mubr.f32.mxu0 %v7065_v52  ;;  %v3233_v25 = vpop.permute.xlu1 %3232  ;;  %v3222_v56 = vld [vmem:[#allocation6 + $0x18] sm:$0xff] }
0x1c18   :  { %5061 = vmatpush1.bf16.msra.mxu0 %v5850_v28  ;;  %5067 = vmatprep.subr.bf16.mxu1 %v7092_v31 }
0x1c19   :  { %5063 = vmatprep.subr.bf16.mxu0 %v5853_v29  ;;  %5069 = vmatpush1.bf16.msra.mxu1 %v6007_v62 }
0x1c1a   :  { %3234 = vrot.lane.b32.xlu1 %v3119_v6, %s5573_s28  ;;  %3226 = vrot.lane.b32.xlu0 %v6534_v50, %s5572_s27  ;;  %v3225_v50 = vpop.permute.xlu0 %3224 }
0x1c1b   :  { %5071 = vmatprep.subr.bf16.mxu1 %v6011_v4  ;;  %3738 = vmatprep.mubr.f32.mxu1 %v7065_v52 }
0x1c1c   :  { %5065 = vmatpush1.bf16.msra.mxu0 %v5864_v33 }
0x1c1d   :  { %5073 = vmatpush1.bf16.msra.mxu1 %v6017_v12  ;;  %5082 = vmatprep.subr.bf16.mxu0 %v7066_v24 }
0x1c1e   :  { %5075 = vmatprep.subr.bf16.mxu1 %v6023_v21 }
0x1c21   :  { %5077 = vmatpush1.bf16.msra.mxu1 %v6026_v26 }
0x1c22   :  { %5079 = vmatprep.subr.bf16.mxu1 %v6030_v43 }
0x1c25   :  { %5081 = vmatpush1.bf16.msra.mxu1 %v6032_v46 }
0x1c8c   :  { %v3235_v13 = vpop.permute.xlu1 %3234  ;;  %v3227_v47 = vpop.permute.xlu0 %3226 }
0x1c8d   :  { %v3228_v58 = vsel %vm151_vm1, %v3225_v50, %v3227_v47  ;;  %v3236_v41 = vsel %vm1359_vm12, %v3233_v25, %v3235_v13 }
0x1c8e   :  { %v3230_v17 = vadd.f32 %v3228_v58, %v3222_v56 }
0x1c90   :  { %v3238_v35 = vadd.f32 %v3236_v41, %v3230_v17 }
0x1c92   :  { %v3239_v49 = vadd.f32 %v6078_v54, %v3238_v35 }
0x1c94   :  { %5251 = vtanh.f32 %v3239_v49  ;;  %v3240_v0 = vmul.f32 0.5, %v3239_v49 }
0x1c96   :  { %5253 = vtanh.f32 %v3240_v0 }
0x1c9e   :  { %v5252_v60 = vpop.eup %5251 }
0x1c9f   :  { %3247 = vrot.lane.b32.xlu0 %v5252_v60, %s5572_s27 }
0x1ca0   :  { %v5254_v2 = vpop.eup %5253 }
0x1ca1   :  { %v3242_v11 = vmul.f32 0.5, %v5254_v2 }
0x1ca3   :  { %v3243_v15 = vadd.f32 0.5, %v3242_v11 }
0x1ca5   :  { %v3245_v14 = vmul.f32 %v3243_v15, %v6517_v63 }
0x1d11   :  { %v3248_v16 = vpop.permute.xlu0 %3247 }
0x1d12   :  { %v3250_v1 = vmul.f32 %v3248_v16, %v3243_v15 }
0x1d14   :  { %3252 = vrot.lane.b32.xlu1 %v3250_v1, %s5574_s29 }
0x1d86   :  { %v3253_v32 = vpop.permute.xlu1 %3252 }
0x1d87   :  { %v6677_v59 = vadd.f32 %v3253_v32, %v3245_v14 }
0x1d89   :  { %5255 = vtanh.f32 %v6677_v59 }
0x1d93   :  { %v5256_v20 = vpop.eup %5255 }
0x1d94   :  { %3258 = vrot.lane.b32.xlu0 %v5256_v20, %s5572_s27  ;;  %v7110_v20 = vld [vmem:[#allocation43_spill] sm:$0xff] }
0x1e06   :  { %v3259_v36 = vpop.permute.xlu0 %3258 }
0x1e07   :  { %v3261_v18 = vmul.f32 %v3259_v36, %v3243_v15 }
0x1e09   :  { %3263 = vrot.lane.b32.xlu1 %v3261_v18, %s5574_s29 }
0x1e7b   :  { %v3264_v39 = vpop.permute.xlu1 %3263 }
0x1e7c   :  { %4514 = vmatmul.mubr.msk.f32.vlgmr.msra.gmra.mrb[24].mxu0 %vm736_vm2, %v3264_v39  ;;  %v7111_v39 = vld [vmem:[#allocation44_spill] sm:$0xff] }
0x1e7d   :  { %5084 = vmatpush3.bf16.msra.mxu0 %v6095_v44  ;;  %4828 = vmatprep.mubr.msk.f32.mxu0 %vm5569_vm0, %v7065_v52 }
0x1e7e   :  { %5085 = vmatprep.subr.bf16.mxu0 %v7066_v24 }
0x1e81   :  { %5087 = vmatpush3.bf16.msra.mxu0 %v6107_v48 }
0x1f4f   :  { %v6688_v63 = vpop.f32.mrb[24].mxu0 }
0x1f50   :  { %v3339_v30 = vcombine.high %v6688_v63, %v6688_v63  ;;  %v3346_v6 = vrot.slane %v6688_v63, %v5880_v55  ;;  %v6694_v40 = vpop.f32.mrb[25].mxu0 }
0x1f52   :  { %v3353_v5 = vrot.slane %v3339_v30, %v5880_v55  ;;  %v3354_v19 = vcombine.high %v3346_v6, %v3346_v6  ;;  %v3362_v53 = vrot.slane %v3346_v6, %v5880_v55 }
0x1f54   :  { %v3355_v45 = vcombine.high %v3353_v5, %v3353_v5  ;;  %v3369_v37 = vrot.slane %v3353_v5, %v5880_v55  ;;  %v3376_v27 = vrot.slane %v3354_v19, %v5880_v55  ;;  %v3391_v51 = vrot.slane %v3362_v53, %v5894_v61 }
0x1f55   :  { %v3384_v25 = vcombine.high %v3362_v53, %v3362_v53 }
0x1f56   :  { %v3383_v50 = vrot.slane %v3355_v45, %v5880_v55  ;;  %v3428_v56 = vadd.f32 %v3391_v51, %v5898_v3  ;;  %v3395_v13 = vrot.slane %v3376_v27, %v5894_v61  ;;  %v3407_v47 = vrot.slane %v3369_v37, %v5894_v61 }
0x1f57   :  { %v3399_v58 = vrot.slane %v3384_v25, %v5894_v61  ;;  %v3386_v17 = vcombine.high %v3376_v27, %v3376_v27  ;;  %v3385_v41 = vcombine.high %v3369_v37, %v3369_v37 }
0x1f58   :  { %5257 = vtanh.f32 %v3428_v56  ;;  %v3429_v35 = vadd.f32 %v3395_v13, %v5904_v9  ;;  %v3432_v49 = vadd.f32 %v3407_v47, %v5911_v23  ;;  %v3411_v60 = vrot.slane %v3383_v50, %v5894_v61 }
0x1f59   :  { %v3430_v0 = vadd.f32 %v3399_v58, %v5902_v8  ;;  %v3403_v2 = vrot.slane %v3386_v17, %v5894_v61  ;;  %v3415_v11 = vrot.slane %v3385_v41, %v5894_v61  ;;  %v3387_v15 = vcombine.high %v3383_v50, %v3383_v50 }
0x1f5a   :  { %5259 = vtanh.f32 %v3429_v35  ;;  %v3433_v14 = vadd.f32 %v3411_v60, %v5918_v34 }
0x1f5b   :  { %5261 = vtanh.f32 %v3430_v0  ;;  %v3431_v16 = vadd.f32 %v3403_v2, %v5906_v10  ;;  %v3434_v1 = vadd.f32 %v3415_v11, %v5927_v42  ;;  %v3419_v32 = vrot.slane %v3387_v15, %v5894_v61 }
0x1f5c   :  { %5263 = vtanh.f32 %v3432_v49 }
0x1f5d   :  { %5265 = vtanh.f32 %v3431_v16  ;;  %v3435_v36 = vadd.f32 %v3419_v32, %v7110_v20 }
0x1f5e   :  { %5267 = vtanh.f32 %v3434_v1  ;;  %v7112_v1 = vld [vmem:[#allocation45_spill] sm:$0xff] }
0x1f5f   :  { %5269 = vtanh.f32 %v3433_v14 }
0x1f60   :  { %5271 = vtanh.f32 %v3435_v36 }
0x1f62   :  { %v5258_v18 = vpop.eup %5257 }
0x1f63   :  { %v3444_v30 = vmul.f32 %v5258_v18, %v7111_v39 }
0x1f64   :  { %v5260_v6 = vpop.eup %5259 }
0x1f65   :  { %v5262_v5 = vpop.eup %5261  ;;  %v3452_v19 = vsel %vm736_vm2, %v3444_v30, 0.0  ;;  %v3445_v53 = vmul.f32 %v5260_v6, %v7111_v39 }
0x1f66   :  { %v5264_v45 = vpop.eup %5263  ;;  %3453 = vadd.xlane.f32.xlu0 %v3452_v19  ;;  %v3446_v37 = vmul.f32 %v5262_v5, %v7111_v39 }
0x1f67   :  { %v5266_v27 = vpop.eup %5265  ;;  %v3455_v51 = vsel %vm736_vm2, %v3445_v53, 0.0  ;;  %v3448_v25 = vmul.f32 %v5264_v45, %v7111_v39 }
0x1f68   :  { %v5268_v50 = vpop.eup %5267  ;;  %3456 = vadd.xlane.f32.xlu1 %v3455_v51  ;;  %v3458_v56 = vsel %vm736_vm2, %v3446_v37, 0.0  ;;  %v3447_v13 = vmul.f32 %v5266_v27, %v7111_v39 }
0x1f69   :  { %v5270_v47 = vpop.eup %5269  ;;  %v3464_v58 = vsel %vm736_vm2, %v3448_v25, 0.0  ;;  %v3450_v17 = vmul.f32 %v5268_v50, %v7111_v39 }
0x1f6a   :  { %3459 = vadd.xlane.f32.xlu0 %v3458_v56  ;;  %v3461_v41 = vsel %vm736_vm2, %v3447_v13, 0.0  ;;  %v3449_v35 = vmul.f32 %v5270_v47, %v7111_v39  ;;  %v5272_v49 = vpop.eup %5271 }
0x1f6b   :  { %v3470_v60 = vsel %vm736_vm2, %v3450_v17, 0.0  ;;  %v3451_v2 = vmul.f32 %v5272_v49, %v7111_v39 }
0x1f6c   :  { %3465 = vadd.xlane.f32.xlu1 %v3464_v58  ;;  %v3467_v0 = vsel %vm736_vm2, %v3449_v35, 0.0  ;;  %v7113_v35 = vld [vmem:[#allocation46_spill] sm:$0xff] }
0x1f6d   :  { %v3473_v11 = vsel %vm736_vm2, %v3451_v2, 0.0 }
0x1f6e   :  { %3462 = vadd.xlane.f32.xlu0 %v3461_v41 }
0x1f70   :  { %3471 = vadd.xlane.f32.xlu1 %v3470_v60 }
0x1f72   :  { %3468 = vadd.xlane.f32.xlu0 %v3467_v0 }
0x1f76   :  { %3474 = vadd.xlane.f32.xlu0 %v3473_v11 }
0x1ff3   :  { %v3454_v15 = vpop.xlane.xlu0 %3453 }
0x1ff4   :  { %v3487_v36 = vrot.slane %v3454_v15, %v7112_v1 }
0x1ff5   :  { %v3457_v16 = vpop.xlane.xlu1 %3456 }
0x1ff6   :  { %v3491_v14 = vrot.slane %v3457_v16, %v7112_v1 }
0x1ff7   :  { %v3460_v32 = vpop.xlane.xlu0 %3459 }
0x1ff8   :  { %v3495_v18 = vrot.slane %v3460_v32, %v7112_v1  ;;  %v3516_v30 = vsel %vm998_vm3, %v3491_v14, %v3487_v36 }
0x1ff9   :  { %v3466_v6 = vpop.xlane.xlu1 %3465 }
0x1ffa   :  { %v3517_v53 = vsel %vm1000_vm4, %v3495_v18, %v3516_v30  ;;  %v3503_v37 = vrot.slane %v3466_v6, %v7112_v1  ;;  %v7114_v30 = vld [vmem:[#allocation47_spill] sm:$0xff] }
0x1ffb   :  { %v3463_v5 = vpop.xlane.xlu0 %3462 }
0x1ffc   :  { %v3499_v19 = vrot.slane %v3463_v5, %v7112_v1 }
0x1ffd   :  { %v3472_v51 = vpop.xlane.xlu1 %3471 }
0x1ffe   :  { %v3518_v45 = vsel %vm1002_vm5, %v3499_v19, %v3517_v53  ;;  %v3511_v13 = vrot.slane %v3472_v51, %v7112_v1  ;;  %v7115_v19 = vld [vmem:[#allocation49_spill] sm:$0xff] }
0x1fff   :  { %v3469_v27 = vpop.xlane.xlu0 %3468  ;;  %v3519_v50 = vsel %vm1004_vm6, %v3503_v37, %v3518_v45  ;;  %v7116_v45 = vld [vmem:[#allocation48_spill] sm:$0xff] }
0x2000   :  { %v3507_v25 = vrot.slane %v3469_v27, %v7112_v1  ;;  %v7117_v27 = vld [vmem:[#allocation51_spill] sm:$0xff] }
0x2002   :  { %v3520_v56 = vsel %vm1006_vm7, %v3507_v25, %v3519_v50  ;;  %v7118_v25 = vld [vmem:[#allocation50_spill] sm:$0xff] }
0x2003   :  { %v3475_v47 = vpop.xlane.xlu0 %3474  ;;  %v3521_v17 = vsel %vm1008_vm8, %v3511_v13, %v3520_v56  ;;  %v7119_v56 = vld [vmem:[#allocation53_spill] sm:$0xff] }
0x2004   :  { %v3515_v58 = vrot.slane %v3475_v47, %v7112_v1  ;;  %v7120_v47 = vld [vmem:[#allocation54_spill] sm:$0xff] }
0x2006   :  { %v3522_v41 = vsel %vm1010_vm9, %v3515_v58, %v3521_v17 }
0x2007   :  { %v3524_v49 = vsel %vm955_vm10, %v3522_v41, -1e+10 }
0x2008   :  { %v3525_v60 = vsel %vm1014_vm11, %v3524_v49, -inf }
0x2009   :  { %3526 = vmax.xlane.f32.xlu1 %v3525_v60 }
0x2096   :  { %v3527_v0 = vpop.xlane.xlu1 %3526 }
0x2097   :  { %v3528_v2 = vsub.f32 %v3524_v49, %v3527_v0  ;;  %v7121_v49 = vld [vmem:[#allocation35_spill] sm:$0xff]  ;;  %v7122_v0 = vld [vmem:[#allocation34_spill] sm:$0xff] }
0x2099   :  { %v3529_v11 = vmul.f32 1.442695, %v3528_v2 }
0x209b   :  { %5273 = vpow2.f32 %v3529_v11 }
0x20a5   :  { %v5274_v15 = vpop.eup %5273 }
0x20a6   :  { %v3531_v16 = vmul.f32 %v5274_v15, %v7113_v35 }
0x20a8   :  { %v3532_v14 = vsel %vm1014_vm11, %v3531_v16, 0.0 }
0x20a9   :  { %3533 = vadd.xlane.f32.xlu0 %v3532_v14 }
0x2136   :  { %v3534_v32 = vpop.xlane.xlu0 %3533 }
0x2137   :  { %5275 = vrcp.f32 %v3534_v32 }
0x2141   :  { %v5276_v36 = vpop.eup %5275 }
0x2142   :  { %v3536_v18 = vmul.f32 %v5276_v36, %v3531_v16 }
0x2144   :  { %v3547_v6 = vrot.slane %v3536_v18, %v7114_v30  ;;  %v3540_v5 = vrot.slane %v3536_v18, %v5894_v61  ;;  %v3568_v53 = vrot.slane %v3536_v18, %v7115_v19  ;;  %v3554_v37 = vrot.slane %v3536_v18, %v7116_v45  ;;  %v7127_v45 = vld [vmem:[#allocation39_spill] sm:$0xff] }
0x2145   :  { %v3582_v51 = vrot.slane %v3536_v18, %v7117_v27  ;;  %v3561_v50 = vrot.slane %v3536_v18, %v7118_v25  ;;  %v3575_v13 = vrot.slane %v3536_v18, %v7119_v56  ;;  %v3589_v58 = vrot.slane %v3536_v18, %v7120_v47  ;;  %v7126_v56 = vld [vmem:[#allocation37_spill] sm:$0xff] }
0x2146   :  { %3549 = vbcast.lane.b32.xlu0 %v3547_v6, 256  ;;  %3542 = vbcast.lane.b32.xlu1 %v3540_v5, 256  ;;  %v7123_v6 = vld [vmem:[#allocation38_spill] sm:$0xff] }
0x214a   :  { %3570 = vbcast.lane.b32.xlu0 %v3568_v53, 256  ;;  %3556 = vbcast.lane.b32.xlu1 %v3554_v37, 256  ;;  %v7124_v53 = vld [vmem:[#allocation36_spill] sm:$0xff] }
0x214e   :  { %3584 = vbcast.lane.b32.xlu0 %v3582_v51, 256  ;;  %3563 = vbcast.lane.b32.xlu1 %v3561_v50, 256 }
0x2152   :  { %3577 = vbcast.lane.b32.xlu1 %v3575_v13, 256 }
0x2156   :  { %3591 = vbcast.lane.b32.xlu1 %v3589_v58, 256 }
0x21b8   :  { %v3550_v17 = vpop.permute.xlu0 %3549  ;;  %v3543_v41 = vpop.permute.xlu1 %3542 }
0x21b9   :  { %v3594_v60 = vmul.f32 %v3550_v17, %v7121_v49  ;;  %v3593_v2 = vmul.f32 %v3543_v41, %v7122_v0  ;;  %v7125_v49 = vld [vmem:[#allocation41_spill] sm:$0xff] }
0x21bb   :  { %v3608_v11 = vsel %vm151_vm1, %v3594_v60, 0.0  ;;  %v3601_v15 = vsel %vm151_vm1, %v3593_v2, 0.0 }
0x21bc   :  { %v3609_v16 = vrot.slane %v3608_v11, 4  ;;  %v3602_v14 = vrot.slane %v3601_v15, 4  ;;  %v3571_v32 = vpop.permute.xlu0 %3570  ;;  %v3557_v36 = vpop.permute.xlu1 %3556 }
0x21bd   :  { %v3597_v5 = vmul.f32 %v3571_v32, %v7123_v6  ;;  %v3595_v37 = vmul.f32 %v3557_v36, %v7124_v53 }
0x21be   :  { %v3610_v18 = vadd.f32 %v3609_v16, %v3608_v11  ;;  %v3603_v51 = vadd.f32 %v3602_v14, %v3601_v15 }
0x21bf   :  { %v3629_v50 = vsel %vm151_vm1, %v3597_v5, 0.0  ;;  %v3615_v13 = vsel %vm151_vm1, %v3595_v37, 0.0 }
0x21c0   :  { %v3611_v58 = vrot.slane %v3610_v18, 2  ;;  %v3604_v17 = vrot.slane %v3603_v51, 2  ;;  %v3630_v41 = vrot.slane %v3629_v50, 4  ;;  %v3616_v60 = vrot.slane %v3615_v13, 4  ;;  %v3585_v0 = vpop.permute.xlu0 %3584  ;;  %v3564_v2 = vpop.permute.xlu1 %3563 }
0x21c1   :  { %v3599_v47 = vmul.f32 %v3585_v0, %v7125_v49  ;;  %v3596_v25 = vmul.f32 %v3564_v2, %v7126_v56 }
0x21c2   :  { %v3612_v27 = vadd.f32 %v3611_v58, %v3610_v18  ;;  %v3631_v32 = vadd.f32 %v3630_v41, %v3629_v50  ;;  %v3617_v6 = vadd.f32 %v3616_v60, %v3615_v13  ;;  %v3605_v36 = vadd.f32 %v3604_v17, %v3603_v51 }
0x21c3   :  { %v3643_v11 = vsel %vm151_vm1, %v3599_v47, 0.0  ;;  %v3622_v15 = vsel %vm151_vm1, %v3596_v25, 0.0 }
0x21c4   :  { %v3618_v16 = vrot.slane %v3617_v6, 2  ;;  %v3578_v14 = vpop.permute.xlu1 %3577  ;;  %v3632_v5 = vrot.slane %v3631_v32, 2  ;;  %v3644_v37 = vrot.slane %v3643_v11, 4  ;;  %v3623_v53 = vrot.slane %v3622_v15, 4 }
0x21c5   :  { %v3598_v19 = vmul.f32 %v3578_v14, %v7127_v45  ;;  %v3613_v30 = vrot.slane %v3612_v27, 1  ;;  %v3606_v0 = vrot.slane %v3605_v36, 1 }
0x21c6   :  { %v3619_v35 = vadd.f32 %v3618_v16, %v3617_v6  ;;  %v3645_v49 = vadd.f32 %v3644_v37, %v3643_v11  ;;  %v3624_v2 = vadd.f32 %v3623_v53, %v3622_v15  ;;  %v3633_v47 = vadd.f32 %v3632_v5, %v3631_v32 }
0x21c7   :  { %v3636_v18 = vsel %vm151_vm1, %v3598_v19, 0.0  ;;  %v3614_v60 = vadd.f32 %v3613_v30, %v3612_v27  ;;  %v3607_v56 = vadd.f32 %v3606_v0, %v3605_v36 }
0x21c8   :  { %v3620_v50 = vrot.slane %v3619_v35, 1  ;;  %v3637_v51 = vrot.slane %v3636_v18, 4  ;;  %v3592_v13 = vpop.permute.xlu1 %3591  ;;  %v3646_v58 = vrot.slane %v3645_v49, 2  ;;  %v3625_v25 = vrot.slane %v3624_v2, 2 }
0x21c9   :  { %v3600_v17 = vmul.f32 %v3592_v13, %v7109_v22  ;;  %v3634_v53 = vrot.slane %v3633_v47, 1  ;;  %v3665_v32 = vsel %vm998_vm3, %v3614_v60, %v3607_v56 }
0x21ca   :  { %v3638_v41 = vadd.f32 %v3637_v51, %v3636_v18  ;;  %v3626_v1 = vadd.f32 %v3625_v25, %v3624_v2  ;;  %v3621_v6 = vadd.f32 %v3620_v50, %v3619_v35  ;;  %v3647_v15 = vadd.f32 %v3646_v58, %v3645_v49 }
0x21cb   :  { %v3650_v14 = vsel %vm151_vm1, %v3600_v17, 0.0  ;;  %v3635_v30 = vadd.f32 %v3634_v53, %v3633_v47 }
0x21cc   :  { %v3639_v16 = vrot.slane %v3638_v41, 2  ;;  %v3651_v11 = vrot.slane %v3650_v14, 4  ;;  %v3627_v19 = vrot.slane %v3626_v1, 1  ;;  %v3666_v18 = vsel %vm1000_vm4, %v3621_v6, %v3665_v32 }
0x21cd   :  { %v3648_v27 = vrot.slane %v3647_v15, 1 }
0x21ce   :  { %v3640_v37 = vadd.f32 %v3639_v16, %v3638_v41  ;;  %v3652_v45 = vadd.f32 %v3651_v11, %v3650_v14  ;;  %v3628_v39 = vadd.f32 %v3627_v19, %v3626_v1 }
0x21cf   :  { %v3649_v51 = vadd.f32 %v3648_v27, %v3647_v15 }
0x21d0   :  { %v3641_v5 = vrot.slane %v3640_v37, 1  ;;  %v3653_v20 = vrot.slane %v3652_v45, 2  ;;  %v3667_v36 = vsel %vm1002_vm5, %v3628_v39, %v3666_v18 }
0x21d1   :  { %v3668_v2 = vsel %vm1004_vm6, %v3635_v30, %v3667_v36 }
0x21d2   :  { %v3654_v0 = vadd.f32 %v3653_v20, %v3652_v45  ;;  %v3642_v35 = vadd.f32 %v3641_v5, %v3640_v37 }
0x21d4   :  { %v3655_v50 = vrot.slane %v3654_v0, 1  ;;  %v3669_v49 = vsel %vm1006_vm7, %v3642_v35, %v3668_v2 }
0x21d5   :  { %v3670_v56 = vsel %vm1008_vm8, %v3649_v51, %v3669_v49 }
0x21d6   :  { %v3656_v1 = vadd.f32 %v3655_v50, %v3654_v0 }
0x21d8   :  { %v3671_v13 = vsel %vm1010_vm9, %v3656_v1, %v3670_v56 }
0x21d9   :  { %4515 = vmatmul.mubr.msk.f32.vlgmr.msra.gmra.mrb[16].mxu1 %vm151_vm1, %v3671_v13 }
0x22ac   :  { %v3740_v47 = vpop.f32.mrb[16].mxu1 }
0x22ad   :  { %3746 = vrot.lane.b32.xlu0 %v3740_v47, %s5574_s29  ;;  %v3742_v39 = vpop.f32.mrb[17].mxu1 }
0x231f   :  { %v3747_v20 = vpop.permute.xlu0 %3746 }
0x2320   :  { %v3749_v45 = vadd.f32 %v3747_v20, %v6688_v63 }
0x2322   :  { %v3750_v58 = vadd.f32 %v3749_v45, %v6111_v38 }
0x2324   :  { %5277 = vtanh.f32 %v3750_v58 }
0x232e   :  { %v5278_v25 = vpop.eup %5277 }
0x232f   :  { %3753 = vrot.lane.b32.xlu1 %v5278_v25, %s5573_s28 }
0x23a1   :  { %v3754_v17 = vpop.permute.xlu1 %3753 }
0x23a2   :  { %4829 = vmatmul.mubr.msk.f32.vlgmr.msra.gmra.mrb[26].mxu0 %vm736_vm2, %v3754_v17 }
0x23a3   :  { %5478 = shalt.err (!%p6465_p4)  }
0x23a4   :  { %s6795_s21 = scalar_lea.hbm %s6985_s12, 512  ;;  %p5482_p7 = scmp.lt.u32.totalorder %s6635_s15, %s6985_s12 }
0x23a5   :  { %p5480_p6 = scmp.ne.s32.totalorder %s6635_s15, %s6795_s21  ;;  %p5483_p9 = scmp.lt.u32.totalorder %s6336_s19, %s6795_s21 }
0x23a6   :  { %p5485_p12 = scmp.lt.u32.totalorder %s6795_s21, %s6635_s15 }
0x23a7   :  { %p5484_p10 = por %p5483_p9, %p5482_p7 }
0x23a9   :  { %p5486_p11 = por %p5485_p12, %p5484_p10 }
0x23ab   :  { %p5487_p13 = pnand %p5486_p11, %p5480_p6 }
0x23ad   :  { %5490 = shalt.err (!%p5487_p13)  }
0x23ae   :  { %3220 = dma.vmem_to_hbm [thread:$0]  %s6457_s2, 128, %s6635_s15, [#allocation3 + $0x1]  ;;  %3855 = vrot.lane.b32.xlu1 %v3740_v47, %s5573_s28  ;;  %3847 = vrot.lane.b32.xlu0 %v6688_v63, %s5572_s27 }
0x2475   :  { %v3823_v41 = vpop.f32.mrb[26].mxu0 }
0x2476   :  { %v3824_v60 = vadd.f32 %v6135_v57, %v3823_v41  ;;  %v4830_v14 = vpop.f32.mrb[27].mxu0 }
0x2477   :  { %5552 = dma.done.wait [#allocation3], 128 }
0x2478   :  { %5553 = vsyncadd [#allocation3], 4294967168  ;;  %3829 = vst [vmem:[#allocation2] sm:$0xff] %v3824_v60  ;;  %5089 = vmatprep.subr.bf16.mxu0 %v7091_v7  ;;  %3954 = vmatprep.mubr.f32.mxu0 %v7065_v52 }
0x2479   :  { %5091 = vmatpush1.bf16.msra.mxu0 %v5850_v28  ;;  %5097 = vmatprep.subr.bf16.mxu1 %v7092_v31  ;;  %v3856_v28 = vpop.permute.xlu1 %3855 }
0x247a   :  { %5093 = vmatprep.subr.bf16.mxu0 %v5853_v29  ;;  %5099 = vmatpush1.bf16.msra.mxu1 %v6007_v62  ;;  %v3848_v29 = vpop.permute.xlu0 %3847  ;;  %v3845_v62 = vld [vmem:[#allocation6 + $0x20] sm:$0xff] }
0x247b   :  { %3857 = vrot.lane.b32.xlu1 %v3742_v39, %s5573_s28  ;;  %3849 = vrot.lane.b32.xlu0 %v6694_v40, %s5572_s27 }
0x247c   :  { %5101 = vmatprep.subr.bf16.mxu1 %v6011_v4  ;;  %4360 = vmatprep.mubr.f32.mxu1 %v7065_v52 }
0x247d   :  { %5095 = vmatpush1.bf16.msra.mxu0 %v5864_v33 }
0x247e   :  { %5103 = vmatpush1.bf16.msra.mxu1 %v6017_v12  ;;  %5112 = vmatprep.subr.bf16.mxu0 %v7066_v24 }
0x247f   :  { %5105 = vmatprep.subr.bf16.mxu1 %v6023_v21 }
0x2482   :  { %5107 = vmatpush1.bf16.msra.mxu1 %v6026_v26 }
0x2483   :  { %5109 = vmatprep.subr.bf16.mxu1 %v6030_v43 }
0x2486   :  { %5111 = vmatpush1.bf16.msra.mxu1 %v6032_v46 }
0x24ed   :  { %v3858_v4 = vpop.permute.xlu1 %3857  ;;  %v3850_v7 = vpop.permute.xlu0 %3849 }
0x24ee   :  { %v3851_v31 = vsel %vm151_vm1, %v3848_v29, %v3850_v7  ;;  %v3859_v12 = vsel %vm1359_vm12, %v3856_v28, %v3858_v4  ;;  %v7129_v28 = vld [vmem:[#allocation44_spill] sm:$0xff] }
0x24ef   :  { %v3853_v33 = vadd.f32 %v3851_v31, %v3845_v62 }
0x24f1   :  { %v3861_v63 = vadd.f32 %v3859_v12, %v3853_v33 }
0x24f3   :  { %v3862_v40 = vadd.f32 %v6078_v54, %v3861_v63 }
0x24f5   :  { %5279 = vtanh.f32 %v3862_v40  ;;  %v3863_v26 = vmul.f32 0.5, %v3862_v40 }
0x24f7   :  { %5281 = vtanh.f32 %v3863_v26 }
0x24ff   :  { %v5280_v21 = vpop.eup %5279 }
0x2500   :  { %3870 = vrot.lane.b32.xlu0 %v5280_v21, %s5572_s27 }
0x2501   :  { %v5282_v43 = vpop.eup %5281 }
0x2502   :  { %v3865_v46 = vmul.f32 0.5, %v5282_v43 }
0x2504   :  { %v3866_v6 = vadd.f32 0.5, %v3865_v46 }
0x2506   :  { %v3868_v53 = vmul.f32 %v3866_v6, %v6677_v59 }
0x2572   :  { %v3871_v16 = vpop.permute.xlu0 %3870 }
0x2573   :  { %v3873_v11 = vmul.f32 %v3871_v16, %v3866_v6 }
0x2575   :  { %3875 = vrot.lane.b32.xlu1 %v3873_v11, %s5574_s29 }
0x25e7   :  { %v3876_v15 = vpop.permute.xlu1 %3875 }
0x25e8   :  { %v3878_v19 = vadd.f32 %v3876_v15, %v3868_v53 }
0x25ea   :  { %5283 = vtanh.f32 %v3878_v19 }
0x25f4   :  { %v5284_v37 = vpop.eup %5283 }
0x25f5   :  { %3881 = vrot.lane.b32.xlu0 %v5284_v37, %s5572_s27 }
0x2667   :  { %v3882_v54 = vpop.permute.xlu0 %3881 }
0x2668   :  { %v3884_v32 = vmul.f32 %v3882_v54, %v3866_v6 }
0x266a   :  { %3886 = vrot.lane.b32.xlu1 %v3884_v32, %s5574_s29 }
0x26dc   :  { %v3887_v5 = vpop.permute.xlu1 %3886 }
0x26dd   :  { %4517 = vmatmul.mubr.msk.f32.vlgmr.msra.gmra.mrb[28].mxu0 %vm736_vm2, %v3887_v5  ;;  %v7130_v5 = vld [vmem:[#allocation45_spill] sm:$0xff] }
0x26de   :  { %5114 = vmatpush3.bf16.msra.mxu0 %v6095_v44  ;;  %4839 = vmatprep.mubr.msk.f32.mxu0 %vm5569_vm0, %v7065_v52 }
0x26df   :  { %5115 = vmatprep.subr.bf16.mxu0 %v7066_v24 }
0x26e2   :  { %5117 = vmatpush3.bf16.msra.mxu0 %v6107_v48 }
0x27b0   :  { %v6845_v59 = vpop.f32.mrb[28].mxu0 }
0x27b1   :  { %v3961_v18 = vcombine.high %v6845_v59, %v6845_v59  ;;  %v3968_v30 = vrot.slane %v6845_v59, %v5880_v55  ;;  %v3958_v27 = vpop.f32.mrb[29].mxu0 }
0x27b3   :  { %v3975_v36 = vrot.slane %v3961_v18, %v5880_v55  ;;  %v3976_v0 = vcombine.high %v3968_v30, %v3968_v30  ;;  %v3984_v44 = vrot.slane %v3968_v30, %v5880_v55 }
0x27b5   :  { %v3977_v35 = vcombine.high %v3975_v36, %v3975_v36  ;;  %v3991_v52 = vrot.slane %v3975_v36, %v5880_v55  ;;  %v3998_v24 = vrot.slane %v3976_v0, %v5880_v55  ;;  %v4013_v48 = vrot.slane %v3984_v44, %v5894_v61 }
0x27b6   :  { %v4006_v2 = vcombine.high %v3984_v44, %v3984_v44 }
0x27b7   :  { %v4005_v50 = vrot.slane %v3977_v35, %v5880_v55  ;;  %v4050_v49 = vadd.f32 %v4013_v48, %v5898_v3  ;;  %v4017_v51 = vrot.slane %v3998_v24, %v5894_v61  ;;  %v4029_v1 = vrot.slane %v3991_v52, %v5894_v61 }
0x27b8   :  { %v4021_v56 = vrot.slane %v4006_v2, %v5894_v61  ;;  %v4008_v13 = vcombine.high %v3998_v24, %v3998_v24  ;;  %v4007_v47 = vcombine.high %v3991_v52, %v3991_v52 }
0x27b9   :  { %5285 = vtanh.f32 %v4050_v49  ;;  %v4051_v39 = vadd.f32 %v4017_v51, %v5904_v9  ;;  %v4054_v20 = vadd.f32 %v4029_v1, %v5911_v23  ;;  %v4033_v45 = vrot.slane %v4005_v50, %v5894_v61 }
0x27ba   :  { %v4052_v58 = vadd.f32 %v4021_v56, %v5902_v8  ;;  %v4025_v55 = vrot.slane %v4008_v13, %v5894_v61  ;;  %v4037_v3 = vrot.slane %v4007_v47, %v5894_v61  ;;  %v4009_v25 = vcombine.high %v4005_v50, %v4005_v50  ;;  %v7128_v8 = vld [vmem:[#allocation43_spill] sm:$0xff] }
0x27bb   :  { %5287 = vtanh.f32 %v4051_v39  ;;  %v4055_v9 = vadd.f32 %v4033_v45, %v5918_v34 }
0x27bc   :  { %5289 = vtanh.f32 %v4052_v58  ;;  %v4053_v17 = vadd.f32 %v4025_v55, %v5906_v10  ;;  %v4056_v41 = vadd.f32 %v4037_v3, %v5927_v42  ;;  %v4041_v23 = vrot.slane %v4009_v25, %v5894_v61  ;;  %v7131_v58 = vld [vmem:[#allocation46_spill] sm:$0xff] }
0x27bd   :  { %5291 = vtanh.f32 %v4054_v20 }
0x27be   :  { %5293 = vtanh.f32 %v4053_v17  ;;  %v4057_v60 = vadd.f32 %v4041_v23, %v7128_v8 }
0x27bf   :  { %5295 = vtanh.f32 %v4056_v41 }
0x27c0   :  { %5297 = vtanh.f32 %v4055_v9 }
0x27c1   :  { %5299 = vtanh.f32 %v4057_v60 }
0x27c3   :  { %v5286_v14 = vpop.eup %5285 }
0x27c4   :  { %v4066_v29 = vmul.f32 %v5286_v14, %v7129_v28 }
0x27c5   :  { %v5288_v62 = vpop.eup %5287 }
0x27c6   :  { %v5290_v4 = vpop.eup %5289  ;;  %v4074_v10 = vsel %vm736_vm2, %v4066_v29, 0.0  ;;  %v4067_v42 = vmul.f32 %v5288_v62, %v7129_v28  ;;  %v7132_v29 = vld [vmem:[#allocation47_spill] sm:$0xff] }
0x27c7   :  { %v5292_v7 = vpop.eup %5291  ;;  %4075 = vadd.xlane.f32.xlu0 %v4074_v10  ;;  %v4068_v34 = vmul.f32 %v5290_v4, %v7129_v28  ;;  %v7133_v10 = vld [vmem:[#allocation49_spill] sm:$0xff] }
0x27c8   :  { %v5294_v31 = vpop.eup %5293  ;;  %v4077_v33 = vsel %vm736_vm2, %v4067_v42, 0.0  ;;  %v4070_v12 = vmul.f32 %v5292_v7, %v7129_v28  ;;  %v7134_v7 = vld [vmem:[#allocation48_spill] sm:$0xff] }
0x27c9   :  { %v5296_v63 = vpop.eup %5295  ;;  %4078 = vadd.xlane.f32.xlu1 %v4077_v33  ;;  %v4080_v40 = vsel %vm736_vm2, %v4068_v34, 0.0  ;;  %v4069_v21 = vmul.f32 %v5294_v31, %v7129_v28  ;;  %v7135_v31 = vld [vmem:[#allocation51_spill] sm:$0xff] }
0x27ca   :  { %v5298_v26 = vpop.eup %5297  ;;  %v4086_v43 = vsel %vm736_vm2, %v4070_v12, 0.0  ;;  %v4072_v46 = vmul.f32 %v5296_v63, %v7129_v28  ;;  %v7136_v12 = vld [vmem:[#allocation50_spill] sm:$0xff] }
0x27cb   :  { %4081 = vadd.xlane.f32.xlu0 %v4080_v40  ;;  %v4083_v6 = vsel %vm736_vm2, %v4069_v21, 0.0  ;;  %v4071_v16 = vmul.f32 %v5298_v26, %v7129_v28  ;;  %v5300_v11 = vpop.eup %5299  ;;  %v7137_v40 = vld [vmem:[#allocation53_spill] sm:$0xff]  ;;  %v7138_v26 = vld [vmem:[#allocation54_spill] sm:$0xff] }
0x27cc   :  { %v4092_v53 = vsel %vm736_vm2, %v4072_v46, 0.0  ;;  %v4073_v19 = vmul.f32 %v5300_v11, %v7129_v28  ;;  %v7140_v11 = vld [vmem:[#allocation34_spill] sm:$0xff] }
0x27cd   :  { %4087 = vadd.xlane.f32.xlu1 %v4086_v43  ;;  %v4089_v15 = vsel %vm736_vm2, %v4071_v16, 0.0 }
0x27ce   :  { %v4095_v37 = vsel %vm736_vm2, %v4073_v19, 0.0 }
0x27cf   :  { %4084 = vadd.xlane.f32.xlu0 %v4083_v6  ;;  %v7139_v6 = vld [vmem:[#allocation35_spill] sm:$0xff] }
0x27d1   :  { %4093 = vadd.xlane.f32.xlu1 %v4092_v53 }
0x27d3   :  { %4090 = vadd.xlane.f32.xlu0 %v4089_v15 }
0x27d7   :  { %4096 = vadd.xlane.f32.xlu0 %v4095_v37 }
0x2854   :  { %v4076_v54 = vpop.xlane.xlu0 %4075 }
0x2855   :  { %v4109_v27 = vrot.slane %v4076_v54, %v7130_v5 }
0x2856   :  { %v4079_v32 = vpop.xlane.xlu1 %4078 }
0x2857   :  { %v4113_v18 = vrot.slane %v4079_v32, %v7130_v5 }
0x2858   :  { %v4082_v30 = vpop.xlane.xlu0 %4081 }
0x2859   :  { %v4117_v36 = vrot.slane %v4082_v30, %v7130_v5  ;;  %v4138_v0 = vsel %vm998_vm3, %v4113_v18, %v4109_v27  ;;  %v7141_v18 = vld [vmem:[#allocation38_spill] sm:$0xff]  ;;  %v7142_v27 = vld [vmem:[#allocation36_spill] sm:$0xff] }
0x285a   :  { %v4088_v44 = vpop.xlane.xlu1 %4087 }
0x285b   :  { %v4139_v24 = vsel %vm1000_vm4, %v4117_v36, %v4138_v0  ;;  %v4125_v2 = vrot.slane %v4088_v44, %v7130_v5 }
0x285c   :  { %v4085_v35 = vpop.xlane.xlu0 %4084 }
0x285d   :  { %v4121_v52 = vrot.slane %v4085_v35, %v7130_v5 }
0x285e   :  { %v4094_v49 = vpop.xlane.xlu1 %4093 }
0x285f   :  { %v4140_v48 = vsel %vm1002_vm5, %v4121_v52, %v4139_v24  ;;  %v4133_v13 = vrot.slane %v4094_v49, %v7130_v5 }
0x2860   :  { %v4091_v50 = vpop.xlane.xlu0 %4090  ;;  %v4141_v1 = vsel %vm1004_vm6, %v4125_v2, %v4140_v48 }
0x2861   :  { %v4129_v51 = vrot.slane %v4091_v50, %v7130_v5 }
0x2863   :  { %v4142_v56 = vsel %vm1006_vm7, %v4129_v51, %v4141_v1  ;;  %v7143_v1 = vld [vmem:[#allocation41_spill] sm:$0xff] }
0x2864   :  { %v4097_v47 = vpop.xlane.xlu0 %4096  ;;  %v4143_v20 = vsel %vm1008_vm8, %v4133_v13, %v4142_v56  ;;  %v7144_v13 = vld [vmem:[#allocation37_spill] sm:$0xff] }
0x2865   :  { %v4137_v39 = vrot.slane %v4097_v47, %v7130_v5 }
0x2867   :  { %v4144_v45 = vsel %vm1010_vm9, %v4137_v39, %v4143_v20 }
0x2868   :  { %v4146_v55 = vsel %vm955_vm10, %v4144_v45, -1e+10 }
0x2869   :  { %v4147_v3 = vsel %vm1014_vm11, %v4146_v55, -inf }
0x286a   :  { %4148 = vmax.xlane.f32.xlu1 %v4147_v3 }
0x28f7   :  { %v4149_v25 = vpop.xlane.xlu1 %4148 }
0x28f8   :  { %v4150_v17 = vsub.f32 %v4146_v55, %v4149_v25 }
0x28fa   :  { %v4151_v41 = vmul.f32 1.442695, %v4150_v17 }
0x28fc   :  { %5301 = vpow2.f32 %v4151_v41 }
0x2906   :  { %v5302_v9 = vpop.eup %5301 }
0x2907   :  { %v4153_v23 = vmul.f32 %v5302_v9, %v7131_v58 }
0x2909   :  { %v4154_v8 = vsel %vm1014_vm11, %v4153_v23, 0.0 }
0x290a   :  { %4155 = vadd.xlane.f32.xlu0 %v4154_v8  ;;  %v7145_v8 = vld [vmem:[#allocation39_spill] sm:$0xff] }
0x2997   :  { %v4156_v60 = vpop.xlane.xlu0 %4155 }
0x2998   :  { %5303 = vrcp.f32 %v4156_v60 }
0x29a2   :  { %v5304_v14 = vpop.eup %5303 }
0x29a3   :  { %v4158_v28 = vmul.f32 %v5304_v14, %v4153_v23 }
0x29a5   :  { %v4169_v62 = vrot.slane %v4158_v28, %v7132_v29  ;;  %v4162_v4 = vrot.slane %v4158_v28, %v5894_v61  ;;  %v4190_v42 = vrot.slane %v4158_v28, %v7133_v10  ;;  %v4176_v34 = vrot.slane %v4158_v28, %v7134_v7 }
0x29a6   :  { %v4204_v33 = vrot.slane %v4158_v28, %v7135_v31  ;;  %v4183_v63 = vrot.slane %v4158_v28, %v7136_v12  ;;  %v4197_v21 = vrot.slane %v4158_v28, %v7137_v40  ;;  %v4211_v43 = vrot.slane %v4158_v28, %v7138_v26 }
0x29a7   :  { %4171 = vbcast.lane.b32.xlu0 %v4169_v62, 256  ;;  %4164 = vbcast.lane.b32.xlu1 %v4162_v4, 256 }
0x29ab   :  { %4192 = vbcast.lane.b32.xlu0 %v4190_v42, 256  ;;  %4178 = vbcast.lane.b32.xlu1 %v4176_v34, 256 }
0x29af   :  { %4206 = vbcast.lane.b32.xlu0 %v4204_v33, 256  ;;  %4185 = vbcast.lane.b32.xlu1 %v4183_v63, 256 }
0x29b3   :  { %4199 = vbcast.lane.b32.xlu1 %v4197_v21, 256 }
0x29b7   :  { %4213 = vbcast.lane.b32.xlu1 %v4211_v43, 256 }
0x2a19   :  { %v4172_v61 = vpop.permute.xlu0 %4171  ;;  %v4165_v46 = vpop.permute.xlu1 %4164 }
0x2a1a   :  { %v4216_v16 = vmul.f32 %v4172_v61, %v7139_v6  ;;  %v4215_v53 = vmul.f32 %v4165_v46, %v7140_v11 }
0x2a1c   :  { %v4230_v15 = vsel %vm151_vm1, %v4216_v16, 0.0  ;;  %v4223_v19 = vsel %vm151_vm1, %v4215_v53, 0.0 }
0x2a1d   :  { %v4231_v37 = vrot.slane %v4230_v15, 4  ;;  %v4224_v54 = vrot.slane %v4223_v19, 4  ;;  %v4193_v32 = vpop.permute.xlu0 %4192  ;;  %v4179_v5 = vpop.permute.xlu1 %4178 }
0x2a1e   :  { %v4219_v30 = vmul.f32 %v4193_v32, %v7141_v18  ;;  %v4217_v36 = vmul.f32 %v4179_v5, %v7142_v27 }
0x2a1f   :  { %v4232_v0 = vadd.f32 %v4231_v37, %v4230_v15  ;;  %v4225_v44 = vadd.f32 %v4224_v54, %v4223_v19 }
0x2a20   :  { %v4251_v35 = vsel %vm151_vm1, %v4219_v30, 0.0  ;;  %v4237_v52 = vsel %vm151_vm1, %v4217_v36, 0.0 }
0x2a21   :  { %v4233_v24 = vrot.slane %v4232_v0, 2  ;;  %v4226_v48 = vrot.slane %v4225_v44, 2  ;;  %v4252_v2 = vrot.slane %v4251_v35, 4  ;;  %v4238_v50 = vrot.slane %v4237_v52, 4  ;;  %v4207_v49 = vpop.permute.xlu0 %4206  ;;  %v4186_v51 = vpop.permute.xlu1 %4185 }
0x2a22   :  { %v4221_v56 = vmul.f32 %v4207_v49, %v7143_v1  ;;  %v4218_v47 = vmul.f32 %v4186_v51, %v7144_v13 }
0x2a23   :  { %v4234_v39 = vadd.f32 %v4233_v24, %v4232_v0  ;;  %v4253_v20 = vadd.f32 %v4252_v2, %v4251_v35  ;;  %v4239_v45 = vadd.f32 %v4238_v50, %v4237_v52  ;;  %v4227_v58 = vadd.f32 %v4226_v48, %v4225_v44 }
0x2a24   :  { %v4265_v55 = vsel %vm151_vm1, %v4221_v56, 0.0  ;;  %v4244_v3 = vsel %vm151_vm1, %v4218_v47, 0.0 }
0x2a25   :  { %v4240_v25 = vrot.slane %v4239_v45, 2  ;;  %v4200_v17 = vpop.permute.xlu1 %4199  ;;  %v4254_v41 = vrot.slane %v4253_v20, 2  ;;  %v4266_v9 = vrot.slane %v4265_v55, 4  ;;  %v4245_v23 = vrot.slane %v4244_v3, 4 }
0x2a26   :  { %v4220_v60 = vmul.f32 %v4200_v17, %v7145_v8  ;;  %v4235_v14 = vrot.slane %v4234_v39, 1  ;;  %v4228_v29 = vrot.slane %v4227_v58, 1 }
0x2a27   :  { %v4241_v28 = vadd.f32 %v4240_v25, %v4239_v45  ;;  %v4267_v62 = vadd.f32 %v4266_v9, %v4265_v55  ;;  %v4246_v4 = vadd.f32 %v4245_v23, %v4244_v3  ;;  %v4255_v31 = vadd.f32 %v4254_v41, %v4253_v20 }
0x2a28   :  { %v4258_v10 = vsel %vm151_vm1, %v4220_v60, 0.0  ;;  %v4236_v21 = vadd.f32 %v4235_v14, %v4234_v39  ;;  %v4229_v26 = vadd.f32 %v4228_v29, %v4227_v58 }
0x2a29   :  { %v4242_v42 = vrot.slane %v4241_v28, 1  ;;  %v4259_v7 = vrot.slane %v4258_v10, 4  ;;  %v4214_v34 = vpop.permute.xlu1 %4213  ;;  %v4268_v33 = vrot.slane %v4267_v62, 2  ;;  %v4247_v12 = vrot.slane %v4246_v4, 2 }
0x2a2a   :  { %v4222_v63 = vmul.f32 %v4214_v34, %v7109_v22  ;;  %v4256_v11 = vrot.slane %v4255_v31, 1  ;;  %v4287_v32 = vsel %vm998_vm3, %v4236_v21, %v4229_v26 }
0x2a2b   :  { %v4260_v40 = vadd.f32 %v4259_v7, %v4258_v10  ;;  %v4248_v43 = vadd.f32 %v4247_v12, %v4246_v4  ;;  %v4243_v46 = vadd.f32 %v4242_v42, %v4241_v28  ;;  %v4269_v53 = vadd.f32 %v4268_v33, %v4267_v62 }
0x2a2c   :  { %v4272_v61 = vsel %vm151_vm1, %v4222_v63, 0.0  ;;  %v4257_v30 = vadd.f32 %v4256_v11, %v4255_v31 }
0x2a2d   :  { %v4261_v6 = vrot.slane %v4260_v40, 2  ;;  %v4273_v16 = vrot.slane %v4272_v61, 4  ;;  %v4249_v15 = vrot.slane %v4248_v43, 1  ;;  %v4288_v22 = vsel %vm1000_vm4, %v4243_v46, %v4287_v32 }
0x2a2e   :  { %v4270_v27 = vrot.slane %v4269_v53, 1 }
0x2a2f   :  { %v4262_v19 = vadd.f32 %v4261_v6, %v4260_v40  ;;  %v4274_v37 = vadd.f32 %v4273_v16, %v4272_v61  ;;  %v4250_v54 = vadd.f32 %v4249_v15, %v4248_v43 }
0x2a30   :  { %v4271_v48 = vadd.f32 %v4270_v27, %v4269_v53 }
0x2a31   :  { %v4263_v5 = vrot.slane %v4262_v19, 1  ;;  %v4275_v18 = vrot.slane %v4274_v37, 2  ;;  %v4289_v36 = vsel %vm1002_vm5, %v4250_v54, %v4288_v22 }
0x2a32   :  { %v4290_v35 = vsel %vm1004_vm6, %v4257_v30, %v4289_v36 }
0x2a33   :  { %v4276_v0 = vadd.f32 %v4275_v18, %v4274_v37  ;;  %v4264_v44 = vadd.f32 %v4263_v5, %v4262_v19 }
0x2a35   :  { %v4277_v52 = vrot.slane %v4276_v0, 1  ;;  %v4291_v24 = vsel %vm1006_vm7, %v4264_v44, %v4290_v35 }
0x2a36   :  { %v4292_v50 = vsel %vm1008_vm8, %v4271_v48, %v4291_v24 }
0x2a37   :  { %v4278_v2 = vadd.f32 %v4277_v52, %v4276_v0 }
0x2a39   :  { %v4293_v49 = vsel %vm1010_vm9, %v4278_v2, %v4292_v50 }
0x2a3a   :  { %4518 = vmatmul.mubr.msk.f32.vlgmr.msra.gmra.mrb[18].mxu1 %vm151_vm1, %v4293_v49 }
0x2b0d   :  { %v4362_v51 = vpop.f32.mrb[18].mxu1 }
0x2b0e   :  { %4367 = vrot.lane.b32.xlu0 %v4362_v51, %s5574_s29  ;;  %v4364_v1 = vpop.f32.mrb[19].mxu1 }
0x2b80   :  { %v4368_v56 = vpop.permute.xlu0 %4367 }
0x2b81   :  { %v4370_v13 = vadd.f32 %v4368_v56, %v6845_v59 }
0x2b83   :  { %v4371_v47 = vadd.f32 %v4370_v13, %v6111_v38 }
0x2b85   :  { %5305 = vtanh.f32 %v4371_v47 }
0x2b8f   :  { %v5306_v39 = vpop.eup %5305 }
0x2b90   :  { %4374 = vrot.lane.b32.xlu1 %v5306_v39, %s5573_s28 }
0x2c02   :  { %v4375_v20 = vpop.permute.xlu1 %4374 }
0x2c03   :  { %4840 = vmatmul.mubr.msk.f32.vlgmr.msra.gmra.mrb[30].mxu0 %vm736_vm2, %v4375_v20 }
0x2c04   :  { %5503 = shalt.err (!%p6318_p8)  }
0x2c05   :  { %s5516_s29 = scalar_lea.hbm %s6985_s12, 640  ;;  %p5507_p1 = scmp.lt.u32.totalorder %s6795_s21, %s6985_s12 }
0x2c06   :  { %p5505_p0 = scmp.ne.s32.totalorder %s6795_s21, %s5516_s29  ;;  %p5508_p2 = scmp.lt.u32.totalorder %s6336_s19, %s5516_s29 }
0x2c07   :  { %p5510_p5 = scmp.lt.u32.totalorder %s5516_s29, %s6795_s21 }
0x2c08   :  { %p5509_p3 = por %p5508_p2, %p5507_p1 }
0x2c0a   :  { %p5511_p6 = por %p5510_p5, %p5509_p3 }
0x2c0c   :  { %p5512_p8 = pnand %p5511_p6, %p5505_p0 }
0x2c0e   :  { %5515 = shalt.err (!%p5512_p8)  }
0x2c0f   :  { %3843 = dma.vmem_to_hbm [thread:$0]  %s6309_s13, 128, %s6795_s21, [#allocation3] }
0x2cd6   :  { %v4444_v38 = vpop.f32.mrb[30].mxu0 }
0x2cd7   :  { %v4445_v59 = vadd.f32 %v6135_v57, %v4444_v38  ;;  %v4841_v45 = vpop.f32.mrb[31].mxu0 }
0x2cd8   :  { %5554 = dma.done.wait [#allocation3 + $0x1], 128 }
0x2cd9   :  { %5555 = vsyncadd [#allocation3 + $0x1], 4294967168  ;;  %4450 = vst [vmem:[#allocation2 + $0x8] sm:$0xff] %v4445_v59 }
0x2cda   :  { %5528 = shalt.err (!%p6465_p4)  }
0x2cdb   :  { %p5530_p7 = scmp.ne.s32.totalorder %s5516_s29, %s6336_s19  ;;  %p5532_p9 = scmp.lt.u32.totalorder %s5516_s29, %s6985_s12 }
0x2cdc   :  { %p5533_p10 = scmp.lt.u32.totalorder %s6336_s19, %s6336_s19 }
0x2cde   :  { %p5534_p12 = por %p5533_p10, %p5532_p9 }
0x2ce0   :  { %p5536_p11 = por %p5534_p12, %p5508_p2 }
0x2ce2   :  { %p5537_p13 = pnand %p5536_p11, %p5530_p7 }
0x2ce4   :  { %5540 = shalt.err (!%p5537_p13)  }
0x2ce5   :  { %4464 = dma.vmem_to_hbm [thread:$0]  %s6457_s2, 128, %s5516_s29, [#allocation3 + $0x1] }
0x2ce6   :  { %5556 = dma.done.wait [#allocation3], 128 }
0x2ce7   :  { %5557 = vsyncadd [#allocation3], 4294967168 }
0x2ce8   :  { %5558 = dma.done.wait [#allocation3 + $0x1], 128 }
0x2ce9   :  { %5559 = vsyncadd [#allocation3 + $0x1], 4294967168 }
0x2cea   :  { %4469 = vsyncpa [#allocation5], 1 }
0x2ceb   :  { %4470 = vsyncpa [#allocation7], 1 }
0x2cec   :  { %4471 = vsyncpa [#allocation10], 1 }
0x2ced   :  { %4472 = vsyncmov [#allocation3] }
0x2cf0   :  { %s4473_s13 = vpop.sfrf %4472 }
0x2cf1   :  { %p4520_p4 = scmp.ne.s32.totalorder %s4473_s13, 0 }
0x2cf3   :  { %4477 = shalt.err (%p4520_p4)  }
0x2cf4   :  { %4479 = vsyncmov [#allocation3 + $0x1] }
0x2cf7   :  { %s4480_s12 = vpop.sfrf %4479 }
0x2cf8   :  { %p4521_p0 = scmp.ne.s32.totalorder %s4480_s12, 0 }
0x2cfa   :  { %4484 = shalt.err (%p4521_p0)  }

</bundles_post_ra>
